<compile_context>
chip_gen: v7x
topology: tpu7x:2x2x1
jax: 0.10.0
libtpu: 0.0.40
codegen_flags: <defaults>
</compile_context>

<pallas_src>
import math

import jax
import jax.numpy as jnp
from jax import lax
from jax.experimental import pallas as pl
from jax.experimental.pallas import tpu as pltpu

K = 8
J = 8
HIDDEN = [256, 512, 512, 512, 512, 512, 256]
OUT = K * J            # 64 real output features
OUT_PAD = 128          # lane-dense padded output width
IN_RAW = 3 * K         # 24 circular-encoded features
IN_PAD = 32            # padded to a clean sublane multiple
EPS = 1e-5
F32 = jnp.float32
BF16 = jnp.bfloat16


def _round_up(n, m):
    return ((n + m - 1) // m) * m


def _layernorm(h, g, b, n):
    # One-pass LN: two independent row reductions, var = E[x^2] - mean^2.
    # `n` is the number of *real* features (padded lanes contribute zero).
    inv_n = 1.0 / float(n)
    mu = jnp.sum(h, axis=-1, keepdims=True) * inv_n
    ex2 = jnp.sum(h * h, axis=-1, keepdims=True) * inv_n
    var = ex2 - mu * mu
    return (h - mu) * lax.rsqrt(var + EPS) * g + b


def _gelu(x):
    # tanh-approx GELU (runs on the EUP slot).  ~1e-3 deviation from
    # torch.nn.GELU()'s exact erf form; swap back to
    # 0.5*x*(1+erf(x*0.70710678)) if exact parity is required.
    c = 0.7978845608028654  # sqrt(2/pi)
    return 0.5 * x * (1.0 + jnp.tanh(c * (x + 0.044715 * x * x * x)))


def lorenz96_kernel(x_ref,
                    wi_ref, bi_ref, gi_ref, hi_ref,
                    wa_ref, ba_ref, ga_ref, ha_ref,
                    w0_ref, b0_ref, g0_ref, h0_ref,
                    wm_ref, bm_ref, gm_ref, hm_ref,
                    w5_ref, b5_ref, g5_ref, h5_ref,
                    wy_ref, by_ref, gy_ref, hy_ref,
                    out_ref):
    xb = x_ref[...].astype(BF16)                                     # (TB, 32)

    # ---- input layer: Linear -> LayerNorm -> GELU (Dropout = identity) -----
    h = jnp.dot(xb, wi_ref[...], preferred_element_type=F32) + bi_ref[...]
    h = _gelu(_layernorm(h, gi_ref[...], hi_ref[...], HIDDEN[0]))
    hb = h.astype(BF16)                                              # (TB, 256)

    # ---- self-attention with seq_len == 1 -----------------------------------
    # softmax over a single key is exactly 1, so attn_out == out_proj(v_proj(h));
    # wa/ba are the pre-folded product of v_proj and out_proj.
    attn = jnp.dot(hb, wa_ref[...], preferred_element_type=F32) + ba_ref[...]
    h = _layernorm(hb.astype(F32) + attn, ga_ref[...], ha_ref[...], HIDDEN[0])
    hb = h.astype(BF16)                                              # (TB, 256)

    # ---- residual block 0: 256 -> 512, fused [main | shortcut] matmul ------
    t = jnp.dot(hb, w0_ref[...], preferred_element_type=F32) + b0_ref[...]
    main, short = t[:, :HIDDEN[1]], t[:, HIDDEN[1]:]
    h = _gelu(_layernorm(main, g0_ref[...], h0_ref[...], HIDDEN[1])) + short
    hb = h.astype(BF16)                                              # (TB, 512)

    # ---- residual blocks 1..4: 512 -> 512, identity shortcut ---------------
    def body(i, hc):
        t = jnp.dot(hc, wm_ref[i], preferred_element_type=F32) + bm_ref[i]
        t = _gelu(_layernorm(t, gm_ref[i], hm_ref[i], 512))
        return (t + hc.astype(F32)).astype(BF16)

    hb = lax.fori_loop(0, 4, body, hb, unroll=True)                  # (TB, 512)

    # ---- residual block 5: 512 -> 256, fused [main | shortcut] matmul ------
    t = jnp.dot(hb, w5_ref[...], preferred_element_type=F32) + b5_ref[...]
    main, short = t[:, :HIDDEN[6]], t[:, HIDDEN[6]:]
    h = _gelu(_layernorm(main, g5_ref[...], h5_ref[...], HIDDEN[6])) + short
    hb = h.astype(BF16)                                              # (TB, 256)

    # ---- output layer: Linear -> LayerNorm (lane-padded 64 -> 128) ---------
    # padded weight/gamma/beta columns are zero, so LN statistics (divided by
    # the real width OUT=64) and the padded outputs are exact.
    y = jnp.dot(hb, wy_ref[...], preferred_element_type=F32) + by_ref[...]
    out_ref[...] = _layernorm(y, gy_ref[...], hy_ref[...], OUT)      # (TB, 128)


def init_params(seed=0):
    """Deterministic Kaiming-normal (fan_in, relu) weights, zero biases,
    unit/zero LayerNorm affine params.  Attention v/out projections and the
    projection-block shortcuts are pre-folded; weights are stored bf16."""
    keys = iter(jax.random.split(jax.random.PRNGKey(seed), 16))

    def lin(fin, fout):
        std = math.sqrt(2.0 / fin)
        w = jax.random.normal(next(keys), (fin, fout), F32) * std
        b = jnp.zeros((1, fout), F32)
        return w, b

    def ln(n):
        return jnp.ones((1, n), F32), jnp.zeros((1, n), F32)

    # input Linear generated for 24 real features, zero-padded to 32 rows
    wi24, bi = lin(IN_RAW, HIDDEN[0])
    wi = jnp.zeros((IN_PAD, HIDDEN[0]), F32).at[:IN_RAW].set(wi24).astype(BF16)
    gi, hi = ln(HIDDEN[0])

    # attention (seq_len == 1 => softmax == 1): fold v_proj and out_proj
    wv, bv = lin(HIDDEN[0], HIDDEN[0])
    wo, bo = lin(HIDDEN[0], HIDDEN[0])
    wa = (wv @ wo).astype(BF16)
    ba = bv @ wo + bo
    ga, ha = ln(HIDDEN[0])

    # residual block 0 (256 -> 512): main + linear shortcut concatenated
    w0, b0 = lin(HIDDEN[0], HIDDEN[1])
    ws0, bs0 = lin(HIDDEN[0], HIDDEN[1])
    w0c = jnp.concatenate([w0, ws0], axis=1).astype(BF16)    # (256, 1024)
    b0c = jnp.concatenate([b0, bs0], axis=1)                  # (1, 1024)
    g0, h0 = ln(HIDDEN[1])

    # residual blocks 1..4 (512 -> 512, identity shortcut), stacked
    wm_l, bm_l = [], []
    for _ in range(4):
        w, b = lin(512, 512)
        wm_l.append(w.astype(BF16))
        bm_l.append(b)
    wm = jnp.stack(wm_l)                      # (4, 512, 512) bf16
    bm = jnp.stack(bm_l)                      # (4, 1, 512)   f32
    gm = jnp.ones((4, 1, 512), F32)
    hm = jnp.zeros((4, 1, 512), F32)

    # residual block 5 (512 -> 256): main + linear shortcut concatenated
    w5, b5 = lin(HIDDEN[5], HIDDEN[6])
    ws5, bs5 = lin(HIDDEN[5], HIDDEN[6])
    w5c = jnp.concatenate([w5, ws5], axis=1).astype(BF16)     # (512, 512)
    b5c = jnp.concatenate([b5, bs5], axis=1)                   # (1, 512)
    g5, h5 = ln(HIDDEN[6])

    # output layer, lane-padded 64 -> 128 (zero weight/bias/gamma/beta cols)
    wy64, by64 = lin(HIDDEN[6], OUT)
    wy = jnp.zeros((HIDDEN[6], OUT_PAD), F32).at[:, :OUT].set(wy64).astype(BF16)
    by = jnp.zeros((1, OUT_PAD), F32).at[:, :OUT].set(by64)
    gy = jnp.zeros((1, OUT_PAD), F32).at[:, :OUT].set(1.0)
    hy = jnp.zeros((1, OUT_PAD), F32)

    return (wi, bi, gi, hi,
            wa, ba, ga, ha,
            w0c, b0c, g0, h0,
            wm, bm, gm, hm,
            w5c, b5c, g5, h5,
            wy, by, gy, hy)


def _const_spec(shape):
    """Weight/bias spec: full-shape block, resident across the batch grid."""
    nd = len(shape)
    return pl.BlockSpec(tuple(shape), lambda i, _nd=nd: (0,) * _nd)


def lorenz96_forward(x, params):
    """x: (B, K) float32 -> (B, K*J) float32."""
    B = x.shape[0]

    # CircularEncoding (cheap glue, done outside the kernel) + pad 24 -> 32
    angles = 2.0 * math.pi * jnp.arange(K, dtype=F32) / K
    sin_f = jnp.broadcast_to(jnp.sin(angles), (B, K))
    cos_f = jnp.broadcast_to(jnp.cos(angles), (B, K))
    pad_f = jnp.zeros((B, IN_PAD - IN_RAW), F32)
    xe = jnp.concatenate([x, sin_f, cos_f, pad_f], axis=1)           # (B, 32)

    # Batch tile: cap at 512 rows but guarantee >= 2 grid steps whenever
    # B > 8 so dimension_semantics=("parallel",) can actually shard the batch
    # axis across both TensorCores on v7x.
    # TODO(synk): on v5e/v6e (128 MiB VMEM) raise TB to 1024 and
    #             vmem_limit_bytes accordingly for very large B.
    if B <= 8:
        TB = 8
    else:
        TB = min(512, _round_up(pl.cdiv(B, 2), 8))
    Bp = _round_up(B, TB)
    if Bp != B:
        xe = jnp.pad(xe, ((0, Bp - B), (0, 0)))

    x_spec = pl.BlockSpec((TB, IN_PAD), lambda i: (i, 0))
    out_spec = pl.BlockSpec((TB, OUT_PAD), lambda i: (i, 0))
    w_specs = [_const_spec(p.shape) for p in params]

    out = pl.pallas_call(
        lorenz96_kernel,
        out_shape=jax.ShapeDtypeStruct((Bp, OUT_PAD), F32),
        grid=(Bp // TB,),
        in_specs=[x_spec] + w_specs,
        out_specs=out_spec,
        compiler_params=pltpu.CompilerParams(
            dimension_semantics=("parallel",),
            vmem_limit_bytes=32 << 20,
        ),
    )(xe, *params)
    return out[:B, :OUT]


if __name__ == "__main__":
    B = 64
    params = init_params(0)
    x = jax.random.normal(jax.random.PRNGKey(0), (B, K), F32)

    out = lorenz96_forward(x, params)
    out = jax.block_until_ready(out)

    assert out.shape == (B, OUT), out.shape
    assert bool(jnp.all(jnp.isfinite(out)))
    print("KERNEL_OK")
</pallas_src>

<mosaic_0001>
module attributes {stable_mosaic.version = 11 : i64} {
  func.func @lorenz96_kernel(%arg0: i32, %arg1: memref<32x32xf32, #tpu.memory_space<vmem>>, %arg2: memref<32x256xbf16, #tpu.memory_space<vmem>>, %arg3: memref<1x256xf32, #tpu.memory_space<vmem>>, %arg4: memref<1x256xf32, #tpu.memory_space<vmem>>, %arg5: memref<1x256xf32, #tpu.memory_space<vmem>>, %arg6: memref<256x256xbf16, #tpu.memory_space<vmem>>, %arg7: memref<1x256xf32, #tpu.memory_space<vmem>>, %arg8: memref<1x256xf32, #tpu.memory_space<vmem>>, %arg9: memref<1x256xf32, #tpu.memory_space<vmem>>, %arg10: memref<256x1024xbf16, #tpu.memory_space<vmem>>, %arg11: memref<1x1024xf32, #tpu.memory_space<vmem>>, %arg12: memref<1x512xf32, #tpu.memory_space<vmem>>, %arg13: memref<1x512xf32, #tpu.memory_space<vmem>>, %arg14: memref<4x512x512xbf16, #tpu.memory_space<vmem>>, %arg15: memref<4x1x512xf32, #tpu.memory_space<vmem>>, %arg16: memref<4x1x512xf32, #tpu.memory_space<vmem>>, %arg17: memref<4x1x512xf32, #tpu.memory_space<vmem>>, %arg18: memref<512x512xbf16, #tpu.memory_space<vmem>>, %arg19: memref<1x512xf32, #tpu.memory_space<vmem>>, %arg20: memref<1x256xf32, #tpu.memory_space<vmem>>, %arg21: memref<1x256xf32, #tpu.memory_space<vmem>>, %arg22: memref<256x128xbf16, #tpu.memory_space<vmem>>, %arg23: memref<1x128xf32, #tpu.memory_space<vmem>>, %arg24: memref<1x128xf32, #tpu.memory_space<vmem>>, %arg25: memref<1x128xf32, #tpu.memory_space<vmem>>, %arg26: memref<32x128xf32, #tpu.memory_space<vmem>>) attributes {dimension_semantics = [#tpu.dimension_semantics<parallel>], iteration_bounds = array<i64: 2>, scalar_prefetch = 0 : i64, scratch_operands = 0 : i64, tpu.core_type = #tpu.core_type<tc>, window_params = [{transform_indices = @transform_0, window_bounds = array<i64: 32, 32>}, {pipeline_mode = #tpu.pipeline_mode<synchronous>, transform_indices = @transform_1, window_bounds = array<i64: 32, 256>}, {pipeline_mode = #tpu.pipeline_mode<synchronous>, transform_indices = @transform_2, window_bounds = array<i64: 1, 256>}, {pipeline_mode = #tpu.pipeline_mode<synchronous>, transform_indices = @transform_3, window_bounds = array<i64: 1, 256>}, {pipeline_mode = #tpu.pipeline_mode<synchronous>, transform_indices = @transform_4, window_bounds = array<i64: 1, 256>}, {pipeline_mode = #tpu.pipeline_mode<synchronous>, transform_indices = @transform_5, window_bounds = array<i64: 256, 256>}, {pipeline_mode = #tpu.pipeline_mode<synchronous>, transform_indices = @transform_6, window_bounds = array<i64: 1, 256>}, {pipeline_mode = #tpu.pipeline_mode<synchronous>, transform_indices = @transform_7, window_bounds = array<i64: 1, 256>}, {pipeline_mode = #tpu.pipeline_mode<synchronous>, transform_indices = @transform_8, window_bounds = array<i64: 1, 256>}, {pipeline_mode = #tpu.pipeline_mode<synchronous>, transform_indices = @transform_9, window_bounds = array<i64: 256, 1024>}, {pipeline_mode = #tpu.pipeline_mode<synchronous>, transform_indices = @transform_10, window_bounds = array<i64: 1, 1024>}, {pipeline_mode = #tpu.pipeline_mode<synchronous>, transform_indices = @transform_11, window_bounds = array<i64: 1, 512>}, {pipeline_mode = #tpu.pipeline_mode<synchronous>, transform_indices = @transform_12, window_bounds = array<i64: 1, 512>}, {pipeline_mode = #tpu.pipeline_mode<synchronous>, transform_indices = @transform_13, window_bounds = array<i64: 4, 512, 512>}, {pipeline_mode = #tpu.pipeline_mode<synchronous>, transform_indices = @transform_14, window_bounds = array<i64: 4, 1, 512>}, {pipeline_mode = #tpu.pipeline_mode<synchronous>, transform_indices = @transform_15, window_bounds = array<i64: 4, 1, 512>}, {pipeline_mode = #tpu.pipeline_mode<synchronous>, transform_indices = @transform_16, window_bounds = array<i64: 4, 1, 512>}, {pipeline_mode = #tpu.pipeline_mode<synchronous>, transform_indices = @transform_17, window_bounds = array<i64: 512, 512>}, {pipeline_mode = #tpu.pipeline_mode<synchronous>, transform_indices = @transform_18, window_bounds = array<i64: 1, 512>}, {pipeline_mode = #tpu.pipeline_mode<synchronous>, transform_indices = @transform_19, window_bounds = array<i64: 1, 256>}, {pipeline_mode = #tpu.pipeline_mode<synchronous>, transform_indices = @transform_20, window_bounds = array<i64: 1, 256>}, {pipeline_mode = #tpu.pipeline_mode<synchronous>, transform_indices = @transform_21, window_bounds = array<i64: 256, 128>}, {pipeline_mode = #tpu.pipeline_mode<synchronous>, transform_indices = @transform_22, window_bounds = array<i64: 1, 128>}, {pipeline_mode = #tpu.pipeline_mode<synchronous>, transform_indices = @transform_23, window_bounds = array<i64: 1, 128>}, {pipeline_mode = #tpu.pipeline_mode<synchronous>, transform_indices = @transform_24, window_bounds = array<i64: 1, 128>}, {transform_indices = @transform_25, window_bounds = array<i64: 32, 128>}]} {
    %c0 = arith.constant 0 : index
    %c0_0 = arith.constant 0 : index
    %0 = vector.load %arg1[%c0, %c0_0] : memref<32x32xf32, #tpu.memory_space<vmem>>, vector<32x32xf32>
    %1 = arith.truncf %0 : vector<32x32xf32> to vector<32x32xbf16>
    %c0_1 = arith.constant 0 : index
    %c0_2 = arith.constant 0 : index
    %2 = vector.load %arg2[%c0_1, %c0_2] : memref<32x256xbf16, #tpu.memory_space<vmem>>, vector<32x256xbf16>
    %cst = arith.constant dense<0.000000e+00> : vector<32x256xf32>
    %3 = tpu.matmul %1, %2, %cst {dimension_numbers = #tpu.dot_dimension_numbers<[1], [0], [0], [1], [0, 0, 1, 1], [], []>} : vector<32x32xbf16>, vector<32x256xbf16>, vector<32x256xf32> -> vector<32x256xf32>
    %c0_3 = arith.constant 0 : index
    %c0_4 = arith.constant 0 : index
    %4 = vector.load %arg3[%c0_3, %c0_4] : memref<1x256xf32, #tpu.memory_space<vmem>>, vector<1x256xf32>
    %5 = vector.broadcast %4 : vector<1x256xf32> to vector<32x256xf32>
    %6 = arith.addf %3, %5 : vector<32x256xf32>
    %c0_5 = arith.constant 0 : index
    %c0_6 = arith.constant 0 : index
    %7 = vector.load %arg4[%c0_5, %c0_6] : memref<1x256xf32, #tpu.memory_space<vmem>>, vector<1x256xf32>
    %c0_7 = arith.constant 0 : index
    %c0_8 = arith.constant 0 : index
    %8 = vector.load %arg5[%c0_7, %c0_8] : memref<1x256xf32, #tpu.memory_space<vmem>>, vector<1x256xf32>
    %cst_9 = arith.constant dense<0.000000e+00> : vector<32xf32>
    %9 = vector.multi_reduction <add>, %6, %cst_9 [1] : vector<32x256xf32> to vector<32xf32>
    %10 = vector.shape_cast %9 : vector<32xf32> to vector<32x1xf32>
    %cst_10 = arith.constant 3.906250e-03 : f32
    %11 = vector.broadcast %cst_10 : f32 to vector<32x1xf32>
    %12 = arith.mulf %10, %11 : vector<32x1xf32>
    %13 = arith.mulf %6, %6 : vector<32x256xf32>
    %cst_11 = arith.constant dense<0.000000e+00> : vector<32xf32>
    %14 = vector.multi_reduction <add>, %13, %cst_11 [1] : vector<32x256xf32> to vector<32xf32>
    %15 = vector.shape_cast %14 : vector<32xf32> to vector<32x1xf32>
    %cst_12 = arith.constant 3.906250e-03 : f32
    %16 = vector.broadcast %cst_12 : f32 to vector<32x1xf32>
    %17 = arith.mulf %15, %16 : vector<32x1xf32>
    %18 = arith.mulf %12, %12 : vector<32x1xf32>
    %19 = arith.subf %17, %18 : vector<32x1xf32>
    %20 = vector.broadcast %12 : vector<32x1xf32> to vector<32x256xf32>
    %21 = arith.subf %6, %20 : vector<32x256xf32>
    %cst_13 = arith.constant 9.99999974E-6 : f32
    %22 = vector.broadcast %cst_13 : f32 to vector<32x1xf32>
    %23 = arith.addf %19, %22 : vector<32x1xf32>
    %24 = math.rsqrt %23 : vector<32x1xf32>
    %25 = vector.broadcast %24 : vector<32x1xf32> to vector<32x256xf32>
    %26 = arith.mulf %21, %25 : vector<32x256xf32>
    %27 = vector.broadcast %7 : vector<1x256xf32> to vector<32x256xf32>
    %28 = arith.mulf %26, %27 : vector<32x256xf32>
    %29 = vector.broadcast %8 : vector<1x256xf32> to vector<32x256xf32>
    %30 = arith.addf %28, %29 : vector<32x256xf32>
    %cst_14 = arith.constant 5.000000e-01 : f32
    %31 = vector.broadcast %cst_14 : f32 to vector<32x256xf32>
    %32 = arith.mulf %31, %30 : vector<32x256xf32>
    %cst_15 = arith.constant 4.471500e-02 : f32
    %33 = vector.broadcast %cst_15 : f32 to vector<32x256xf32>
    %34 = arith.mulf %33, %30 : vector<32x256xf32>
    %35 = arith.mulf %34, %30 : vector<32x256xf32>
    %36 = arith.mulf %35, %30 : vector<32x256xf32>
    %37 = arith.addf %30, %36 : vector<32x256xf32>
    %cst_16 = arith.constant 0.797884583 : f32
    %38 = vector.broadcast %cst_16 : f32 to vector<32x256xf32>
    %39 = arith.mulf %38, %37 : vector<32x256xf32>
    %40 = math.tanh %39 : vector<32x256xf32>
    %cst_17 = arith.constant 1.000000e+00 : f32
    %41 = vector.broadcast %cst_17 : f32 to vector<32x256xf32>
    %42 = arith.addf %41, %40 : vector<32x256xf32>
    %43 = arith.mulf %32, %42 : vector<32x256xf32>
    %44 = arith.truncf %43 : vector<32x256xf32> to vector<32x256xbf16>
    %c0_18 = arith.constant 0 : index
    %c0_19 = arith.constant 0 : index
    %45 = vector.load %arg6[%c0_18, %c0_19] : memref<256x256xbf16, #tpu.memory_space<vmem>>, vector<256x256xbf16>
    %cst_20 = arith.constant dense<0.000000e+00> : vector<32x256xf32>
    %46 = tpu.matmul %44, %45, %cst_20 {dimension_numbers = #tpu.dot_dimension_numbers<[1], [0], [0], [1], [0, 0, 1, 1], [], []>} : vector<32x256xbf16>, vector<256x256xbf16>, vector<32x256xf32> -> vector<32x256xf32>
    %c0_21 = arith.constant 0 : index
    %c0_22 = arith.constant 0 : index
    %47 = vector.load %arg7[%c0_21, %c0_22] : memref<1x256xf32, #tpu.memory_space<vmem>>, vector<1x256xf32>
    %48 = vector.broadcast %47 : vector<1x256xf32> to vector<32x256xf32>
    %49 = arith.addf %46, %48 : vector<32x256xf32>
    %50 = arith.extf %44 : vector<32x256xbf16> to vector<32x256xf32>
    %51 = arith.addf %50, %49 : vector<32x256xf32>
    %c0_23 = arith.constant 0 : index
    %c0_24 = arith.constant 0 : index
    %52 = vector.load %arg8[%c0_23, %c0_24] : memref<1x256xf32, #tpu.memory_space<vmem>>, vector<1x256xf32>
    %c0_25 = arith.constant 0 : index
    %c0_26 = arith.constant 0 : index
    %53 = vector.load %arg9[%c0_25, %c0_26] : memref<1x256xf32, #tpu.memory_space<vmem>>, vector<1x256xf32>
    %cst_27 = arith.constant dense<0.000000e+00> : vector<32xf32>
    %54 = vector.multi_reduction <add>, %51, %cst_27 [1] : vector<32x256xf32> to vector<32xf32>
    %55 = vector.shape_cast %54 : vector<32xf32> to vector<32x1xf32>
    %cst_28 = arith.constant 3.906250e-03 : f32
    %56 = vector.broadcast %cst_28 : f32 to vector<32x1xf32>
    %57 = arith.mulf %55, %56 : vector<32x1xf32>
    %58 = arith.mulf %51, %51 : vector<32x256xf32>
    %cst_29 = arith.constant dense<0.000000e+00> : vector<32xf32>
    %59 = vector.multi_reduction <add>, %58, %cst_29 [1] : vector<32x256xf32> to vector<32xf32>
    %60 = vector.shape_cast %59 : vector<32xf32> to vector<32x1xf32>
    %cst_30 = arith.constant 3.906250e-03 : f32
    %61 = vector.broadcast %cst_30 : f32 to vector<32x1xf32>
    %62 = arith.mulf %60, %61 : vector<32x1xf32>
    %63 = arith.mulf %57, %57 : vector<32x1xf32>
    %64 = arith.subf %62, %63 : vector<32x1xf32>
    %65 = vector.broadcast %57 : vector<32x1xf32> to vector<32x256xf32>
    %66 = arith.subf %51, %65 : vector<32x256xf32>
    %cst_31 = arith.constant 9.99999974E-6 : f32
    %67 = vector.broadcast %cst_31 : f32 to vector<32x1xf32>
    %68 = arith.addf %64, %67 : vector<32x1xf32>
    %69 = math.rsqrt %68 : vector<32x1xf32>
    %70 = vector.broadcast %69 : vector<32x1xf32> to vector<32x256xf32>
    %71 = arith.mulf %66, %70 : vector<32x256xf32>
    %72 = vector.broadcast %52 : vector<1x256xf32> to vector<32x256xf32>
    %73 = arith.mulf %71, %72 : vector<32x256xf32>
    %74 = vector.broadcast %53 : vector<1x256xf32> to vector<32x256xf32>
    %75 = arith.addf %73, %74 : vector<32x256xf32>
    %76 = arith.truncf %75 : vector<32x256xf32> to vector<32x256xbf16>
    %c0_32 = arith.constant 0 : index
    %c0_33 = arith.constant 0 : index
    %77 = vector.load %arg10[%c0_32, %c0_33] : memref<256x1024xbf16, #tpu.memory_space<vmem>>, vector<256x1024xbf16>
    %cst_34 = arith.constant dense<0.000000e+00> : vector<32x1024xf32>
    %78 = tpu.matmul %76, %77, %cst_34 {dimension_numbers = #tpu.dot_dimension_numbers<[1], [0], [0], [1], [0, 0, 1, 1], [], []>} : vector<32x256xbf16>, vector<256x1024xbf16>, vector<32x1024xf32> -> vector<32x1024xf32>
    %c0_35 = arith.constant 0 : index
    %c0_36 = arith.constant 0 : index
    %79 = vector.load %arg11[%c0_35, %c0_36] : memref<1x1024xf32, #tpu.memory_space<vmem>>, vector<1x1024xf32>
    %80 = vector.broadcast %79 : vector<1x1024xf32> to vector<32x1024xf32>
    %81 = arith.addf %78, %80 : vector<32x1024xf32>
    %82 = vector.extract_strided_slice %81 {offsets = [0, 0], sizes = [32, 512], strides = [1, 1]} : vector<32x1024xf32> to vector<32x512xf32>
    %83 = vector.extract_strided_slice %81 {offsets = [0, 512], sizes = [32, 512], strides = [1, 1]} : vector<32x1024xf32> to vector<32x512xf32>
    %c0_37 = arith.constant 0 : index
    %c0_38 = arith.constant 0 : index
    %84 = vector.load %arg12[%c0_37, %c0_38] : memref<1x512xf32, #tpu.memory_space<vmem>>, vector<1x512xf32>
    %c0_39 = arith.constant 0 : index
    %c0_40 = arith.constant 0 : index
    %85 = vector.load %arg13[%c0_39, %c0_40] : memref<1x512xf32, #tpu.memory_space<vmem>>, vector<1x512xf32>
    %cst_41 = arith.constant dense<0.000000e+00> : vector<32xf32>
    %86 = vector.multi_reduction <add>, %82, %cst_41 [1] : vector<32x512xf32> to vector<32xf32>
    %87 = vector.shape_cast %86 : vector<32xf32> to vector<32x1xf32>
    %cst_42 = arith.constant 0.001953125 : f32
    %88 = vector.broadcast %cst_42 : f32 to vector<32x1xf32>
    %89 = arith.mulf %87, %88 : vector<32x1xf32>
    %90 = arith.mulf %82, %82 : vector<32x512xf32>
    %cst_43 = arith.constant dense<0.000000e+00> : vector<32xf32>
    %91 = vector.multi_reduction <add>, %90, %cst_43 [1] : vector<32x512xf32> to vector<32xf32>
    %92 = vector.shape_cast %91 : vector<32xf32> to vector<32x1xf32>
    %cst_44 = arith.constant 0.001953125 : f32
    %93 = vector.broadcast %cst_44 : f32 to vector<32x1xf32>
    %94 = arith.mulf %92, %93 : vector<32x1xf32>
    %95 = arith.mulf %89, %89 : vector<32x1xf32>
    %96 = arith.subf %94, %95 : vector<32x1xf32>
    %97 = vector.broadcast %89 : vector<32x1xf32> to vector<32x512xf32>
    %98 = arith.subf %82, %97 : vector<32x512xf32>
    %cst_45 = arith.constant 9.99999974E-6 : f32
    %99 = vector.broadcast %cst_45 : f32 to vector<32x1xf32>
    %100 = arith.addf %96, %99 : vector<32x1xf32>
    %101 = math.rsqrt %100 : vector<32x1xf32>
    %102 = vector.broadcast %101 : vector<32x1xf32> to vector<32x512xf32>
    %103 = arith.mulf %98, %102 : vector<32x512xf32>
    %104 = vector.broadcast %84 : vector<1x512xf32> to vector<32x512xf32>
    %105 = arith.mulf %103, %104 : vector<32x512xf32>
    %106 = vector.broadcast %85 : vector<1x512xf32> to vector<32x512xf32>
    %107 = arith.addf %105, %106 : vector<32x512xf32>
    %cst_46 = arith.constant 5.000000e-01 : f32
    %108 = vector.broadcast %cst_46 : f32 to vector<32x512xf32>
    %109 = arith.mulf %108, %107 : vector<32x512xf32>
    %cst_47 = arith.constant 4.471500e-02 : f32
    %110 = vector.broadcast %cst_47 : f32 to vector<32x512xf32>
    %111 = arith.mulf %110, %107 : vector<32x512xf32>
    %112 = arith.mulf %111, %107 : vector<32x512xf32>
    %113 = arith.mulf %112, %107 : vector<32x512xf32>
    %114 = arith.addf %107, %113 : vector<32x512xf32>
    %cst_48 = arith.constant 0.797884583 : f32
    %115 = vector.broadcast %cst_48 : f32 to vector<32x512xf32>
    %116 = arith.mulf %115, %114 : vector<32x512xf32>
    %117 = math.tanh %116 : vector<32x512xf32>
    %cst_49 = arith.constant 1.000000e+00 : f32
    %118 = vector.broadcast %cst_49 : f32 to vector<32x512xf32>
    %119 = arith.addf %118, %117 : vector<32x512xf32>
    %120 = arith.mulf %109, %119 : vector<32x512xf32>
    %121 = arith.addf %120, %83 : vector<32x512xf32>
    %122 = arith.truncf %121 : vector<32x512xf32> to vector<32x512xbf16>
    %c0_i32 = arith.constant 0 : i32
    %123 = arith.index_cast %c0_i32 : i32 to index
    %c0_50 = arith.constant 0 : index
    %c0_51 = arith.constant 0 : index
    %124 = vector.load %arg14[%123, %c0_50, %c0_51] : memref<4x512x512xbf16, #tpu.memory_space<vmem>>, vector<1x512x512xbf16>
    %125 = vector.shape_cast %124 : vector<1x512x512xbf16> to vector<512x512xbf16>
    %cst_52 = arith.constant dense<0.000000e+00> : vector<32x512xf32>
    %126 = tpu.matmul %122, %125, %cst_52 {dimension_numbers = #tpu.dot_dimension_numbers<[1], [0], [0], [1], [0, 0, 1, 1], [], []>} : vector<32x512xbf16>, vector<512x512xbf16>, vector<32x512xf32> -> vector<32x512xf32>
    %127 = arith.index_cast %c0_i32 : i32 to index
    %c0_53 = arith.constant 0 : index
    %c0_54 = arith.constant 0 : index
    %128 = vector.load %arg15[%127, %c0_53, %c0_54] : memref<4x1x512xf32, #tpu.memory_space<vmem>>, vector<1x1x512xf32>
    %129 = vector.shape_cast %128 : vector<1x1x512xf32> to vector<1x512xf32>
    %130 = vector.broadcast %129 : vector<1x512xf32> to vector<32x512xf32>
    %131 = arith.addf %126, %130 : vector<32x512xf32>
    %132 = arith.index_cast %c0_i32 : i32 to index
    %c0_55 = arith.constant 0 : index
    %c0_56 = arith.constant 0 : index
    %133 = vector.load %arg16[%132, %c0_55, %c0_56] : memref<4x1x512xf32, #tpu.memory_space<vmem>>, vector<1x1x512xf32>
    %134 = vector.shape_cast %133 : vector<1x1x512xf32> to vector<1x512xf32>
    %135 = arith.index_cast %c0_i32 : i32 to index
    %c0_57 = arith.constant 0 : index
    %c0_58 = arith.constant 0 : index
    %136 = vector.load %arg17[%135, %c0_57, %c0_58] : memref<4x1x512xf32, #tpu.memory_space<vmem>>, vector<1x1x512xf32>
    %137 = vector.shape_cast %136 : vector<1x1x512xf32> to vector<1x512xf32>
    %cst_59 = arith.constant dense<0.000000e+00> : vector<32xf32>
    %138 = vector.multi_reduction <add>, %131, %cst_59 [1] : vector<32x512xf32> to vector<32xf32>
    %139 = vector.shape_cast %138 : vector<32xf32> to vector<32x1xf32>
    %cst_60 = arith.constant 0.001953125 : f32
    %140 = vector.broadcast %cst_60 : f32 to vector<32x1xf32>
    %141 = arith.mulf %139, %140 : vector<32x1xf32>
    %142 = arith.mulf %131, %131 : vector<32x512xf32>
    %cst_61 = arith.constant dense<0.000000e+00> : vector<32xf32>
    %143 = vector.multi_reduction <add>, %142, %cst_61 [1] : vector<32x512xf32> to vector<32xf32>
    %144 = vector.shape_cast %143 : vector<32xf32> to vector<32x1xf32>
    %cst_62 = arith.constant 0.001953125 : f32
    %145 = vector.broadcast %cst_62 : f32 to vector<32x1xf32>
    %146 = arith.mulf %144, %145 : vector<32x1xf32>
    %147 = arith.mulf %141, %141 : vector<32x1xf32>
    %148 = arith.subf %146, %147 : vector<32x1xf32>
    %149 = vector.broadcast %141 : vector<32x1xf32> to vector<32x512xf32>
    %150 = arith.subf %131, %149 : vector<32x512xf32>
    %cst_63 = arith.constant 9.99999974E-6 : f32
    %151 = vector.broadcast %cst_63 : f32 to vector<32x1xf32>
    %152 = arith.addf %148, %151 : vector<32x1xf32>
    %153 = math.rsqrt %152 : vector<32x1xf32>
    %154 = vector.broadcast %153 : vector<32x1xf32> to vector<32x512xf32>
    %155 = arith.mulf %150, %154 : vector<32x512xf32>
    %156 = vector.broadcast %134 : vector<1x512xf32> to vector<32x512xf32>
    %157 = arith.mulf %155, %156 : vector<32x512xf32>
    %158 = vector.broadcast %137 : vector<1x512xf32> to vector<32x512xf32>
    %159 = arith.addf %157, %158 : vector<32x512xf32>
    %cst_64 = arith.constant 5.000000e-01 : f32
    %160 = vector.broadcast %cst_64 : f32 to vector<32x512xf32>
    %161 = arith.mulf %160, %159 : vector<32x512xf32>
    %cst_65 = arith.constant 4.471500e-02 : f32
    %162 = vector.broadcast %cst_65 : f32 to vector<32x512xf32>
    %163 = arith.mulf %162, %159 : vector<32x512xf32>
    %164 = arith.mulf %163, %159 : vector<32x512xf32>
    %165 = arith.mulf %164, %159 : vector<32x512xf32>
    %166 = arith.addf %159, %165 : vector<32x512xf32>
    %cst_66 = arith.constant 0.797884583 : f32
    %167 = vector.broadcast %cst_66 : f32 to vector<32x512xf32>
    %168 = arith.mulf %167, %166 : vector<32x512xf32>
    %169 = math.tanh %168 : vector<32x512xf32>
    %cst_67 = arith.constant 1.000000e+00 : f32
    %170 = vector.broadcast %cst_67 : f32 to vector<32x512xf32>
    %171 = arith.addf %170, %169 : vector<32x512xf32>
    %172 = arith.mulf %161, %171 : vector<32x512xf32>
    %173 = arith.extf %122 : vector<32x512xbf16> to vector<32x512xf32>
    %174 = arith.addf %172, %173 : vector<32x512xf32>
    %175 = arith.truncf %174 : vector<32x512xf32> to vector<32x512xbf16>
    %c1_i32 = arith.constant 1 : i32
    %176 = arith.index_cast %c1_i32 : i32 to index
    %c0_68 = arith.constant 0 : index
    %c0_69 = arith.constant 0 : index
    %177 = vector.load %arg14[%176, %c0_68, %c0_69] : memref<4x512x512xbf16, #tpu.memory_space<vmem>>, vector<1x512x512xbf16>
    %178 = vector.shape_cast %177 : vector<1x512x512xbf16> to vector<512x512xbf16>
    %cst_70 = arith.constant dense<0.000000e+00> : vector<32x512xf32>
    %179 = tpu.matmul %175, %178, %cst_70 {dimension_numbers = #tpu.dot_dimension_numbers<[1], [0], [0], [1], [0, 0, 1, 1], [], []>} : vector<32x512xbf16>, vector<512x512xbf16>, vector<32x512xf32> -> vector<32x512xf32>
    %180 = arith.index_cast %c1_i32 : i32 to index
    %c0_71 = arith.constant 0 : index
    %c0_72 = arith.constant 0 : index
    %181 = vector.load %arg15[%180, %c0_71, %c0_72] : memref<4x1x512xf32, #tpu.memory_space<vmem>>, vector<1x1x512xf32>
    %182 = vector.shape_cast %181 : vector<1x1x512xf32> to vector<1x512xf32>
    %183 = vector.broadcast %182 : vector<1x512xf32> to vector<32x512xf32>
    %184 = arith.addf %179, %183 : vector<32x512xf32>
    %185 = arith.index_cast %c1_i32 : i32 to index
    %c0_73 = arith.constant 0 : index
    %c0_74 = arith.constant 0 : index
    %186 = vector.load %arg16[%185, %c0_73, %c0_74] : memref<4x1x512xf32, #tpu.memory_space<vmem>>, vector<1x1x512xf32>
    %187 = vector.shape_cast %186 : vector<1x1x512xf32> to vector<1x512xf32>
    %188 = arith.index_cast %c1_i32 : i32 to index
    %c0_75 = arith.constant 0 : index
    %c0_76 = arith.constant 0 : index
    %189 = vector.load %arg17[%188, %c0_75, %c0_76] : memref<4x1x512xf32, #tpu.memory_space<vmem>>, vector<1x1x512xf32>
    %190 = vector.shape_cast %189 : vector<1x1x512xf32> to vector<1x512xf32>
    %cst_77 = arith.constant dense<0.000000e+00> : vector<32xf32>
    %191 = vector.multi_reduction <add>, %184, %cst_77 [1] : vector<32x512xf32> to vector<32xf32>
    %192 = vector.shape_cast %191 : vector<32xf32> to vector<32x1xf32>
    %cst_78 = arith.constant 0.001953125 : f32
    %193 = vector.broadcast %cst_78 : f32 to vector<32x1xf32>
    %194 = arith.mulf %192, %193 : vector<32x1xf32>
    %195 = arith.mulf %184, %184 : vector<32x512xf32>
    %cst_79 = arith.constant dense<0.000000e+00> : vector<32xf32>
    %196 = vector.multi_reduction <add>, %195, %cst_79 [1] : vector<32x512xf32> to vector<32xf32>
    %197 = vector.shape_cast %196 : vector<32xf32> to vector<32x1xf32>
    %cst_80 = arith.constant 0.001953125 : f32
    %198 = vector.broadcast %cst_80 : f32 to vector<32x1xf32>
    %199 = arith.mulf %197, %198 : vector<32x1xf32>
    %200 = arith.mulf %194, %194 : vector<32x1xf32>
    %201 = arith.subf %199, %200 : vector<32x1xf32>
    %202 = vector.broadcast %194 : vector<32x1xf32> to vector<32x512xf32>
    %203 = arith.subf %184, %202 : vector<32x512xf32>
    %cst_81 = arith.constant 9.99999974E-6 : f32
    %204 = vector.broadcast %cst_81 : f32 to vector<32x1xf32>
    %205 = arith.addf %201, %204 : vector<32x1xf32>
    %206 = math.rsqrt %205 : vector<32x1xf32>
    %207 = vector.broadcast %206 : vector<32x1xf32> to vector<32x512xf32>
    %208 = arith.mulf %203, %207 : vector<32x512xf32>
    %209 = vector.broadcast %187 : vector<1x512xf32> to vector<32x512xf32>
    %210 = arith.mulf %208, %209 : vector<32x512xf32>
    %211 = vector.broadcast %190 : vector<1x512xf32> to vector<32x512xf32>
    %212 = arith.addf %210, %211 : vector<32x512xf32>
    %cst_82 = arith.constant 5.000000e-01 : f32
    %213 = vector.broadcast %cst_82 : f32 to vector<32x512xf32>
    %214 = arith.mulf %213, %212 : vector<32x512xf32>
    %cst_83 = arith.constant 4.471500e-02 : f32
    %215 = vector.broadcast %cst_83 : f32 to vector<32x512xf32>
    %216 = arith.mulf %215, %212 : vector<32x512xf32>
    %217 = arith.mulf %216, %212 : vector<32x512xf32>
    %218 = arith.mulf %217, %212 : vector<32x512xf32>
    %219 = arith.addf %212, %218 : vector<32x512xf32>
    %cst_84 = arith.constant 0.797884583 : f32
    %220 = vector.broadcast %cst_84 : f32 to vector<32x512xf32>
    %221 = arith.mulf %220, %219 : vector<32x512xf32>
    %222 = math.tanh %221 : vector<32x512xf32>
    %cst_85 = arith.constant 1.000000e+00 : f32
    %223 = vector.broadcast %cst_85 : f32 to vector<32x512xf32>
    %224 = arith.addf %223, %222 : vector<32x512xf32>
    %225 = arith.mulf %214, %224 : vector<32x512xf32>
    %226 = arith.extf %175 : vector<32x512xbf16> to vector<32x512xf32>
    %227 = arith.addf %225, %226 : vector<32x512xf32>
    %228 = arith.truncf %227 : vector<32x512xf32> to vector<32x512xbf16>
    %c2_i32 = arith.constant 2 : i32
    %229 = arith.index_cast %c2_i32 : i32 to index
    %c0_86 = arith.constant 0 : index
    %c0_87 = arith.constant 0 : index
    %230 = vector.load %arg14[%229, %c0_86, %c0_87] : memref<4x512x512xbf16, #tpu.memory_space<vmem>>, vector<1x512x512xbf16>
    %231 = vector.shape_cast %230 : vector<1x512x512xbf16> to vector<512x512xbf16>
    %cst_88 = arith.constant dense<0.000000e+00> : vector<32x512xf32>
    %232 = tpu.matmul %228, %231, %cst_88 {dimension_numbers = #tpu.dot_dimension_numbers<[1], [0], [0], [1], [0, 0, 1, 1], [], []>} : vector<32x512xbf16>, vector<512x512xbf16>, vector<32x512xf32> -> vector<32x512xf32>
    %233 = arith.index_cast %c2_i32 : i32 to index
    %c0_89 = arith.constant 0 : index
    %c0_90 = arith.constant 0 : index
    %234 = vector.load %arg15[%233, %c0_89, %c0_90] : memref<4x1x512xf32, #tpu.memory_space<vmem>>, vector<1x1x512xf32>
    %235 = vector.shape_cast %234 : vector<1x1x512xf32> to vector<1x512xf32>
    %236 = vector.broadcast %235 : vector<1x512xf32> to vector<32x512xf32>
    %237 = arith.addf %232, %236 : vector<32x512xf32>
    %238 = arith.index_cast %c2_i32 : i32 to index
    %c0_91 = arith.constant 0 : index
    %c0_92 = arith.constant 0 : index
    %239 = vector.load %arg16[%238, %c0_91, %c0_92] : memref<4x1x512xf32, #tpu.memory_space<vmem>>, vector<1x1x512xf32>
    %240 = vector.shape_cast %239 : vector<1x1x512xf32> to vector<1x512xf32>
    %241 = arith.index_cast %c2_i32 : i32 to index
    %c0_93 = arith.constant 0 : index
    %c0_94 = arith.constant 0 : index
    %242 = vector.load %arg17[%241, %c0_93, %c0_94] : memref<4x1x512xf32, #tpu.memory_space<vmem>>, vector<1x1x512xf32>
    %243 = vector.shape_cast %242 : vector<1x1x512xf32> to vector<1x512xf32>
    %cst_95 = arith.constant dense<0.000000e+00> : vector<32xf32>
    %244 = vector.multi_reduction <add>, %237, %cst_95 [1] : vector<32x512xf32> to vector<32xf32>
    %245 = vector.shape_cast %244 : vector<32xf32> to vector<32x1xf32>
    %cst_96 = arith.constant 0.001953125 : f32
    %246 = vector.broadcast %cst_96 : f32 to vector<32x1xf32>
    %247 = arith.mulf %245, %246 : vector<32x1xf32>
    %248 = arith.mulf %237, %237 : vector<32x512xf32>
    %cst_97 = arith.constant dense<0.000000e+00> : vector<32xf32>
    %249 = vector.multi_reduction <add>, %248, %cst_97 [1] : vector<32x512xf32> to vector<32xf32>
    %250 = vector.shape_cast %249 : vector<32xf32> to vector<32x1xf32>
    %cst_98 = arith.constant 0.001953125 : f32
    %251 = vector.broadcast %cst_98 : f32 to vector<32x1xf32>
    %252 = arith.mulf %250, %251 : vector<32x1xf32>
    %253 = arith.mulf %247, %247 : vector<32x1xf32>
    %254 = arith.subf %252, %253 : vector<32x1xf32>
    %255 = vector.broadcast %247 : vector<32x1xf32> to vector<32x512xf32>
    %256 = arith.subf %237, %255 : vector<32x512xf32>
    %cst_99 = arith.constant 9.99999974E-6 : f32
    %257 = vector.broadcast %cst_99 : f32 to vector<32x1xf32>
    %258 = arith.addf %254, %257 : vector<32x1xf32>
    %259 = math.rsqrt %258 : vector<32x1xf32>
    %260 = vector.broadcast %259 : vector<32x1xf32> to vector<32x512xf32>
    %261 = arith.mulf %256, %260 : vector<32x512xf32>
    %262 = vector.broadcast %240 : vector<1x512xf32> to vector<32x512xf32>
    %263 = arith.mulf %261, %262 : vector<32x512xf32>
    %264 = vector.broadcast %243 : vector<1x512xf32> to vector<32x512xf32>
    %265 = arith.addf %263, %264 : vector<32x512xf32>
    %cst_100 = arith.constant 5.000000e-01 : f32
    %266 = vector.broadcast %cst_100 : f32 to vector<32x512xf32>
    %267 = arith.mulf %266, %265 : vector<32x512xf32>
    %cst_101 = arith.constant 4.471500e-02 : f32
    %268 = vector.broadcast %cst_101 : f32 to vector<32x512xf32>
    %269 = arith.mulf %268, %265 : vector<32x512xf32>
    %270 = arith.mulf %269, %265 : vector<32x512xf32>
    %271 = arith.mulf %270, %265 : vector<32x512xf32>
    %272 = arith.addf %265, %271 : vector<32x512xf32>
    %cst_102 = arith.constant 0.797884583 : f32
    %273 = vector.broadcast %cst_102 : f32 to vector<32x512xf32>
    %274 = arith.mulf %273, %272 : vector<32x512xf32>
    %275 = math.tanh %274 : vector<32x512xf32>
    %cst_103 = arith.constant 1.000000e+00 : f32
    %276 = vector.broadcast %cst_103 : f32 to vector<32x512xf32>
    %277 = arith.addf %276, %275 : vector<32x512xf32>
    %278 = arith.mulf %267, %277 : vector<32x512xf32>
    %279 = arith.extf %228 : vector<32x512xbf16> to vector<32x512xf32>
    %280 = arith.addf %278, %279 : vector<32x512xf32>
    %281 = arith.truncf %280 : vector<32x512xf32> to vector<32x512xbf16>
    %c3_i32 = arith.constant 3 : i32
    %282 = arith.index_cast %c3_i32 : i32 to index
    %c0_104 = arith.constant 0 : index
    %c0_105 = arith.constant 0 : index
    %283 = vector.load %arg14[%282, %c0_104, %c0_105] : memref<4x512x512xbf16, #tpu.memory_space<vmem>>, vector<1x512x512xbf16>
    %284 = vector.shape_cast %283 : vector<1x512x512xbf16> to vector<512x512xbf16>
    %cst_106 = arith.constant dense<0.000000e+00> : vector<32x512xf32>
    %285 = tpu.matmul %281, %284, %cst_106 {dimension_numbers = #tpu.dot_dimension_numbers<[1], [0], [0], [1], [0, 0, 1, 1], [], []>} : vector<32x512xbf16>, vector<512x512xbf16>, vector<32x512xf32> -> vector<32x512xf32>
    %286 = arith.index_cast %c3_i32 : i32 to index
    %c0_107 = arith.constant 0 : index
    %c0_108 = arith.constant 0 : index
    %287 = vector.load %arg15[%286, %c0_107, %c0_108] : memref<4x1x512xf32, #tpu.memory_space<vmem>>, vector<1x1x512xf32>
    %288 = vector.shape_cast %287 : vector<1x1x512xf32> to vector<1x512xf32>
    %289 = vector.broadcast %288 : vector<1x512xf32> to vector<32x512xf32>
    %290 = arith.addf %285, %289 : vector<32x512xf32>
    %291 = arith.index_cast %c3_i32 : i32 to index
    %c0_109 = arith.constant 0 : index
    %c0_110 = arith.constant 0 : index
    %292 = vector.load %arg16[%291, %c0_109, %c0_110] : memref<4x1x512xf32, #tpu.memory_space<vmem>>, vector<1x1x512xf32>
    %293 = vector.shape_cast %292 : vector<1x1x512xf32> to vector<1x512xf32>
    %294 = arith.index_cast %c3_i32 : i32 to index
    %c0_111 = arith.constant 0 : index
    %c0_112 = arith.constant 0 : index
    %295 = vector.load %arg17[%294, %c0_111, %c0_112] : memref<4x1x512xf32, #tpu.memory_space<vmem>>, vector<1x1x512xf32>
    %296 = vector.shape_cast %295 : vector<1x1x512xf32> to vector<1x512xf32>
    %cst_113 = arith.constant dense<0.000000e+00> : vector<32xf32>
    %297 = vector.multi_reduction <add>, %290, %cst_113 [1] : vector<32x512xf32> to vector<32xf32>
    %298 = vector.shape_cast %297 : vector<32xf32> to vector<32x1xf32>
    %cst_114 = arith.constant 0.001953125 : f32
    %299 = vector.broadcast %cst_114 : f32 to vector<32x1xf32>
    %300 = arith.mulf %298, %299 : vector<32x1xf32>
    %301 = arith.mulf %290, %290 : vector<32x512xf32>
    %cst_115 = arith.constant dense<0.000000e+00> : vector<32xf32>
    %302 = vector.multi_reduction <add>, %301, %cst_115 [1] : vector<32x512xf32> to vector<32xf32>
    %303 = vector.shape_cast %302 : vector<32xf32> to vector<32x1xf32>
    %cst_116 = arith.constant 0.001953125 : f32
    %304 = vector.broadcast %cst_116 : f32 to vector<32x1xf32>
    %305 = arith.mulf %303, %304 : vector<32x1xf32>
    %306 = arith.mulf %300, %300 : vector<32x1xf32>
    %307 = arith.subf %305, %306 : vector<32x1xf32>
    %308 = vector.broadcast %300 : vector<32x1xf32> to vector<32x512xf32>
    %309 = arith.subf %290, %308 : vector<32x512xf32>
    %cst_117 = arith.constant 9.99999974E-6 : f32
    %310 = vector.broadcast %cst_117 : f32 to vector<32x1xf32>
    %311 = arith.addf %307, %310 : vector<32x1xf32>
    %312 = math.rsqrt %311 : vector<32x1xf32>
    %313 = vector.broadcast %312 : vector<32x1xf32> to vector<32x512xf32>
    %314 = arith.mulf %309, %313 : vector<32x512xf32>
    %315 = vector.broadcast %293 : vector<1x512xf32> to vector<32x512xf32>
    %316 = arith.mulf %314, %315 : vector<32x512xf32>
    %317 = vector.broadcast %296 : vector<1x512xf32> to vector<32x512xf32>
    %318 = arith.addf %316, %317 : vector<32x512xf32>
    %cst_118 = arith.constant 5.000000e-01 : f32
    %319 = vector.broadcast %cst_118 : f32 to vector<32x512xf32>
    %320 = arith.mulf %319, %318 : vector<32x512xf32>
    %cst_119 = arith.constant 4.471500e-02 : f32
    %321 = vector.broadcast %cst_119 : f32 to vector<32x512xf32>
    %322 = arith.mulf %321, %318 : vector<32x512xf32>
    %323 = arith.mulf %322, %318 : vector<32x512xf32>
    %324 = arith.mulf %323, %318 : vector<32x512xf32>
    %325 = arith.addf %318, %324 : vector<32x512xf32>
    %cst_120 = arith.constant 0.797884583 : f32
    %326 = vector.broadcast %cst_120 : f32 to vector<32x512xf32>
    %327 = arith.mulf %326, %325 : vector<32x512xf32>
    %328 = math.tanh %327 : vector<32x512xf32>
    %cst_121 = arith.constant 1.000000e+00 : f32
    %329 = vector.broadcast %cst_121 : f32 to vector<32x512xf32>
    %330 = arith.addf %329, %328 : vector<32x512xf32>
    %331 = arith.mulf %320, %330 : vector<32x512xf32>
    %332 = arith.extf %281 : vector<32x512xbf16> to vector<32x512xf32>
    %333 = arith.addf %331, %332 : vector<32x512xf32>
    %334 = arith.truncf %333 : vector<32x512xf32> to vector<32x512xbf16>
    %c4_i32 = arith.constant 4 : i32
    %c0_122 = arith.constant 0 : index
    %c0_123 = arith.constant 0 : index
    %335 = vector.load %arg18[%c0_122, %c0_123] : memref<512x512xbf16, #tpu.memory_space<vmem>>, vector<512x512xbf16>
    %cst_124 = arith.constant dense<0.000000e+00> : vector<32x512xf32>
    %336 = tpu.matmul %334, %335, %cst_124 {dimension_numbers = #tpu.dot_dimension_numbers<[1], [0], [0], [1], [0, 0, 1, 1], [], []>} : vector<32x512xbf16>, vector<512x512xbf16>, vector<32x512xf32> -> vector<32x512xf32>
    %c0_125 = arith.constant 0 : index
    %c0_126 = arith.constant 0 : index
    %337 = vector.load %arg19[%c0_125, %c0_126] : memref<1x512xf32, #tpu.memory_space<vmem>>, vector<1x512xf32>
    %338 = vector.broadcast %337 : vector<1x512xf32> to vector<32x512xf32>
    %339 = arith.addf %336, %338 : vector<32x512xf32>
    %340 = vector.extract_strided_slice %339 {offsets = [0, 0], sizes = [32, 256], strides = [1, 1]} : vector<32x512xf32> to vector<32x256xf32>
    %341 = vector.extract_strided_slice %339 {offsets = [0, 256], sizes = [32, 256], strides = [1, 1]} : vector<32x512xf32> to vector<32x256xf32>
    %c0_127 = arith.constant 0 : index
    %c0_128 = arith.constant 0 : index
    %342 = vector.load %arg20[%c0_127, %c0_128] : memref<1x256xf32, #tpu.memory_space<vmem>>, vector<1x256xf32>
    %c0_129 = arith.constant 0 : index
    %c0_130 = arith.constant 0 : index
    %343 = vector.load %arg21[%c0_129, %c0_130] : memref<1x256xf32, #tpu.memory_space<vmem>>, vector<1x256xf32>
    %cst_131 = arith.constant dense<0.000000e+00> : vector<32xf32>
    %344 = vector.multi_reduction <add>, %340, %cst_131 [1] : vector<32x256xf32> to vector<32xf32>
    %345 = vector.shape_cast %344 : vector<32xf32> to vector<32x1xf32>
    %cst_132 = arith.constant 3.906250e-03 : f32
    %346 = vector.broadcast %cst_132 : f32 to vector<32x1xf32>
    %347 = arith.mulf %345, %346 : vector<32x1xf32>
    %348 = arith.mulf %340, %340 : vector<32x256xf32>
    %cst_133 = arith.constant dense<0.000000e+00> : vector<32xf32>
    %349 = vector.multi_reduction <add>, %348, %cst_133 [1] : vector<32x256xf32> to vector<32xf32>
    %350 = vector.shape_cast %349 : vector<32xf32> to vector<32x1xf32>
    %cst_134 = arith.constant 3.906250e-03 : f32
    %351 = vector.broadcast %cst_134 : f32 to vector<32x1xf32>
    %352 = arith.mulf %350, %351 : vector<32x1xf32>
    %353 = arith.mulf %347, %347 : vector<32x1xf32>
    %354 = arith.subf %352, %353 : vector<32x1xf32>
    %355 = vector.broadcast %347 : vector<32x1xf32> to vector<32x256xf32>
    %356 = arith.subf %340, %355 : vector<32x256xf32>
    %cst_135 = arith.constant 9.99999974E-6 : f32
    %357 = vector.broadcast %cst_135 : f32 to vector<32x1xf32>
    %358 = arith.addf %354, %357 : vector<32x1xf32>
    %359 = math.rsqrt %358 : vector<32x1xf32>
    %360 = vector.broadcast %359 : vector<32x1xf32> to vector<32x256xf32>
    %361 = arith.mulf %356, %360 : vector<32x256xf32>
    %362 = vector.broadcast %342 : vector<1x256xf32> to vector<32x256xf32>
    %363 = arith.mulf %361, %362 : vector<32x256xf32>
    %364 = vector.broadcast %343 : vector<1x256xf32> to vector<32x256xf32>
    %365 = arith.addf %363, %364 : vector<32x256xf32>
    %cst_136 = arith.constant 5.000000e-01 : f32
    %366 = vector.broadcast %cst_136 : f32 to vector<32x256xf32>
    %367 = arith.mulf %366, %365 : vector<32x256xf32>
    %cst_137 = arith.constant 4.471500e-02 : f32
    %368 = vector.broadcast %cst_137 : f32 to vector<32x256xf32>
    %369 = arith.mulf %368, %365 : vector<32x256xf32>
    %370 = arith.mulf %369, %365 : vector<32x256xf32>
    %371 = arith.mulf %370, %365 : vector<32x256xf32>
    %372 = arith.addf %365, %371 : vector<32x256xf32>
    %cst_138 = arith.constant 0.797884583 : f32
    %373 = vector.broadcast %cst_138 : f32 to vector<32x256xf32>
    %374 = arith.mulf %373, %372 : vector<32x256xf32>
    %375 = math.tanh %374 : vector<32x256xf32>
    %cst_139 = arith.constant 1.000000e+00 : f32
    %376 = vector.broadcast %cst_139 : f32 to vector<32x256xf32>
    %377 = arith.addf %376, %375 : vector<32x256xf32>
    %378 = arith.mulf %367, %377 : vector<32x256xf32>
    %379 = arith.addf %378, %341 : vector<32x256xf32>
    %380 = arith.truncf %379 : vector<32x256xf32> to vector<32x256xbf16>
    %c0_140 = arith.constant 0 : index
    %c0_141 = arith.constant 0 : index
    %381 = vector.load %arg22[%c0_140, %c0_141] : memref<256x128xbf16, #tpu.memory_space<vmem>>, vector<256x128xbf16>
    %cst_142 = arith.constant dense<0.000000e+00> : vector<32x128xf32>
    %382 = tpu.matmul %380, %381, %cst_142 {dimension_numbers = #tpu.dot_dimension_numbers<[1], [0], [0], [1], [0, 0, 1, 1], [], []>} : vector<32x256xbf16>, vector<256x128xbf16>, vector<32x128xf32> -> vector<32x128xf32>
    %c0_143 = arith.constant 0 : index
    %c0_144 = arith.constant 0 : index
    %383 = vector.load %arg23[%c0_143, %c0_144] : memref<1x128xf32, #tpu.memory_space<vmem>>, vector<1x128xf32>
    %384 = vector.broadcast %383 : vector<1x128xf32> to vector<32x128xf32>
    %385 = arith.addf %382, %384 : vector<32x128xf32>
    %c0_145 = arith.constant 0 : index
    %c0_146 = arith.constant 0 : index
    %386 = vector.load %arg24[%c0_145, %c0_146] : memref<1x128xf32, #tpu.memory_space<vmem>>, vector<1x128xf32>
    %c0_147 = arith.constant 0 : index
    %c0_148 = arith.constant 0 : index
    %387 = vector.load %arg25[%c0_147, %c0_148] : memref<1x128xf32, #tpu.memory_space<vmem>>, vector<1x128xf32>
    %cst_149 = arith.constant dense<0.000000e+00> : vector<32xf32>
    %388 = vector.multi_reduction <add>, %385, %cst_149 [1] : vector<32x128xf32> to vector<32xf32>
    %389 = vector.shape_cast %388 : vector<32xf32> to vector<32x1xf32>
    %cst_150 = arith.constant 1.562500e-02 : f32
    %390 = vector.broadcast %cst_150 : f32 to vector<32x1xf32>
    %391 = arith.mulf %389, %390 : vector<32x1xf32>
    %392 = arith.mulf %385, %385 : vector<32x128xf32>
    %cst_151 = arith.constant dense<0.000000e+00> : vector<32xf32>
    %393 = vector.multi_reduction <add>, %392, %cst_151 [1] : vector<32x128xf32> to vector<32xf32>
    %394 = vector.shape_cast %393 : vector<32xf32> to vector<32x1xf32>
    %cst_152 = arith.constant 1.562500e-02 : f32
    %395 = vector.broadcast %cst_152 : f32 to vector<32x1xf32>
    %396 = arith.mulf %394, %395 : vector<32x1xf32>
    %397 = arith.mulf %391, %391 : vector<32x1xf32>
    %398 = arith.subf %396, %397 : vector<32x1xf32>
    %399 = vector.broadcast %391 : vector<32x1xf32> to vector<32x128xf32>
    %400 = arith.subf %385, %399 : vector<32x128xf32>
    %cst_153 = arith.constant 9.99999974E-6 : f32
    %401 = vector.broadcast %cst_153 : f32 to vector<32x1xf32>
    %402 = arith.addf %398, %401 : vector<32x1xf32>
    %403 = math.rsqrt %402 : vector<32x1xf32>
    %404 = vector.broadcast %403 : vector<32x1xf32> to vector<32x128xf32>
    %405 = arith.mulf %400, %404 : vector<32x128xf32>
    %406 = vector.broadcast %386 : vector<1x128xf32> to vector<32x128xf32>
    %407 = arith.mulf %405, %406 : vector<32x128xf32>
    %408 = vector.broadcast %387 : vector<1x128xf32> to vector<32x128xf32>
    %409 = arith.addf %407, %408 : vector<32x128xf32>
    %c0_154 = arith.constant 0 : index
    %c0_155 = arith.constant 0 : index
    %410 = vector.load %arg26[%c0_154, %c0_155] : memref<32x128xf32, #tpu.memory_space<vmem>>, vector<32x128xf32>
    tpu.vector_store %arg26[%c0_154, %c0_155], %409 {strides = array<i32>} : memref<32x128xf32, #tpu.memory_space<vmem>>, vector<32x128xf32>,
    return
  }
  func.func @transform_0(%arg0: i32) -> (i32, i32) {
    %c0_i32 = arith.constant 0 : i32
    %c0_i32_0 = arith.constant 0 : i32
    return %arg0, %c0_i32 : i32, i32
  }
  func.func @transform_1(%arg0: i32) -> (i32, i32) {
    %c0_i32 = arith.constant 0 : i32
    %c0_i32_0 = arith.constant 0 : i32
    %c0_i32_1 = arith.constant 0 : i32
    return %c0_i32, %c0_i32_0 : i32, i32
  }
  func.func @transform_2(%arg0: i32) -> (i32, i32) {
    %c0_i32 = arith.constant 0 : i32
    %c0_i32_0 = arith.constant 0 : i32
    %c0_i32_1 = arith.constant 0 : i32
    return %c0_i32, %c0_i32_0 : i32, i32
  }
  func.func @transform_3(%arg0: i32) -> (i32, i32) {
    %c0_i32 = arith.constant 0 : i32
    %c0_i32_0 = arith.constant 0 : i32
    %c0_i32_1 = arith.constant 0 : i32
    return %c0_i32, %c0_i32_0 : i32, i32
  }
  func.func @transform_4(%arg0: i32) -> (i32, i32) {
    %c0_i32 = arith.constant 0 : i32
    %c0_i32_0 = arith.constant 0 : i32
    %c0_i32_1 = arith.constant 0 : i32
    return %c0_i32, %c0_i32_0 : i32, i32
  }
  func.func @transform_5(%arg0: i32) -> (i32, i32) {
    %c0_i32 = arith.constant 0 : i32
    %c0_i32_0 = arith.constant 0 : i32
    %c0_i32_1 = arith.constant 0 : i32
    return %c0_i32, %c0_i32_0 : i32, i32
  }
  func.func @transform_6(%arg0: i32) -> (i32, i32) {
    %c0_i32 = arith.constant 0 : i32
    %c0_i32_0 = arith.constant 0 : i32
    %c0_i32_1 = arith.constant 0 : i32
    return %c0_i32, %c0_i32_0 : i32, i32
  }
  func.func @transform_7(%arg0: i32) -> (i32, i32) {
    %c0_i32 = arith.constant 0 : i32
    %c0_i32_0 = arith.constant 0 : i32
    %c0_i32_1 = arith.constant 0 : i32
    return %c0_i32, %c0_i32_0 : i32, i32
  }
  func.func @transform_8(%arg0: i32) -> (i32, i32) {
    %c0_i32 = arith.constant 0 : i32
    %c0_i32_0 = arith.constant 0 : i32
    %c0_i32_1 = arith.constant 0 : i32
    return %c0_i32, %c0_i32_0 : i32, i32
  }
  func.func @transform_9(%arg0: i32) -> (i32, i32) {
    %c0_i32 = arith.constant 0 : i32
    %c0_i32_0 = arith.constant 0 : i32
    %c0_i32_1 = arith.constant 0 : i32
    return %c0_i32, %c0_i32_0 : i32, i32
  }
  func.func @transform_10(%arg0: i32) -> (i32, i32) {
    %c0_i32 = arith.constant 0 : i32
    %c0_i32_0 = arith.constant 0 : i32
    %c0_i32_1 = arith.constant 0 : i32
    return %c0_i32, %c0_i32_0 : i32, i32
  }
  func.func @transform_11(%arg0: i32) -> (i32, i32) {
    %c0_i32 = arith.constant 0 : i32
    %c0_i32_0 = arith.constant 0 : i32
    %c0_i32_1 = arith.constant 0 : i32
    return %c0_i32, %c0_i32_0 : i32, i32
  }
  func.func @transform_12(%arg0: i32) -> (i32, i32) {
    %c0_i32 = arith.constant 0 : i32
    %c0_i32_0 = arith.constant 0 : i32
    %c0_i32_1 = arith.constant 0 : i32
    return %c0_i32, %c0_i32_0 : i32, i32
  }
  func.func @transform_13(%arg0: i32) -> (i32, i32, i32) {
    %c0_i32 = arith.constant 0 : i32
    %c0_i32_0 = arith.constant 0 : i32
    %c0_i32_1 = arith.constant 0 : i32
    %c0_i32_2 = arith.constant 0 : i32
    return %c0_i32, %c0_i32_0, %c0_i32_1 : i32, i32, i32
  }
  func.func @transform_14(%arg0: i32) -> (i32, i32, i32) {
    %c0_i32 = arith.constant 0 : i32
    %c0_i32_0 = arith.constant 0 : i32
    %c0_i32_1 = arith.constant 0 : i32
    %c0_i32_2 = arith.constant 0 : i32
    return %c0_i32, %c0_i32_0, %c0_i32_1 : i32, i32, i32
  }
  func.func @transform_15(%arg0: i32) -> (i32, i32, i32) {
    %c0_i32 = arith.constant 0 : i32
    %c0_i32_0 = arith.constant 0 : i32
    %c0_i32_1 = arith.constant 0 : i32
    %c0_i32_2 = arith.constant 0 : i32
    return %c0_i32, %c0_i32_0, %c0_i32_1 : i32, i32, i32
  }
  func.func @transform_16(%arg0: i32) -> (i32, i32, i32) {
    %c0_i32 = arith.constant 0 : i32
    %c0_i32_0 = arith.constant 0 : i32
    %c0_i32_1 = arith.constant 0 : i32
    %c0_i32_2 = arith.constant 0 : i32
    return %c0_i32, %c0_i32_0, %c0_i32_1 : i32, i32, i32
  }
  func.func @transform_17(%arg0: i32) -> (i32, i32) {
    %c0_i32 = arith.constant 0 : i32
    %c0_i32_0 = arith.constant 0 : i32
    %c0_i32_1 = arith.constant 0 : i32
    return %c0_i32, %c0_i32_0 : i32, i32
  }
  func.func @transform_18(%arg0: i32) -> (i32, i32) {
    %c0_i32 = arith.constant 0 : i32
    %c0_i32_0 = arith.constant 0 : i32
    %c0_i32_1 = arith.constant 0 : i32
    return %c0_i32, %c0_i32_0 : i32, i32
  }
  func.func @transform_19(%arg0: i32) -> (i32, i32) {
    %c0_i32 = arith.constant 0 : i32
    %c0_i32_0 = arith.constant 0 : i32
    %c0_i32_1 = arith.constant 0 : i32
    return %c0_i32, %c0_i32_0 : i32, i32
  }
  func.func @transform_20(%arg0: i32) -> (i32, i32) {
    %c0_i32 = arith.constant 0 : i32
    %c0_i32_0 = arith.constant 0 : i32
    %c0_i32_1 = arith.constant 0 : i32
    return %c0_i32, %c0_i32_0 : i32, i32
  }
  func.func @transform_21(%arg0: i32) -> (i32, i32) {
    %c0_i32 = arith.constant 0 : i32
    %c0_i32_0 = arith.constant 0 : i32
    %c0_i32_1 = arith.constant 0 : i32
    return %c0_i32, %c0_i32_0 : i32, i32
  }
  func.func @transform_22(%arg0: i32) -> (i32, i32) {
    %c0_i32 = arith.constant 0 : i32
    %c0_i32_0 = arith.constant 0 : i32
    %c0_i32_1 = arith.constant 0 : i32
    return %c0_i32, %c0_i32_0 : i32, i32
  }
  func.func @transform_23(%arg0: i32) -> (i32, i32) {
    %c0_i32 = arith.constant 0 : i32
    %c0_i32_0 = arith.constant 0 : i32
    %c0_i32_1 = arith.constant 0 : i32
    return %c0_i32, %c0_i32_0 : i32, i32
  }
  func.func @transform_24(%arg0: i32) -> (i32, i32) {
    %c0_i32 = arith.constant 0 : i32
    %c0_i32_0 = arith.constant 0 : i32
    %c0_i32_1 = arith.constant 0 : i32
    return %c0_i32, %c0_i32_0 : i32, i32
  }
  func.func @transform_25(%arg0: i32) -> (i32, i32) {
    %c0_i32 = arith.constant 0 : i32
    %c0_i32_0 = arith.constant 0 : i32
    return %arg0, %c0_i32 : i32, i32
  }
}

</mosaic_0001>

<bundles_post_ra>
// kernel: tpu_custom_call.1
= control target key start
LH: loop header
LB: loop body
LE: loop exit
PB: predicated region body
PF: predicated region fallthrough
CT: control target
= control target key end

     0   :  { %s17034_s0 = inlined_call_operand.vmem [shape: f32[64,32], index: 0, kind: input, shape index: {}]   ;;  %s17035_s1 = inlined_call_operand.hbm [shape: bf16[32,256], index: 1, kind: input, shape index: {}]   ;;  %s17036_s2 = inlined_call_operand.hbm [shape: f32[1,256], index: 2, kind: input, shape index: {}]   ;;  %s17037_s3 = inlined_call_operand.hbm [shape: f32[1,256], index: 3, kind: input, shape index: {}]   ;;  %s17038_s4 = inlined_call_operand.hbm [shape: f32[1,256], index: 4, kind: input, shape index: {}]   ;;  %s17039_s5 = inlined_call_operand.hbm [shape: bf16[256,256], index: 5, kind: input, shape index: {}]   ;;  %s17040_s6 = inlined_call_operand.hbm [shape: f32[1,256], index: 6, kind: input, shape index: {}]   ;;  %s17041_s7 = inlined_call_operand.hbm [shape: f32[1,256], index: 7, kind: input, shape index: {}]   ;;  %s17042_s8 = inlined_call_operand.hbm [shape: f32[1,256], index: 8, kind: input, shape index: {}]   ;;  %s17043_s9 = inlined_call_operand.hbm [shape: bf16[256,1024], index: 9, kind: input, shape index: {}]   ;;  %s17044_s10 = inlined_call_operand.hbm [shape: f32[1,1024], index: 10, kind: input, shape index: {}]   ;;  %s17045_s11 = inlined_call_operand.hbm [shape: f32[1,512], index: 11, kind: input, shape index: {}]   ;;  %s17046_s12 = inlined_call_operand.hbm [shape: f32[1,512], index: 12, kind: input, shape index: {}]   ;;  %s17047_s13 = inlined_call_operand.hbm [shape: bf16[4,512,512], index: 13, kind: input, shape index: {}]   ;;  %s17048_s14 = inlined_call_operand.hbm [shape: f32[4,1,512], index: 14, kind: input, shape index: {}]   ;;  %s17049_s15 = inlined_call_operand.hbm [shape: f32[4,1,512], index: 15, kind: input, shape index: {}]   ;;  %s17050_s16 = inlined_call_operand.hbm [shape: f32[4,1,512], index: 16, kind: input, shape index: {}]   ;;  %s17051_s17 = inlined_call_operand.hbm [shape: bf16[512,512], index: 17, kind: input, shape index: {}]   ;;  %s17052_s18 = inlined_call_operand.hbm [shape: f32[1,512], index: 18, kind: input, shape index: {}]   ;;  %s17053_s19 = inlined_call_operand.hbm [shape: f32[1,256], index: 19, kind: input, shape index: {}]   ;;  %s17054_s20 = inlined_call_operand.hbm [shape: f32[1,256], index: 20, kind: input, shape index: {}]   ;;  %s17055_s21 = inlined_call_operand.hbm [shape: bf16[256,128], index: 21, kind: input, shape index: {}]   ;;  %s17056_s22 = inlined_call_operand.hbm [shape: f32[1,128], index: 22, kind: input, shape index: {}]   ;;  %s17057_s23 = inlined_call_operand.hbm [shape: f32[1,128], index: 23, kind: input, shape index: {}]   ;;  %s17058_s24 = inlined_call_operand.hbm [shape: f32[1,128], index: 24, kind: input, shape index: {}]   ;;  %s17059_s25 = inlined_call_operand.hbm [shape: f32[64,128], index: 25, kind: output, shape index: {}]  }
   0x1   :  { %17106 = sst [smem:[#allocation70_spill]] %s17034_s0 }
   0x2   :  { %17107 = sst [smem:[#allocation71_spill]] %s17035_s1 }
   0x3   :  { %17108 = sst [smem:[#allocation72_spill]] %s17036_s2 }
   0x4   :  { %17109 = sst [smem:[#allocation73_spill]] %s17037_s3 }
   0x5   :  { %17110 = sst [smem:[#allocation74_spill]] %s17038_s4 }
   0x6   :  { %17111 = sst [smem:[#allocation75_spill]] %s17039_s5 }
   0x7   :  { %17112 = sst [smem:[#allocation76_spill]] %s17040_s6 }
   0x8   :  { %17113 = sst [smem:[#allocation77_spill]] %s17041_s7 }
   0x9   :  { %17114 = sst [smem:[#allocation78_spill]] %s17042_s8 }
   0xa   :  { %17115 = sst [smem:[#allocation79_spill]] %s17043_s9 }
   0xb   :  { %17116 = sst [smem:[#allocation80_spill]] %s17044_s10 }
   0xc   :  { %17117 = sst [smem:[#allocation81_spill]] %s17045_s11 }
   0xd   :  { %17118 = sst [smem:[#allocation82_spill]] %s17046_s12 }
   0xe   :  { %17119 = sst [smem:[#allocation83_spill]] %s17048_s14 }
   0xf   :  { %17120 = sst [smem:[#allocation84_spill]] %s17058_s24 }
  0x10   :  { %17121 = sst [smem:[#allocation85_spill]] %s17059_s25 }
  0x11   :  { %30 = vsyncpa [#allocation3], 0 }
  0x12   :  { %31 = vsyncpa [#allocation6], 0 }
  0x13   :  { %32 = vsyncpa [#allocation9], 0 }
  0x14   :  { %33 = vsyncpa [#allocation12], 0 }
  0x15   :  { %34 = vsyncpa [#allocation15], 0 }
  0x16   :  { %35 = vsyncpa [#allocation18], 0 }
  0x17   :  { %36 = vsyncpa [#allocation21], 0 }
  0x18   :  { %37 = vsyncpa [#allocation24], 0 }
  0x19   :  { %38 = vsyncpa [#allocation27], 0 }
  0x1a   :  { %39 = vsyncpa [#allocation30], 0 }
  0x1b   :  { %40 = vsyncpa [#allocation33], 0 }
  0x1c   :  { %41 = vsyncpa [#allocation36], 0 }
  0x1d   :  { %42 = vsyncpa [#allocation39], 0 }
  0x1e   :  { %43 = vsyncpa [#allocation4], 0 }
  0x1f   :  { %45 = vsyncpa [#allocation4 + $0x1], 0  ;;  %s14031_s29 = smov 0   ;;  %s14033_s2 = smov 0  }
  0x20   :  { %s14035_s6 = smov 0   ;;  %s14037_s30 = smov 0  }
  0x21 LB: > { %17122 = sst [smem:[#allocation55_spill]] %s13851_s29  ;;  %s14052_s7 = sadd.s32 4294967295, %s13863_s30   ;;  %s13863_s30 = sphi %s14037_s30, %s17235_s30   ;;  %s13859_s6 = sphi %s14035_s6, %s17238_s6   ;;  %s13855_s2 = sphi %s14033_s2, %s17237_s2   ;;  %s13851_s29 = sphi %s14031_s29, %s17236_s29  }
  0x22   : > { %17123 = sst [smem:[#allocation56_spill]] %s13855_s2  ;;  %s10418_s3 = sadd.s32 4294967294, %s13863_s30  }
  0x23   : > { %17124 = sst [smem:[#allocation57_spill]] %s13859_s6  ;;  %s14056_s26 = sadd.s32 1, %s13863_s30  }
  0x24   : > { %17125 = sst [smem:[#allocation58_spill]] %s13863_s30  ;;  %s588_s1 = sadd.s32 1, %s13859_s6 }
  0x25   : > { %17126 = sst [smem:[#allocation59_spill]] %s14052_s7  ;;  %s585_s8 = ssub.s32 %s13863_s30, %s14056_s26 }
  0x26   : > { %17127 = sst [smem:[#allocation60_spill]] %s14056_s26  ;;  %p598_p0 = scmp.ne.s32.totalorder %s13859_s6, %s13855_s2 }
  0x27   : > { %p586_p1 = scmp.eq.s32.totalorder %s585_s8, 0  ;;  %p599_p2 = scmp.eq.s32.totalorder %s14052_s7, 1 }
  0x28   : > { %p604_p3 = scmp.ne.s32.totalorder %s13855_s2, %s13851_s29  ;;  %p605_p4 = scmp.eq.s32.totalorder %s10418_s3, 1 }
  0x29   : > { %s14067_s27 = scalar_select %p586_p1, %s13859_s6, %s588_s1  }
  0x2a   : > { %p14069_p5 = por %p599_p2, %p598_p0  ;;  %p14073_p6 = por %p605_p4, %p604_p3 }
  0x2b   : > { %17128 = sst [smem:[#allocation61_spill]] %s14067_s27  ;;  %p10419_p7 = scmp.ge.s32.totalorder %s13863_s30, 1 }
  0x2c   : > { %s17129_s4 = scalar_select %p14069_p5, 1, 0 }
  0x2d   : > { %s17131_s28 = scalar_select %p14073_p6, 1, 0 }
  0x2e   : > { %17130 = sst [smem:[#allocation62_spill]] %s17129_s4  ;;  %p612_p8 = scmp.lt.s32.totalorder %s13863_s30, 3 }
  0x2f   : > { %17132 = sst [smem:[#allocation63_spill]] %s17131_s28  ;;  %p17078_p9 = scmp.eq.s32.totalorder %s14052_s7, 0 }
  0x30   : > { %p14080_p10 = pnand %p10419_p7, %p612_p8  ;;  %s13865_s5 = smov [#allocation5]  }
  0x31   : > { %s638_s0 = sshll.u32 %s13865_s5, 4  ;;  %s13866_s3 = smov [#allocation8]   ;;  %s639_s0 = int_to_ptr.vmem [resolvable:$true] %s638_s0 }
  0x32   : > { %s17133_s9 = scalar_select %p14080_p10, 1, 0 }
  0x33   : > { %p11590_p11 = pneg %p14080_p10  ;;  %s660_s1 = sshll.u32 %s13866_s3, 4  ;;  %s14092_s1 = int_to_ptr.vmem [resolvable:$true] %s660_s1 }
  0x34   : > { %17134 = sst [smem:[#allocation64_spill]] %s17133_s9  ;;  %s13867_s27 = smov [#allocation11]  }
  0x35   : > { %p14088_p12 = pnand %p17078_p9, %p11590_p11  ;;  %s684_s6 = sshll.u32 %s13867_s27, 4  ;;  %s14094_s6 = int_to_ptr.vmem [resolvable:$true] %s684_s6 }
  0x36   : > { %s17136_s5 = sld [smem:[#allocation72_spill]] }
  0x37   : > { %p14104_p0 = pneg %p14088_p12 }
  0x3c   : > { %s13077_s29 = scalar_lea.hbm %s17136_s5, 32 }
  0x3d   : > { %p13078_p13 = scmp.ne.s32.totalorder %s17136_s5, %s13077_s29  ;;  %p13084_p3 = scmp.lt.u32.totalorder %s13077_s29, %s17136_s5 }
  0x3f   : > { %p13080_p1 = pnand %p14104_p0, %p13078_p13 }
  0x41   : > { %p13081_p2 = pneg %p13080_p1 }
  0x43   : > { %p13086_p4 = pnand %p13084_p3, %p13081_p2 }
  0x45   : > { %13089 = shalt.err (!%p13086_p4)
}
  0x46   : > { %s13090_s26 = scalar_lea.vmem %s639_s0, 32  ;;  %p13098_p9 = scmp.lt.s32.totalorder %s639_s0, %s639_s0 }
  0x47   : > { %p13091_p7 = scmp.ne.s32.totalorder %s639_s0, %s13090_s26  ;;  %p13099_p6 = scmp.lt.s32.totalorder %s13090_s26, %s13090_s26 }
  0x49   : > { %p13093_p8 = pnand %p13091_p7, %p14104_p0  ;;  %p13100_p5 = por %p13099_p6, %p13098_p9 }
  0x4b   : > { %p13094_p11 = pneg %p13093_p8 }
  0x4d   : > { %p13101_p10 = pnand %p13100_p5, %p13094_p11 }
  0x4f   : > { %13104 = shalt.err (!%p13101_p10)
}
  0x50   : > { %11596 = dma.hbm_to_vmem [thread:$0]  (!%p14088_p12), %s17136_s5, 32, %s639_s0, [#allocation6]  }
  0x51   : > { %s17138_s28 = sld [smem:[#allocation74_spill]] }
  0x57   : > { %s13105_s27 = scalar_lea.hbm %s17138_s28, 32 }
  0x58   : > { %p13106_p13 = scmp.ne.s32.totalorder %s17138_s28, %s13105_s27  ;;  %p13112_p5 = scmp.lt.u32.totalorder %s13105_s27, %s17138_s28 }
  0x5a   : > { %p13108_p1 = pnand %p13106_p13, %p14104_p0 }
  0x5c   : > { %p13109_p6 = pneg %p13108_p1 }
  0x5e   : > { %p13114_p9 = pnand %p13112_p5, %p13109_p6 }
  0x60   : > { %13117 = shalt.err (!%p13114_p9)
}
  0x61   : > { %s13118_s0 = scalar_lea.vmem %s14092_s1, 32  ;;  %p13126_p4 = scmp.lt.s32.totalorder %s14092_s1, %s14092_s1 }
  0x62   : > { %p13119_p10 = scmp.ne.s32.totalorder %s14092_s1, %s13118_s0  ;;  %p13127_p7 = scmp.lt.s32.totalorder %s13118_s0, %s13118_s0 }
  0x64   : > { %p13121_p2 = pnand %p13119_p10, %p14104_p0  ;;  %p13128_p8 = por %p13127_p7, %p13126_p4 }
  0x66   : > { %p13122_p3 = pneg %p13121_p2 }
  0x68   : > { %p13129_p11 = pnand %p13128_p8, %p13122_p3 }
  0x6a   : > { %13132 = shalt.err (!%p13129_p11)
}
  0x6b   : > { %11602 = dma.hbm_to_vmem [thread:$0]  (!%p14088_p12), %s17138_s28, 32, %s14092_s1, [#allocation9]  }
  0x6c   : > { %s17139_s30 = sld [smem:[#allocation76_spill]] }
  0x72   : > { %s17140_s4 = smov %s17139_s30  ;;  %s13133_s29 = scalar_lea.hbm %s17139_s30, 32 }
  0x73   : > { %p13134_p13 = scmp.ne.s32.totalorder %s17140_s4, %s13133_s29  ;;  %p13140_p5 = scmp.lt.u32.totalorder %s13133_s29, %s17140_s4 }
  0x75   : > { %p13136_p1 = pnand %p13134_p13, %p14104_p0 }
  0x77   : > { %p13137_p6 = pneg %p13136_p1 }
  0x79   : > { %p13142_p9 = pnand %p13140_p5, %p13137_p6 }
  0x7b   : > { %13145 = shalt.err (!%p13142_p9)
}
  0x7c   : > { %s13146_s1 = scalar_lea.vmem %s14094_s6, 32  ;;  %p13154_p4 = scmp.lt.s32.totalorder %s14094_s6, %s14094_s6 }
  0x7d   : > { %p13147_p10 = scmp.ne.s32.totalorder %s14094_s6, %s13146_s1  ;;  %p13155_p7 = scmp.lt.s32.totalorder %s13146_s1, %s13146_s1 }
  0x7f   : > { %p13149_p2 = pnand %p13147_p10, %p14104_p0  ;;  %p13156_p8 = por %p13155_p7, %p13154_p4 }
  0x81   : > { %p13150_p3 = pneg %p13149_p2 }
  0x83   : > { %p13157_p11 = pnand %p13156_p8, %p13150_p3 }
  0x85   : > { %13160 = shalt.err (!%p13157_p11)
}
  0x86   : > { %11608 = dma.hbm_to_vmem [thread:$0]  (!%p14088_p12), %s17140_s4, 32, %s14094_s6, [#allocation12]  }
  0x87   : > { %s13868_s7 = smov [#allocation14]   ;;  %s13869_s25 = smov [#allocation17]  }
  0x88   : > { %s706_s9 = sshll.u32 %s13868_s7, 4  ;;  %s730_s30 = sshll.u32 %s13869_s25, 4  ;;  %s707_s9 = int_to_ptr.vmem [resolvable:$true] %s706_s9  ;;  %s731_s30 = int_to_ptr.vmem [resolvable:$true] %s730_s30 }
  0x89   : > { %s17141_s26 = sld [smem:[#allocation78_spill]] }
  0x8f   : > { %s13161_s0 = scalar_lea.hbm %s17141_s26, 32 }
  0x90   : > { %p13162_p13 = scmp.ne.s32.totalorder %s17141_s26, %s13161_s0  ;;  %p13168_p5 = scmp.lt.u32.totalorder %s13161_s0, %s17141_s26 }
  0x92   : > { %p13164_p1 = pnand %p13162_p13, %p14104_p0 }
  0x94   : > { %p13165_p6 = pneg %p13164_p1 }
  0x96   : > { %p13170_p9 = pnand %p13168_p5, %p13165_p6 }
  0x98   : > { %13173 = shalt.err (!%p13170_p9)
}
  0x99   : > { %s13174_s6 = scalar_lea.vmem %s707_s9, 32  ;;  %p13182_p4 = scmp.lt.s32.totalorder %s707_s9, %s707_s9 }
  0x9a   : > { %p13175_p10 = scmp.ne.s32.totalorder %s707_s9, %s13174_s6  ;;  %p13183_p7 = scmp.lt.s32.totalorder %s13174_s6, %s13174_s6 }
  0x9c   : > { %p13177_p2 = pnand %p13175_p10, %p14104_p0  ;;  %p13184_p8 = por %p13183_p7, %p13182_p4 }
  0x9e   : > { %p13178_p3 = pneg %p13177_p2 }
  0xa0   : > { %p13185_p11 = pnand %p13184_p8, %p13178_p3 }
  0xa2   : > { %13188 = shalt.err (!%p13185_p11)
}
  0xa3   : > { %11614 = dma.hbm_to_vmem [thread:$0]  (!%p14088_p12), %s17141_s26, 32, %s707_s9, [#allocation15]  }
  0xa4   : > { %s17142_s10 = sld [smem:[#allocation80_spill]] }
  0xaa   : > { %s13189_s25 = scalar_lea.hbm %s17142_s10, 128 }
  0xab   : > { %p13190_p13 = scmp.ne.s32.totalorder %s17142_s10, %s13189_s25  ;;  %p13196_p5 = scmp.lt.u32.totalorder %s13189_s25, %s17142_s10 }
  0xad   : > { %p13192_p1 = pnand %p13190_p13, %p14104_p0 }
  0xaf   : > { %p13193_p6 = pneg %p13192_p1 }
  0xb1   : > { %p13198_p9 = pnand %p13196_p5, %p13193_p6 }
  0xb3   : > { %13201 = shalt.err (!%p13198_p9)
}
  0xb4   : > { %s13202_s5 = scalar_lea.vmem %s731_s30, 128  ;;  %p13210_p4 = scmp.lt.s32.totalorder %s731_s30, %s731_s30 }
  0xb5   : > { %p13203_p10 = scmp.ne.s32.totalorder %s731_s30, %s13202_s5  ;;  %p13211_p7 = scmp.lt.s32.totalorder %s13202_s5, %s13202_s5 }
  0xb7   : > { %p13205_p2 = pnand %p13203_p10, %p14104_p0  ;;  %p13212_p8 = por %p13211_p7, %p13210_p4 }
  0xb9   : > { %p13206_p3 = pneg %p13205_p2 }
  0xbb   : > { %p13213_p11 = pnand %p13212_p8, %p13206_p3 }
  0xbd   : > { %13216 = shalt.err (!%p13213_p11)
}
  0xbe   : > { %11620 = dma.hbm_to_vmem [thread:$0]  (!%p14088_p12), %s17142_s10, 128, %s731_s30, [#allocation18]  }
  0xbf   : > { %s13870_s28 = smov [#allocation20]   ;;  %s13871_s24 = smov [#allocation23]  }
  0xc0   : > { %s752_s2 = sshll.u32 %s13870_s28, 4  ;;  %s775_s7 = sshll.u32 %s13871_s24, 4  ;;  %s753_s2 = int_to_ptr.vmem [resolvable:$true] %s752_s2  ;;  %s776_s7 = int_to_ptr.vmem [resolvable:$true] %s775_s7 }
  0xc1   : > { %s17143_s12 = sld [smem:[#allocation82_spill]] }
  0xc7   : > { %s13217_s27 = scalar_lea.hbm %s17143_s12, 64 }
  0xc8   : > { %p13218_p13 = scmp.ne.s32.totalorder %s17143_s12, %s13217_s27  ;;  %p13224_p5 = scmp.lt.u32.totalorder %s13217_s27, %s17143_s12 }
  0xca   : > { %p13220_p1 = pnand %p13218_p13, %p14104_p0 }
  0xcc   : > { %p13221_p6 = pneg %p13220_p1 }
  0xce   : > { %p13226_p9 = pnand %p13224_p5, %p13221_p6 }
  0xd0   : > { %13229 = shalt.err (!%p13226_p9)
}
  0xd1   : > { %s13230_s30 = scalar_lea.vmem %s753_s2, 64  ;;  %p13238_p4 = scmp.lt.s32.totalorder %s753_s2, %s753_s2 }
  0xd2   : > { %p13231_p10 = scmp.ne.s32.totalorder %s753_s2, %s13230_s30  ;;  %p13239_p7 = scmp.lt.s32.totalorder %s13230_s30, %s13230_s30 }
  0xd4   : > { %p13233_p2 = pnand %p13231_p10, %p14104_p0  ;;  %p13240_p8 = por %p13239_p7, %p13238_p4 }
  0xd6   : > { %p13234_p3 = pneg %p13233_p2 }
  0xd8   : > { %p13241_p11 = pnand %p13240_p8, %p13234_p3 }
  0xda   : > { %13244 = shalt.err (!%p13241_p11)
}
  0xdb   : > { %11626 = dma.hbm_to_vmem [thread:$0]  (!%p14088_p12), %s17143_s12, 64, %s753_s2, [#allocation21]  }
  0xdc   : > { %s17144_s14 = sld [smem:[#allocation83_spill]] }
  0xe2   : > { %s13245_s29 = scalar_lea.hbm %s17144_s14, 256 }
  0xe3   : > { %p13246_p13 = scmp.ne.s32.totalorder %s17144_s14, %s13245_s29  ;;  %p13252_p5 = scmp.lt.u32.totalorder %s13245_s29, %s17144_s14 }
  0xe5   : > { %p13248_p1 = pnand %p13246_p13, %p14104_p0 }
  0xe7   : > { %p13249_p6 = pneg %p13248_p1 }
  0xe9   : > { %p13254_p9 = pnand %p13252_p5, %p13249_p6 }
  0xeb   : > { %13257 = shalt.err (!%p13254_p9)
}
  0xec   : > { %s13258_s9 = scalar_lea.vmem %s776_s7, 256  ;;  %p13266_p4 = scmp.lt.s32.totalorder %s776_s7, %s776_s7 }
  0xed   : > { %p13259_p10 = scmp.ne.s32.totalorder %s776_s7, %s13258_s9  ;;  %p13267_p7 = scmp.lt.s32.totalorder %s13258_s9, %s13258_s9 }
  0xef   : > { %p13261_p2 = pnand %p13259_p10, %p14104_p0  ;;  %p13268_p8 = por %p13267_p7, %p13266_p4 }
  0xf1   : > { %p13262_p3 = pneg %p13261_p2 }
  0xf3   : > { %p13269_p11 = pnand %p13268_p8, %p13262_p3 }
  0xf5   : > { %13272 = shalt.err (!%p13269_p11)
}
  0xf6   : > { %s17090_s2 = smov 64   ;;  %s17092_s30 = smov 4  }
  0xf7   : > { %11632 = dma.hbm_to_vmem [thread:$0]  (!%p14088_p12), %s17144_s14, 256, %s776_s7, [#allocation24], %s17090_s2, %s17090_s2, %s17092_s30  }
  0xf8   : > { %s13874_s24 = smov [#allocation26]   ;;  %s13875_s29 = smov [#allocation29]  }
  0xf9   : > { %s801_s25 = sshll.u32 %s13874_s24, 4  ;;  %s828_s27 = sshll.u32 %s13875_s29, 4  ;;  %s802_s25 = int_to_ptr.vmem [resolvable:$true] %s801_s25  ;;  %s829_s27 = int_to_ptr.vmem [resolvable:$true] %s828_s27 }
  0xfa   : > { %s13273_s5 = scalar_lea.hbm %s17050_s16, 256 }
  0xfb   : > { %p13274_p13 = scmp.ne.s32.totalorder %s17050_s16, %s13273_s5  ;;  %p13280_p5 = scmp.lt.u32.totalorder %s13273_s5, %s17050_s16 }
  0xfd   : > { %p13276_p1 = pnand %p13274_p13, %p14104_p0 }
  0xff   : > { %p13277_p6 = pneg %p13276_p1 }
 0x101   : > { %p13282_p9 = pnand %p13280_p5, %p13277_p6 }
 0x103   : > { %13285 = shalt.err (!%p13282_p9)
}
 0x104   : > { %s13286_s7 = scalar_lea.vmem %s802_s25, 256  ;;  %p13294_p4 = scmp.lt.s32.totalorder %s802_s25, %s802_s25 }
 0x105   : > { %p13287_p10 = scmp.ne.s32.totalorder %s802_s25, %s13286_s7  ;;  %p13295_p7 = scmp.lt.s32.totalorder %s13286_s7, %s13286_s7 }
 0x107   : > { %p13289_p2 = pnand %p13287_p10, %p14104_p0  ;;  %p13296_p8 = por %p13295_p7, %p13294_p4 }
 0x109   : > { %p13290_p3 = pneg %p13289_p2 }
 0x10b   : > { %p13297_p11 = pnand %p13296_p8, %p13290_p3 }
 0x10d   : > { %13300 = shalt.err (!%p13297_p11)
}
 0x10e   : > { %11638 = dma.hbm_to_vmem [thread:$0]  (!%p14088_p12), %s17050_s16, 256, %s802_s25, [#allocation27], %s17090_s2, %s17090_s2, %s17092_s30  }
 0x10f   : > { %s13301_s28 = scalar_lea.hbm %s17052_s18, 64 }
 0x110   : > { %p13302_p13 = scmp.ne.s32.totalorder %s17052_s18, %s13301_s28  ;;  %p13308_p5 = scmp.lt.u32.totalorder %s13301_s28, %s17052_s18 }
 0x112   : > { %p13304_p1 = pnand %p13302_p13, %p14104_p0 }
 0x114   : > { %p13305_p6 = pneg %p13304_p1 }
 0x116   : > { %p13310_p9 = pnand %p13308_p5, %p13305_p6 }
 0x118   : > { %13313 = shalt.err (!%p13310_p9)
}
 0x119   : > { %s13314_s5 = scalar_lea.vmem %s829_s27, 64  ;;  %p13322_p4 = scmp.lt.s32.totalorder %s829_s27, %s829_s27 }
 0x11a   : > { %p13315_p10 = scmp.ne.s32.totalorder %s829_s27, %s13314_s5  ;;  %p13323_p7 = scmp.lt.s32.totalorder %s13314_s5, %s13314_s5 }
 0x11c   : > { %p13317_p2 = pnand %p13315_p10, %p14104_p0  ;;  %p13324_p8 = por %p13323_p7, %p13322_p4 }
 0x11e   : > { %p13318_p3 = pneg %p13317_p2 }
 0x120   : > { %p13325_p11 = pnand %p13324_p8, %p13318_p3 }
 0x122   : > { %13328 = shalt.err (!%p13325_p11)
}
 0x123   : > { %11644 = dma.hbm_to_vmem [thread:$0]  (!%p14088_p12), %s17052_s18, 64, %s829_s27, [#allocation30]  }
 0x124   : > { %s13876_s7 = smov [#allocation32]   ;;  %s13877_s12 = smov [#allocation35]  }
 0x125   : > { %s850_s10 = sshll.u32 %s13876_s7, 4  ;;  %s874_s4 = sshll.u32 %s13877_s12, 4  ;;  %s851_s10 = int_to_ptr.vmem [resolvable:$true] %s850_s10  ;;  %s875_s4 = int_to_ptr.vmem [resolvable:$true] %s874_s4 }
 0x126   : > { %s13329_s24 = scalar_lea.hbm %s17054_s20, 32 }
 0x127   : > { %p13330_p13 = scmp.ne.s32.totalorder %s17054_s20, %s13329_s24  ;;  %p13336_p5 = scmp.lt.u32.totalorder %s13329_s24, %s17054_s20 }
 0x129   : > { %p13332_p1 = pnand %p13330_p13, %p14104_p0 }
 0x12b   : > { %p13333_p6 = pneg %p13332_p1 }
 0x12d   : > { %p13338_p9 = pnand %p13336_p5, %p13333_p6 }
 0x12f   : > { %13341 = shalt.err (!%p13338_p9)
}
 0x130   : > { %s13342_s27 = scalar_lea.vmem %s851_s10, 32  ;;  %p13350_p4 = scmp.lt.s32.totalorder %s851_s10, %s851_s10 }
 0x131   : > { %p13343_p10 = scmp.ne.s32.totalorder %s851_s10, %s13342_s27  ;;  %p13351_p7 = scmp.lt.s32.totalorder %s13342_s27, %s13342_s27 }
 0x133   : > { %p13345_p2 = pnand %p13343_p10, %p14104_p0  ;;  %p13352_p8 = por %p13351_p7, %p13350_p4 }
 0x135   : > { %p13346_p3 = pneg %p13345_p2 }
 0x137   : > { %p13353_p11 = pnand %p13352_p8, %p13346_p3 }
 0x139   : > { %13356 = shalt.err (!%p13353_p11)
}
 0x13a   : > { %11650 = dma.hbm_to_vmem [thread:$0]  (!%p14088_p12), %s17054_s20, 32, %s851_s10, [#allocation33]  }
 0x13b   : > { %s13357_s6 = scalar_lea.hbm %s17056_s22, 16 }
 0x13c   : > { %p13358_p13 = scmp.ne.s32.totalorder %s17056_s22, %s13357_s6  ;;  %p13364_p5 = scmp.lt.u32.totalorder %s13357_s6, %s17056_s22 }
 0x13e   : > { %p13360_p1 = pnand %p13358_p13, %p14104_p0 }
 0x140   : > { %p13361_p6 = pneg %p13360_p1 }
 0x142   : > { %p13366_p9 = pnand %p13364_p5, %p13361_p6 }
 0x144   : > { %13369 = shalt.err (!%p13366_p9)
}
 0x145   : > { %s13370_s1 = scalar_lea.vmem %s875_s4, 16  ;;  %s13377_s10 = scalar_lea.vmem %s875_s4, 32 }
 0x146   : > { %p13371_p10 = scmp.ne.s32.totalorder %s875_s4, %s13370_s1  ;;  %p13378_p4 = scmp.lt.s32.totalorder %s875_s4, %s875_s4 }
 0x147   : > { %p13379_p7 = scmp.lt.s32.totalorder %s13377_s10, %s13370_s1 }
 0x148   : > { %p13373_p2 = pnand %p13371_p10, %p14104_p0 }
 0x149   : > { %p13380_p8 = por %p13379_p7, %p13378_p4 }
 0x14a   : > { %p13374_p3 = pneg %p13373_p2 }
 0x14c   : > { %p13381_p11 = pnand %p13380_p8, %p13374_p3 }
 0x14e   : > { %13384 = shalt.err (!%p13381_p11)
}
 0x14f   : > { %11656 = dma.hbm_to_vmem [thread:$0]  (!%p14088_p12), %s17056_s22, 16, %s875_s4, [#allocation36]  }
 0x150   : > { %s13878_s25 = smov [#allocation2]   ;;  %s17145_s6 = sld [smem:[#allocation71_spill]] }
 0x151   : > { %s624_s9 = sshll.u32 %s13878_s25, 4  ;;  %s625_s9 = int_to_ptr.vmem [resolvable:$true] %s624_s9 }
 0x156   : > { %s17146_s28 = smov %s17145_s6  ;;  %s13385_s24 = scalar_lea.hbm %s17145_s6, 512 }
 0x157   : > { %p13386_p13 = scmp.ne.s32.totalorder %s17146_s28, %s13385_s24  ;;  %p13392_p5 = scmp.lt.u32.totalorder %s13385_s24, %s17146_s28 }
 0x159   : > { %p13388_p1 = pnand %p13386_p13, %p14104_p0 }
 0x15b   : > { %p13389_p6 = pneg %p13388_p1 }
 0x15d   : > { %p13394_p9 = pnand %p13392_p5, %p13389_p6 }
 0x15f   : > { %13397 = shalt.err (!%p13394_p9)
}
 0x160   : > { %s13398_s4 = scalar_lea.vmem %s625_s9, 512  ;;  %p13406_p4 = scmp.lt.s32.totalorder %s625_s9, %s625_s9 }
 0x161   : > { %p13399_p10 = scmp.ne.s32.totalorder %s625_s9, %s13398_s4  ;;  %p13407_p7 = scmp.lt.s32.totalorder %s13398_s4, %s13398_s4 }
 0x163   : > { %p13401_p2 = pnand %p13399_p10, %p14104_p0  ;;  %p13408_p8 = por %p13407_p7, %p13406_p4 }
 0x165   : > { %p13402_p3 = pneg %p13401_p2 }
 0x167   : > { %p13409_p11 = pnand %p13408_p8, %p13402_p3 }
 0x169   : > { %13412 = shalt.err (!%p13409_p11)
}
 0x16a   : > { %s13879_s5 = smov 128   ;;  %s13880_s27 = smov 8  }
 0x16b   : > { %11593 = dma.hbm_to_vmem [thread:$0]  (!%p14088_p12), %s17146_s28, 512, %s625_s9, [#allocation3], %s13879_s5, %s13879_s5, %s13880_s27  }
 0x16c   : > { %s13881_s12 = smov [#allocation7]   ;;  %s13882_s24 = smov [#allocation10]  }
 0x16d   : > { %s649_s6 = sshll.u32 %s13881_s12, 4  ;;  %s670_s29 = sshll.u32 %s13882_s24, 4  ;;  %s650_s6 = int_to_ptr.vmem [resolvable:$true] %s649_s6  ;;  %s14337_s29 = int_to_ptr.vmem [resolvable:$true] %s670_s29 }
 0x16e   : > { %s17147_s10 = sld [smem:[#allocation73_spill]] }
 0x174   : > { %s13413_s4 = scalar_lea.hbm %s17147_s10, 32 }
 0x175   : > { %p13414_p13 = scmp.ne.s32.totalorder %s17147_s10, %s13413_s4  ;;  %p13420_p5 = scmp.lt.u32.totalorder %s13413_s4, %s17147_s10 }
 0x177   : > { %p13416_p1 = pnand %p13414_p13, %p14104_p0 }
 0x179   : > { %p13417_p6 = pneg %p13416_p1 }
 0x17b   : > { %p13422_p9 = pnand %p13420_p5, %p13417_p6 }
 0x17d   : > { %13425 = shalt.err (!%p13422_p9)
}
 0x17e   : > { %s13426_s7 = scalar_lea.vmem %s650_s6, 32  ;;  %p13434_p4 = scmp.lt.s32.totalorder %s650_s6, %s650_s6 }
 0x17f   : > { %p13427_p10 = scmp.ne.s32.totalorder %s650_s6, %s13426_s7  ;;  %p13435_p7 = scmp.lt.s32.totalorder %s13426_s7, %s13426_s7 }
 0x181   : > { %p13429_p2 = pnand %p13427_p10, %p14104_p0  ;;  %p13436_p8 = por %p13435_p7, %p13434_p4 }
 0x183   : > { %p13430_p3 = pneg %p13429_p2 }
 0x185   : > { %p13437_p11 = pnand %p13436_p8, %p13430_p3 }
 0x187   : > { %13440 = shalt.err (!%p13437_p11)
}
 0x188   : > { %11599 = dma.hbm_to_vmem [thread:$0]  (!%p14088_p12), %s17147_s10, 32, %s650_s6, [#allocation6]  }
 0x189   : > { %s17148_s0 = sld [smem:[#allocation75_spill]] }
 0x18f   : > { %s13441_s1 = scalar_lea.hbm %s17148_s0, 4096 }
 0x190   : > { %p13442_p13 = scmp.ne.s32.totalorder %s17148_s0, %s13441_s1  ;;  %p13448_p5 = scmp.lt.u32.totalorder %s13441_s1, %s17148_s0 }
 0x192   : > { %p13444_p1 = pnand %p13442_p13, %p14104_p0 }
 0x194   : > { %p13445_p6 = pneg %p13444_p1 }
 0x196   : > { %p13450_p9 = pnand %p13448_p5, %p13445_p6 }
 0x198   : > { %13453 = shalt.err (!%p13450_p9)
}
 0x199   : > { %s13454_s6 = scalar_lea.vmem %s14337_s29, 4096  ;;  %p13462_p4 = scmp.lt.s32.totalorder %s14337_s29, %s14337_s29 }
 0x19a   : > { %p13455_p10 = scmp.ne.s32.totalorder %s14337_s29, %s13454_s6  ;;  %p13463_p7 = scmp.lt.s32.totalorder %s13454_s6, %s13454_s6 }
 0x19c   : > { %p13457_p2 = pnand %p13455_p10, %p14104_p0  ;;  %p13464_p8 = por %p13463_p7, %p13462_p4 }
 0x19e   : > { %p13458_p3 = pneg %p13457_p2 }
 0x1a0   : > { %p13465_p11 = pnand %p13464_p8, %p13458_p3 }
 0x1a2   : > { %13468 = shalt.err (!%p13465_p11)
}
 0x1a3   : > { %11605 = dma.hbm_to_vmem [thread:$0]  (!%p14088_p12), %s17148_s0, 4096, %s14337_s29, [#allocation9], %s13879_s5, %s13879_s5, %s13880_s27  }
 0x1a4   : > { %s13883_s12 = smov [#allocation13]   ;;  %s13884_s1 = smov [#allocation16]  }
 0x1a5   : > { %s695_s24 = sshll.u32 %s13883_s12, 4  ;;  %s716_s4 = sshll.u32 %s13884_s1, 4  ;;  %s696_s24 = int_to_ptr.vmem [resolvable:$true] %s695_s24  ;;  %s14383_s4 = int_to_ptr.vmem [resolvable:$true] %s716_s4 }
 0x1a6   : > { %s17149_s7 = sld [smem:[#allocation77_spill]] }
 0x1ac   : > { %s13469_s6 = scalar_lea.hbm %s17149_s7, 32 }
 0x1ad   : > { %p13470_p13 = scmp.ne.s32.totalorder %s17149_s7, %s13469_s6  ;;  %p13476_p5 = scmp.lt.u32.totalorder %s13469_s6, %s17149_s7 }
 0x1af   : > { %p13472_p1 = pnand %p13470_p13, %p14104_p0 }
 0x1b1   : > { %p13473_p6 = pneg %p13472_p1 }
 0x1b3   : > { %p13478_p9 = pnand %p13476_p5, %p13473_p6 }
 0x1b5   : > { %13481 = shalt.err (!%p13478_p9)
}
 0x1b6   : > { %s13482_s27 = scalar_lea.vmem %s696_s24, 32  ;;  %p13490_p4 = scmp.lt.s32.totalorder %s696_s24, %s696_s24 }
 0x1b7   : > { %p13483_p10 = scmp.ne.s32.totalorder %s696_s24, %s13482_s27  ;;  %p13491_p7 = scmp.lt.s32.totalorder %s13482_s27, %s13482_s27 }
 0x1b9   : > { %p13485_p2 = pnand %p13483_p10, %p14104_p0  ;;  %p13492_p8 = por %p13491_p7, %p13490_p4 }
 0x1bb   : > { %p13486_p3 = pneg %p13485_p2 }
 0x1bd   : > { %p13493_p11 = pnand %p13492_p8, %p13486_p3 }
 0x1bf   : > { %13496 = shalt.err (!%p13493_p11)
}
 0x1c0   : > { %11611 = dma.hbm_to_vmem [thread:$0]  (!%p14088_p12), %s17149_s7, 32, %s696_s24, [#allocation12]  }
 0x1c1   : > { %s17150_s12 = sld [smem:[#allocation79_spill]] }
 0x1c7   : > { %s13497_s1 = scalar_lea.hbm %s17150_s12, 16384 }
 0x1c8   : > { %p13498_p13 = scmp.ne.s32.totalorder %s17150_s12, %s13497_s1  ;;  %p13504_p5 = scmp.lt.u32.totalorder %s13497_s1, %s17150_s12 }
 0x1ca   : > { %p13500_p1 = pnand %p13498_p13, %p14104_p0 }
 0x1cc   : > { %p13501_p6 = pneg %p13500_p1 }
 0x1ce   : > { %p13506_p9 = pnand %p13504_p5, %p13501_p6 }
 0x1d0   : > { %13509 = shalt.err (!%p13506_p9)
}
 0x1d1   : > { %s13510_s24 = scalar_lea.vmem %s14383_s4, 16384  ;;  %p13518_p4 = scmp.lt.s32.totalorder %s14383_s4, %s14383_s4 }
 0x1d2   : > { %p13511_p10 = scmp.ne.s32.totalorder %s14383_s4, %s13510_s24  ;;  %p13519_p7 = scmp.lt.s32.totalorder %s13510_s24, %s13510_s24 }
 0x1d4   : > { %p13513_p2 = pnand %p13511_p10, %p14104_p0  ;;  %p13520_p8 = por %p13519_p7, %p13518_p4 }
 0x1d6   : > { %p13514_p3 = pneg %p13513_p2 }
 0x1d8   : > { %p13521_p11 = pnand %p13520_p8, %p13514_p3 }
 0x1da   : > { %13524 = shalt.err (!%p13521_p11)
}
 0x1db   : > { %s13885_s5 = smov 512   ;;  %s13886_s27 = smov 32  }
 0x1dc   : > { %11617 = dma.hbm_to_vmem [thread:$0]  (!%p14088_p12), %s17150_s12, 16384, %s14383_s4, [#allocation15], %s13885_s5, %s13885_s5, %s13886_s27  }
 0x1dd   : > { %s13887_s10 = smov [#allocation19]   ;;  %s13888_s1 = smov [#allocation22]  }
 0x1de   : > { %s741_s30 = sshll.u32 %s13887_s10, 4  ;;  %s762_s25 = sshll.u32 %s13888_s1, 4  ;;  %s742_s30 = int_to_ptr.vmem [resolvable:$true] %s741_s30  ;;  %s14426_s25 = int_to_ptr.vmem [resolvable:$true] %s762_s25 }
 0x1df   : > { %s17151_s11 = sld [smem:[#allocation81_spill]] }
 0x1e5   : > { %s13525_s2 = scalar_lea.hbm %s17151_s11, 64 }
 0x1e6   : > { %p13526_p13 = scmp.ne.s32.totalorder %s17151_s11, %s13525_s2  ;;  %p13532_p5 = scmp.lt.u32.totalorder %s13525_s2, %s17151_s11 }
 0x1e8   : > { %p13528_p1 = pnand %p13526_p13, %p14104_p0 }
 0x1ea   : > { %p13529_p6 = pneg %p13528_p1 }
 0x1ec   : > { %p13534_p9 = pnand %p13532_p5, %p13529_p6 }
 0x1ee   : > { %13537 = shalt.err (!%p13534_p9)
}
 0x1ef   : > { %s13538_s5 = scalar_lea.vmem %s742_s30, 64  ;;  %p13546_p4 = scmp.lt.s32.totalorder %s742_s30, %s742_s30 }
 0x1f0   : > { %p13539_p10 = scmp.ne.s32.totalorder %s742_s30, %s13538_s5  ;;  %p13547_p7 = scmp.lt.s32.totalorder %s13538_s5, %s13538_s5 }
 0x1f2   : > { %p13541_p2 = pnand %p13539_p10, %p14104_p0  ;;  %p13548_p8 = por %p13547_p7, %p13546_p4 }
 0x1f4   : > { %p13542_p3 = pneg %p13541_p2 }
 0x1f6   : > { %p13549_p11 = pnand %p13548_p8, %p13542_p3 }
 0x1f8   : > { %13552 = shalt.err (!%p13549_p11)
}
 0x1f9   : > { %11623 = dma.hbm_to_vmem [thread:$0]  (!%p14088_p12), %s17151_s11, 64, %s742_s30, [#allocation18]  }
 0x1fa   : > { %s13553_s1 = scalar_lea.hbm %s17047_s13, 65536 }
 0x1fb   : > { %p13554_p13 = scmp.ne.s32.totalorder %s17047_s13, %s13553_s1  ;;  %p13560_p5 = scmp.lt.u32.totalorder %s13553_s1, %s17047_s13 }
 0x1fd   : > { %p13556_p1 = pnand %p13554_p13, %p14104_p0 }
 0x1ff   : > { %p13557_p6 = pneg %p13556_p1 }
 0x201   : > { %p13562_p9 = pnand %p13560_p5, %p13557_p6 }
 0x203   : > { %13565 = shalt.err (!%p13562_p9)
}
 0x204   : > { %s13566_s30 = scalar_lea.vmem %s14426_s25, 65536  ;;  %p13574_p4 = scmp.lt.s32.totalorder %s14426_s25, %s14426_s25 }
 0x205   : > { %p13567_p10 = scmp.ne.s32.totalorder %s14426_s25, %s13566_s30  ;;  %p13575_p7 = scmp.lt.s32.totalorder %s13566_s30, %s13566_s30 }
 0x207   : > { %p13569_p2 = pnand %p13567_p10, %p14104_p0  ;;  %p13576_p8 = por %p13575_p7, %p13574_p4 }
 0x209   : > { %p13570_p3 = pneg %p13569_p2 }
 0x20b   : > { %p13577_p11 = pnand %p13576_p8, %p13570_p3 }
 0x20d   : > { %13580 = shalt.err (!%p13577_p11)
}
 0x20e   : > { %s17096_s14 = smov 256   ;;  %s13890_s4 = smov 16  }
 0x20f   : > { %11629 = dma.hbm_to_vmem [thread:$0]  (!%p14088_p12), %s17047_s13, 65536, %s14426_s25, [#allocation21], %s17096_s14, %s17096_s14, %s13890_s4  }
 0x210   : > { %s13891_s27 = smov [#allocation25]   ;;  %s13892_s10 = smov [#allocation28]  }
 0x211   : > { %s788_s29 = sshll.u32 %s13891_s27, 4  ;;  %s814_s1 = sshll.u32 %s13892_s10, 4  ;;  %s789_s29 = int_to_ptr.vmem [resolvable:$true] %s788_s29  ;;  %s14472_s1 = int_to_ptr.vmem [resolvable:$true] %s814_s1 }
 0x212   : > { %s13581_s2 = scalar_lea.hbm %s17049_s15, 256 }
 0x213   : > { %p13582_p13 = scmp.ne.s32.totalorder %s17049_s15, %s13581_s2  ;;  %p13588_p5 = scmp.lt.u32.totalorder %s13581_s2, %s17049_s15 }
 0x215   : > { %p13584_p1 = pnand %p13582_p13, %p14104_p0 }
 0x217   : > { %p13585_p6 = pneg %p13584_p1 }
 0x219   : > { %p13590_p9 = pnand %p13588_p5, %p13585_p6 }
 0x21b   : > { %13593 = shalt.err (!%p13590_p9)
}
 0x21c   : > { %s13594_s0 = scalar_lea.vmem %s789_s29, 256  ;;  %p13602_p4 = scmp.lt.s32.totalorder %s789_s29, %s789_s29 }
 0x21d   : > { %p13595_p10 = scmp.ne.s32.totalorder %s789_s29, %s13594_s0  ;;  %p13603_p7 = scmp.lt.s32.totalorder %s13594_s0, %s13594_s0 }
 0x21f   : > { %p13597_p2 = pnand %p13595_p10, %p14104_p0  ;;  %p13604_p8 = por %p13603_p7, %p13602_p4 }
 0x221   : > { %p13598_p3 = pneg %p13597_p2 }
 0x223   : > { %p13605_p11 = pnand %p13604_p8, %p13598_p3 }
 0x225   : > { %13608 = shalt.err (!%p13605_p11)
}
 0x226   : > { %s17152_s27 = smov 4   ;;  %s17153_s10 = smov 64  }
 0x227   : > { %11635 = dma.hbm_to_vmem [thread:$0]  (!%p14088_p12), %s17049_s15, 256, %s789_s29, [#allocation24], %s17153_s10, %s17153_s10, %s17152_s27  }
 0x228   : > { %s13609_s30 = scalar_lea.hbm %s17051_s17, 16384 }
 0x229   : > { %p13610_p13 = scmp.ne.s32.totalorder %s17051_s17, %s13609_s30  ;;  %p13616_p5 = scmp.lt.u32.totalorder %s13609_s30, %s17051_s17 }
 0x22b   : > { %p13612_p1 = pnand %p13610_p13, %p14104_p0 }
 0x22d   : > { %p13613_p6 = pneg %p13612_p1 }
 0x22f   : > { %p13618_p9 = pnand %p13616_p5, %p13613_p6 }
 0x231   : > { %13621 = shalt.err (!%p13618_p9)
}
 0x232   : > { %s13622_s29 = scalar_lea.vmem %s14472_s1, 16384  ;;  %p13630_p4 = scmp.lt.s32.totalorder %s14472_s1, %s14472_s1 }
 0x233   : > { %p13623_p10 = scmp.ne.s32.totalorder %s14472_s1, %s13622_s29  ;;  %p13631_p7 = scmp.lt.s32.totalorder %s13622_s29, %s13622_s29 }
 0x235   : > { %p13625_p2 = pnand %p13623_p10, %p14104_p0  ;;  %p13632_p8 = por %p13631_p7, %p13630_p4 }
 0x237   : > { %p13626_p3 = pneg %p13625_p2 }
 0x239   : > { %p13633_p11 = pnand %p13632_p8, %p13626_p3 }
 0x23b   : > { %13636 = shalt.err (!%p13633_p11)
}
 0x23c   : > { %s17154_s14 = smov 256   ;;  %s13893_s2 = smov [#allocation31]  }
 0x23d   : > { %11641 = dma.hbm_to_vmem [thread:$0]  (!%p14088_p12), %s17051_s17, 16384, %s14472_s1, [#allocation27], %s17154_s14, %s17154_s14, %s13890_s4  }
 0x23e   : > { %s839_s24 = sshll.u32 %s13893_s2, 4  ;;  %s13894_s30 = smov [#allocation34]   ;;  %s840_s24 = int_to_ptr.vmem [resolvable:$true] %s839_s24 }
 0x23f   : > { %s860_s5 = sshll.u32 %s13894_s30, 4  ;;  %s13637_s29 = scalar_lea.hbm %s17053_s19, 32  ;;  %s14521_s5 = int_to_ptr.vmem [resolvable:$true] %s860_s5 }
 0x240   : > { %p13638_p13 = scmp.ne.s32.totalorder %s17053_s19, %s13637_s29  ;;  %p13644_p5 = scmp.lt.u32.totalorder %s13637_s29, %s17053_s19 }
 0x242   : > { %p13640_p1 = pnand %p13638_p13, %p14104_p0 }
 0x244   : > { %p13641_p6 = pneg %p13640_p1 }
 0x246   : > { %p13646_p9 = pnand %p13644_p5, %p13641_p6 }
 0x248   : > { %13649 = shalt.err (!%p13646_p9)
}
 0x249   : > { %s13650_s1 = scalar_lea.vmem %s840_s24, 32  ;;  %p13658_p4 = scmp.lt.s32.totalorder %s840_s24, %s840_s24 }
 0x24a   : > { %p13651_p10 = scmp.ne.s32.totalorder %s840_s24, %s13650_s1  ;;  %p13659_p7 = scmp.lt.s32.totalorder %s13650_s1, %s13650_s1 }
 0x24c   : > { %p13653_p2 = pnand %p13651_p10, %p14104_p0  ;;  %p13660_p8 = por %p13659_p7, %p13658_p4 }
 0x24e   : > { %p13654_p3 = pneg %p13653_p2 }
 0x250   : > { %p13661_p11 = pnand %p13660_p8, %p13654_p3 }
 0x252   : > { %13664 = shalt.err (!%p13661_p11)
}
 0x253   : > { %11647 = dma.hbm_to_vmem [thread:$0]  (!%p14088_p12), %s17053_s19, 32, %s840_s24, [#allocation30]  }
 0x254   : > { %s13665_s2 = scalar_lea.hbm %s17055_s21, 2048 }
 0x255   : > { %p13666_p13 = scmp.ne.s32.totalorder %s17055_s21, %s13665_s2  ;;  %p13672_p5 = scmp.lt.u32.totalorder %s13665_s2, %s17055_s21 }
 0x257   : > { %p13668_p1 = pnand %p13666_p13, %p14104_p0 }
 0x259   : > { %p13669_p6 = pneg %p13668_p1 }
 0x25b   : > { %p13674_p9 = pnand %p13672_p5, %p13669_p6 }
 0x25d   : > { %13677 = shalt.err (!%p13674_p9)
}
 0x25e   : > { %s13678_s24 = scalar_lea.vmem %s14521_s5, 2048  ;;  %p13686_p4 = scmp.lt.s32.totalorder %s14521_s5, %s14521_s5 }
 0x25f   : > { %p13679_p10 = scmp.ne.s32.totalorder %s14521_s5, %s13678_s24  ;;  %p13687_p7 = scmp.lt.s32.totalorder %s13678_s24, %s13678_s24 }
 0x261   : > { %p13681_p2 = pnand %p13679_p10, %p14104_p0  ;;  %p13688_p8 = por %p13687_p7, %p13686_p4 }
 0x263   : > { %p13682_p3 = pneg %p13681_p2 }
 0x265   : > { %p13689_p11 = pnand %p13688_p8, %p13682_p3 }
 0x267   : > { %13692 = shalt.err (!%p13689_p11)
}
 0x268   : > { %11653 = dma.hbm_to_vmem [thread:$0]  (!%p14088_p12), %s17055_s21, 2048, %s14521_s5, [#allocation33], %s17153_s10, %s17153_s10, %s17152_s27  }
 0x269   : > { %s13895_s1 = smov [#allocation37]   ;;  %s13896_s7 = smov [#allocation38]  }
 0x26a   : > { %s885_s11 = sshll.u32 %s13895_s1, 4  ;;  %s896_s14 = sshll.u32 %s13896_s7, 4  ;;  %s886_s11 = int_to_ptr.vmem [resolvable:$true] %s885_s11  ;;  %s14567_s14 = int_to_ptr.vmem [resolvable:$true] %s896_s14 }
 0x26b   : > { %s13693_s30 = scalar_lea.hbm %s17057_s23, 16 }
 0x26c   : > { %p13694_p13 = scmp.ne.s32.totalorder %s17057_s23, %s13693_s30  ;;  %p13700_p5 = scmp.lt.u32.totalorder %s13693_s30, %s17057_s23 }
 0x26e   : > { %p13696_p1 = pnand %p13694_p13, %p14104_p0 }
 0x270   : > { %p13697_p6 = pneg %p13696_p1 }
 0x272   : > { %p13702_p9 = pnand %p13700_p5, %p13697_p6 }
 0x274   : > { %13705 = shalt.err (!%p13702_p9)
}
 0x275   : > { %s13706_s10 = scalar_lea.vmem %s886_s11, 16  ;;  %s13713_s5 = scalar_lea.vmem %s886_s11, 32 }
 0x276   : > { %p13707_p10 = scmp.ne.s32.totalorder %s886_s11, %s13706_s10  ;;  %p13714_p4 = scmp.lt.s32.totalorder %s886_s11, %s886_s11 }
 0x277   : > { %p13715_p7 = scmp.lt.s32.totalorder %s13713_s5, %s13706_s10 }
 0x278   : > { %p13709_p2 = pnand %p13707_p10, %p14104_p0 }
 0x279   : > { %p13716_p8 = por %p13715_p7, %p13714_p4 }
 0x27a   : > { %p13710_p3 = pneg %p13709_p2 }
 0x27c   : > { %p13717_p11 = pnand %p13716_p8, %p13710_p3 }
 0x27e   : > { %13720 = shalt.err (!%p13717_p11)
}
 0x27f   : > { %11659 = dma.hbm_to_vmem [thread:$0]  (!%p14088_p12), %s17057_s23, 16, %s886_s11, [#allocation36]  }
 0x280   : > { %s17155_s7 = sld [smem:[#allocation84_spill]] }
 0x286   : > { %s13721_s6 = scalar_lea.hbm %s17155_s7, 16 }
 0x287   : > { %p13722_p13 = scmp.ne.s32.totalorder %s17155_s7, %s13721_s6  ;;  %p13728_p5 = scmp.lt.u32.totalorder %s13721_s6, %s17155_s7 }
 0x289   : > { %p13724_p1 = pnand %p13722_p13, %p14104_p0 }
 0x28b   : > { %p13725_p6 = pneg %p13724_p1 }
 0x28d   : > { %p13730_p9 = pnand %p13728_p5, %p13725_p6 }
 0x28f   : > { %13733 = shalt.err (!%p13730_p9)
}
 0x290   : > { %s13734_s11 = scalar_lea.vmem %s14567_s14, 16  ;;  %s13741_s29 = scalar_lea.vmem %s14567_s14, 32 }
 0x291   : > { %p13735_p10 = scmp.ne.s32.totalorder %s14567_s14, %s13734_s11  ;;  %p13742_p4 = scmp.lt.s32.totalorder %s14567_s14, %s14567_s14 }
 0x292   : > { %p13743_p7 = scmp.lt.s32.totalorder %s13741_s29, %s13734_s11 }
 0x293   : > { %p13737_p2 = pnand %p13735_p10, %p14104_p0 }
 0x294   : > { %p13744_p8 = por %p13743_p7, %p13742_p4 }
 0x295   : > { %p13738_p3 = pneg %p13737_p2 }
 0x297   : > { %p13745_p11 = pnand %p13744_p8, %p13738_p3 }
 0x299   : > { %13748 = shalt.err (!%p13745_p11)
}
 0x29a   : > { %11662 = dma.hbm_to_vmem [thread:$0]  (!%p14088_p12), %s17155_s7, 16, %s14567_s14, [#allocation39]  }
 0x29b   : > { %s17156_s5 = sld [smem:[#allocation64_spill]] }
 0x2a1   : > { %p17157_p13 = scmp.ne.s32.totalorder %s17156_s5, 0 }
 0x2a3   : > { %918 = sbr.rel (%p17157_p13) target bundleno = 4824 (0x12d8), region = 120 }
 0x2aa   : > { %s17158_s3 = sld [smem:[#allocation59_spill]] }
 0x2b0   : > { %p17159_p0 = scmp.eq.s32.totalorder %s17158_s3, 0 }
 0x2b2   : > { %13794 = dma.done.wait (%p17159_p0), [#allocation3], 512   ;;  %p17160_p1 = pmov %p17159_p0 }
 0x2b3   : > { %p17161_p6 = pmov %p17159_p0 }
 0x2b4   : > { %13796 = vsyncadd (%p17160_p1), [#allocation3], 4294966784 }
 0x2b5   : > { %13798 = dma.done.wait (%p17161_p6), [#allocation6], 64   ;;  %p17162_p5 = pmov %p17159_p0 }
 0x2b6   : > { %p17163_p9 = pmov %p17159_p0 }
 0x2b7   : > { %13800 = vsyncadd (%p17162_p5), [#allocation6], 4294967232 }
 0x2b8   : > { %13802 = dma.done.wait (%p17163_p9), [#allocation9], 4128   ;;  %p17164_p12 = pmov %p17159_p0 }
 0x2b9   : > { %p17165_p10 = pmov %p17159_p0 }
 0x2ba   : > { %13804 = vsyncadd (%p17164_p12), [#allocation9], 4294963168 }
 0x2bb   : > { %13806 = dma.done.wait (%p17165_p10), [#allocation12], 64   ;;  %p17166_p2 = pmov %p17159_p0 }
 0x2bc   : > { %p17167_p3 = pmov %p17159_p0 }
 0x2bd   : > { %13808 = vsyncadd (%p17166_p2), [#allocation12], 4294967232 }
 0x2be   : > { %13810 = dma.done.wait (%p17167_p3), [#allocation15], 16416   ;;  %p17168_p4 = pmov %p17159_p0 }
 0x2bf   : > { %p17169_p7 = pmov %p17159_p0 }
 0x2c0   : > { %13812 = vsyncadd (%p17168_p4), [#allocation15], 4294950880 }
 0x2c1   : > { %13814 = dma.done.wait (%p17169_p7), [#allocation18], 192   ;;  %p17170_p8 = pmov %p17159_p0 }
 0x2c2   : > { %p17171_p11 = pmov %p17159_p0 }
 0x2c3   : > { %13816 = vsyncadd (%p17170_p8), [#allocation18], 4294967104 }
 0x2c4   : > { %13818 = dma.done.wait (%p17171_p11), [#allocation21], 65600   ;;  %p17172_p13 = pmov %p17159_p0 }
 0x2c6   : > { %13820 = vsyncadd (%p17172_p13), [#allocation21], 4294901696 }
 0x2c7   : > { %13822 = dma.done.wait (%p17159_p0), [#allocation24], 512   ;;  %p17173_p1 = pmov %p17159_p0 }
 0x2c8   : > { %p17174_p6 = pmov %p17159_p0 }
 0x2c9   : > { %13824 = vsyncadd (%p17173_p1), [#allocation24], 4294966784 }
 0x2ca   : > { %13826 = dma.done.wait (%p17174_p6), [#allocation27], 16640   ;;  %p17175_p5 = pmov %p17159_p0 }
 0x2cb   : > { %p17176_p9 = pmov %p17159_p0 }
 0x2cc   : > { %13828 = vsyncadd (%p17175_p5), [#allocation27], 4294950656 }
 0x2cd   : > { %13830 = dma.done.wait (%p17176_p9), [#allocation30], 96   ;;  %p17177_p12 = pmov %p17159_p0 }
 0x2ce   : > { %p17178_p10 = pmov %p17159_p0 }
 0x2cf   : > { %13832 = vsyncadd (%p17177_p12), [#allocation30], 4294967200 }
 0x2d0   : > { %13834 = dma.done.wait (%p17178_p10), [#allocation33], 2080   ;;  %p17179_p2 = pmov %p17159_p0 }
 0x2d1   : > { %p17180_p3 = pmov %p17159_p0 }
 0x2d2   : > { %13836 = vsyncadd (%p17179_p2), [#allocation33], 4294965216 }
 0x2d3   : > { %13838 = dma.done.wait (%p17180_p3), [#allocation36], 32   ;;  %p17181_p4 = pmov %p17159_p0 }
 0x2d4   : > { %p17182_p7 = pmov %p17159_p0 }
 0x2d5   : > { %13840 = vsyncadd (%p17181_p4), [#allocation36], 4294967264 }
 0x2d6   : > { %13842 = dma.done.wait (%p17182_p7), [#allocation39], 16   ;;  %p17183_p8 = pmov %p17159_p0 }
 0x2d7   : > { %s10471_s8 = sshll.u32 %s17158_s3, 2  ;;  %v13897_v0 = vmov 0   ;;  %v11783_v1 = vld [vmem:[#allocation2 + $0x4] ss:$8 sps:$4 sm:$0xff]   ;;  %s17184_s4 = sld [smem:[#allocation70_spill]]  ;;  %vm1128_vm0 = vcmask 261120   ;;  %v1098_v15 = vlaneseq }
 0x2d8   : > { %13844 = vsyncadd (%p17183_p8), [#allocation39], 4294967280  ;;  %1167 = vmatprep.mubr.bf16.mxu0 %v13897_v0  ;;  %p1079_p11 = scmp.lt.s32.totalorder %s10471_s8, 7  ;;  %v11785_v2 = vld [vmem:[#allocation2] ss:$8 sps:$4 sm:$0xff]   ;;  %1135 = vmatprep.subr.bf16.mxu0 %v11783_v1  ;;  %s17227_s6 = sld [smem:[#allocation56_spill]] }
 0x2d9   : > { %v11786_v3 = vld [vmem:[#allocation2 + $0x14] ss:$8 sps:$4 sm:$0xff]   ;;  %1136 = vmatpush1.bf16.msra.mxu0 %v11785_v2  ;;  %v11788_v4 = vld [vmem:[#allocation2 + $0x10] ss:$8 sps:$4 sm:$0xff]   ;;  %v14669_v16 = vshrl.u32 %v1098_v15, 7  ;;  %s17228_s0 = sld [smem:[#allocation62_spill]] }
 0x2da   : > { %s17240_s8 = smov (!%p1079_p11, %s10471_s8), 7  ;;  %1137 = vmatprep.subr.bf16.mxu0 %v11786_v3  ;;  %v11789_v11 = vld [vmem:[#allocation10 + $0x4] ss:$8 sps:$4 sm:$0xff]   ;;  %v11791_v12 = vld [vmem:[#allocation10] ss:$8 sps:$4 sm:$0xff]   ;;  %s11303_s11 = sshll.u32 %s17158_s3, 9 }
 0x2db   : > { %s10472_s14 = sshll.u32 %s17240_s8, 3  ;;  %v11792_v13 = vld [vmem:[#allocation10 + $0x14] ss:$8 sps:$4 sm:$0xff]   ;;  %v11794_v14 = vld [vmem:[#allocation10 + $0x10] ss:$8 sps:$4 sm:$0xff]   ;;  %1580 = vmatprep.subr.bf16.mxu1 %v11789_v11  ;;  %v14672_v18 = vsub.s32 0, %v14669_v16 }
 0x2dc   : > { %1581 = vmatpush1.bf16.msra.mxu1 %v11791_v12  ;;  %v1096_v17 = vld [vmem:[#allocation5] sm:$0x3]  ;;  %v14675_v19 = vsub.s32 1, %v14669_v16  ;;  %v11795_v54 = vld [vmem:[#allocation10 + $0x24] ss:$8 sps:$4 sm:$0xff]   ;;  %s17229_s5 = sld [smem:[#allocation85_spill]] }
 0x2dd   : > { %s1082_s1 = scalar_lea.vmem %s17184_s4, %s10472_s14  ;;  %1138 = vmatpush1.bf16.msra.mxu0 %v11788_v4  ;;  %1582 = vmatprep.subr.bf16.mxu1 %v11792_v13  ;;  %17185 = vst [vmem:[#allocation65_spill] sm:$0xff] %v14672_v18  ;;  %v1101_v20 = vrot.slane %v1096_v17, %v14672_v18  ;;  %v11797_v55 = vld [vmem:[#allocation10 + $0x20] ss:$8 sps:$4 sm:$0xff]   ;;  %v11798_v56 = vld [vmem:[#allocation10 + $0x34] ss:$8 sps:$4 sm:$0xff]   ;;  %s13898_s24 = smov [#allocation40]  }
 0x2de   : > { %v1086_v5 = vld [vmem:[%s1082_s1] sm:$0xff]  ;;  %v1087_v6 = vld [vmem:[%s1082_s1 + $0x8] sm:$0xff]  ;;  %v1088_v8 = vld [vmem:[%s1082_s1 + $0x10] sm:$0xff]  ;;  %17186 = vst [vmem:[#allocation66_spill] sm:$0xff] %v14675_v19  ;;  %v1105_v21 = vrot.slane %v1096_v17, %v14675_v19  ;;  %s1075_s2 = sand.u32 1, %s17227_s6   ;;  %s13753_s9 = sshll.u32 %s13898_s24, 4  ;;  %s13754_s9 = int_to_ptr.vmem [resolvable:$false] %s13753_s9 }
 0x2df   : > { %v1090_v7 = vpack.c.bf16 %v1087_v6, %v1086_v5  ;;  %v1089_v9 = vld [vmem:[%s1082_s1 + $0x18] sm:$0xff]  ;;  %v11801_v58 = vld [vmem:[#allocation10 + $0x44] ss:$8 sps:$4 sm:$0xff]   ;;  %v11803_v59 = vld [vmem:[#allocation10 + $0x40] ss:$8 sps:$4 sm:$0xff]   ;;  %s10470_s30 = sshll.u32 %s1075_s2, 5 }
 0x2e0   : > { %v1091_v10 = vpack.c.bf16 %v1089_v9, %v1088_v8  ;;  %1583 = vmatpush1.bf16.msra.mxu1 %v11794_v14  ;;  %v11800_v57 = vld [vmem:[#allocation10 + $0x30] ss:$8 sps:$4 sm:$0xff]   ;;  %v11804_v60 = vld [vmem:[#allocation10 + $0x54] ss:$8 sps:$4 sm:$0xff]   ;;  %v11807_v62 = vld [vmem:[#allocation10 + $0x64] ss:$8 sps:$4 sm:$0xff]  }
 0x2e1   : > { %10477 = vmatmul.mubr.msk.bf16.vlgmr.msra.gmra.mrb[0].mxu0 %vm1128_vm0, %v1090_v7  ;;  %1584 = vmatprep.subr.bf16.mxu1 %v11795_v54  ;;  %v11806_v61 = vld [vmem:[#allocation10 + $0x50] ss:$8 sps:$4 sm:$0xff]   ;;  %v11809_v63 = vld [vmem:[#allocation10 + $0x60] ss:$8 sps:$4 sm:$0xff]   ;;  %v11813_v2 = vld [vmem:[#allocation10 + $0x84] ss:$8 sps:$4 sm:$0xff]  }
 0x2e2   : > { %1177 = vmatprep.mubr.bf16.mxu0 %v13897_v0  ;;  %v11810_v0 = vld [vmem:[#allocation10 + $0x74] ss:$8 sps:$4 sm:$0xff]   ;;  %v11812_v1 = vld [vmem:[#allocation10 + $0x70] ss:$8 sps:$4 sm:$0xff]   ;;  %v11815_v3 = vld [vmem:[#allocation10 + $0x80] ss:$8 sps:$4 sm:$0xff]   ;;  %s16987_s8 = scalar_lea.hbm %s17229_s5, %s11303_s11 }
 0x2e3   : > { %v11816_v4 = vld [vmem:[#allocation10 + $0x94] ss:$8 sps:$4 sm:$0xff]   ;;  %v11818_v5 = vld [vmem:[#allocation10 + $0x90] ss:$8 sps:$4 sm:$0xff]   ;;  %v11819_v6 = vld [vmem:[#allocation10 + $0xa4] ss:$8 sps:$4 sm:$0xff]  }
 0x2e4   : > { %1585 = vmatpush1.bf16.msra.mxu1 %v11797_v55  ;;  %v11821_v7 = vld [vmem:[#allocation10 + $0xa0] ss:$8 sps:$4 sm:$0xff]   ;;  %v11822_v8 = vld [vmem:[#allocation10 + $0xb4] ss:$8 sps:$4 sm:$0xff]   ;;  %v11824_v9 = vld [vmem:[#allocation10 + $0xb0] ss:$8 sps:$4 sm:$0xff]  }
 0x2e5   : > { %1586 = vmatprep.subr.bf16.mxu1 %v11798_v56  ;;  %v11827_v11 = vld [vmem:[#allocation10 + $0xc0] ss:$8 sps:$4 sm:$0xff]   ;;  %v11828_v12 = vld [vmem:[#allocation10 + $0xd4] ss:$8 sps:$4 sm:$0xff]   ;;  %v11830_v13 = vld [vmem:[#allocation10 + $0xd0] ss:$8 sps:$4 sm:$0xff]  }
 0x2e6   : > { %v11831_v14 = vld [vmem:[#allocation10 + $0xe4] ss:$8 sps:$4 sm:$0xff]   ;;  %v11833_v15 = vld [vmem:[#allocation10 + $0xe0] ss:$8 sps:$4 sm:$0xff]   ;;  %v11834_v17 = vld [vmem:[#allocation10 + $0xf4] ss:$8 sps:$4 sm:$0xff]  }
 0x2e7   : > { %v1189_v55 = vld [vmem:[#allocation8] sm:$0x3]  ;;  %s1077_s25 = scalar_lea.vmem [#allocation40], %s10470_s30  ;;  %s16993_s14 = scalar_lea.sflag [#allocation4], %s1075_s2 }
 0x2e8   : > { %1587 = vmatpush1.bf16.msra.mxu1 %v11800_v57  ;;  %s10125_s29 = sshll.u32 %s1077_s25, 4  ;;  %p17230_p0 = scmp.ne.s32.totalorder %s17228_s0, 0  ;;  %s16989_s29 = int_to_ptr.vmem [resolvable:$true] %s10125_s29 }
 0x2e9   : > { %10478 = vmatmul.mubr.msk.bf16.gmra.mrb[4].mxu0 %vm1128_vm0, %v1091_v10  ;;  %1588 = vmatprep.subr.bf16.mxu1 %v11801_v58  ;;  %v11825_v10 = vld [vmem:[#allocation10 + $0xc4] ss:$8 sps:$4 sm:$0xff]   ;;  %s13749_s3 = scalar_lea.vmem %s16989_s29, 512  ;;  %s13755_s4 = scalar_lea.vmem %s13754_s9, 1024 }
 0x2ea   : > { %p13750_p13 = scmp.ne.s32.totalorder %s16989_s29, %s13749_s3  ;;  %p13756_p5 = scmp.lt.s32.totalorder %s16989_s29, %s13754_s9 }
 0x2eb   : > { %p13757_p9 = scmp.lt.s32.totalorder %s13755_s4, %s13749_s3 }
 0x2ec   : > { %1589 = vmatpush1.bf16.msra.mxu1 %v11803_v59  ;;  %p13751_p1 = pnand %p13750_p13, %p17230_p0 }
 0x2ed   : > { %1590 = vmatprep.subr.bf16.mxu1 %v11804_v60  ;;  %p13758_p12 = por %p13757_p9, %p13756_p5 }
 0x2ee   : > { %p13752_p6 = pneg %p13751_p1 }
 0x2f0   : > { %1591 = vmatpush1.bf16.msra.mxu1 %v11806_v61  ;;  %p13759_p10 = pnand %p13758_p12, %p13752_p6 }
 0x2f1   : > { %1592 = vmatprep.subr.bf16.mxu1 %v11807_v62 }
 0x2f4   : > { %1593 = vmatpush1.bf16.msra.mxu1 %v11809_v63 }
 0x2f5   : > { %1594 = vmatprep.subr.bf16.mxu1 %v11810_v0  ;;  %v1285_v0 = vrot.slane %v1189_v55, %v14672_v18 }
 0x2f8   : > { %1595 = vmatpush1.bf16.msra.mxu1 %v11812_v1  ;;  %v1289_v1 = vrot.slane %v1189_v55, %v14675_v19 }
 0x2f9   : > { %1596 = vmatprep.subr.bf16.mxu1 %v11813_v2 }
 0x2fc   : > { %1597 = vmatpush1.bf16.msra.mxu1 %v11815_v3 }
 0x2fd   : > { %1598 = vmatprep.subr.bf16.mxu1 %v11816_v4 }
 0x300   : > { %1599 = vmatpush1.bf16.msra.mxu1 %v11818_v5 }
 0x301   : > { %1600 = vmatprep.subr.bf16.mxu1 %v11819_v6 }
 0x304   : > { %1601 = vmatpush1.bf16.msra.mxu1 %v11821_v7 }
 0x305   : > { %1602 = vmatprep.subr.bf16.mxu1 %v11822_v8 }
 0x308   : > { %1603 = vmatpush1.bf16.msra.mxu1 %v11824_v9 }
 0x309   : > { %1604 = vmatprep.subr.bf16.mxu1 %v11825_v10 }
 0x30c   : > { %1605 = vmatpush1.bf16.msra.mxu1 %v11827_v11 }
 0x30d   : > { %1606 = vmatprep.subr.bf16.mxu1 %v11828_v12 }
 0x310   : > { %1607 = vmatpush1.bf16.msra.mxu1 %v11830_v13 }
 0x311   : > { %1608 = vmatprep.subr.bf16.mxu1 %v11831_v14 }
 0x314   : > { %1609 = vmatpush1.bf16.msra.mxu1 %v11833_v15 }
 0x315   : > { %1610 = vmatprep.subr.bf16.mxu1 %v11834_v17 }
 0x3b4   : > { %v1169_v22 = vpop.f32.mrb[0].mxu0 }
 0x3b5   : > { %v14679_v23 = vadd.f32 %v1169_v22, %v1101_v20  ;;  %v1171_v24 = vpop.f32.mrb[1].mxu0 }
 0x3b6   : > { %v14681_v25 = vadd.f32 %v1171_v24, %v1105_v21  ;;  %v1173_v26 = vpop.f32.mrb[2].mxu0 }
 0x3b7   : > { %v14683_v27 = vadd.f32 %v1173_v26, %v1101_v20  ;;  %v1175_v28 = vpop.f32.mrb[3].mxu0  ;;  %v1206_v29 = vmul.f32 %v14679_v23, %v14679_v23 }
 0x3b8   : > { %v14687_v30 = vadd.f32 %v1175_v28, %v1105_v21  ;;  %v1190_v31 = vadd.f32 %v14681_v25, %v14679_v23  ;;  %v1207_v32 = vmul.f32 %v14681_v25, %v14681_v25 }
 0x3b9   : > { %v1208_v34 = vmul.f32 %v14683_v27, %v14683_v27 }
 0x3ba   : > { %1191 = vadd.xlane.f32.xlu0 %v1190_v31  ;;  %v1214_v33 = vadd.f32 %v1207_v32, %v1206_v29  ;;  %v1209_v35 = vmul.f32 %v14687_v30, %v14687_v30  ;;  %v1193_v37 = vadd.f32 %v14687_v30, %v14683_v27 }
 0x3bc   : > { %v1179_v36 = vpop.f32.mrb[4].mxu0  ;;  %1215 = vadd.xlane.f32.xlu1 %v1214_v33  ;;  %v1217_v42 = vadd.f32 %v1209_v35, %v1208_v34 }
 0x3bd   : > { %v14699_v38 = vadd.f32 %v1179_v36, %v1101_v20  ;;  %v1181_v39 = vpop.f32.mrb[5].mxu0 }
 0x3be   : > { %v14701_v40 = vadd.f32 %v1181_v39, %v1105_v21  ;;  %v1183_v41 = vpop.f32.mrb[6].mxu0  ;;  %1194 = vadd.xlane.f32.xlu0 %v1193_v37 }
 0x3bf   : > { %v14703_v43 = vadd.f32 %v1183_v41, %v1101_v20  ;;  %v1185_v44 = vpop.f32.mrb[7].mxu0  ;;  %v1210_v45 = vmul.f32 %v14699_v38, %v14699_v38  ;;  %v11836_v20 = vld [vmem:[#allocation10 + $0xf0] ss:$8 sps:$4 sm:$0xff]  }
 0x3c0   : > { %v14707_v46 = vadd.f32 %v1185_v44, %v1105_v21  ;;  %1218 = vadd.xlane.f32.xlu1 %v1217_v42  ;;  %v1196_v47 = vadd.f32 %v14701_v40, %v14699_v38  ;;  %v1211_v48 = vmul.f32 %v14701_v40, %v14701_v40  ;;  %1611 = vmatpush1.bf16.msra.mxu1 %v11836_v20 }
 0x3c1   : > { %v1212_v49 = vmul.f32 %v14703_v43, %v14703_v43 }
 0x3c2   : > { %1197 = vadd.xlane.f32.xlu0 %v1196_v47  ;;  %v1199_v50 = vadd.f32 %v14707_v46, %v14703_v43  ;;  %v1220_v51 = vadd.f32 %v1211_v48, %v1210_v45  ;;  %v1213_v52 = vmul.f32 %v14707_v46, %v14707_v46 }
 0x3c4   : > { %1200 = vadd.xlane.f32.xlu1 %v1199_v50  ;;  %v1223_v53 = vadd.f32 %v1213_v52, %v1212_v49  ;;  %v1188_v52 = vld [vmem:[#allocation7] sm:$0x3] }
 0x3c5   : > { %v1266_v60 = vrot.slane %v1188_v52, %v14672_v18  ;;  %v1270_v61 = vrot.slane %v1188_v52, %v14675_v19 }
 0x3c6   : > { %1221 = vadd.xlane.f32.xlu0 %v1220_v51 }
 0x3c8   : > { %1224 = vadd.xlane.f32.xlu1 %v1223_v53 }
 0x447   : > { %v1192_v21 = vpop.xlane.xlu0 %1191 }
 0x448   : > { %v1202_v22 = vmul.f32 0.00390625, %v1192_v21 }
 0x449   : > { %v1216_v24 = vpop.xlane.xlu1 %1215 }
 0x44a   : > { %v1226_v26 = vmul.f32 0.00390625, %v1216_v24  ;;  %v1230_v28 = vmul.f32 %v1202_v22, %v1202_v22  ;;  %v1238_v58 = vsub.f32 %v14679_v23, %v1202_v22  ;;  %v1239_v59 = vsub.f32 %v14681_v25, %v1202_v22 }
 0x44b   : > { %v1195_v29 = vpop.xlane.xlu0 %1194 }
 0x44c   : > { %v1234_v31 = vsub.f32 %v1226_v26, %v1230_v28  ;;  %v1203_v32 = vmul.f32 0.00390625, %v1195_v29 }
 0x44d   : > { %v1219_v33 = vpop.xlane.xlu1 %1218 }
 0x44e   : > { %v1246_v34 = vadd.f32 1e-05, %v1234_v31  ;;  %v1227_v35 = vmul.f32 0.00390625, %v1219_v33  ;;  %v1231_v36 = vmul.f32 %v1203_v32, %v1203_v32  ;;  %v1240_v23 = vsub.f32 %v14683_v27, %v1203_v32 }
 0x44f   : > { %v1198_v37 = vpop.xlane.xlu0 %1197  ;;  %v1241_v25 = vsub.f32 %v14687_v30, %v1203_v32 }
 0x450   : > { %12813 = vrsqrt.f32 %v1246_v34  ;;  %v1204_v39 = vmul.f32 0.00390625, %v1198_v37  ;;  %v1235_v41 = vsub.f32 %v1227_v35, %v1231_v36 }
 0x451   : > { %v1201_v42 = vpop.xlane.xlu1 %1200 }
 0x452   : > { %v1205_v44 = vmul.f32 0.00390625, %v1201_v42  ;;  %v1232_v45 = vmul.f32 %v1204_v39, %v1204_v39  ;;  %v1247_v47 = vadd.f32 1e-05, %v1235_v41  ;;  %v1242_v15 = vsub.f32 %v14699_v38, %v1204_v39 }
 0x453   : > { %v1222_v48 = vpop.xlane.xlu0 %1221  ;;  %v1243_v17 = vsub.f32 %v14701_v40, %v1204_v39 }
 0x454   : > { %v1228_v49 = vmul.f32 0.00390625, %v1222_v48  ;;  %v1233_v50 = vmul.f32 %v1205_v44, %v1205_v44  ;;  %12815 = vrsqrt.f32 %v1247_v47  ;;  %v1244_v24 = vsub.f32 %v14703_v43, %v1205_v44 }
 0x455   : > { %v1225_v51 = vpop.xlane.xlu1 %1224  ;;  %v1245_v26 = vsub.f32 %v14707_v46, %v1205_v44 }
 0x456   : > { %v1236_v53 = vsub.f32 %v1228_v49, %v1232_v45  ;;  %v1229_v54 = vmul.f32 0.00390625, %v1225_v51 }
 0x458   : > { %v1248_v56 = vadd.f32 1e-05, %v1236_v53  ;;  %v1237_v57 = vsub.f32 %v1229_v54, %v1233_v50 }
 0x45a   : > { %v12814_v62 = vpop.eup %12813  ;;  %12817 = vrsqrt.f32 %v1248_v56  ;;  %v1249_v63 = vadd.f32 1e-05, %v1237_v57 }
 0x45b   : > { %v1254_v2 = vmul.f32 %v12814_v62, %v1238_v58  ;;  %v1255_v3 = vmul.f32 %v12814_v62, %v1239_v59 }
 0x45c   : > { %12819 = vrsqrt.f32 %v1249_v63 }
 0x45d   : > { %v1273_v4 = vmul.f32 %v1266_v60, %v1254_v2  ;;  %v1274_v5 = vmul.f32 %v1270_v61, %v1255_v3 }
 0x45e   : > { %v12816_v6 = vpop.eup %12815 }
 0x45f   : > { %v14727_v7 = vadd.f32 %v1285_v0, %v1273_v4  ;;  %v14729_v8 = vadd.f32 %v1289_v1, %v1274_v5  ;;  %v1256_v9 = vmul.f32 %v12816_v6, %v1240_v23  ;;  %v1257_v10 = vmul.f32 %v12816_v6, %v1241_v25 }
 0x461   : > { %v1309_v11 = vmul.f32 0.044715, %v14729_v8  ;;  %v1308_v12 = vmul.f32 0.044715, %v14727_v7  ;;  %v1275_v13 = vmul.f32 %v1266_v60, %v1256_v9  ;;  %v1276_v14 = vmul.f32 %v1270_v61, %v1257_v10 }
 0x463   : > { %v1317_v27 = vmul.f32 %v1309_v11, %v14729_v8  ;;  %v1316_v30 = vmul.f32 %v1308_v12, %v14727_v7  ;;  %v14737_v21 = vadd.f32 %v1285_v0, %v1275_v13  ;;  %v14739_v22 = vadd.f32 %v1289_v1, %v1276_v14 }
 0x464   : > { %v12818_v20 = vpop.eup %12817 }
 0x465   : > { %v1258_v28 = vmul.f32 %v12818_v20, %v1242_v15  ;;  %v1259_v29 = vmul.f32 %v12818_v20, %v1243_v17  ;;  %v1325_v31 = vmul.f32 %v1317_v27, %v14729_v8  ;;  %v1324_v38 = vmul.f32 %v1316_v30, %v14727_v7 }
 0x466   : > { %v12820_v40 = vpop.eup %12819  ;;  %v1311_v32 = vmul.f32 0.044715, %v14739_v22  ;;  %v1310_v33 = vmul.f32 0.044715, %v14737_v21 }
 0x467   : > { %v1277_v34 = vmul.f32 %v1266_v60, %v1258_v28  ;;  %v1278_v35 = vmul.f32 %v1270_v61, %v1259_v29  ;;  %v1260_v36 = vmul.f32 %v12820_v40, %v1244_v24  ;;  %v1261_v37 = vmul.f32 %v12820_v40, %v1245_v26 }
 0x468   : > { %v1319_v39 = vmul.f32 %v1311_v32, %v14739_v22  ;;  %v1333_v43 = vadd.f32 %v1325_v31, %v14729_v8  ;;  %v1318_v46 = vmul.f32 %v1310_v33, %v14737_v21  ;;  %v1332_v41 = vadd.f32 %v1324_v38, %v14727_v7 }
 0x469   : > { %v14751_v42 = vadd.f32 %v1289_v1, %v1278_v35  ;;  %v1279_v44 = vmul.f32 %v1266_v60, %v1260_v36  ;;  %v1280_v45 = vmul.f32 %v1270_v61, %v1261_v37  ;;  %v14755_v51 = vadd.f32 %v1285_v0, %v1277_v34 }
 0x46a   : > { %v1327_v47 = vmul.f32 %v1319_v39, %v14739_v22  ;;  %v1341_v48 = vmul.f32 0.7978846, %v1333_v43  ;;  %v1326_v49 = vmul.f32 %v1318_v46, %v14737_v21  ;;  %v1340_v50 = vmul.f32 0.7978846, %v1332_v41 }
 0x46b   : > { %v14757_v52 = vadd.f32 %v1285_v0, %v1279_v44  ;;  %v1299_v53 = vadd.f32 %v1289_v1, %v1280_v45  ;;  %v1313_v54 = vmul.f32 0.044715, %v14751_v42  ;;  %v1312_v63 = vmul.f32 0.044715, %v14755_v51 }
 0x46c   : > { %v1335_v55 = vadd.f32 %v1327_v47, %v14739_v22  ;;  %12821 = vtanh.f32 %v1341_v48  ;;  %v1334_v56 = vadd.f32 %v1326_v49, %v14737_v21  ;;  %v1301_v24 = vmul.f32 0.5, %v14729_v8 }
 0x46d   : > { %12823 = vtanh.f32 %v1340_v50  ;;  %v1315_v57 = vmul.f32 0.044715, %v1299_v53  ;;  %v1321_v58 = vmul.f32 %v1313_v54, %v14751_v42  ;;  %v1314_v0 = vmul.f32 0.044715, %v14757_v52 }
 0x46e   : > { %v1343_v59 = vmul.f32 0.7978846, %v1335_v55  ;;  %v1342_v60 = vmul.f32 0.7978846, %v1334_v56  ;;  %v1320_v3 = vmul.f32 %v1312_v63, %v14755_v51  ;;  %v1303_v26 = vmul.f32 0.5, %v14739_v22 }
 0x46f   : > { %v1323_v61 = vmul.f32 %v1315_v57, %v1299_v53  ;;  %v1329_v62 = vmul.f32 %v1321_v58, %v14751_v42  ;;  %v1322_v4 = vmul.f32 %v1314_v0, %v14757_v52  ;;  %v1300_v29 = vmul.f32 0.5, %v14727_v7  ;;  %v1766_v57 = vld [vmem:[#allocation16 + $0x8] sm:$0xff] }
 0x470   : > { %12825 = vtanh.f32 %v1343_v59  ;;  %v1328_v25 = vmul.f32 %v1320_v3, %v14755_v51  ;;  %v1302_v31 = vmul.f32 0.5, %v14737_v21  ;;  %v1305_v7 = vmul.f32 0.5, %v14751_v42  ;;  %v1774_v0 = vld [vmem:[#allocation16 + $0x48] sm:$0xff] }
 0x471   : > { %12827 = vtanh.f32 %v1342_v60  ;;  %v1331_v1 = vmul.f32 %v1323_v61, %v1299_v53  ;;  %v1337_v2 = vadd.f32 %v1329_v62, %v14751_v42  ;;  %v1330_v6 = vmul.f32 %v1322_v4, %v14757_v52  ;;  %v1765_v42 = vld [vmem:[#allocation16] sm:$0xff]  ;;  %v1770_v60 = vld [vmem:[#allocation16 + $0x28] sm:$0xff] }
 0x472   : > { %v1336_v10 = vadd.f32 %v1328_v25, %v14755_v51  ;;  %v1307_v8 = vmul.f32 0.5, %v1299_v53  ;;  %v1304_v47 = vmul.f32 0.5, %v14755_v51  ;;  %v1306_v48 = vmul.f32 0.5, %v14757_v52  ;;  %v1773_v51 = vld [vmem:[#allocation16 + $0x40] sm:$0xff] }
 0x473   : > { %v1339_v5 = vadd.f32 %v1331_v1, %v1299_v53  ;;  %v1345_v23 = vmul.f32 0.7978846, %v1337_v2  ;;  %v1338_v12 = vadd.f32 %v1330_v6, %v14757_v52  ;;  %v1769_v53 = vld [vmem:[#allocation16 + $0x20] sm:$0xff]  ;;  %v10513_v52 = vcombine.low %v1766_v57, %v1770_v60  ;;  %v1778_v1 = vld [vmem:[#allocation16 + $0x68] sm:$0xff] }
 0x474   : > { %v1344_v14 = vmul.f32 0.7978846, %v1336_v10  ;;  %v10511_v58 = vcombine.low %v1765_v42, %v1769_v53  ;;  %v10512_v59 = vcombine.high %v1765_v42, %v1769_v53  ;;  %v1777_v61 = vld [vmem:[#allocation16 + $0x60] sm:$0xff]  ;;  %v10514_v62 = vcombine.high %v1766_v57, %v1770_v60  ;;  %v1826_v42 = vld [vmem:[#allocation16 + $0x1e8] sm:$0xff] }
 0x475   : > { %v1347_v9 = vmul.f32 0.7978846, %v1339_v5  ;;  %12829 = vtanh.f32 %v1345_v23  ;;  %v1346_v15 = vmul.f32 0.7978846, %v1338_v12  ;;  %v10520_v63 = vcombine.high %v1773_v51, %v1777_v61  ;;  %v1781_v2 = vld [vmem:[#allocation16 + $0x80] sm:$0xff]  ;;  %v1782_v5 = vld [vmem:[#allocation16 + $0x88] sm:$0xff] }
 0x476   : > { %v12822_v11 = vpop.eup %12821  ;;  %2575 = vmatprep.subr.bf16.mxu0 %v10512_v59  ;;  %v10522_v3 = vcombine.high %v1774_v0, %v1778_v1  ;;  %v1785_v4 = vld [vmem:[#allocation16 + $0xa0] sm:$0xff]  ;;  %v1786_v23 = vld [vmem:[#allocation16 + $0xa8] sm:$0xff]  ;;  %2628 = vmatprep.subr.bf16.mxu1 %v10514_v62  ;;  %v10519_v25 = vcombine.low %v1773_v51, %v1777_v61  ;;  %v10521_v6 = vcombine.low %v1774_v0, %v1778_v1 }
 0x477   : > { %v12824_v13 = vpop.eup %12823  ;;  %12831 = vtanh.f32 %v1347_v9  ;;  %v1357_v17 = vadd.f32 1.0, %v12822_v11  ;;  %2576 = vmatpush1.bf16.msra.mxu0 %v10511_v58  ;;  %v10528_v9 = vcombine.high %v1781_v2, %v1785_v4  ;;  %v10530_v10 = vcombine.high %v1782_v5, %v1786_v23  ;;  %v1789_v11 = vld [vmem:[#allocation16 + $0xc0] sm:$0xff]  ;;  %v1830_v61 = vld [vmem:[#allocation16 + $0x208] sm:$0xff] }
 0x478   : > { %12833 = vtanh.f32 %v1344_v14  ;;  %v1356_v30 = vadd.f32 1.0, %v12824_v13  ;;  %2577 = vmatprep.subr.bf16.mxu0 %v10520_v63  ;;  %v1793_v12 = vld [vmem:[#allocation16 + $0xe0] sm:$0xff]  ;;  %v1790_v13 = vld [vmem:[#allocation16 + $0xc8] sm:$0xff] }
 0x479   : > { %12835 = vtanh.f32 %v1346_v15  ;;  %v1365_v40 = vmul.f32 %v1357_v17, %v1301_v24  ;;  %v1794_v14 = vld [vmem:[#allocation16 + $0xe8] sm:$0xff]  ;;  %v10527_v15 = vcombine.low %v1781_v2, %v1785_v4  ;;  %v10529_v17 = vcombine.low %v1782_v5, %v1786_v23  ;;  %v1801_v24 = vld [vmem:[#allocation16 + $0x120] sm:$0xff]  ;;  %v1408_v4 = vld [vmem:[#allocation11] sm:$0x3] }
 0x47a   : > { %v12826_v27 = vpop.eup %12825  ;;  %v1364_v33 = vmul.f32 %v1356_v30, %v1300_v29  ;;  %v10538_v30 = vcombine.high %v1790_v13, %v1794_v14  ;;  %v10535_v29 = vcombine.low %v1789_v11, %v1793_v12  ;;  %v1829_v60 = vld [vmem:[#allocation16 + $0x200] sm:$0xff]  ;;  %v1413_v5 = vrot.slane %v1408_v4, %v14672_v18 }
 0x47b   : > { %v12828_v20 = vpop.eup %12827  ;;  %v1359_v28 = vadd.f32 1.0, %v12826_v27  ;;  %2578 = vmatpush1.bf16.msra.mxu0 %v10519_v25  ;;  %v10536_v27 = vcombine.high %v1789_v11, %v1793_v12  ;;  %v1833_v51 = vld [vmem:[#allocation16 + $0x220] sm:$0xff]  ;;  %v1417_v23 = vrot.slane %v1408_v4, %v14675_v19  ;;  %v1846_v4 = vld [vmem:[#allocation16 + $0x288] sm:$0xff] }
 0x47c   : > { %v1358_v38 = vadd.f32 1.0, %v12828_v20  ;;  %2579 = vmatprep.subr.bf16.mxu0 %v10528_v9  ;;  %v1797_v20 = vld [vmem:[#allocation16 + $0x100] sm:$0xff]  ;;  %v10576_v0 = vcombine.high %v1829_v60, %v1833_v51  ;;  %v10575_v2 = vcombine.low %v1829_v60, %v1833_v51 }
 0x47d   : > { %v1367_v32 = vmul.f32 %v1359_v28, %v1303_v26  ;;  %v1798_v26 = vld [vmem:[#allocation16 + $0x108] sm:$0xff]  ;;  %v1837_v60 = vld [vmem:[#allocation16 + $0x240] sm:$0xff] }
 0x47e   : > { %v1366_v34 = vmul.f32 %v1358_v38, %v1302_v31  ;;  %v1802_v28 = vld [vmem:[#allocation16 + $0x128] sm:$0xff]  ;;  %v10537_v31 = vcombine.low %v1790_v13, %v1794_v14  ;;  %v10544_v38 = vcombine.high %v1797_v20, %v1801_v24  ;;  %v1841_v51 = vld [vmem:[#allocation16 + $0x260] sm:$0xff] }
 0x47f   : > { %v12830_v35 = vpop.eup %12829  ;;  %v14777_v36 = vpack.c.bf16 %v1367_v32, %v1365_v40  ;;  %2580 = vmatpush1.bf16.msra.mxu0 %v10527_v15  ;;  %v10546_v40 = vcombine.high %v1798_v26, %v1802_v28  ;;  %v1805_v32 = vld [vmem:[#allocation16 + $0x140] sm:$0xff] }
 0x480   : > { %v14779_v37 = vpack.c.bf16 %v1366_v34, %v1364_v33  ;;  %v1361_v39 = vadd.f32 1.0, %v12830_v35  ;;  %2581 = vmatprep.subr.bf16.mxu0 %v10536_v27  ;;  %v1809_v33 = vld [vmem:[#allocation16 + $0x160] sm:$0xff]  ;;  %v1806_v34 = vld [vmem:[#allocation16 + $0x148] sm:$0xff] }
 0x481   : > { %v12832_v43 = vpop.eup %12831  ;;  %1612 = vmatprep.mubr.bf16.mxu1 %v14777_v36  ;;  %v1810_v35 = vld [vmem:[#allocation16 + $0x168] sm:$0xff]  ;;  %v1634_v12 = vunpack.c.l.bf16 %v14777_v36 }
 0x482   : > { %1613 = vmatmul.mubr.bf16.vlgmr.msra.gmra.mrb[0].mxu1 %v14779_v37  ;;  %v1363_v21 = vadd.f32 1.0, %v12832_v43  ;;  %v12834_v22 = vpop.eup %12833  ;;  %v1369_v41 = vmul.f32 %v1361_v39, %v1305_v7  ;;  %v10543_v39 = vcombine.low %v1797_v20, %v1801_v24  ;;  %v10545_v43 = vcombine.low %v1798_v26, %v1802_v28 }
 0x483   : > { %v12836_v46 = vpop.eup %12835  ;;  %v1360_v45 = vadd.f32 1.0, %v12834_v22  ;;  %2629 = vmatpush1.bf16.msra.mxu1 %v10513_v52  ;;  %2582 = vmatpush1.bf16.msra.mxu0 %v10535_v29  ;;  %v10552_v7 = vcombine.high %v1805_v32, %v1809_v33  ;;  %v1817_v22 = vld [vmem:[#allocation16 + $0x1a0] sm:$0xff]  ;;  %v1834_v52 = vld [vmem:[#allocation16 + $0x228] sm:$0xff]  ;;  %v1633_v9 = vunpack.c.l.bf16 %v14779_v37  ;;  %v1636_v24 = vunpack.c.h.bf16 %v14777_v36 }
 0x484   : > { %v1371_v44 = vmul.f32 %v1363_v21, %v1307_v8  ;;  %v1362_v49 = vadd.f32 1.0, %v12836_v46  ;;  %2630 = vmatprep.subr.bf16.mxu1 %v10522_v3  ;;  %2583 = vmatprep.subr.bf16.mxu0 %v10544_v38  ;;  %v10554_v8 = vcombine.high %v1806_v34, %v1810_v35  ;;  %v1813_v21 = vld [vmem:[#allocation16 + $0x180] sm:$0xff]  ;;  %v1814_v46 = vld [vmem:[#allocation16 + $0x188] sm:$0xff]  ;;  %v10578_v1 = vcombine.high %v1830_v61, %v1834_v52 }
 0x485   : > { %v1368_v54 = vmul.f32 %v1360_v45, %v1304_v47  ;;  %v10553_v45 = vcombine.low %v1806_v34, %v1810_v35  ;;  %v10560_v47 = vcombine.high %v1813_v21, %v1817_v22  ;;  %v10559_v53 = vcombine.low %v1813_v21, %v1817_v22 }
 0x486   : > { %v14786_v50 = vpack.c.bf16 %v1371_v44, %v1369_v41  ;;  %v1370_v55 = vmul.f32 %v1362_v49, %v1306_v48  ;;  %v1818_v41 = vld [vmem:[#allocation16 + $0x1a8] sm:$0xff]  ;;  %v10551_v44 = vcombine.low %v1805_v32, %v1809_v33  ;;  %v1821_v49 = vld [vmem:[#allocation16 + $0x1c0] sm:$0xff]  ;;  %v10577_v3 = vcombine.low %v1830_v61, %v1834_v52 }
 0x487   : > { %2631 = vmatpush1.bf16.msra.mxu1 %v10521_v6  ;;  %2584 = vmatpush1.bf16.msra.mxu0 %v10543_v39  ;;  %v10562_v48 = vcombine.high %v1814_v46, %v1818_v41  ;;  %v10561_v57 = vcombine.low %v1814_v46, %v1818_v41  ;;  %v1838_v61 = vld [vmem:[#allocation16 + $0x248] sm:$0xff]  ;;  %v10583_v52 = vcombine.low %v1837_v60, %v1841_v51 }
 0x488   : > { %1622 = vmatprep.mubr.bf16.mxu1 %v14786_v50  ;;  %v14789_v56 = vpack.c.bf16 %v1370_v55, %v1368_v54  ;;  %2632 = vmatprep.subr.bf16.mxu1 %v10530_v10  ;;  %v1825_v54 = vld [vmem:[#allocation16 + $0x1e0] sm:$0xff]  ;;  %v1822_v55 = vld [vmem:[#allocation16 + $0x1c8] sm:$0xff] }
 0x489   : > { %2585 = vmatprep.subr.bf16.mxu0 %v10552_v7  ;;  %v10568_v58 = vcombine.high %v1821_v49, %v1825_v54  ;;  %v10570_v59 = vcombine.high %v1822_v55, %v1826_v42  ;;  %v10567_v62 = vcombine.low %v1821_v49, %v1825_v54  ;;  %v10569_v63 = vcombine.low %v1822_v55, %v1826_v42 }
 0x48a   : > { %1623 = vmatmul.mubr.bf16.gmra.mrb[4].mxu1 %v14789_v56  ;;  %v1637_v34 = vunpack.c.l.bf16 %v14789_v56  ;;  %v1638_v7 = vunpack.c.l.bf16 %v14786_v50  ;;  %v1639_v46 = vunpack.c.h.bf16 %v14789_v56 }
 0x48b   : > { %2633 = vmatpush1.bf16.msra.mxu1 %v10529_v17  ;;  %2586 = vmatpush1.bf16.msra.mxu0 %v10551_v44  ;;  %v1635_v17 = vunpack.c.h.bf16 %v14779_v37 }
 0x48c   : > { %2634 = vmatprep.subr.bf16.mxu1 %v10538_v30  ;;  %2587 = vmatprep.subr.bf16.mxu0 %v10560_v47 }
 0x48f   : > { %2635 = vmatpush1.bf16.msra.mxu1 %v10537_v31  ;;  %2588 = vmatpush1.bf16.msra.mxu0 %v10559_v53 }
 0x490   : > { %2636 = vmatprep.subr.bf16.mxu1 %v10546_v40  ;;  %2589 = vmatprep.subr.bf16.mxu0 %v10568_v58 }
 0x493   : > { %2637 = vmatpush1.bf16.msra.mxu1 %v10545_v43  ;;  %2590 = vmatpush1.bf16.msra.mxu0 %v10567_v62  ;;  %v10584_v62 = vcombine.high %v1837_v60, %v1841_v51 }
 0x494   : > { %2638 = vmatprep.subr.bf16.mxu1 %v10554_v8  ;;  %2591 = vmatprep.subr.bf16.mxu0 %v10576_v0 }
 0x497   : > { %2639 = vmatpush1.bf16.msra.mxu1 %v10553_v45  ;;  %2592 = vmatpush1.bf16.msra.mxu0 %v10575_v2  ;;  %v1845_v2 = vld [vmem:[#allocation16 + $0x280] sm:$0xff] }
 0x498   : > { %2640 = vmatprep.subr.bf16.mxu1 %v10562_v48  ;;  %v1640_v48 = vunpack.c.h.bf16 %v14786_v50  ;;  %2593 = vmatprep.subr.bf16.mxu0 %v10584_v62  ;;  %v14844_v62 = vld [vmem:[#allocation16 + $0x30] sm:$0xff] }
 0x49b   : > { %2641 = vmatpush1.bf16.msra.mxu1 %v10561_v57  ;;  %2594 = vmatpush1.bf16.msra.mxu0 %v10583_v52  ;;  %v14842_v52 = vld [vmem:[#allocation16 + $0x10] sm:$0xff] }
 0x49c   : > { %2642 = vmatprep.subr.bf16.mxu1 %v10570_v59 }
 0x49f   : > { %2643 = vmatpush1.bf16.msra.mxu1 %v10569_v63  ;;  %v1842_v63 = vld [vmem:[#allocation16 + $0x268] sm:$0xff] }
 0x4a0   : > { %2644 = vmatprep.subr.bf16.mxu1 %v10578_v1  ;;  %v10585_v0 = vcombine.low %v1838_v61, %v1842_v63  ;;  %v10586_v1 = vcombine.high %v1838_v61, %v1842_v63  ;;  %v14846_v63 = vld [vmem:[#allocation16 + $0x18] sm:$0xff] }
 0x4a3   : > { %2645 = vmatpush1.bf16.msra.mxu1 %v10577_v3  ;;  %v1849_v3 = vld [vmem:[#allocation16 + $0x2a0] sm:$0xff] }
 0x4a4   : > { %2646 = vmatprep.subr.bf16.mxu1 %v10586_v1  ;;  %v10516_v1 = vcombine.high %v14842_v52, %v14844_v62 }
 0x4a7   : > { %2647 = vmatpush1.bf16.msra.mxu1 %v10585_v0  ;;  %v10515_v0 = vcombine.low %v14842_v52, %v14844_v62  ;;  %v1791_v52 = vld [vmem:[#allocation16 + $0xd0] sm:$0xff] }
 0x555   : > { %v1614_v25 = vpop.f32.mrb[0].mxu1 }
 0x556   : > { %v1615_v6 = vadd.f32 %v1614_v25, %v1413_v5  ;;  %v1616_v10 = vpop.f32.mrb[1].mxu1  ;;  %v10591_v25 = vcombine.low %v1845_v2, %v1849_v3 }
 0x557   : > { %v1617_v11 = vadd.f32 %v1616_v10, %v1417_v23  ;;  %v1618_v13 = vpop.f32.mrb[2].mxu1  ;;  %v1853_v10 = vld [vmem:[#allocation16 + $0x2c0] sm:$0xff] }
 0x558   : > { %v14796_v14 = vadd.f32 %v1633_v9, %v1615_v6  ;;  %v1619_v15 = vadd.f32 %v1618_v13, %v1413_v5  ;;  %v1620_v27 = vpop.f32.mrb[3].mxu1 }
 0x559   : > { %v14799_v30 = vadd.f32 %v1634_v12, %v1617_v11  ;;  %v1621_v20 = vadd.f32 %v1620_v27, %v1417_v23  ;;  %v1857_v11 = vld [vmem:[#allocation16 + $0x2e0] sm:$0xff]  ;;  %v1854_v12 = vld [vmem:[#allocation16 + $0x2c8] sm:$0xff] }
 0x55a   : > { %v14802_v26 = vadd.f32 %v1635_v17, %v1619_v15  ;;  %v1667_v31 = vmul.f32 %v14796_v14, %v14796_v14  ;;  %v10600_v13 = vcombine.high %v1853_v10, %v1857_v11  ;;  %v1858_v15 = vld [vmem:[#allocation16 + $0x2e8] sm:$0xff]  ;;  %v10599_v17 = vcombine.low %v1853_v10, %v1857_v11 }
 0x55b   : > { %v14804_v28 = vadd.f32 %v1636_v24, %v1621_v20  ;;  %v1651_v29 = vadd.f32 %v14799_v30, %v14796_v14  ;;  %v1668_v38 = vmul.f32 %v14799_v30, %v14799_v30  ;;  %v10601_v27 = vcombine.low %v1854_v12, %v1858_v15  ;;  %v1861_v24 = vld [vmem:[#allocation16 + $0x300] sm:$0xff] }
 0x55c   : > { %v1669_v36 = vmul.f32 %v14802_v26, %v14802_v26  ;;  %v10602_v20 = vcombine.high %v1854_v12, %v1858_v15 }
 0x55d   : > { %1652 = vadd.xlane.f32.xlu0 %v1651_v29  ;;  %v1654_v37 = vadd.f32 %v14804_v28, %v14802_v26  ;;  %v1670_v40 = vmul.f32 %v14804_v28, %v14804_v28  ;;  %v1624_v32 = vpop.f32.mrb[4].mxu1  ;;  %v1675_v39 = vadd.f32 %v1668_v38, %v1667_v31  ;;  %v1865_v29 = vld [vmem:[#allocation16 + $0x320] sm:$0xff]  ;;  %v1862_v31 = vld [vmem:[#allocation16 + $0x308] sm:$0xff] }
 0x55e   : > { %v1625_v33 = vadd.f32 %v1624_v32, %v1413_v5  ;;  %v1626_v35 = vpop.f32.mrb[5].mxu1  ;;  %v10608_v38 = vcombine.high %v1861_v24, %v1865_v29 }
 0x55f   : > { %1655 = vadd.xlane.f32.xlu1 %v1654_v37  ;;  %v1627_v43 = vadd.f32 %v1626_v35, %v1417_v23  ;;  %v1628_v8 = vpop.f32.mrb[6].mxu1  ;;  %v1678_v44 = vadd.f32 %v1670_v40, %v1669_v36  ;;  %v1866_v37 = vld [vmem:[#allocation16 + $0x328] sm:$0xff]  ;;  %v10607_v36 = vcombine.low %v1861_v24, %v1865_v29 }
 0x560   : > { %v14820_v21 = vadd.f32 %v1637_v34, %v1625_v33  ;;  %v1629_v22 = vadd.f32 %v1628_v8, %v1413_v5  ;;  %v1630_v41 = vpop.f32.mrb[7].mxu1  ;;  %v10592_v5 = vcombine.high %v1845_v2, %v1849_v3  ;;  %v10609_v40 = vcombine.low %v1862_v31, %v1866_v37  ;;  %v1869_v33 = vld [vmem:[#allocation16 + $0x340] sm:$0xff]  ;;  %v1870_v35 = vld [vmem:[#allocation16 + $0x348] sm:$0xff]  ;;  %v14852_v2 = vld [vmem:[#allocation16 + $0x38] sm:$0xff] }
 0x561   : > { %1676 = vadd.xlane.f32.xlu0 %v1675_v39  ;;  %v14823_v45 = vadd.f32 %v1638_v7, %v1627_v43  ;;  %v1631_v47 = vadd.f32 %v1630_v41, %v1417_v23  ;;  %v1850_v23 = vld [vmem:[#allocation16 + $0x2a8] sm:$0xff]  ;;  %v10610_v32 = vcombine.high %v1862_v31, %v1866_v37  ;;  %v1873_v34 = vld [vmem:[#allocation16 + $0x360] sm:$0xff]  ;;  %v10517_v3 = vcombine.low %v14846_v63, %v14852_v2 }
 0x562   : > { %v14826_v49 = vadd.f32 %v1639_v46, %v1629_v22  ;;  %v1671_v42 = vmul.f32 %v14820_v21, %v14820_v21  ;;  %v10593_v6 = vcombine.low %v1846_v4, %v1850_v23  ;;  %v10594_v9 = vcombine.high %v1846_v4, %v1850_v23  ;;  %2595 = vmatprep.subr.bf16.mxu0 %v10592_v5  ;;  %v1874_v43 = vld [vmem:[#allocation16 + $0x368] sm:$0xff]  ;;  %v1877_v46 = vld [vmem:[#allocation16 + $0x380] sm:$0xff] }
 0x563   : > { %1679 = vadd.xlane.f32.xlu1 %v1678_v44  ;;  %v14828_v54 = vadd.f32 %v1640_v48, %v1631_v47  ;;  %v1657_v55 = vadd.f32 %v14823_v45, %v14820_v21  ;;  %v1672_v56 = vmul.f32 %v14823_v45, %v14823_v45  ;;  %2596 = vmatpush1.bf16.msra.mxu0 %v10591_v25  ;;  %v1881_v41 = vld [vmem:[#allocation16 + $0x3a0] sm:$0xff]  ;;  %v1878_v44 = vld [vmem:[#allocation16 + $0x388] sm:$0xff] }
 0x564   : > { %v1673_v50 = vmul.f32 %v14826_v49, %v14826_v49  ;;  %2648 = vmatprep.subr.bf16.mxu1 %v10594_v9  ;;  %2597 = vmatprep.subr.bf16.mxu0 %v10600_v13  ;;  %v10616_v39 = vcombine.high %v1869_v33, %v1873_v34  ;;  %v10615_v7 = vcombine.low %v1869_v33, %v1873_v34 }
 0x565   : > { %1658 = vadd.xlane.f32.xlu0 %v1657_v55  ;;  %v1660_v53 = vadd.f32 %v14828_v54, %v14826_v49  ;;  %v1674_v57 = vmul.f32 %v14828_v54, %v14828_v54  ;;  %v1681_v58 = vadd.f32 %v1672_v56, %v1671_v42  ;;  %2649 = vmatpush1.bf16.msra.mxu1 %v10593_v6  ;;  %v1882_v55 = vld [vmem:[#allocation16 + $0x3a8] sm:$0xff]  ;;  %v1885_v42 = vld [vmem:[#allocation16 + $0x3c0] sm:$0xff] }
 0x566   : > { %2650 = vmatprep.subr.bf16.mxu1 %v10602_v20  ;;  %v10617_v8 = vcombine.low %v1870_v35, %v1874_v43  ;;  %v10618_v22 = vcombine.high %v1870_v35, %v1874_v43  ;;  %v10623_v47 = vcombine.low %v1877_v46, %v1881_v41  ;;  %v10624_v48 = vcombine.high %v1877_v46, %v1881_v41  ;;  %v1889_v56 = vld [vmem:[#allocation16 + $0x3e0] sm:$0xff]  ;;  %v1649_v43 = vld [vmem:[#allocation13] sm:$0x3] }
 0x567   : > { %1661 = vadd.xlane.f32.xlu1 %v1660_v53  ;;  %v1684_v59 = vadd.f32 %v1674_v57, %v1673_v50  ;;  %2598 = vmatpush1.bf16.msra.mxu0 %v10599_v17  ;;  %v10625_v53 = vcombine.low %v1878_v44, %v1882_v55  ;;  %v10626_v50 = vcombine.high %v1878_v44, %v1882_v55 }
 0x568   : > { %2599 = vmatprep.subr.bf16.mxu0 %v10608_v38  ;;  %v10632_v57 = vcombine.high %v1885_v42, %v1889_v56  ;;  %v10631_v51 = vcombine.low %v1885_v42, %v1889_v56  ;;  %v10518_v4 = vcombine.high %v14846_v63, %v14852_v2  ;;  %v1731_v46 = vrot.slane %v1649_v43, %v14675_v19  ;;  %v1795_v63 = vld [vmem:[#allocation16 + $0xf0] sm:$0xff]  ;;  %v1796_v2 = vld [vmem:[#allocation16 + $0xf8] sm:$0xff] }
 0x569   : > { %1682 = vadd.xlane.f32.xlu0 %v1681_v58  ;;  %2651 = vmatpush1.bf16.msra.mxu1 %v10601_v27  ;;  %v1886_v58 = vld [vmem:[#allocation16 + $0x3c8] sm:$0xff] }
 0x56a   : > { %2652 = vmatprep.subr.bf16.mxu1 %v10610_v32 }
 0x56b   : > { %1685 = vadd.xlane.f32.xlu1 %v1684_v59  ;;  %2600 = vmatpush1.bf16.msra.mxu0 %v10607_v36  ;;  %v1890_v59 = vld [vmem:[#allocation16 + $0x3e8] sm:$0xff] }
 0x56c   : > { %2601 = vmatprep.subr.bf16.mxu0 %v10616_v39  ;;  %v10634_v60 = vcombine.high %v1886_v58, %v1890_v59  ;;  %v10633_v61 = vcombine.low %v1886_v58, %v1890_v59 }
 0x56d   : > { %2653 = vmatpush1.bf16.msra.mxu1 %v10609_v40 }
 0x56e   : > { %2654 = vmatprep.subr.bf16.mxu1 %v10618_v22  ;;  %v14863_v22 = vrot.slane %v1649_v43, %v14672_v18 }
 0x56f   : > { %2602 = vmatpush1.bf16.msra.mxu0 %v10615_v7 }
 0x570   : > { %2603 = vmatprep.subr.bf16.mxu0 %v10624_v48  ;;  %v1650_v48 = vld [vmem:[#allocation14] sm:$0x3] }
 0x571   : > { %2655 = vmatpush1.bf16.msra.mxu1 %v10617_v8  ;;  %v1746_v58 = vrot.slane %v1650_v48, %v14672_v18  ;;  %v1750_v59 = vrot.slane %v1650_v48, %v14675_v19 }
 0x572   : > { %2656 = vmatprep.subr.bf16.mxu1 %v10626_v50 }
 0x573   : > { %2604 = vmatpush1.bf16.msra.mxu0 %v10623_v47 }
 0x574   : > { %2605 = vmatprep.subr.bf16.mxu0 %v10632_v57 }
 0x575   : > { %2657 = vmatpush1.bf16.msra.mxu1 %v10625_v53 }
 0x576   : > { %2658 = vmatprep.subr.bf16.mxu1 %v10634_v60 }
 0x577   : > { %2606 = vmatpush1.bf16.msra.mxu0 %v10631_v51 }
 0x578   : > { %2681 = vmatprep.subr.bf16.mxu0 %v10516_v1 }
 0x579   : > { %2659 = vmatpush1.bf16.msra.mxu1 %v10633_v61 }
 0x57a   : > { %2734 = vmatprep.subr.bf16.mxu1 %v10518_v4  ;;  %v1775_v4 = vld [vmem:[#allocation16 + $0x50] sm:$0xff] }
 0x5ea   : > { %v1653_v5 = vpop.xlane.xlu0 %1652 }
 0x5eb   : > { %v1663_v23 = vmul.f32 0.00390625, %v1653_v5  ;;  %v1776_v5 = vld [vmem:[#allocation16 + $0x58] sm:$0xff] }
 0x5ec   : > { %v1656_v25 = vpop.xlane.xlu1 %1655 }
 0x5ed   : > { %v1664_v6 = vmul.f32 0.00390625, %v1656_v25  ;;  %v1691_v10 = vmul.f32 %v1663_v23, %v1663_v23  ;;  %v1699_v41 = vsub.f32 %v14796_v14, %v1663_v23  ;;  %v1700_v44 = vsub.f32 %v14799_v30, %v1663_v23 }
 0x5ee   : > { %v1677_v9 = vpop.xlane.xlu0 %1676 }
 0x5ef   : > { %v1687_v11 = vmul.f32 0.00390625, %v1677_v9  ;;  %v1692_v15 = vmul.f32 %v1664_v6, %v1664_v6  ;;  %v1701_v42 = vsub.f32 %v14802_v26, %v1664_v6  ;;  %v1702_v56 = vsub.f32 %v14804_v28, %v1664_v6  ;;  %v1779_v26 = vld [vmem:[#allocation16 + $0x70] sm:$0xff]  ;;  %v1780_v28 = vld [vmem:[#allocation16 + $0x78] sm:$0xff] }
 0x5f0   : > { %v1680_v12 = vpop.xlane.xlu1 %1679 }
 0x5f1   : > { %v1695_v13 = vsub.f32 %v1687_v11, %v1691_v10  ;;  %v1688_v17 = vmul.f32 0.00390625, %v1680_v12 }
 0x5f2   : > { %v1659_v24 = vpop.xlane.xlu0 %1658 }
 0x5f3   : > { %v1707_v27 = vadd.f32 1e-05, %v1695_v13  ;;  %v1696_v20 = vsub.f32 %v1688_v17, %v1692_v15  ;;  %v1665_v29 = vmul.f32 0.00390625, %v1659_v24  ;;  %v10524_v17 = vcombine.high %v1775_v4, %v1779_v26 }
 0x5f4   : > { %v1662_v38 = vpop.xlane.xlu1 %1661 }
 0x5f5   : > { %12837 = vrsqrt.f32 %v1707_v27  ;;  %v1708_v31 = vadd.f32 1e-05, %v1696_v20  ;;  %v14858_v37 = vmul.f32 0.00390625, %v1662_v38  ;;  %v1693_v40 = vmul.f32 %v1665_v29, %v1665_v29  ;;  %v1783_v38 = vld [vmem:[#allocation16 + $0x90] sm:$0xff] }
 0x5f6   : > { %v1683_v36 = vpop.xlane.xlu0 %1682  ;;  %v1703_v10 = vsub.f32 %v14820_v21, %v1665_v29  ;;  %v1704_v11 = vsub.f32 %v14823_v45, %v1665_v29  ;;  %v10526_v27 = vcombine.high %v1776_v5, %v1780_v28  ;;  %v10523_v21 = vcombine.low %v1775_v4, %v1779_v26  ;;  %v1784_v45 = vld [vmem:[#allocation16 + $0x98] sm:$0xff] }
 0x5f7   : > { %12839 = vrsqrt.f32 %v1708_v31  ;;  %v1689_v32 = vmul.f32 0.00390625, %v1683_v36  ;;  %v1694_v35 = vmul.f32 %v14858_v37, %v14858_v37  ;;  %v1705_v20 = vsub.f32 %v14826_v49, %v14858_v37  ;;  %v1787_v36 = vld [vmem:[#allocation16 + $0xb0] sm:$0xff]  ;;  %v1788_v29 = vld [vmem:[#allocation16 + $0xb8] sm:$0xff] }
 0x5f8   : > { %v1686_v33 = vpop.xlane.xlu1 %1685  ;;  %v1706_v24 = vsub.f32 %v14828_v54, %v14858_v37  ;;  %v10525_v54 = vcombine.low %v1776_v5, %v1780_v28  ;;  %v10532_v37 = vcombine.high %v1783_v38, %v1787_v36  ;;  %v10534_v43 = vcombine.high %v1784_v45, %v1788_v29  ;;  %v1815_v28 = vld [vmem:[#allocation16 + $0x190] sm:$0xff] }
 0x5f9   : > { %v1697_v34 = vsub.f32 %v1689_v32, %v1693_v40  ;;  %v1690_v39 = vmul.f32 0.00390625, %v1686_v33  ;;  %v10531_v62 = vcombine.low %v1783_v38, %v1787_v36  ;;  %v10533_v48 = vcombine.low %v1784_v45, %v1788_v29  ;;  %v1836_v45 = vld [vmem:[#allocation16 + $0x238] sm:$0xff] }
 0x5fb   : > { %v1709_v7 = vadd.f32 1e-05, %v1697_v34  ;;  %v1698_v8 = vsub.f32 %v1690_v39, %v1694_v35 }
 0x5fd   : > { %12841 = vrsqrt.f32 %v1709_v7  ;;  %v1710_v47 = vadd.f32 1e-05, %v1698_v8 }
 0x5ff   : > { %v12838_v55 = vpop.eup %12837  ;;  %12843 = vrsqrt.f32 %v1710_v47 }
 0x600   : > { %v1715_v53 = vmul.f32 %v12838_v55, %v1699_v41  ;;  %v1716_v50 = vmul.f32 %v12838_v55, %v1700_v44  ;;  %v1799_v55 = vld [vmem:[#allocation16 + $0x110] sm:$0xff] }
 0x601   : > { %v12840_v57 = vpop.eup %12839 }
 0x602   : > { %v1717_v60 = vmul.f32 %v12840_v57, %v1701_v42  ;;  %v1718_v14 = vmul.f32 %v12840_v57, %v1702_v56  ;;  %v1735_v51 = vmul.f32 %v1731_v46, %v1716_v50  ;;  %v1734_v30 = vmul.f32 %v14863_v22, %v1715_v53  ;;  %v1803_v56 = vld [vmem:[#allocation16 + $0x130] sm:$0xff]  ;;  %v1800_v53 = vld [vmem:[#allocation16 + $0x118] sm:$0xff] }
 0x603   : > { %v1804_v50 = vld [vmem:[#allocation16 + $0x138] sm:$0xff]  ;;  %v10539_v57 = vcombine.low %v1791_v52, %v1795_v63 }
 0x604   : > { %v1737_v61 = vmul.f32 %v1731_v46, %v1718_v14  ;;  %v1736_v1 = vmul.f32 %v14863_v22, %v1717_v60  ;;  %v1754_v23 = vadd.f32 %v1750_v59, %v1735_v51  ;;  %v1753_v6 = vadd.f32 %v1746_v58, %v1734_v30  ;;  %v1807_v14 = vld [vmem:[#allocation16 + $0x150] sm:$0xff]  ;;  %v1808_v30 = vld [vmem:[#allocation16 + $0x158] sm:$0xff] }
 0x605   : > { %v10550_v60 = vcombine.high %v1800_v53, %v1804_v50  ;;  %v1811_v51 = vld [vmem:[#allocation16 + $0x170] sm:$0xff]  ;;  %v10549_v4 = vcombine.low %v1800_v53, %v1804_v50 }
 0x606   : > { %v1756_v25 = vadd.f32 %v1750_v59, %v1737_v61  ;;  %v1755_v9 = vadd.f32 %v1746_v58, %v1736_v1  ;;  %v1812_v61 = vld [vmem:[#allocation16 + $0x178] sm:$0xff]  ;;  %v10547_v1 = vcombine.low %v1799_v55, %v1803_v56  ;;  %v10556_v26 = vcombine.high %v1807_v14, %v1811_v51 }
 0x607   : > { %v12842_v12 = vpop.eup %12841  ;;  %v10558_v5 = vcombine.high %v1808_v30, %v1812_v61 }
 0x608   : > { %v1762_v13 = vpack.c.bf16 %v1756_v25, %v1754_v23  ;;  %v14876_v15 = vpack.c.bf16 %v1755_v9, %v1753_v6  ;;  %v1720_v31 = vmul.f32 %v12842_v12, %v1704_v11  ;;  %v1719_v40 = vmul.f32 %v12842_v12, %v1703_v10  ;;  %v1819_v23 = vld [vmem:[#allocation16 + $0x1b0] sm:$0xff]  ;;  %v1816_v25 = vld [vmem:[#allocation16 + $0x198] sm:$0xff] }
 0x609   : > { %v12844_v32 = vpop.eup %12843  ;;  %v1820_v6 = vld [vmem:[#allocation16 + $0x1b8] sm:$0xff]  ;;  %v10555_v9 = vcombine.low %v1807_v14, %v1811_v51  ;;  %v10557_v10 = vcombine.low %v1808_v30, %v1812_v61  ;;  %v10564_v11 = vcombine.high %v1815_v28, %v1819_v23 }
 0x60a   : > { %2607 = vmatprep.mubr.bf16.mxu0 %v1762_v13  ;;  %2660 = vmatprep.mubr.bf16.mxu1 %v1762_v13  ;;  %v1722_v33 = vmul.f32 %v12844_v32, %v1706_v24  ;;  %v1739_v34 = vmul.f32 %v1731_v46, %v1720_v31  ;;  %v1721_v49 = vmul.f32 %v12844_v32, %v1705_v20  ;;  %v1828_v20 = vld [vmem:[#allocation16 + $0x1f8] sm:$0xff]  ;;  %v1835_v32 = vld [vmem:[#allocation16 + $0x230] sm:$0xff] }
 0x60b   : > { %2608 = vmatmul.mubr.bf16.vlgmr.msra.gmra.mrb[8].mxu0 %v14876_v15  ;;  %2661 = vmatmul.mubr.bf16.vlgmr.msra.gmra.mrb[8].mxu1 %v14876_v15  ;;  %v1738_v35 = vmul.f32 %v14863_v22, %v1719_v40  ;;  %v10566_v12 = vcombine.high %v1816_v25, %v1820_v6  ;;  %v10563_v24 = vcombine.low %v1815_v28, %v1819_v23  ;;  %v1831_v40 = vld [vmem:[#allocation16 + $0x210] sm:$0xff]  ;;  %v1864_v14 = vld [vmem:[#allocation16 + $0x318] sm:$0xff] }
 0x60c   : > { %2682 = vmatpush1.bf16.msra.mxu0 %v10515_v0  ;;  %2735 = vmatpush1.bf16.msra.mxu1 %v10517_v3  ;;  %v1741_v39 = vmul.f32 %v1731_v46, %v1722_v33  ;;  %v1740_v7 = vmul.f32 %v14863_v22, %v1721_v49  ;;  %v1758_v8 = vadd.f32 %v1750_v59, %v1739_v34  ;;  %v1792_v0 = vld [vmem:[#allocation16 + $0xd8] sm:$0xff] }
 0x60d   : > { %2683 = vmatprep.subr.bf16.mxu0 %v10524_v17  ;;  %2736 = vmatprep.subr.bf16.mxu1 %v10526_v27  ;;  %v1757_v44 = vadd.f32 %v1746_v58, %v1738_v35  ;;  %v10540_v22 = vcombine.high %v1791_v52, %v1795_v63  ;;  %v10542_v42 = vcombine.high %v1792_v0, %v1796_v2  ;;  %v1827_v17 = vld [vmem:[#allocation16 + $0x1f0] sm:$0xff]  ;;  %v1824_v27 = vld [vmem:[#allocation16 + $0x1d8] sm:$0xff] }
 0x60e   : > { %v1760_v41 = vadd.f32 %v1750_v59, %v1741_v39  ;;  %v1759_v47 = vadd.f32 %v1746_v58, %v1740_v7  ;;  %v10541_v58 = vcombine.low %v1792_v0, %v1796_v2  ;;  %v10548_v59 = vcombine.high %v1799_v55, %v1803_v56  ;;  %v1840_v35 = vld [vmem:[#allocation16 + $0x258] sm:$0xff]  ;;  %v1855_v55 = vld [vmem:[#allocation16 + $0x2d0] sm:$0xff] }
 0x60f   : > { %v10565_v31 = vcombine.low %v1816_v25, %v1820_v6  ;;  %v10574_v36 = vcombine.high %v1824_v27, %v1828_v20  ;;  %v10573_v33 = vcombine.low %v1824_v27, %v1828_v20  ;;  %v10580_v34 = vcombine.high %v1831_v40, %v1835_v32  ;;  %v1844_v39 = vld [vmem:[#allocation16 + $0x278] sm:$0xff] }
 0x610   : > { %2684 = vmatpush1.bf16.msra.mxu0 %v10523_v21  ;;  %2737 = vmatpush1.bf16.msra.mxu1 %v10525_v54  ;;  %v14892_v3 = vpack.c.bf16 %v1760_v41, %v1758_v8  ;;  %v14894_v46 = vpack.c.bf16 %v1759_v47, %v1757_v44  ;;  %v1832_v21 = vld [vmem:[#allocation16 + $0x218] sm:$0xff]  ;;  %v1839_v54 = vld [vmem:[#allocation16 + $0x250] sm:$0xff]  ;;  %v10590_v41 = vcombine.high %v1840_v35, %v1844_v39 }
 0x611   : > { %2685 = vmatprep.subr.bf16.mxu0 %v10532_v37  ;;  %2738 = vmatprep.subr.bf16.mxu1 %v10534_v43  ;;  %v10582_v49 = vcombine.high %v1832_v21, %v1836_v45  ;;  %v1843_v37 = vld [vmem:[#allocation16 + $0x270] sm:$0xff]  ;;  %v10579_v43 = vcombine.low %v1831_v40, %v1835_v32  ;;  %v10581_v7 = vcombine.low %v1832_v21, %v1836_v45  ;;  %v1848_v52 = vld [vmem:[#allocation16 + $0x298] sm:$0xff] }
 0x612   : > { %2617 = vmatprep.mubr.bf16.mxu0 %v14892_v3  ;;  %2670 = vmatprep.mubr.bf16.mxu1 %v14892_v3  ;;  %v10588_v8 = vcombine.high %v1839_v54, %v1843_v37  ;;  %v1847_v44 = vld [vmem:[#allocation16 + $0x290] sm:$0xff]  ;;  %v10587_v63 = vcombine.low %v1839_v54, %v1843_v37  ;;  %v10589_v0 = vcombine.low %v1840_v35, %v1844_v39  ;;  %v1860_v56 = vld [vmem:[#allocation16 + $0x2f8] sm:$0xff] }
 0x613   : > { %2618 = vmatmul.mubr.bf16.gmra.mrb[12].mxu0 %v14894_v46  ;;  %2671 = vmatmul.mubr.bf16.gmra.mrb[12].mxu1 %v14894_v46  ;;  %v1851_v47 = vld [vmem:[#allocation16 + $0x2b0] sm:$0xff]  ;;  %v1868_v51 = vld [vmem:[#allocation16 + $0x338] sm:$0xff] }
 0x614   : > { %2686 = vmatpush1.bf16.msra.mxu0 %v10531_v62  ;;  %2739 = vmatpush1.bf16.msra.mxu1 %v10533_v48  ;;  %v1852_v62 = vld [vmem:[#allocation16 + $0x2b8] sm:$0xff]  ;;  %v10596_v2 = vcombine.high %v1847_v44, %v1851_v47  ;;  %v10595_v53 = vcombine.low %v1847_v44, %v1851_v47  ;;  %v10613_v6 = vcombine.low %v1864_v14, %v1868_v51  ;;  %v11837_v54 = vld [vmem:[#allocation22] ss:$16 sps:$4 sm:$0xff]   ;;  %v11839_v37 = vld [vmem:[#allocation22 + $0x4] ss:$16 sps:$4 sm:$0xff]   ;;  %v14916_v47 = vsub.s32 3, %v14669_v16 }
 0x615   : > { %2713 = vmatprep.mubr.bf16.mxu0 %v1762_v13  ;;  %2766 = vmatprep.mubr.bf16.mxu1 %v1762_v13  ;;  %v1823_v13 = vld [vmem:[#allocation16 + $0x1d0] sm:$0xff]  ;;  %v10598_v48 = vcombine.high %v1848_v52, %v1852_v62  ;;  %v10597_v50 = vcombine.low %v1848_v52, %v1852_v62  ;;  %v1872_v28 = vld [vmem:[#allocation16 + $0x358] sm:$0xff] }
 0x616   : > { %2687 = vmatprep.subr.bf16.mxu0 %v10540_v22  ;;  %2740 = vmatprep.subr.bf16.mxu1 %v10542_v42  ;;  %v10572_v38 = vcombine.high %v1823_v13, %v1827_v17  ;;  %v10571_v29 = vcombine.low %v1823_v13, %v1827_v17  ;;  %v1859_v22 = vld [vmem:[#allocation16 + $0x2f0] sm:$0xff]  ;;  %v1856_v42 = vld [vmem:[#allocation16 + $0x2d8] sm:$0xff]  ;;  %17188 = vst [vmem:[#allocation68_spill] sm:$0xff] %v14916_v47 }
 0x617   : > { %v10603_v30 = vcombine.low %v1855_v55, %v1859_v22  ;;  %v10605_v61 = vcombine.low %v1856_v42, %v1860_v56  ;;  %v1876_v23 = vld [vmem:[#allocation16 + $0x378] sm:$0xff] }
 0x618   : > { %2688 = vmatpush1.bf16.msra.mxu0 %v10539_v57  ;;  %2741 = vmatpush1.bf16.msra.mxu1 %v10541_v58  ;;  %v10604_v57 = vcombine.high %v1855_v55, %v1859_v22  ;;  %v10606_v58 = vcombine.high %v1856_v42, %v1860_v56  ;;  %v1880_v13 = vld [vmem:[#allocation16 + $0x398] sm:$0xff]  ;;  %v10621_v20 = vcombine.low %v1872_v28, %v1876_v23 }
 0x619   : > { %2689 = vmatprep.subr.bf16.mxu0 %v10548_v59  ;;  %2742 = vmatprep.subr.bf16.mxu1 %v10550_v60  ;;  %v1863_v59 = vld [vmem:[#allocation16 + $0x310] sm:$0xff]  ;;  %v1884_v17 = vld [vmem:[#allocation16 + $0x3b8] sm:$0xff] }
 0x61a   : > { %v1867_v60 = vld [vmem:[#allocation16 + $0x330] sm:$0xff]  ;;  %v1888_v40 = vld [vmem:[#allocation16 + $0x3d8] sm:$0xff]  ;;  %v10629_v45 = vcombine.low %v1880_v13, %v1884_v17 }
 0x61b   : > { %v10611_v25 = vcombine.low %v1863_v59, %v1867_v60  ;;  %v1892_v32 = vld [vmem:[#allocation16 + $0x3f8] sm:$0xff] }
 0x61c   : > { %2690 = vmatpush1.bf16.msra.mxu0 %v10547_v1  ;;  %2743 = vmatpush1.bf16.msra.mxu1 %v10549_v4  ;;  %v10612_v1 = vcombine.high %v1863_v59, %v1867_v60  ;;  %v10614_v4 = vcombine.high %v1864_v14, %v1868_v51  ;;  %v11840_v35 = vld [vmem:[#allocation22 + $0x8] ss:$16 sps:$4 sm:$0xff]   ;;  %v11842_v39 = vld [vmem:[#allocation22 + $0xc] ss:$16 sps:$4 sm:$0xff]  }
 0x61d   : > { %2691 = vmatprep.subr.bf16.mxu0 %v10556_v26  ;;  %2744 = vmatprep.subr.bf16.mxu1 %v10558_v5  ;;  %v1871_v26 = vld [vmem:[#allocation16 + $0x350] sm:$0xff] }
 0x61e   : > { %v1875_v5 = vld [vmem:[#allocation16 + $0x370] sm:$0xff] }
 0x61f   : > { %v10619_v27 = vcombine.low %v1871_v26, %v1875_v5 }
 0x620   : > { %2692 = vmatpush1.bf16.msra.mxu0 %v10555_v9  ;;  %2745 = vmatpush1.bf16.msra.mxu1 %v10557_v10  ;;  %v10620_v9 = vcombine.high %v1871_v26, %v1875_v5  ;;  %v10622_v10 = vcombine.high %v1872_v28, %v1876_v23 }
 0x621   : > { %2693 = vmatprep.subr.bf16.mxu0 %v10564_v11  ;;  %2746 = vmatprep.subr.bf16.mxu1 %v10566_v12  ;;  %v1879_v11 = vld [vmem:[#allocation16 + $0x390] sm:$0xff] }
 0x622   : > { %v1883_v12 = vld [vmem:[#allocation16 + $0x3b0] sm:$0xff] }
 0x623   : > { %v10627_v21 = vcombine.low %v1879_v11, %v1883_v12 }
 0x624   : > { %2694 = vmatpush1.bf16.msra.mxu0 %v10563_v24  ;;  %2747 = vmatpush1.bf16.msra.mxu1 %v10565_v31  ;;  %v10628_v24 = vcombine.high %v1879_v11, %v1883_v12  ;;  %v10630_v31 = vcombine.high %v1880_v13, %v1884_v17 }
 0x625   : > { %2695 = vmatprep.subr.bf16.mxu0 %v10572_v38  ;;  %2748 = vmatprep.subr.bf16.mxu1 %v10574_v36  ;;  %v1887_v38 = vld [vmem:[#allocation16 + $0x3d0] sm:$0xff] }
 0x626   : > { %v1891_v36 = vld [vmem:[#allocation16 + $0x3f0] sm:$0xff] }
 0x628   : > { %2696 = vmatpush1.bf16.msra.mxu0 %v10571_v29  ;;  %2749 = vmatpush1.bf16.msra.mxu1 %v10573_v33  ;;  %v10636_v29 = vcombine.high %v1887_v38, %v1891_v36  ;;  %v10638_v33 = vcombine.high %v1888_v40, %v1892_v32 }
 0x629   : > { %2697 = vmatprep.subr.bf16.mxu0 %v10580_v34  ;;  %2750 = vmatprep.subr.bf16.mxu1 %v10582_v49  ;;  %v10635_v34 = vcombine.low %v1887_v38, %v1891_v36  ;;  %v10637_v49 = vcombine.low %v1888_v40, %v1892_v32 }
 0x62c   : > { %2698 = vmatpush1.bf16.msra.mxu0 %v10579_v43  ;;  %2751 = vmatpush1.bf16.msra.mxu1 %v10581_v7  ;;  %v11845_v43 = vld [vmem:[#allocation22 + $0x24] ss:$16 sps:$4 sm:$0xff]   ;;  %v11848_v7 = vld [vmem:[#allocation22 + $0x2c] ss:$16 sps:$4 sm:$0xff]  }
 0x62d   : > { %2699 = vmatprep.subr.bf16.mxu0 %v10588_v8  ;;  %2752 = vmatprep.subr.bf16.mxu1 %v10590_v41  ;;  %v11843_v8 = vld [vmem:[#allocation22 + $0x20] ss:$16 sps:$4 sm:$0xff]  }
 0x630   : > { %2700 = vmatpush1.bf16.msra.mxu0 %v10587_v63  ;;  %2753 = vmatpush1.bf16.msra.mxu1 %v10589_v0 }
 0x631   : > { %2701 = vmatprep.subr.bf16.mxu0 %v10596_v2  ;;  %2754 = vmatprep.subr.bf16.mxu1 %v10598_v48 }
 0x634   : > { %2702 = vmatpush1.bf16.msra.mxu0 %v10595_v53  ;;  %2755 = vmatpush1.bf16.msra.mxu1 %v10597_v50 }
 0x635   : > { %2703 = vmatprep.subr.bf16.mxu0 %v10604_v57  ;;  %2756 = vmatprep.subr.bf16.mxu1 %v10606_v58 }
 0x638   : > { %2704 = vmatpush1.bf16.msra.mxu0 %v10603_v30  ;;  %2757 = vmatpush1.bf16.msra.mxu1 %v10605_v61 }
 0x639   : > { %2705 = vmatprep.subr.bf16.mxu0 %v10612_v1  ;;  %2758 = vmatprep.subr.bf16.mxu1 %v10614_v4 }
 0x63c   : > { %2706 = vmatpush1.bf16.msra.mxu0 %v10611_v25  ;;  %2759 = vmatpush1.bf16.msra.mxu1 %v10613_v6 }
 0x63d   : > { %2707 = vmatprep.subr.bf16.mxu0 %v10620_v9  ;;  %2760 = vmatprep.subr.bf16.mxu1 %v10622_v10 }
 0x640   : > { %2708 = vmatpush1.bf16.msra.mxu0 %v10619_v27  ;;  %2761 = vmatpush1.bf16.msra.mxu1 %v10621_v20 }
 0x641   : > { %2709 = vmatprep.subr.bf16.mxu0 %v10628_v24  ;;  %2762 = vmatprep.subr.bf16.mxu1 %v10630_v31 }
 0x644   : > { %2710 = vmatpush1.bf16.msra.mxu0 %v10627_v21  ;;  %2763 = vmatpush1.bf16.msra.mxu1 %v10629_v45 }
 0x645   : > { %2711 = vmatprep.subr.bf16.mxu0 %v10636_v29  ;;  %2764 = vmatprep.subr.bf16.mxu1 %v10638_v33 }
 0x648   : > { %2712 = vmatpush1.bf16.msra.mxu0 %v10635_v34  ;;  %2765 = vmatpush1.bf16.msra.mxu1 %v10637_v49 }
 0x649   : > { %3933 = vmatprep.subr.bf16.mxu0 %v11839_v37  ;;  %4039 = vmatprep.subr.bf16.mxu1 %v11842_v39 }
 0x64b   : > { %2714 = vmatmul.mubr.bf16.vlgmr.msra.gmra.mrb[16].mxu0 %v14876_v15  ;;  %2767 = vmatmul.mubr.bf16.vlgmr.msra.gmra.mrb[16].mxu1 %v14876_v15  ;;  %v11846_v15 = vld [vmem:[#allocation22 + $0x28] ss:$16 sps:$4 sm:$0xff]  }
 0x64c   : > { %2723 = vmatprep.mubr.bf16.mxu0 %v14892_v3  ;;  %2776 = vmatprep.mubr.bf16.mxu1 %v14892_v3  ;;  %v14907_v3 = vsub.s32 2, %v14669_v16 }
 0x64d   : > { %3934 = vmatpush1.bf16.msra.mxu0 %v11837_v54  ;;  %4040 = vmatpush1.bf16.msra.mxu1 %v11840_v35 }
 0x64e   : > { %3935 = vmatprep.subr.bf16.mxu0 %v11845_v43  ;;  %4041 = vmatprep.subr.bf16.mxu1 %v11848_v7  ;;  %17187 = vst [vmem:[#allocation67_spill] sm:$0xff] %v14907_v3 }
 0x651   : > { %3936 = vmatpush1.bf16.msra.mxu0 %v11843_v8  ;;  %4042 = vmatpush1.bf16.msra.mxu1 %v11846_v15 }
 0x653   : > { %2724 = vmatmul.mubr.bf16.gmra.mrb[20].mxu0 %v14894_v46  ;;  %2777 = vmatmul.mubr.bf16.gmra.mrb[20].mxu1 %v14894_v46  ;;  %v14909_v46 = vld [vmem:[#allocation17] sm:$0xff] }
 0x654   : > { %v1898_v41 = vrot.slane %v14909_v46, %v14672_v18  ;;  %v1906_v44 = vrot.slane %v14909_v46, %v14907_v3  ;;  %v1902_v52 = vrot.slane %v14909_v46, %v14675_v19  ;;  %v1910_v55 = vrot.slane %v14909_v46, %v14916_v47 }
 0x6de   : > { %v2609_v62 = vpop.f32.mrb[8].mxu0  ;;  %v2662_v63 = vpop.f32.mrb[8].mxu1 }
 0x6df   : > { %v14920_v0 = vadd.f32 %v2609_v62, %v1898_v41  ;;  %v14922_v2 = vadd.f32 %v2662_v63, %v1906_v44  ;;  %v2611_v48 = vpop.f32.mrb[9].mxu0  ;;  %v2664_v22 = vpop.f32.mrb[9].mxu1 }
 0x6e0   : > { %v14926_v42 = vadd.f32 %v2611_v48, %v1902_v52  ;;  %v2613_v56 = vpop.f32.mrb[10].mxu0  ;;  %v2666_v53 = vpop.f32.mrb[10].mxu1  ;;  %v14940_v61 = vadd.f32 %v2664_v22, %v1910_v55 }
 0x6e1   : > { %v2813_v50 = vmul.f32 %v14920_v0, %v14920_v0  ;;  %v14930_v57 = vadd.f32 %v2613_v56, %v1898_v41  ;;  %v2615_v58 = vpop.f32.mrb[11].mxu0  ;;  %v2668_v59 = vpop.f32.mrb[11].mxu1  ;;  %v2815_v30 = vmul.f32 %v14922_v2, %v14922_v2  ;;  %v14944_v4 = vadd.f32 %v2666_v53, %v1906_v44 }
 0x6e2   : > { %v2789_v60 = vadd.f32 %v14926_v42, %v14920_v0  ;;  %v2814_v14 = vmul.f32 %v14926_v42, %v14926_v42  ;;  %v14936_v51 = vadd.f32 %v2615_v58, %v1902_v52  ;;  %v14951_v25 = vadd.f32 %v2668_v59, %v1910_v55 }
 0x6e3   : > { %v2817_v1 = vmul.f32 %v14930_v57, %v14930_v57  ;;  %v2819_v12 = vmul.f32 %v14944_v4, %v14944_v4  ;;  %v2816_v36 = vmul.f32 %v14940_v61, %v14940_v61 }
 0x6e4   : > { %v2794_v26 = vadd.f32 %v14936_v51, %v14930_v57  ;;  %v2818_v5 = vmul.f32 %v14936_v51, %v14936_v51  ;;  %v2790_v28 = vadd.f32 %v2789_v60, %v14922_v2  ;;  %v2829_v23 = vadd.f32 %v2814_v14, %v2813_v50 }
 0x6e5   : > { %v2820_v45 = vmul.f32 %v14951_v25, %v14951_v25 }
 0x6e6   : > { %v2791_v6 = vadd.f32 %v2790_v28, %v14940_v61  ;;  %v2795_v9 = vadd.f32 %v2794_v26, %v14944_v4  ;;  %v2830_v10 = vadd.f32 %v2829_v23, %v2815_v30  ;;  %v2834_v11 = vadd.f32 %v2818_v5, %v2817_v1  ;;  %v2619_v13 = vpop.f32.mrb[12].mxu0  ;;  %v2672_v17 = vpop.f32.mrb[12].mxu1  ;;  %v11851_v5 = vld [vmem:[#allocation22 + $0x44] ss:$16 sps:$4 sm:$0xff]   ;;  %v11854_v28 = vld [vmem:[#allocation22 + $0x4c] ss:$16 sps:$4 sm:$0xff]  }
 0x6e7   : > { %v14957_v27 = vadd.f32 %v2619_v13, %v1898_v41  ;;  %v14959_v20 = vadd.f32 %v2672_v17, %v1906_v44  ;;  %v2621_v24 = vpop.f32.mrb[13].mxu0  ;;  %v2674_v31 = vpop.f32.mrb[13].mxu1  ;;  %v11849_v23 = vld [vmem:[#allocation22 + $0x40] ss:$16 sps:$4 sm:$0xff]   ;;  %3937 = vmatprep.subr.bf16.mxu0 %v11851_v5  ;;  %4043 = vmatprep.subr.bf16.mxu1 %v11854_v28  ;;  %v11863_v13 = vld [vmem:[#allocation22 + $0x84] ss:$16 sps:$4 sm:$0xff]  }
 0x6e8   : > { %2792 = vadd.xlane.f32.xlu0 %v2791_v6  ;;  %v2796_v38 = vadd.f32 %v2795_v9, %v14951_v25  ;;  %v14964_v40 = vadd.f32 %v2621_v24, %v1902_v52  ;;  %v2623_v32 = vpop.f32.mrb[14].mxu0  ;;  %v2676_v21 = vpop.f32.mrb[14].mxu1  ;;  %v2835_v29 = vadd.f32 %v2834_v11, %v2819_v12  ;;  %v2831_v35 = vadd.f32 %v2830_v10, %v2816_v36  ;;  %v11852_v6 = vld [vmem:[#allocation22 + $0x48] ss:$16 sps:$4 sm:$0xff]   ;;  %v11857_v9 = vld [vmem:[#allocation22 + $0x64] ss:$16 sps:$4 sm:$0xff]  }
 0x6e9   : > { %v2821_v33 = vmul.f32 %v14957_v27, %v14957_v27  ;;  %v14970_v34 = vadd.f32 %v2623_v32, %v1898_v41  ;;  %v14972_v49 = vadd.f32 %v2676_v21, %v1906_v44  ;;  %v2625_v54 = vpop.f32.mrb[15].mxu0  ;;  %v2678_v37 = vpop.f32.mrb[15].mxu1  ;;  %v2823_v8 = vmul.f32 %v14959_v20, %v14959_v20  ;;  %3938 = vmatpush1.bf16.msra.mxu0 %v11849_v23  ;;  %v11860_v10 = vld [vmem:[#allocation22 + $0x6c] ss:$16 sps:$4 sm:$0xff]   ;;  %v11855_v11 = vld [vmem:[#allocation22 + $0x60] ss:$16 sps:$4 sm:$0xff]  }
 0x6ea   : > { %2797 = vadd.xlane.f32.xlu1 %v2796_v38  ;;  %v2799_v39 = vadd.f32 %v14964_v40, %v14957_v27  ;;  %v2822_v43 = vmul.f32 %v14964_v40, %v14964_v40  ;;  %v14978_v7 = vadd.f32 %v2625_v54, %v1902_v52  ;;  %v14982_v15 = vadd.f32 %v2674_v31, %v1910_v55  ;;  %v11858_v12 = vld [vmem:[#allocation22 + $0x68] ss:$16 sps:$4 sm:$0xff]   ;;  %v11866_v17 = vld [vmem:[#allocation22 + $0x8c] ss:$16 sps:$4 sm:$0xff]   ;;  %v11861_v24 = vld [vmem:[#allocation22 + $0x80] ss:$16 sps:$4 sm:$0xff]  }
 0x6eb   : > { %v2825_v41 = vmul.f32 %v14970_v34, %v14970_v34  ;;  %v2836_v44 = vadd.f32 %v2835_v29, %v2820_v45  ;;  %v2827_v22 = vmul.f32 %v14972_v49, %v14972_v49  ;;  %v14993_v56 = vadd.f32 %v2678_v37, %v1910_v55  ;;  %4044 = vmatpush1.bf16.msra.mxu1 %v11852_v6  ;;  %v11864_v31 = vld [vmem:[#allocation22 + $0x88] ss:$16 sps:$4 sm:$0xff]   ;;  %v11869_v38 = vld [vmem:[#allocation22 + $0xa4] ss:$16 sps:$4 sm:$0xff]   ;;  %v11872_v36 = vld [vmem:[#allocation22 + $0xac] ss:$16 sps:$4 sm:$0xff]  }
 0x6ec   : > { %2832 = vadd.xlane.f32.xlu0 %v2831_v35  ;;  %v2804_v62 = vadd.f32 %v14978_v7, %v14970_v34  ;;  %v2826_v63 = vmul.f32 %v14978_v7, %v14978_v7  ;;  %v2800_v48 = vadd.f32 %v2799_v39, %v14959_v20  ;;  %v2839_v52 = vadd.f32 %v2822_v43, %v2821_v33  ;;  %v11867_v32 = vld [vmem:[#allocation22 + $0xa0] ss:$16 sps:$4 sm:$0xff]   ;;  %v11870_v21 = vld [vmem:[#allocation22 + $0xa8] ss:$16 sps:$4 sm:$0xff]   ;;  %v11875_v45 = vld [vmem:[#allocation22 + $0xc4] ss:$16 sps:$4 sm:$0xff]  }
 0x6ed   : > { %v2824_v14 = vmul.f32 %v14982_v15, %v14982_v15  ;;  %v2828_v55 = vmul.f32 %v14993_v56, %v14993_v56  ;;  %3939 = vmatprep.subr.bf16.mxu0 %v11857_v9  ;;  %4045 = vmatprep.subr.bf16.mxu1 %v11860_v10  ;;  %v11878_v29 = vld [vmem:[#allocation22 + $0xcc] ss:$16 sps:$4 sm:$0xff]   ;;  %v11873_v33 = vld [vmem:[#allocation22 + $0xc0] ss:$16 sps:$4 sm:$0xff]   ;;  %v11876_v54 = vld [vmem:[#allocation22 + $0xc8] ss:$16 sps:$4 sm:$0xff]  }
 0x6ee   : > { %2837 = vadd.xlane.f32.xlu1 %v2836_v44  ;;  %v2801_v53 = vadd.f32 %v2800_v48, %v14982_v15  ;;  %v2805_v50 = vadd.f32 %v2804_v62, %v14972_v49  ;;  %v2840_v58 = vadd.f32 %v2839_v52, %v2823_v8  ;;  %v2844_v59 = vadd.f32 %v2826_v63, %v2825_v41  ;;  %v11881_v37 = vld [vmem:[#allocation22 + $0xe4] ss:$16 sps:$4 sm:$0xff]   ;;  %v11879_v35 = vld [vmem:[#allocation22 + $0xe0] ss:$16 sps:$4 sm:$0xff]   ;;  %v11882_v39 = vld [vmem:[#allocation22 + $0xe8] ss:$16 sps:$4 sm:$0xff]  }
 0x6ef   : > { %3940 = vmatpush1.bf16.msra.mxu0 %v11855_v11  ;;  %4046 = vmatpush1.bf16.msra.mxu1 %v11858_v12  ;;  %v11884_v43 = vld [vmem:[#allocation22 + $0xec] ss:$16 sps:$4 sm:$0xff]   ;;  %v11887_v8 = vld [vmem:[#allocation22 + $0x104] ss:$16 sps:$4 sm:$0xff]   ;;  %v11885_v44 = vld [vmem:[#allocation22 + $0x100] ss:$16 sps:$4 sm:$0xff]  }
 0x6f0   : > { %2802 = vadd.xlane.f32.xlu0 %v2801_v53  ;;  %v2806_v60 = vadd.f32 %v2805_v50, %v14993_v56  ;;  %v2845_v30 = vadd.f32 %v2844_v59, %v2827_v22  ;;  %v2841_v1 = vadd.f32 %v2840_v58, %v2824_v14  ;;  %3941 = vmatprep.subr.bf16.mxu0 %v11863_v13  ;;  %v11890_v41 = vld [vmem:[#allocation22 + $0x10c] ss:$16 sps:$4 sm:$0xff]   ;;  %v11888_v62 = vld [vmem:[#allocation22 + $0x108] ss:$16 sps:$4 sm:$0xff]   ;;  %v11893_v63 = vld [vmem:[#allocation22 + $0x124] ss:$16 sps:$4 sm:$0xff]  }
 0x6f1   : > { %4047 = vmatprep.subr.bf16.mxu1 %v11866_v17  ;;  %v11896_v48 = vld [vmem:[#allocation22 + $0x12c] ss:$16 sps:$4 sm:$0xff]   ;;  %v11891_v52 = vld [vmem:[#allocation22 + $0x120] ss:$16 sps:$4 sm:$0xff]   ;;  %v11894_v22 = vld [vmem:[#allocation22 + $0x128] ss:$16 sps:$4 sm:$0xff]  }
 0x6f2   : > { %2807 = vadd.xlane.f32.xlu1 %v2806_v60  ;;  %v2846_v26 = vadd.f32 %v2845_v30, %v2828_v55  ;;  %v11899_v53 = vld [vmem:[#allocation22 + $0x144] ss:$16 sps:$4 sm:$0xff]   ;;  %v11902_v50 = vld [vmem:[#allocation22 + $0x14c] ss:$16 sps:$4 sm:$0xff]   ;;  %v11897_v58 = vld [vmem:[#allocation22 + $0x140] ss:$16 sps:$4 sm:$0xff]  }
 0x6f3   : > { %3942 = vmatpush1.bf16.msra.mxu0 %v11861_v24  ;;  %4048 = vmatpush1.bf16.msra.mxu1 %v11864_v31  ;;  %v11900_v59 = vld [vmem:[#allocation22 + $0x148] ss:$16 sps:$4 sm:$0xff]   ;;  %v11905_v60 = vld [vmem:[#allocation22 + $0x164] ss:$16 sps:$4 sm:$0xff]   ;;  %v11908_v14 = vld [vmem:[#allocation22 + $0x16c] ss:$16 sps:$4 sm:$0xff]  }
 0x6f4   : > { %2842 = vadd.xlane.f32.xlu0 %v2841_v1  ;;  %3943 = vmatprep.subr.bf16.mxu0 %v11869_v38  ;;  %v11903_v30 = vld [vmem:[#allocation22 + $0x160] ss:$16 sps:$4 sm:$0xff]   ;;  %v11906_v1 = vld [vmem:[#allocation22 + $0x168] ss:$16 sps:$4 sm:$0xff]   ;;  %v11911_v55 = vld [vmem:[#allocation22 + $0x184] ss:$16 sps:$4 sm:$0xff]  }
 0x6f5   : > { %4049 = vmatprep.subr.bf16.mxu1 %v11872_v36  ;;  %v11909_v9 = vld [vmem:[#allocation22 + $0x180] ss:$16 sps:$4 sm:$0xff]   ;;  %v11912_v10 = vld [vmem:[#allocation22 + $0x188] ss:$16 sps:$4 sm:$0xff]   ;;  %v11917_v13 = vld [vmem:[#allocation22 + $0x1a4] ss:$16 sps:$4 sm:$0xff]  }
 0x6f6   : > { %2847 = vadd.xlane.f32.xlu1 %v2846_v26  ;;  %v11914_v26 = vld [vmem:[#allocation22 + $0x18c] ss:$16 sps:$4 sm:$0xff]   ;;  %v11915_v38 = vld [vmem:[#allocation22 + $0x1a0] ss:$16 sps:$4 sm:$0xff]   ;;  %v11918_v36 = vld [vmem:[#allocation22 + $0x1a8] ss:$16 sps:$4 sm:$0xff]  }
 0x6f7   : > { %3944 = vmatpush1.bf16.msra.mxu0 %v11867_v32  ;;  %4050 = vmatpush1.bf16.msra.mxu1 %v11870_v21  ;;  %v11920_v17 = vld [vmem:[#allocation22 + $0x1ac] ss:$16 sps:$4 sm:$0xff]   ;;  %v11923_v32 = vld [vmem:[#allocation22 + $0x1c4] ss:$16 sps:$4 sm:$0xff]  }
 0x6f8   : > { %3945 = vmatprep.subr.bf16.mxu0 %v11875_v45  ;;  %4051 = vmatprep.subr.bf16.mxu1 %v11878_v29  ;;  %v11926_v21 = vld [vmem:[#allocation22 + $0x1cc] ss:$16 sps:$4 sm:$0xff]  }
 0x6fb   : > { %3946 = vmatpush1.bf16.msra.mxu0 %v11873_v33  ;;  %4052 = vmatpush1.bf16.msra.mxu1 %v11876_v54 }
 0x6fc   : > { %3947 = vmatprep.subr.bf16.mxu0 %v11881_v37  ;;  %4053 = vmatprep.subr.bf16.mxu1 %v11884_v43  ;;  %v11921_v37 = vld [vmem:[#allocation22 + $0x1c0] ss:$16 sps:$4 sm:$0xff]  }
 0x6ff   : > { %3948 = vmatpush1.bf16.msra.mxu0 %v11879_v35  ;;  %4054 = vmatpush1.bf16.msra.mxu1 %v11882_v39  ;;  %v11924_v35 = vld [vmem:[#allocation22 + $0x1c8] ss:$16 sps:$4 sm:$0xff]  }
 0x700   : > { %3949 = vmatprep.subr.bf16.mxu0 %v11887_v8  ;;  %4055 = vmatprep.subr.bf16.mxu1 %v11890_v41  ;;  %v11929_v8 = vld [vmem:[#allocation22 + $0x1e4] ss:$16 sps:$4 sm:$0xff]   ;;  %v11932_v41 = vld [vmem:[#allocation22 + $0x1ec] ss:$16 sps:$4 sm:$0xff]  }
 0x703   : > { %3950 = vmatpush1.bf16.msra.mxu0 %v11885_v44  ;;  %4056 = vmatpush1.bf16.msra.mxu1 %v11888_v62 }
 0x704   : > { %3951 = vmatprep.subr.bf16.mxu0 %v11893_v63  ;;  %4057 = vmatprep.subr.bf16.mxu1 %v11896_v48  ;;  %v11927_v63 = vld [vmem:[#allocation22 + $0x1e0] ss:$16 sps:$4 sm:$0xff]   ;;  %v11930_v48 = vld [vmem:[#allocation22 + $0x1e8] ss:$16 sps:$4 sm:$0xff]  }
 0x707   : > { %3952 = vmatpush1.bf16.msra.mxu0 %v11891_v52  ;;  %4058 = vmatpush1.bf16.msra.mxu1 %v11894_v22  ;;  %v11935_v52 = vld [vmem:[#allocation22 + $0x204] ss:$16 sps:$4 sm:$0xff]   ;;  %v11938_v22 = vld [vmem:[#allocation22 + $0x20c] ss:$16 sps:$4 sm:$0xff]  }
 0x708   : > { %3953 = vmatprep.subr.bf16.mxu0 %v11899_v53  ;;  %4059 = vmatprep.subr.bf16.mxu1 %v11902_v50 }
 0x70b   : > { %3954 = vmatpush1.bf16.msra.mxu0 %v11897_v58  ;;  %4060 = vmatpush1.bf16.msra.mxu1 %v11900_v59 }
 0x70c   : > { %3955 = vmatprep.subr.bf16.mxu0 %v11905_v60  ;;  %4061 = vmatprep.subr.bf16.mxu1 %v11908_v14 }
 0x70f   : > { %3956 = vmatpush1.bf16.msra.mxu0 %v11903_v30  ;;  %4062 = vmatpush1.bf16.msra.mxu1 %v11906_v1  ;;  %v1913_v1 = vsub.s32 4, %v14669_v16 }
 0x710   : > { %3957 = vmatprep.subr.bf16.mxu0 %v11911_v55  ;;  %4063 = vmatprep.subr.bf16.mxu1 %v11914_v26  ;;  %v1921_v26 = vsub.s32 6, %v14669_v16 }
 0x713   : > { %3958 = vmatpush1.bf16.msra.mxu0 %v11909_v9  ;;  %4064 = vmatpush1.bf16.msra.mxu1 %v11912_v10 }
 0x714   : > { %3959 = vmatprep.subr.bf16.mxu0 %v11917_v13  ;;  %4065 = vmatprep.subr.bf16.mxu1 %v11920_v17  ;;  %v1917_v17 = vsub.s32 5, %v14669_v16 }
 0x717   : > { %3960 = vmatpush1.bf16.msra.mxu0 %v11915_v38  ;;  %4066 = vmatpush1.bf16.msra.mxu1 %v11918_v36  ;;  %v1925_v38 = vsub.s32 7, %v14669_v16 }
 0x718   : > { %3961 = vmatprep.subr.bf16.mxu0 %v11923_v32  ;;  %4067 = vmatprep.subr.bf16.mxu1 %v11926_v21 }
 0x71b   : > { %3962 = vmatpush1.bf16.msra.mxu0 %v11921_v37  ;;  %4068 = vmatpush1.bf16.msra.mxu1 %v11924_v35  ;;  %v2787_v37 = vld [vmem:[#allocation19] sm:$0xf]  ;;  %v2788_v35 = vld [vmem:[#allocation20] sm:$0xf] }
 0x71c   : > { %3963 = vmatprep.subr.bf16.mxu0 %v11929_v8  ;;  %4069 = vmatprep.subr.bf16.mxu1 %v11932_v41  ;;  %v1914_v41 = vrot.slane %v14909_v46, %v1913_v1  ;;  %v15057_v16 = vrot.slane %v2787_v37, %v14675_v19  ;;  %v15068_v1 = vrot.slane %v2788_v35, %v14672_v18 }
 0x71e   : > { %v15002_v5 = vpop.f32.mrb[16].mxu0  ;;  %v15004_v28 = vpop.f32.mrb[16].mxu1 }
 0x71f   : > { %v15006_v23 = vpop.f32.mrb[17].mxu0  ;;  %v15008_v6 = vpop.f32.mrb[17].mxu1  ;;  %3964 = vmatpush1.bf16.msra.mxu0 %v11927_v63  ;;  %4070 = vmatpush1.bf16.msra.mxu1 %v11930_v48  ;;  %v15050_v63 = vrot.slane %v14909_v46, %v1921_v26  ;;  %v15073_v26 = vrot.slane %v2787_v37, %v14916_v47 }
 0x720   : > { %v15010_v11 = vpop.f32.mrb[18].mxu0  ;;  %v15012_v12 = vpop.f32.mrb[18].mxu1  ;;  %3986 = vmatprep.subr.bf16.mxu0 %v11935_v52  ;;  %4092 = vmatprep.subr.bf16.mxu1 %v11938_v22  ;;  %v1918_v22 = vrot.slane %v14909_v46, %v1917_v17 }
 0x721   : > { %v15014_v24 = vpop.f32.mrb[19].mxu0  ;;  %v15016_v31 = vpop.f32.mrb[19].mxu1 }
 0x726   : > { %v15018_v45 = vpop.f32.mrb[20].mxu0  ;;  %v15020_v29 = vpop.f32.mrb[20].mxu1 }
 0x727   : > { %v15022_v33 = vpop.f32.mrb[21].mxu0  ;;  %v15024_v54 = vpop.f32.mrb[21].mxu1 }
 0x728   : > { %v15026_v39 = vpop.f32.mrb[22].mxu0  ;;  %v15028_v43 = vpop.f32.mrb[22].mxu1 }
 0x729   : > { %17189 = vst [vmem:[#allocation69_spill] sm:$0xff] %v15028_v43  ;;  %v15030_v44 = vpop.f32.mrb[23].mxu0  ;;  %v15032_v62 = vpop.f32.mrb[23].mxu1 }
 0x775   : > { %v2793_v53 = vpop.xlane.xlu0 %2792 }
 0x776   : > { %v15034_v50 = vmul.f32 0.001953125, %v2793_v53  ;;  %v15054_v53 = vrot.slane %v14909_v46, %v1925_v38  ;;  %v15086_v38 = vrot.slane %v2787_v37, %v14907_v3 }
 0x777   : > { %v2798_v58 = vpop.xlane.xlu1 %2797 }
 0x778   : > { %v15036_v59 = vmul.f32 0.001953125, %v2798_v58  ;;  %v2853_v14 = vmul.f32 %v15034_v50, %v15034_v50  ;;  %v15060_v58 = vrot.slane %v2788_v35, %v14675_v19 }
 0x779   : > { %v2833_v60 = vpop.xlane.xlu0 %2832 }
 0x77a   : > { %v2849_v30 = vmul.f32 0.001953125, %v2833_v60  ;;  %v2854_v10 = vmul.f32 %v15036_v59, %v15036_v59 }
 0x77b   : > { %v2838_v55 = vpop.xlane.xlu1 %2837 }
 0x77c   : > { %v2857_v9 = vsub.f32 %v2849_v30, %v2853_v14  ;;  %v2850_v13 = vmul.f32 0.001953125, %v2838_v55  ;;  %v15065_v30 = vrot.slane %v2787_v37, %v14672_v18  ;;  %v15105_v37 = vadd.f32 %v15012_v12, %v15050_v63 }
 0x77d   : > { %v2803_v21 = vpop.xlane.xlu0 %2802  ;;  %v15124_v12 = vadd.f32 %v15030_v44, %v1918_v22  ;;  %v2866_v44 = vsub.f32 %v14936_v51, %v15036_v59 }
 0x77e   : > { %v2877_v36 = vadd.f32 1e-05, %v2857_v9  ;;  %v2858_v32 = vsub.f32 %v2850_v13, %v2854_v10  ;;  %v15046_v8 = vmul.f32 0.001953125, %v2803_v21  ;;  %v15076_v9 = vrot.slane %v2788_v35, %v14916_v47 }
 0x77f   : > { %v2808_v52 = vpop.xlane.xlu1 %2807  ;;  %v15079_v10 = vadd.f32 %v15002_v5, %v1914_v41  ;;  %v15083_v13 = vadd.f32 %v15004_v28, %v15050_v63  ;;  %v15101_v28 = vadd.f32 %v15010_v11, %v1914_v41  ;;  %v15121_v11 = vadd.f32 %v15026_v39, %v1914_v41 }
 0x780   : > { %12845 = vrsqrt.f32 %v2877_v36  ;;  %v2878_v48 = vadd.f32 1e-05, %v2858_v32  ;;  %v15062_v60 = vmul.f32 0.001953125, %v2808_v52  ;;  %v2855_v46 = vmul.f32 %v15046_v8, %v15046_v8 }
 0x781   : > { %v2843_v14 = vpop.xlane.xlu0 %2842  ;;  %v15089_v36 = vrot.slane %v2788_v35, %v14907_v3  ;;  %v15092_v32 = vadd.f32 %v15006_v23, %v1918_v22  ;;  %v15098_v52 = vadd.f32 %v15008_v6, %v15054_v53  ;;  %v15108_v35 = vadd.f32 %v15014_v24, %v1918_v22 }
 0x782   : > { %12847 = vrsqrt.f32 %v2878_v48  ;;  %v2851_v55 = vmul.f32 0.001953125, %v2843_v14  ;;  %v2856_v48 = vmul.f32 %v15062_v60, %v15062_v60  ;;  %v15112_v23 = vadd.f32 %v15016_v31, %v15054_v53 }
 0x783   : > { %v2848_v17 = vpop.xlane.xlu1 %2847  ;;  %v15115_v14 = vadd.f32 %v15018_v45, %v1914_v41  ;;  %v2861_v24 = vsub.f32 %v14920_v0, %v15034_v50  ;;  %v2862_v31 = vsub.f32 %v14926_v42, %v15034_v50  ;;  %v2864_v45 = vsub.f32 %v14940_v61, %v15034_v50 }
 0x784   : > { %v2859_v21 = vsub.f32 %v2851_v55, %v2855_v46  ;;  %v2852_v5 = vmul.f32 0.001953125, %v2848_v17  ;;  %v15118_v55 = vadd.f32 %v15022_v33, %v1918_v22  ;;  %v2863_v33 = vsub.f32 %v14922_v2, %v15034_v50 }
 0x785   : > { %v2865_v39 = vsub.f32 %v14930_v57, %v15036_v59  ;;  %v2867_v0 = vsub.f32 %v14944_v4, %v15036_v59  ;;  %v2869_v2 = vsub.f32 %v14957_v27, %v15046_v8  ;;  %v2870_v57 = vsub.f32 %v14964_v40, %v15046_v8 }
 0x786   : > { %v2879_v46 = vadd.f32 1e-05, %v2859_v21  ;;  %v2860_v6 = vsub.f32 %v2852_v5, %v2856_v48  ;;  %v2868_v48 = vsub.f32 %v14951_v25, %v15036_v59 }
 0x788   : > { %12849 = vrsqrt.f32 %v2879_v46  ;;  %v2880_v17 = vadd.f32 1e-05, %v2860_v6 }
 0x78a   : > { %v12846_v21 = vpop.eup %12845  ;;  %12851 = vrsqrt.f32 %v2880_v17 }
 0x78b   : > { %v2886_v42 = vmul.f32 %v12846_v21, %v2862_v31  ;;  %v2885_v41 = vmul.f32 %v12846_v21, %v2861_v24  ;;  %v2888_v22 = vmul.f32 %v12846_v21, %v2864_v45  ;;  %v2887_v50 = vmul.f32 %v12846_v21, %v2863_v33 }
 0x78c   : > { %v12848_v61 = vpop.eup %12847 }
 0x78d   : > { %v2890_v5 = vmul.f32 %v12848_v61, %v2866_v44  ;;  %v2923_v51 = vmul.f32 %v15057_v16, %v2886_v42  ;;  %v2889_v46 = vmul.f32 %v12848_v61, %v2865_v39  ;;  %v2922_v4 = vmul.f32 %v15065_v30, %v2885_v41 }
 0x78e   : > { %v2892_v6 = vmul.f32 %v12848_v61, %v2868_v48  ;;  %v2925_v24 = vmul.f32 %v15073_v26, %v2888_v22  ;;  %v2891_v31 = vmul.f32 %v12848_v61, %v2867_v0  ;;  %v2924_v45 = vmul.f32 %v15086_v38, %v2887_v50 }
 0x78f   : > { %v2927_v25 = vmul.f32 %v15057_v16, %v2890_v5  ;;  %v2960_v27 = vadd.f32 %v15060_v58, %v2923_v51  ;;  %v2926_v59 = vmul.f32 %v15065_v30, %v2889_v46  ;;  %v2959_v40 = vadd.f32 %v15068_v1, %v2922_v4 }
 0x790   : > { %v15159_v33 = vmul.f32 %v15086_v38, %v2891_v31  ;;  %v15162_v39 = vadd.f32 %v15089_v36, %v2924_v45  ;;  %v2929_v41 = vmul.f32 %v15073_v26, %v2892_v6  ;;  %v2873_v22 = vsub.f32 %v14970_v34, %v15062_v60 }
 0x791   : > { %v2964_v44 = vadd.f32 %v15060_v58, %v2927_v25  ;;  %v2992_v0 = vmul.f32 0.044715, %v2960_v27  ;;  %v2963_v42 = vadd.f32 %v15068_v1, %v2926_v59  ;;  %v2874_v61 = vsub.f32 %v14978_v7, %v15062_v60 }
 0x792   : > { %v2991_v50 = vmul.f32 0.044715, %v2959_v40  ;;  %v15173_v5 = vpop.eup %12849  ;;  %v15178_v31 = vadd.f32 %v15076_v9, %v2925_v24  ;;  %v15184_v59 = vmul.f32 0.5, %v2960_v27  ;;  %v15187_v21 = vadd.f32 %v15076_v9, %v2929_v41 }
 0x793   : > { %v2996_v46 = vmul.f32 0.044715, %v2964_v44  ;;  %v3008_v4 = vmul.f32 %v2992_v0, %v2960_v27  ;;  %v2995_v6 = vmul.f32 0.044715, %v2963_v42  ;;  %v2894_v34 = vmul.f32 %v15173_v5, %v2870_v57 }
 0x794   : > { %v3007_v45 = vmul.f32 %v2991_v50, %v2959_v40  ;;  %v2893_v7 = vmul.f32 %v15173_v5, %v2869_v2  ;;  %v15182_v25 = vpop.eup %12851 }
 0x795   : > { %v3012_v48 = vmul.f32 %v2996_v46, %v2964_v44  ;;  %v3024_v17 = vmul.f32 %v3008_v4, %v2960_v27  ;;  %v3011_v51 = vmul.f32 %v2995_v6, %v2963_v42  ;;  %v2898_v24 = vmul.f32 %v15182_v25, %v2874_v61 }
 0x796   : > { %v3023_v0 = vmul.f32 %v3007_v45, %v2959_v40  ;;  %v2931_v47 = vmul.f32 %v15057_v16, %v2894_v34  ;;  %v2897_v57 = vmul.f32 %v15182_v25, %v2873_v22  ;;  %v2930_v2 = vmul.f32 %v15065_v30, %v2893_v7 }
 0x797   : > { %v3028_v50 = vmul.f32 %v3012_v48, %v2964_v44  ;;  %v3040_v19 = vadd.f32 %v3024_v17, %v2960_v27  ;;  %v3027_v3 = vmul.f32 %v3011_v51, %v2963_v42  ;;  %v2935_v46 = vmul.f32 %v15057_v16, %v2898_v24 }
 0x798   : > { %v3039_v18 = vadd.f32 %v3023_v0, %v2959_v40  ;;  %v15195_v4 = vadd.f32 %v15060_v58, %v2931_v47  ;;  %v2934_v45 = vmul.f32 %v15065_v30, %v2897_v57  ;;  %v2994_v61 = vmul.f32 0.044715, %v15178_v31 }
 0x799   : > { %v3044_v41 = vadd.f32 %v3028_v50, %v2964_v44  ;;  %v3056_v6 = vmul.f32 0.7978846, %v3040_v19  ;;  %v3043_v34 = vadd.f32 %v3027_v3, %v2963_v42  ;;  %v15200_v27 = vadd.f32 %v15060_v58, %v2935_v46 }
 0x79a   : > { %v3055_v48 = vmul.f32 0.7978846, %v3039_v18  ;;  %v15203_v17 = vadd.f32 %v15068_v1, %v2930_v2  ;;  %v3000_v16 = vmul.f32 0.044715, %v15195_v4  ;;  %v15207_v47 = vadd.f32 %v15068_v1, %v2934_v45 }
 0x79b   : > { %v3060_v22 = vmul.f32 0.7978846, %v3044_v41  ;;  %12853 = vtanh.f32 %v3056_v6  ;;  %v2975_v19 = vmul.f32 0.5, %v2959_v40  ;;  %v3059_v51 = vmul.f32 0.7978846, %v3043_v34 }
 0x79c   : > { %12855 = vtanh.f32 %v3055_v48  ;;  %v3004_v30 = vmul.f32 0.044715, %v15200_v27  ;;  %v2980_v3 = vmul.f32 0.5, %v2964_v44  ;;  %v3016_v18 = vmul.f32 %v3000_v16, %v15195_v4 }
 0x79d   : > { %12857 = vtanh.f32 %v3060_v22  ;;  %v15212_v58 = vmul.f32 0.5, %v15178_v31  ;;  %v2999_v0 = vmul.f32 0.044715, %v15203_v17  ;;  %v3003_v1 = vmul.f32 0.044715, %v15207_v47 }
 0x79e   : > { %12859 = vtanh.f32 %v3059_v51  ;;  %v3020_v7 = vmul.f32 %v3004_v30, %v15200_v27  ;;  %v3032_v40 = vmul.f32 %v3016_v18, %v15195_v4  ;;  %v2998_v24 = vmul.f32 0.044715, %v15187_v21 }
 0x79f   : > { %v3010_v50 = vmul.f32 %v2994_v61, %v15178_v31  ;;  %v15222_v44 = vadd.f32 %v15089_v36, %v15159_v33  ;;  %v2979_v57 = vmul.f32 0.5, %v2963_v42  ;;  %v3015_v46 = vmul.f32 %v2999_v0, %v15203_v17 }
 0x7a0   : > { %v3036_v2 = vmul.f32 %v3020_v7, %v15200_v27  ;;  %v3019_v41 = vmul.f32 %v3003_v1, %v15207_v47  ;;  %v3048_v6 = vadd.f32 %v3032_v40, %v15195_v4  ;;  %v15229_v45 = vmul.f32 0.5, %v15187_v21 }
 0x7a1   : > { %v3014_v34 = vmul.f32 %v2998_v24, %v15187_v21  ;;  %v3026_v61 = vmul.f32 %v3010_v50, %v15178_v31  ;;  %v3031_v33 = vmul.f32 %v3015_v46, %v15203_v17  ;;  %v2993_v22 = vmul.f32 0.044715, %v15162_v39 }
 0x7a2   : > { %v3052_v48 = vadd.f32 %v3036_v2, %v15200_v27  ;;  %v3035_v42 = vmul.f32 %v3019_v41, %v15207_v47  ;;  %v3064_v16 = vmul.f32 0.7978846, %v3048_v6  ;;  %v2997_v18 = vmul.f32 0.044715, %v15222_v44 }
 0x7a3   : > { %v3030_v51 = vmul.f32 %v3014_v34, %v15187_v21  ;;  %v3042_v30 = vadd.f32 %v3026_v61, %v15178_v31  ;;  %v3047_v0 = vadd.f32 %v3031_v33, %v15203_v17  ;;  %v3009_v40 = vmul.f32 %v2993_v22, %v15162_v39 }
 0x7a4   : > { %v3068_v7 = vmul.f32 0.7978846, %v3052_v48  ;;  %v3051_v1 = vadd.f32 %v3035_v42, %v15207_v47  ;;  %12861 = vtanh.f32 %v3064_v16  ;;  %v3013_v46 = vmul.f32 %v2997_v18, %v15222_v44 }
 0x7a5   : > { %v12854_v24 = vpop.eup %12853  ;;  %v3046_v50 = vadd.f32 %v3030_v51, %v15187_v21  ;;  %v3058_v2 = vmul.f32 0.7978846, %v3042_v30  ;;  %v3063_v31 = vmul.f32 0.7978846, %v3047_v0  ;;  %v3025_v33 = vmul.f32 %v3009_v40, %v15162_v39 }
 0x7a6   : > { %v12856_v41 = vpop.eup %12855  ;;  %v3088_v6 = vadd.f32 1.0, %v12854_v24  ;;  %12863 = vtanh.f32 %v3068_v7  ;;  %v3067_v34 = vmul.f32 0.7978846, %v3051_v1  ;;  %v3029_v21 = vmul.f32 %v3013_v46, %v15222_v44 }
 0x7a7   : > { %v12858_v61 = vpop.eup %12857  ;;  %v3087_v48 = vadd.f32 1.0, %v12856_v41  ;;  %v3062_v43 = vmul.f32 0.7978846, %v3046_v50  ;;  %12865 = vtanh.f32 %v3058_v2  ;;  %v3041_v18 = vadd.f32 %v3025_v33, %v15162_v39 }
 0x7a8   : > { %v12860_v42 = vpop.eup %12859  ;;  %v3092_v22 = vadd.f32 1.0, %v12858_v61  ;;  %v3104_v16 = vmul.f32 %v3088_v6, %v15184_v59  ;;  %12867 = vtanh.f32 %v3063_v31  ;;  %v3045_v1 = vadd.f32 %v3029_v21, %v15222_v44  ;;  %v11936_v31 = vld [vmem:[#allocation22 + $0x208] ss:$16 sps:$4 sm:$0xff]   ;;  %v11944_v61 = vld [vmem:[#allocation22 + $0x22c] ss:$16 sps:$4 sm:$0xff]  }
 0x7a9   : > { %v3091_v51 = vadd.f32 1.0, %v12860_v42  ;;  %v3103_v30 = vmul.f32 %v3087_v48, %v2975_v19  ;;  %12869 = vtanh.f32 %v3067_v34  ;;  %v3057_v50 = vmul.f32 0.7978846, %v3041_v18 }
 0x7aa   : > { %v3108_v7 = vmul.f32 %v3092_v22, %v2980_v3  ;;  %v3120_v0 = vadd.f32 %v3104_v16, %v15092_v32  ;;  %12871 = vtanh.f32 %v3062_v43  ;;  %v17190_v59 = vsub.f32 %v14982_v15, %v15046_v8 }
 0x7ab   : > { %v3107_v24 = vmul.f32 %v3091_v51, %v2979_v57  ;;  %v3119_v40 = vadd.f32 %v3103_v30, %v15079_v10  ;;  %v3061_v46 = vmul.f32 0.7978846, %v3045_v1  ;;  %v17191_v3 = vsub.f32 %v14993_v56, %v15062_v60  ;;  %v11933_v56 = vld [vmem:[#allocation22 + $0x200] ss:$16 sps:$4 sm:$0xff]  }
 0x7ac   : > { %v2896_v2 = vmul.f32 %v15173_v5, %v17190_v59  ;;  %v3124_v19 = vadd.f32 %v3108_v7, %v15108_v35  ;;  %v17192_v43 = vsub.f32 %v14959_v20, %v15046_v8  ;;  %12873 = vtanh.f32 %v3057_v50  ;;  %v11950_v50 = vld [vmem:[#allocation22 + $0x24c] ss:$16 sps:$4 sm:$0xff]  }
 0x7ad   : > { %v2900_v32 = vmul.f32 %v15182_v25, %v17191_v3  ;;  %v3123_v10 = vadd.f32 %v3107_v24, %v15101_v28  ;;  %v17193_v41 = vsub.f32 %v14972_v49, %v15062_v60  ;;  %12875 = vtanh.f32 %v3061_v46  ;;  %v11941_v28 = vld [vmem:[#allocation22 + $0x224] ss:$16 sps:$4 sm:$0xff]  }
 0x7ae   : > { %v2895_v57 = vmul.f32 %v15173_v5, %v17192_v43  ;;  %v2933_v15 = vmul.f32 %v15073_v26, %v2896_v2  ;;  %v15271_v6 = vpack.c.bf16 %v3124_v19, %v3120_v0  ;;  %v12862_v8 = vpop.eup %12861  ;;  %v2984_v48 = vmul.f32 0.5, %v15195_v4 }
 0x7af   : > { %v2899_v35 = vmul.f32 %v15182_v25, %v17193_v41  ;;  %v2937_v34 = vmul.f32 %v15073_v26, %v2900_v32  ;;  %v15275_v5 = vpack.c.bf16 %v3123_v10, %v3119_v40  ;;  %v2988_v26 = vmul.f32 0.5, %v15200_v27  ;;  %v11945_v41 = vld [vmem:[#allocation22 + $0x240] ss:$16 sps:$4 sm:$0xff]  }
 0x7b0   : > { %v2932_v20 = vmul.f32 %v15086_v38, %v2895_v57  ;;  %v15279_v49 = vadd.f32 %v15076_v9, %v2933_v15  ;;  %v12864_v25 = vpop.eup %12863  ;;  %3965 = vmatprep.mubr.bf16.mxu0 %v15271_v6  ;;  %4071 = vmatprep.mubr.bf16.mxu1 %v15271_v6  ;;  %v3096_v33 = vadd.f32 1.0, %v12862_v8  ;;  %v2983_v21 = vmul.f32 0.5, %v15203_v17  ;;  %v11947_v17 = vld [vmem:[#allocation22 + $0x244] ss:$16 sps:$4 sm:$0xff]  }
 0x7b1   : > { %v2936_v60 = vmul.f32 %v15086_v38, %v2899_v35  ;;  %v15286_v42 = vadd.f32 %v15076_v9, %v2937_v34  ;;  %v12866_v4 = vpop.eup %12865  ;;  %3966 = vmatmul.mubr.bf16.vlgmr.msra.gmra.mrb[24].mxu0 %v15275_v5  ;;  %4072 = vmatmul.mubr.bf16.vlgmr.msra.gmra.mrb[24].mxu1 %v15275_v5  ;;  %v11939_v38 = vld [vmem:[#allocation22 + $0x220] ss:$16 sps:$4 sm:$0xff]   ;;  %v3100_v16 = vadd.f32 1.0, %v12864_v25  ;;  %v11942_v9 = vld [vmem:[#allocation22 + $0x228] ss:$16 sps:$4 sm:$0xff]   ;;  %v2987_v7 = vmul.f32 0.5, %v15207_v47 }
 0x7b2   : > { %v15289_v22 = vadd.f32 %v15089_v36, %v2932_v20  ;;  %v3002_v51 = vmul.f32 0.044715, %v15279_v49  ;;  %v12868_v30 = vpop.eup %12867  ;;  %3987 = vmatpush1.bf16.msra.mxu0 %v11933_v56  ;;  %4093 = vmatpush1.bf16.msra.mxu1 %v11936_v31  ;;  %v3112_v18 = vmul.f32 %v3096_v33, %v2984_v48  ;;  %v3090_v0 = vadd.f32 1.0, %v12866_v4  ;;  %v11953_v8 = vld [vmem:[#allocation22 + $0x264] ss:$16 sps:$4 sm:$0xff]  }
 0x7b3   : > { %v15296_v27 = vadd.f32 %v15089_v36, %v2936_v60  ;;  %v3006_v1 = vmul.f32 0.044715, %v15286_v42  ;;  %v12870_v24 = vpop.eup %12869  ;;  %3988 = vmatprep.subr.bf16.mxu0 %v11941_v28  ;;  %4094 = vmatprep.subr.bf16.mxu1 %v11944_v61  ;;  %v3116_v40 = vmul.f32 %v3100_v16, %v2988_v26  ;;  %v3095_v59 = vadd.f32 1.0, %v12868_v30  ;;  %v11956_v28 = vld [vmem:[#allocation22 + $0x26c] ss:$16 sps:$4 sm:$0xff]  }
 0x7b4   : > { %v2977_v36 = vmul.f32 0.5, %v15162_v39  ;;  %v3018_v2 = vmul.f32 %v3002_v51, %v15279_v49  ;;  %v12872_v19 = vpop.eup %12871  ;;  %v3128_v46 = vadd.f32 %v3112_v18, %v15118_v55  ;;  %v3099_v3 = vadd.f32 1.0, %v12870_v24  ;;  %v11948_v39 = vld [vmem:[#allocation22 + $0x248] ss:$16 sps:$4 sm:$0xff]   ;;  %v11951_v26 = vld [vmem:[#allocation22 + $0x260] ss:$16 sps:$4 sm:$0xff]  }
 0x7b5   : > { %v3106_v47 = vmul.f32 %v3090_v0, %v15212_v58  ;;  %v3022_v32 = vmul.f32 %v3006_v1, %v15286_v42  ;;  %v3132_v43 = vadd.f32 %v3116_v40, %v15124_v12  ;;  %v3111_v57 = vmul.f32 %v3095_v59, %v2983_v21 }
 0x7b6   : > { %v3094_v10 = vadd.f32 1.0, %v12872_v19  ;;  %v3034_v15 = vmul.f32 %v3018_v2, %v15279_v49  ;;  %3989 = vmatpush1.bf16.msra.mxu0 %v11939_v38  ;;  %4095 = vmatpush1.bf16.msra.mxu1 %v11942_v9  ;;  %v3115_v35 = vmul.f32 %v3099_v3, %v2987_v7  ;;  %v2981_v55 = vmul.f32 0.5, %v15222_v44  ;;  %v12874_v58 = vpop.eup %12873  ;;  %v11959_v9 = vld [vmem:[#allocation22 + $0x284] ss:$16 sps:$4 sm:$0xff]  }
 0x7b7   : > { %v3122_v56 = vadd.f32 %v3106_v47, %v15098_v52  ;;  %v3038_v31 = vmul.f32 %v3022_v32, %v15286_v42  ;;  %v15310_v34 = vpack.c.bf16 %v3132_v43, %v3128_v46  ;;  %3990 = vmatprep.subr.bf16.mxu0 %v11947_v17  ;;  %4096 = vmatprep.subr.bf16.mxu1 %v11950_v50  ;;  %v3001_v61 = vmul.f32 0.044715, %v15289_v22  ;;  %v12876_v48 = vpop.eup %12875  ;;  %v11957_v17 = vld [vmem:[#allocation22 + $0x280] ss:$16 sps:$4 sm:$0xff]   ;;  %v11960_v50 = vld [vmem:[#allocation22 + $0x288] ss:$16 sps:$4 sm:$0xff]  }
 0x7b8   : > { %v3127_v12 = vadd.f32 %v3111_v57, %v15115_v14  ;;  %v3110_v20 = vmul.f32 %v3094_v10, %v15229_v45  ;;  %v3131_v52 = vadd.f32 %v3115_v35, %v15121_v11  ;;  %v3089_v60 = vadd.f32 1.0, %v12874_v58  ;;  %v11954_v11 = vld [vmem:[#allocation22 + $0x268] ss:$16 sps:$4 sm:$0xff]   ;;  %v11971_v32 = vld [vmem:[#allocation22 + $0x2c4] ss:$16 sps:$4 sm:$0xff]  }
 0x7b9   : > { %v3050_v44 = vadd.f32 %v3034_v15, %v15279_v49  ;;  %v3054_v25 = vadd.f32 %v3038_v31, %v15286_v42  ;;  %3975 = vmatprep.mubr.bf16.mxu0 %v15310_v34  ;;  %4081 = vmatprep.mubr.bf16.mxu1 %v15310_v34  ;;  %v3093_v45 = vadd.f32 1.0, %v12876_v48  ;;  %v3005_v33 = vmul.f32 0.044715, %v15296_v27  ;;  %v11966_v47 = vld [vmem:[#allocation22 + $0x2a8] ss:$16 sps:$4 sm:$0xff]  }
 0x7ba   : > { %v3126_v14 = vadd.f32 %v3110_v20, %v15112_v23  ;;  %v3017_v4 = vmul.f32 %v3001_v61, %v15289_v22  ;;  %v15323_v38 = vpack.c.bf16 %v3131_v52, %v3127_v12  ;;  %3991 = vmatpush1.bf16.msra.mxu0 %v11945_v41  ;;  %4097 = vmatpush1.bf16.msra.mxu1 %v11948_v39  ;;  %v11962_v23 = vld [vmem:[#allocation22 + $0x28c] ss:$16 sps:$4 sm:$0xff]   ;;  %v11969_v10 = vld [vmem:[#allocation22 + $0x2c0] ss:$16 sps:$4 sm:$0xff]   ;;  %v11972_v15 = vld [vmem:[#allocation22 + $0x2c8] ss:$16 sps:$4 sm:$0xff]  }
 0x7bb   : > { %v3105_v16 = vmul.f32 %v3089_v60, %v2977_v36  ;;  %v3066_v21 = vmul.f32 0.7978846, %v3050_v44  ;;  %v3070_v51 = vmul.f32 0.7978846, %v3054_v25  ;;  %3992 = vmatprep.subr.bf16.mxu0 %v11953_v8  ;;  %4098 = vmatprep.subr.bf16.mxu1 %v11956_v28  ;;  %v3109_v18 = vmul.f32 %v3093_v45, %v2981_v55  ;;  %v11968_v36 = vld [vmem:[#allocation22 + $0x2ac] ss:$16 sps:$4 sm:$0xff]  }
 0x7bc   : > { %v15325_v30 = vpack.c.bf16 %v3126_v14, %v3122_v56  ;;  %v3021_v7 = vmul.f32 %v3005_v33, %v15296_v27  ;;  %3976 = vmatmul.mubr.bf16.gmra.mrb[28].mxu0 %v15323_v38  ;;  %4082 = vmatmul.mubr.bf16.gmra.mrb[28].mxu1 %v15323_v38  ;;  %v3033_v1 = vmul.f32 %v3017_v4, %v15289_v22  ;;  %v11974_v43 = vld [vmem:[#allocation22 + $0x2cc] ss:$16 sps:$4 sm:$0xff]   ;;  %v11977_v39 = vld [vmem:[#allocation22 + $0x2e4] ss:$16 sps:$4 sm:$0xff]   ;;  %v2986_v56 = vmul.f32 0.5, %v15279_v49 }
 0x7bd   : > { %v3121_v0 = vadd.f32 %v3105_v16, %v15083_v13  ;;  %12877 = vtanh.f32 %v3066_v21  ;;  %v3125_v24 = vadd.f32 %v3109_v18, %v15105_v37  ;;  %v11965_v13 = vld [vmem:[#allocation22 + $0x2a4] ss:$16 sps:$4 sm:$0xff]   ;;  %v11963_v37 = vld [vmem:[#allocation22 + $0x2a0] ss:$16 sps:$4 sm:$0xff]   ;;  %v11980_v35 = vld [vmem:[#allocation22 + $0x2ec] ss:$16 sps:$4 sm:$0xff]   ;;  %v2781_v12 = vadd.f32 %v15024_v54, %v15054_v53 }
 0x7be   : > { %4018 = vmatprep.mubr.bf16.mxu0 %v15325_v30  ;;  %4124 = vmatprep.mubr.bf16.mxu1 %v15325_v30  ;;  %12879 = vtanh.f32 %v3070_v51  ;;  %v3037_v40 = vmul.f32 %v3021_v7, %v15296_v27  ;;  %v3049_v59 = vadd.f32 %v3033_v1, %v15289_v22  ;;  %v2990_v31 = vmul.f32 0.5, %v15286_v42  ;;  %v11975_v28 = vld [vmem:[#allocation22 + $0x2e0] ss:$16 sps:$4 sm:$0xff]   ;;  %v11978_v61 = vld [vmem:[#allocation22 + $0x2e8] ss:$16 sps:$4 sm:$0xff]  }
 0x7bf   : > { %3993 = vmatpush1.bf16.msra.mxu0 %v11951_v26  ;;  %4099 = vmatpush1.bf16.msra.mxu1 %v11954_v11  ;;  %v15337_v2 = vpack.c.bf16 %v3125_v24, %v3121_v0  ;;  %v2785_v8 = vadd.f32 %v15032_v62, %v15054_v53  ;;  %v11983_v52 = vld [vmem:[#allocation22 + $0x304] ss:$16 sps:$4 sm:$0xff]   ;;  %v11986_v49 = vld [vmem:[#allocation22 + $0x30c] ss:$16 sps:$4 sm:$0xff]   ;;  %v2985_v14 = vmul.f32 0.5, %v15289_v22  ;;  %v2989_v45 = vmul.f32 0.5, %v15296_v27 }
 0x7c0   : > { %3994 = vmatprep.subr.bf16.mxu0 %v11959_v9  ;;  %4100 = vmatprep.subr.bf16.mxu1 %v11962_v23  ;;  %v3053_v19 = vadd.f32 %v3037_v40, %v15296_v27  ;;  %v3065_v46 = vmul.f32 0.7978846, %v3049_v59  ;;  %v11981_v26 = vld [vmem:[#allocation22 + $0x300] ss:$16 sps:$4 sm:$0xff]   ;;  %v11984_v62 = vld [vmem:[#allocation22 + $0x308] ss:$16 sps:$4 sm:$0xff]   ;;  %v2779_v4 = vadd.f32 %v15020_v29, %v15050_v63 }
 0x7c1   : > { %v11989_v11 = vld [vmem:[#allocation22 + $0x324] ss:$16 sps:$4 sm:$0xff]   ;;  %v11992_v16 = vld [vmem:[#allocation22 + $0x32c] ss:$16 sps:$4 sm:$0xff]   ;;  %v11987_v18 = vld [vmem:[#allocation22 + $0x320] ss:$16 sps:$4 sm:$0xff]  }
 0x7c2   : > { %v3069_v3 = vmul.f32 0.7978846, %v3053_v19  ;;  %12881 = vtanh.f32 %v3065_v46  ;;  %v17194_v22 = vld [vmem:[#allocation69_spill] sm:$0xff]  ;;  %v11990_v7 = vld [vmem:[#allocation22 + $0x328] ss:$16 sps:$4 sm:$0xff]  }
 0x7c3   : > { %3995 = vmatpush1.bf16.msra.mxu0 %v11957_v17  ;;  %4101 = vmatpush1.bf16.msra.mxu1 %v11960_v50  ;;  %v2783_v51 = vadd.f32 %v17194_v22, %v15050_v63  ;;  %v11995_v27 = vld [vmem:[#allocation22 + $0x344] ss:$16 sps:$4 sm:$0xff]   ;;  %v11998_v1 = vld [vmem:[#allocation22 + $0x34c] ss:$16 sps:$4 sm:$0xff]   ;;  %v11993_v24 = vld [vmem:[#allocation22 + $0x340] ss:$16 sps:$4 sm:$0xff]  }
 0x7c4   : > { %3996 = vmatprep.subr.bf16.mxu0 %v11965_v13  ;;  %4102 = vmatprep.subr.bf16.mxu1 %v11968_v36  ;;  %12883 = vtanh.f32 %v3069_v3  ;;  %v11996_v40 = vld [vmem:[#allocation22 + $0x348] ss:$16 sps:$4 sm:$0xff]   ;;  %v12001_v63 = vld [vmem:[#allocation22 + $0x364] ss:$16 sps:$4 sm:$0xff]   ;;  %v12004_v17 = vld [vmem:[#allocation22 + $0x36c] ss:$16 sps:$4 sm:$0xff]  }
 0x7c5   : > { %v11999_v50 = vld [vmem:[#allocation22 + $0x360] ss:$16 sps:$4 sm:$0xff]   ;;  %v12002_v59 = vld [vmem:[#allocation22 + $0x368] ss:$16 sps:$4 sm:$0xff]   ;;  %v12007_v13 = vld [vmem:[#allocation22 + $0x384] ss:$16 sps:$4 sm:$0xff]  }
 0x7c6   : > { %v12010_v36 = vld [vmem:[#allocation22 + $0x38c] ss:$16 sps:$4 sm:$0xff]   ;;  %v12005_v19 = vld [vmem:[#allocation22 + $0x380] ss:$16 sps:$4 sm:$0xff]   ;;  %v12008_v46 = vld [vmem:[#allocation22 + $0x388] ss:$16 sps:$4 sm:$0xff]  }
 0x7c7   : > { %v12878_v57 = vpop.eup %12877  ;;  %3997 = vmatpush1.bf16.msra.mxu0 %v11963_v37  ;;  %4103 = vmatpush1.bf16.msra.mxu1 %v11966_v47  ;;  %v12013_v3 = vld [vmem:[#allocation22 + $0x3a4] ss:$16 sps:$4 sm:$0xff]   ;;  %v12016_v37 = vld [vmem:[#allocation22 + $0x3ac] ss:$16 sps:$4 sm:$0xff]   ;;  %v12011_v47 = vld [vmem:[#allocation22 + $0x3a0] ss:$16 sps:$4 sm:$0xff]  }
 0x7c8   : > { %v12880_v41 = vpop.eup %12879  ;;  %3998 = vmatprep.subr.bf16.mxu0 %v11971_v32  ;;  %4104 = vmatprep.subr.bf16.mxu1 %v11974_v43  ;;  %v3098_v55 = vadd.f32 1.0, %v12878_v57  ;;  %v12014_v32 = vld [vmem:[#allocation22 + $0x3a8] ss:$16 sps:$4 sm:$0xff]   ;;  %v12019_v43 = vld [vmem:[#allocation22 + $0x3c4] ss:$16 sps:$4 sm:$0xff]  }
 0x7c9   : > { %v3102_v58 = vadd.f32 1.0, %v12880_v41  ;;  %v12022_v57 = vld [vmem:[#allocation22 + $0x3cc] ss:$16 sps:$4 sm:$0xff]   ;;  %v12025_v41 = vld [vmem:[#allocation22 + $0x3e4] ss:$16 sps:$4 sm:$0xff]  }
 0x7ca   : > { %v3114_v20 = vmul.f32 %v3098_v55, %v2986_v56  ;;  %v12026_v56 = vld [vmem:[#allocation22 + $0x3e8] ss:$16 sps:$4 sm:$0xff]   ;;  %v12029_v55 = vld [vmem:[#allocation22 + $0x400] ss:$16 sps:$4 sm:$0xff]  }
 0x7cb   : > { %3999 = vmatpush1.bf16.msra.mxu0 %v11969_v10  ;;  %4105 = vmatpush1.bf16.msra.mxu1 %v11972_v15  ;;  %v3118_v48 = vmul.f32 %v3102_v58, %v2990_v31  ;;  %v12017_v10 = vld [vmem:[#allocation22 + $0x3c0] ss:$16 sps:$4 sm:$0xff]   ;;  %v12020_v15 = vld [vmem:[#allocation22 + $0x3c8] ss:$16 sps:$4 sm:$0xff]   ;;  %v12031_v31 = vld [vmem:[#allocation22 + $0x404] ss:$16 sps:$4 sm:$0xff]  }
 0x7cc   : > { %4000 = vmatprep.subr.bf16.mxu0 %v11977_v39  ;;  %4106 = vmatprep.subr.bf16.mxu1 %v11980_v35  ;;  %v3130_v60 = vadd.f32 %v3114_v20, %v2781_v12  ;;  %v12882_v44 = vpop.eup %12881  ;;  %v12028_v39 = vld [vmem:[#allocation22 + $0x3ec] ss:$16 sps:$4 sm:$0xff]   ;;  %v12023_v35 = vld [vmem:[#allocation22 + $0x3e0] ss:$16 sps:$4 sm:$0xff]   ;;  %v12032_v58 = vld [vmem:[#allocation22 + $0x408] ss:$16 sps:$4 sm:$0xff]  }
 0x7cd   : > { %v3134_v42 = vadd.f32 %v3118_v48, %v2785_v8  ;;  %v3097_v54 = vadd.f32 1.0, %v12882_v44  ;;  %v12034_v12 = vld [vmem:[#allocation22 + $0x40c] ss:$16 sps:$4 sm:$0xff]   ;;  %v12037_v20 = vld [vmem:[#allocation22 + $0x424] ss:$16 sps:$4 sm:$0xff]  }
 0x7ce   : > { %v12884_v25 = vpop.eup %12883  ;;  %v12040_v8 = vld [vmem:[#allocation22 + $0x42c] ss:$16 sps:$4 sm:$0xff]   ;;  %v3271_v48 = vld [vmem:[#allocation23] sm:$0xf] }
 0x7cf   : > { %4001 = vmatpush1.bf16.msra.mxu0 %v11975_v28  ;;  %4107 = vmatpush1.bf16.msra.mxu1 %v11978_v61  ;;  %v15347_v53 = vpack.c.bf16 %v3134_v42, %v3130_v60  ;;  %v3101_v33 = vadd.f32 1.0, %v12884_v25  ;;  %v3113_v21 = vmul.f32 %v3097_v54, %v2985_v14  ;;  %v12035_v28 = vld [vmem:[#allocation22 + $0x420] ss:$16 sps:$4 sm:$0xff]   ;;  %v12038_v61 = vld [vmem:[#allocation22 + $0x428] ss:$16 sps:$4 sm:$0xff]  }
 0x7d0   : > { %4002 = vmatprep.subr.bf16.mxu0 %v11983_v52  ;;  %4108 = vmatprep.subr.bf16.mxu1 %v11986_v49  ;;  %v17195_v52 = vld [vmem:[#allocation65_spill] sm:$0xff]  ;;  %v17196_v60 = vld [vmem:[#allocation67_spill] sm:$0xff]  ;;  %v17197_v42 = vld [vmem:[#allocation66_spill] sm:$0xff] }
 0x7d1   : > { %v3117_v9 = vmul.f32 %v3101_v33, %v2989_v45  ;;  %v3129_v23 = vadd.f32 %v3113_v21, %v2779_v4  ;;  %v3276_v49 = vrot.slane %v3271_v48, %v17195_v52  ;;  %v3284_v44 = vrot.slane %v3271_v48, %v17196_v60  ;;  %v17198_v33 = vld [vmem:[#allocation68_spill] sm:$0xff] }
 0x7d2   : > { %v3280_v25 = vrot.slane %v3271_v48, %v17197_v42  ;;  %v3288_v4 = vrot.slane %v3271_v48, %v17198_v33 }
 0x7d3   : > { %4003 = vmatpush1.bf16.msra.mxu0 %v11981_v26  ;;  %4109 = vmatpush1.bf16.msra.mxu1 %v11984_v62  ;;  %v3133_v0 = vadd.f32 %v3117_v9, %v2783_v51 }
 0x7d4   : > { %4004 = vmatprep.subr.bf16.mxu0 %v11989_v11  ;;  %4110 = vmatprep.subr.bf16.mxu1 %v11992_v16 }
 0x7d5   : > { %v15354_v29 = vpack.c.bf16 %v3133_v0, %v3129_v23 }
 0x7d7   : > { %4005 = vmatpush1.bf16.msra.mxu0 %v11987_v18  ;;  %4111 = vmatpush1.bf16.msra.mxu1 %v11990_v7 }
 0x7d8   : > { %4006 = vmatprep.subr.bf16.mxu0 %v11995_v27  ;;  %4112 = vmatprep.subr.bf16.mxu1 %v11998_v1 }
 0x7db   : > { %4007 = vmatpush1.bf16.msra.mxu0 %v11993_v24  ;;  %4113 = vmatpush1.bf16.msra.mxu1 %v11996_v40 }
 0x7dc   : > { %4008 = vmatprep.subr.bf16.mxu0 %v12001_v63  ;;  %4114 = vmatprep.subr.bf16.mxu1 %v12004_v17 }
 0x7df   : > { %4009 = vmatpush1.bf16.msra.mxu0 %v11999_v50  ;;  %4115 = vmatpush1.bf16.msra.mxu1 %v12002_v59 }
 0x7e0   : > { %4010 = vmatprep.subr.bf16.mxu0 %v12007_v13  ;;  %4116 = vmatprep.subr.bf16.mxu1 %v12010_v36 }
 0x7e3   : > { %4011 = vmatpush1.bf16.msra.mxu0 %v12005_v19  ;;  %4117 = vmatpush1.bf16.msra.mxu1 %v12008_v46 }
 0x7e4   : > { %4012 = vmatprep.subr.bf16.mxu0 %v12013_v3  ;;  %4118 = vmatprep.subr.bf16.mxu1 %v12016_v37 }
 0x7e7   : > { %4013 = vmatpush1.bf16.msra.mxu0 %v12011_v47  ;;  %4119 = vmatpush1.bf16.msra.mxu1 %v12014_v32 }
 0x7e8   : > { %4014 = vmatprep.subr.bf16.mxu0 %v12019_v43  ;;  %4120 = vmatprep.subr.bf16.mxu1 %v12022_v57 }
 0x7eb   : > { %4015 = vmatpush1.bf16.msra.mxu0 %v12017_v10  ;;  %4121 = vmatpush1.bf16.msra.mxu1 %v12020_v15 }
 0x7ec   : > { %4016 = vmatprep.subr.bf16.mxu0 %v12025_v41  ;;  %4122 = vmatprep.subr.bf16.mxu1 %v12028_v39 }
 0x7ef   : > { %4017 = vmatpush1.bf16.msra.mxu0 %v12023_v35  ;;  %4123 = vmatpush1.bf16.msra.mxu1 %v12026_v56 }
 0x7f0   : > { %5309 = vmatprep.subr.bf16.mxu0 %v12031_v31  ;;  %5415 = vmatprep.subr.bf16.mxu1 %v12034_v12 }
 0x7f2   : > { %4019 = vmatmul.mubr.bf16.vlgmr.msra.gmra.mrb[24].mxu0 %v15337_v2  ;;  %4125 = vmatmul.mubr.bf16.vlgmr.msra.gmra.mrb[24].mxu1 %v15337_v2 }
 0x7f3   : > { %4028 = vmatprep.mubr.bf16.mxu0 %v15347_v53  ;;  %4134 = vmatprep.mubr.bf16.mxu1 %v15347_v53 }
 0x7f4   : > { %5310 = vmatpush1.bf16.msra.mxu0 %v12029_v55  ;;  %5416 = vmatpush1.bf16.msra.mxu1 %v12032_v58 }
 0x7f5   : > { %5311 = vmatprep.subr.bf16.mxu0 %v12037_v20  ;;  %5417 = vmatprep.subr.bf16.mxu1 %v12040_v8 }
 0x7f8   : > { %5312 = vmatpush1.bf16.msra.mxu0 %v12035_v28  ;;  %5418 = vmatpush1.bf16.msra.mxu1 %v12038_v61 }
 0x7fa   : > { %4029 = vmatmul.mubr.bf16.gmra.mrb[28].mxu0 %v15354_v29  ;;  %4135 = vmatmul.mubr.bf16.gmra.mrb[28].mxu1 %v15354_v29 }
 0x8c5   : > { %v4020_v14 = vpop.f32.mrb[24].mxu0  ;;  %v4126_v54 = vpop.f32.mrb[24].mxu1 }
 0x8c6   : > { %v15365_v26 = vadd.f32 %v4020_v14, %v3276_v49  ;;  %v15367_v62 = vadd.f32 %v4126_v54, %v3284_v44  ;;  %v4022_v45 = vpop.f32.mrb[25].mxu0  ;;  %v4128_v11 = vpop.f32.mrb[25].mxu1 }
 0x8c7   : > { %v15370_v16 = vadd.f32 %v4022_v45, %v3280_v25  ;;  %v4024_v21 = vpop.f32.mrb[26].mxu0  ;;  %v4130_v22 = vpop.f32.mrb[26].mxu1  ;;  %v15384_v24 = vadd.f32 %v4128_v11, %v3288_v4 }
 0x8c8   : > { %v4171_v51 = vmul.f32 %v15365_v26, %v15365_v26  ;;  %v15374_v9 = vadd.f32 %v4024_v21, %v3276_v49  ;;  %v4026_v23 = vpop.f32.mrb[27].mxu0  ;;  %v4132_v18 = vpop.f32.mrb[27].mxu1  ;;  %v4173_v1 = vmul.f32 %v15367_v62, %v15367_v62  ;;  %v15388_v63 = vadd.f32 %v4130_v22, %v3284_v44 }
 0x8c9   : > { %v4147_v7 = vadd.f32 %v15370_v16, %v15365_v26  ;;  %v4172_v0 = vmul.f32 %v15370_v16, %v15370_v16  ;;  %v15380_v27 = vadd.f32 %v4026_v23, %v3280_v25  ;;  %v15395_v36 = vadd.f32 %v4132_v18, %v3288_v4 }
 0x8ca   : > { %v4175_v40 = vmul.f32 %v15374_v9, %v15374_v9  ;;  %v4177_v41 = vmul.f32 %v15388_v63, %v15388_v63  ;;  %v4174_v31 = vmul.f32 %v15384_v24, %v15384_v24 }
 0x8cb   : > { %v4152_v17 = vadd.f32 %v15380_v27, %v15374_v9  ;;  %v4176_v50 = vmul.f32 %v15380_v27, %v15380_v27  ;;  %v4148_v59 = vadd.f32 %v15367_v62, %v4147_v7  ;;  %v4187_v13 = vadd.f32 %v4172_v0, %v4171_v51 }
 0x8cc   : > { %v4178_v61 = vmul.f32 %v15395_v36, %v15395_v36 }
 0x8cd   : > { %v4030_v19 = vpop.f32.mrb[28].mxu0  ;;  %v4136_v46 = vpop.f32.mrb[28].mxu1  ;;  %v4149_v3 = vadd.f32 %v15384_v24, %v4148_v59  ;;  %v4153_v37 = vadd.f32 %v15388_v63, %v4152_v17  ;;  %v4188_v47 = vadd.f32 %v4187_v13, %v4173_v1  ;;  %v4192_v15 = vadd.f32 %v4176_v50, %v4175_v40 }
 0x8ce   : > { %v15399_v32 = vadd.f32 %v4030_v19, %v3276_v49  ;;  %v15401_v43 = vadd.f32 %v4136_v46, %v3284_v44  ;;  %v4032_v57 = vpop.f32.mrb[29].mxu0  ;;  %v4138_v10 = vpop.f32.mrb[29].mxu1 }
 0x8cf   : > { %v15405_v39 = vadd.f32 %v4032_v57, %v3280_v25  ;;  %v4034_v35 = vpop.f32.mrb[30].mxu0  ;;  %v4140_v56 = vpop.f32.mrb[30].mxu1  ;;  %4150 = vadd.xlane.f32.xlu0 %v4149_v3  ;;  %v4154_v55 = vadd.f32 %v15395_v36, %v4153_v37  ;;  %v15412_v12 = vadd.f32 %v4138_v10, %v3288_v4  ;;  %v4189_v45 = vadd.f32 %v4188_v47, %v4174_v31  ;;  %v12041_v37 = vld [vmem:[#allocation22 + $0x440] ss:$16 sps:$4 sm:$0xff]   ;;  %v12043_v47 = vld [vmem:[#allocation22 + $0x444] ss:$16 sps:$4 sm:$0xff]  }
 0x8d0   : > { %v4179_v58 = vmul.f32 %v15399_v32, %v15399_v32  ;;  %v15414_v20 = vadd.f32 %v4034_v35, %v3276_v49  ;;  %v4036_v8 = vpop.f32.mrb[31].mxu0  ;;  %v4142_v28 = vpop.f32.mrb[31].mxu1  ;;  %v4181_v11 = vmul.f32 %v15401_v43, %v15401_v43  ;;  %v15428_v21 = vadd.f32 %v4140_v56, %v3284_v44  ;;  %v12044_v57 = vld [vmem:[#allocation22 + $0x448] ss:$16 sps:$4 sm:$0xff]   ;;  %v12046_v10 = vld [vmem:[#allocation22 + $0x44c] ss:$16 sps:$4 sm:$0xff]   ;;  %5313 = vmatprep.subr.bf16.mxu0 %v12043_v47 }
 0x8d1   : > { %v4157_v48 = vadd.f32 %v15405_v39, %v15399_v32  ;;  %v4180_v14 = vmul.f32 %v15405_v39, %v15405_v39  ;;  %v15422_v54 = vadd.f32 %v4036_v8, %v3280_v25  ;;  %4155 = vadd.xlane.f32.xlu1 %v4154_v55  ;;  %v4193_v22 = vadd.f32 %v4192_v15, %v4177_v41  ;;  %v12047_v15 = vld [vmem:[#allocation22 + $0x460] ss:$16 sps:$4 sm:$0xff]   ;;  %v12049_v41 = vld [vmem:[#allocation22 + $0x464] ss:$16 sps:$4 sm:$0xff]   ;;  %v12050_v35 = vld [vmem:[#allocation22 + $0x468] ss:$16 sps:$4 sm:$0xff]  }
 0x8d2   : > { %v4183_v49 = vmul.f32 %v15414_v20, %v15414_v20  ;;  %v15435_v7 = vadd.f32 %v4142_v28, %v3288_v4  ;;  %v4185_v50 = vmul.f32 %v15428_v21, %v15428_v21  ;;  %v4182_v13 = vmul.f32 %v15412_v12, %v15412_v12  ;;  %5419 = vmatprep.subr.bf16.mxu1 %v12046_v10  ;;  %v12052_v56 = vld [vmem:[#allocation22 + $0x46c] ss:$16 sps:$4 sm:$0xff]   ;;  %v12055_v55 = vld [vmem:[#allocation22 + $0x484] ss:$16 sps:$4 sm:$0xff]   ;;  %v12056_v8 = vld [vmem:[#allocation22 + $0x488] ss:$16 sps:$4 sm:$0xff]  }
 0x8d3   : > { %v4162_v51 = vadd.f32 %v15422_v54, %v15414_v20  ;;  %v4184_v23 = vmul.f32 %v15422_v54, %v15422_v54  ;;  %4190 = vadd.xlane.f32.xlu0 %v4189_v45  ;;  %v4158_v25 = vadd.f32 %v15401_v43, %v4157_v48  ;;  %v4197_v18 = vadd.f32 %v4180_v14, %v4179_v58  ;;  %v12058_v31 = vld [vmem:[#allocation22 + $0x48c] ss:$16 sps:$4 sm:$0xff]   ;;  %v12053_v58 = vld [vmem:[#allocation22 + $0x480] ss:$16 sps:$4 sm:$0xff]   ;;  %v12062_v48 = vld [vmem:[#allocation22 + $0x4a8] ss:$16 sps:$4 sm:$0xff]  }
 0x8d4   : > { %v4194_v0 = vadd.f32 %v4193_v22, %v4178_v61  ;;  %v4186_v46 = vmul.f32 %v15435_v7, %v15435_v7  ;;  %5314 = vmatpush1.bf16.msra.mxu0 %v12041_v37  ;;  %5420 = vmatpush1.bf16.msra.mxu1 %v12044_v57  ;;  %v12059_v28 = vld [vmem:[#allocation22 + $0x4a0] ss:$16 sps:$4 sm:$0xff]   ;;  %v12061_v61 = vld [vmem:[#allocation22 + $0x4a4] ss:$16 sps:$4 sm:$0xff]   ;;  %v12064_v14 = vld [vmem:[#allocation22 + $0x4ac] ss:$16 sps:$4 sm:$0xff]  }
 0x8d5   : > { %v4159_v1 = vadd.f32 %v15412_v12, %v4158_v25  ;;  %v4163_v40 = vadd.f32 %v15428_v21, %v4162_v51  ;;  %v4198_v44 = vadd.f32 %v4197_v18, %v4181_v11  ;;  %v4202_v17 = vadd.f32 %v4184_v23, %v4183_v49  ;;  %5315 = vmatprep.subr.bf16.mxu0 %v12049_v41  ;;  %v12067_v45 = vld [vmem:[#allocation22 + $0x4c4] ss:$16 sps:$4 sm:$0xff]   ;;  %v12070_v11 = vld [vmem:[#allocation22 + $0x4cc] ss:$16 sps:$4 sm:$0xff]   ;;  %v12065_v49 = vld [vmem:[#allocation22 + $0x4c0] ss:$16 sps:$4 sm:$0xff]  }
 0x8d6   : > { %4195 = vadd.xlane.f32.xlu1 %v4194_v0  ;;  %5421 = vmatprep.subr.bf16.mxu1 %v12052_v56  ;;  %v12068_v22 = vld [vmem:[#allocation22 + $0x4c8] ss:$16 sps:$4 sm:$0xff]   ;;  %v12073_v51 = vld [vmem:[#allocation22 + $0x4e4] ss:$16 sps:$4 sm:$0xff]   ;;  %v12076_v23 = vld [vmem:[#allocation22 + $0x4ec] ss:$16 sps:$4 sm:$0xff]  }
 0x8d7   : > { %4160 = vadd.xlane.f32.xlu0 %v4159_v1  ;;  %v4164_v59 = vadd.f32 %v15435_v7, %v4163_v40  ;;  %v4203_v19 = vadd.f32 %v4202_v17, %v4185_v50  ;;  %v4199_v4 = vadd.f32 %v4198_v44, %v4182_v13  ;;  %v12071_v25 = vld [vmem:[#allocation22 + $0x4e0] ss:$16 sps:$4 sm:$0xff]   ;;  %v12074_v18 = vld [vmem:[#allocation22 + $0x4e8] ss:$16 sps:$4 sm:$0xff]   ;;  %v12079_v0 = vld [vmem:[#allocation22 + $0x504] ss:$16 sps:$4 sm:$0xff]  }
 0x8d8   : > { %5316 = vmatpush1.bf16.msra.mxu0 %v12047_v15  ;;  %5422 = vmatpush1.bf16.msra.mxu1 %v12050_v35  ;;  %v12082_v1 = vld [vmem:[#allocation22 + $0x50c] ss:$16 sps:$4 sm:$0xff]   ;;  %v12077_v40 = vld [vmem:[#allocation22 + $0x500] ss:$16 sps:$4 sm:$0xff]   ;;  %v12080_v44 = vld [vmem:[#allocation22 + $0x508] ss:$16 sps:$4 sm:$0xff]  }
 0x8d9   : > { %v4204_v3 = vadd.f32 %v4203_v19, %v4186_v46  ;;  %5317 = vmatprep.subr.bf16.mxu0 %v12055_v55  ;;  %5423 = vmatprep.subr.bf16.mxu1 %v12058_v31  ;;  %v12085_v17 = vld [vmem:[#allocation22 + $0x524] ss:$16 sps:$4 sm:$0xff]   ;;  %v12088_v50 = vld [vmem:[#allocation22 + $0x52c] ss:$16 sps:$4 sm:$0xff]   ;;  %v12086_v13 = vld [vmem:[#allocation22 + $0x528] ss:$16 sps:$4 sm:$0xff]  }
 0x8da   : > { %4165 = vadd.xlane.f32.xlu1 %v4164_v59  ;;  %v12083_v59 = vld [vmem:[#allocation22 + $0x520] ss:$16 sps:$4 sm:$0xff]   ;;  %v12091_v19 = vld [vmem:[#allocation22 + $0x544] ss:$16 sps:$4 sm:$0xff]   ;;  %v12100_v47 = vld [vmem:[#allocation22 + $0x56c] ss:$16 sps:$4 sm:$0xff]  }
 0x8db   : > { %4200 = vadd.xlane.f32.xlu0 %v4199_v4  ;;  %v12094_v4 = vld [vmem:[#allocation22 + $0x54c] ss:$16 sps:$4 sm:$0xff]   ;;  %v12089_v46 = vld [vmem:[#allocation22 + $0x540] ss:$16 sps:$4 sm:$0xff]   ;;  %v12097_v37 = vld [vmem:[#allocation22 + $0x564] ss:$16 sps:$4 sm:$0xff]  }
 0x8dc   : > { %5318 = vmatpush1.bf16.msra.mxu0 %v12053_v58  ;;  %5424 = vmatpush1.bf16.msra.mxu1 %v12056_v8  ;;  %v12095_v57 = vld [vmem:[#allocation22 + $0x560] ss:$16 sps:$4 sm:$0xff]   ;;  %v12098_v10 = vld [vmem:[#allocation22 + $0x568] ss:$16 sps:$4 sm:$0xff]   ;;  %v12103_v15 = vld [vmem:[#allocation22 + $0x584] ss:$16 sps:$4 sm:$0xff]  }
 0x8dd   : > { %5319 = vmatprep.subr.bf16.mxu0 %v12061_v61  ;;  %5425 = vmatprep.subr.bf16.mxu1 %v12064_v14  ;;  %v12106_v41 = vld [vmem:[#allocation22 + $0x58c] ss:$16 sps:$4 sm:$0xff]   ;;  %v12101_v35 = vld [vmem:[#allocation22 + $0x580] ss:$16 sps:$4 sm:$0xff]   ;;  %v12104_v56 = vld [vmem:[#allocation22 + $0x588] ss:$16 sps:$4 sm:$0xff]  }
 0x8de   : > { %4205 = vadd.xlane.f32.xlu1 %v4204_v3  ;;  %v12092_v3 = vld [vmem:[#allocation22 + $0x548] ss:$16 sps:$4 sm:$0xff]   ;;  %v12109_v55 = vld [vmem:[#allocation22 + $0x5a4] ss:$16 sps:$4 sm:$0xff]   ;;  %v12112_v31 = vld [vmem:[#allocation22 + $0x5ac] ss:$16 sps:$4 sm:$0xff]  }
 0x8df   : > { %v12107_v58 = vld [vmem:[#allocation22 + $0x5a0] ss:$16 sps:$4 sm:$0xff]   ;;  %v12110_v8 = vld [vmem:[#allocation22 + $0x5a8] ss:$16 sps:$4 sm:$0xff]   ;;  %v12118_v61 = vld [vmem:[#allocation22 + $0x5cc] ss:$16 sps:$4 sm:$0xff]  }
 0x8e0   : > { %5320 = vmatpush1.bf16.msra.mxu0 %v12059_v28  ;;  %5426 = vmatpush1.bf16.msra.mxu1 %v12062_v48  ;;  %v12115_v28 = vld [vmem:[#allocation22 + $0x5c4] ss:$16 sps:$4 sm:$0xff]   ;;  %v12113_v48 = vld [vmem:[#allocation22 + $0x5c0] ss:$16 sps:$4 sm:$0xff]   ;;  %v12116_v14 = vld [vmem:[#allocation22 + $0x5c8] ss:$16 sps:$4 sm:$0xff]  }
 0x8e1   : > { %5321 = vmatprep.subr.bf16.mxu0 %v12067_v45  ;;  %5427 = vmatprep.subr.bf16.mxu1 %v12070_v11  ;;  %v12121_v45 = vld [vmem:[#allocation22 + $0x5e4] ss:$16 sps:$4 sm:$0xff]   ;;  %v12124_v11 = vld [vmem:[#allocation22 + $0x5ec] ss:$16 sps:$4 sm:$0xff]  }
 0x8e4   : > { %5322 = vmatpush1.bf16.msra.mxu0 %v12065_v49  ;;  %5428 = vmatpush1.bf16.msra.mxu1 %v12068_v22  ;;  %v12119_v49 = vld [vmem:[#allocation22 + $0x5e0] ss:$16 sps:$4 sm:$0xff]   ;;  %v12122_v22 = vld [vmem:[#allocation22 + $0x5e8] ss:$16 sps:$4 sm:$0xff]  }
 0x8e5   : > { %5323 = vmatprep.subr.bf16.mxu0 %v12073_v51  ;;  %5429 = vmatprep.subr.bf16.mxu1 %v12076_v23  ;;  %v12127_v51 = vld [vmem:[#allocation22 + $0x604] ss:$16 sps:$4 sm:$0xff]   ;;  %v12130_v23 = vld [vmem:[#allocation22 + $0x60c] ss:$16 sps:$4 sm:$0xff]  }
 0x8e8   : > { %5324 = vmatpush1.bf16.msra.mxu0 %v12071_v25  ;;  %5430 = vmatpush1.bf16.msra.mxu1 %v12074_v18 }
 0x8e9   : > { %5325 = vmatprep.subr.bf16.mxu0 %v12079_v0  ;;  %5431 = vmatprep.subr.bf16.mxu1 %v12082_v1 }
 0x8ec   : > { %5326 = vmatpush1.bf16.msra.mxu0 %v12077_v40  ;;  %5432 = vmatpush1.bf16.msra.mxu1 %v12080_v44 }
 0x8ed   : > { %5327 = vmatprep.subr.bf16.mxu0 %v12085_v17  ;;  %5433 = vmatprep.subr.bf16.mxu1 %v12088_v50 }
 0x8f0   : > { %5328 = vmatpush1.bf16.msra.mxu0 %v12083_v59  ;;  %5434 = vmatpush1.bf16.msra.mxu1 %v12086_v13 }
 0x8f1   : > { %5329 = vmatprep.subr.bf16.mxu0 %v12091_v19  ;;  %5435 = vmatprep.subr.bf16.mxu1 %v12094_v4 }
 0x8f4   : > { %5330 = vmatpush1.bf16.msra.mxu0 %v12089_v46  ;;  %5436 = vmatpush1.bf16.msra.mxu1 %v12092_v3 }
 0x8f5   : > { %5331 = vmatprep.subr.bf16.mxu0 %v12097_v37  ;;  %5437 = vmatprep.subr.bf16.mxu1 %v12100_v47 }
 0x8f8   : > { %5332 = vmatpush1.bf16.msra.mxu0 %v12095_v57  ;;  %5438 = vmatpush1.bf16.msra.mxu1 %v12098_v10 }
 0x8f9   : > { %5333 = vmatprep.subr.bf16.mxu0 %v12103_v15  ;;  %5439 = vmatprep.subr.bf16.mxu1 %v12106_v41 }
 0x8fc   : > { %5334 = vmatpush1.bf16.msra.mxu0 %v12101_v35  ;;  %5440 = vmatpush1.bf16.msra.mxu1 %v12104_v56  ;;  %v4145_v56 = vld [vmem:[#allocation25] sm:$0xf] }
 0x8fd   : > { %5335 = vmatprep.subr.bf16.mxu0 %v12109_v55  ;;  %5441 = vmatprep.subr.bf16.mxu1 %v12112_v31  ;;  %v4478_v55 = vunpack.c.l.bf16 %v15271_v6  ;;  %v4482_v31 = vunpack.c.h.bf16 %v15271_v6 }
 0x900   : > { %5336 = vmatpush1.bf16.msra.mxu0 %v12107_v58  ;;  %5442 = vmatpush1.bf16.msra.mxu1 %v12110_v8  ;;  %v4477_v58 = vunpack.c.l.bf16 %v15275_v5 }
 0x901   : > { %5337 = vmatprep.subr.bf16.mxu0 %v12115_v28  ;;  %5443 = vmatprep.subr.bf16.mxu1 %v12118_v61  ;;  %v4146_v61 = vld [vmem:[#allocation26] sm:$0xf] }
 0x904   : > { %5338 = vmatpush1.bf16.msra.mxu0 %v12113_v48  ;;  %5444 = vmatpush1.bf16.msra.mxu1 %v12116_v14 }
 0x905   : > { %5339 = vmatprep.subr.bf16.mxu0 %v12121_v45  ;;  %5445 = vmatprep.subr.bf16.mxu1 %v12124_v11 }
 0x908   : > { %5340 = vmatpush1.bf16.msra.mxu0 %v12119_v49  ;;  %5446 = vmatpush1.bf16.msra.mxu1 %v12122_v22 }
 0x909   : > { %5362 = vmatprep.subr.bf16.mxu0 %v12127_v51  ;;  %5468 = vmatprep.subr.bf16.mxu1 %v12130_v23 }
 0x95c   : > { %v4151_v25 = vpop.xlane.xlu0 %4150 }
 0x95d   : > { %v15446_v18 = vmul.f32 0.001953125, %v4151_v25  ;;  %v15471_v25 = vrot.slane %v4145_v56, %v17197_v42 }
 0x95e   : > { %v4156_v0 = vpop.xlane.xlu1 %4155 }
 0x95f   : > { %v15448_v1 = vmul.f32 0.001953125, %v4156_v0  ;;  %v4211_v44 = vmul.f32 %v15446_v18, %v15446_v18 }
 0x960   : > { %v4191_v40 = vpop.xlane.xlu0 %4190 }
 0x961   : > { %v4207_v17 = vmul.f32 0.001953125, %v4191_v40  ;;  %v4212_v13 = vmul.f32 %v15448_v1, %v15448_v1 }
 0x963   : > { %v4215_v50 = vsub.f32 %v4207_v17, %v4211_v44  ;;  %v4196_v59 = vpop.xlane.xlu1 %4195  ;;  %v15476_v17 = vrot.slane %v4146_v61, %v17197_v42 }
 0x964   : > { %v4208_v19 = vmul.f32 0.001953125, %v4196_v59  ;;  %v4161_v4 = vpop.xlane.xlu0 %4160  ;;  %v15482_v59 = vrot.slane %v4145_v56, %v17198_v33 }
 0x965   : > { %v4235_v46 = vadd.f32 1e-05, %v4215_v50  ;;  %v15454_v3 = vmul.f32 0.001953125, %v4161_v4  ;;  %v15479_v50 = vrot.slane %v4145_v56, %v17195_v52  ;;  %v15491_v4 = vrot.slane %v4145_v56, %v17196_v60 }
 0x966   : > { %v4216_v37 = vsub.f32 %v4208_v19, %v4212_v13  ;;  %v15485_v13 = vrot.slane %v4146_v61, %v17195_v52  ;;  %v15488_v19 = vrot.slane %v4146_v61, %v17198_v33  ;;  %v4224_v56 = vsub.f32 %v15380_v27, %v15448_v1 }
 0x967   : > { %12885 = vrsqrt.f32 %v4235_v46  ;;  %v4166_v47 = vpop.xlane.xlu1 %4165  ;;  %v4213_v41 = vmul.f32 %v15454_v3, %v15454_v3  ;;  %v4219_v46 = vsub.f32 %v15365_v26, %v15446_v18  ;;  %v4228_v27 = vsub.f32 %v15405_v39, %v15454_v3 }
 0x968   : > { %v4236_v57 = vadd.f32 1e-05, %v4216_v37  ;;  %v15456_v10 = vmul.f32 0.001953125, %v4166_v47  ;;  %v4201_v15 = vpop.xlane.xlu0 %4200  ;;  %v4220_v37 = vsub.f32 %v15370_v16, %v15446_v18  ;;  %v4222_v47 = vsub.f32 %v15384_v24, %v15446_v18 }
 0x969   : > { %v4209_v35 = vmul.f32 0.001953125, %v4201_v15  ;;  %v4225_v24 = vsub.f32 %v15388_v63, %v15448_v1  ;;  %v4230_v63 = vsub.f32 %v15412_v12, %v15454_v3 }
 0x96a   : > { %12887 = vrsqrt.f32 %v4236_v57  ;;  %v4214_v11 = vmul.f32 %v15456_v10, %v15456_v10 }
 0x96b   : > { %v4217_v8 = vsub.f32 %v4209_v35, %v4213_v41  ;;  %v4206_v28 = vpop.xlane.xlu1 %4205  ;;  %v4221_v41 = vsub.f32 %v15367_v62, %v15446_v18  ;;  %v4223_v35 = vsub.f32 %v15374_v9, %v15448_v1  ;;  %v4227_v62 = vsub.f32 %v15399_v32, %v15454_v3 }
 0x96c   : > { %v4210_v49 = vmul.f32 0.001953125, %v4206_v28 }
 0x96d   : > { %v4237_v23 = vadd.f32 1e-05, %v4217_v8  ;;  %v15506_v8 = vrot.slane %v4146_v61, %v17196_v60  ;;  %v4229_v61 = vsub.f32 %v15401_v43, %v15454_v3 }
 0x96e   : > { %v4218_v44 = vsub.f32 %v4210_v49, %v4214_v11  ;;  %v4226_v11 = vsub.f32 %v15395_v36, %v15448_v1 }
 0x96f   : > { %12889 = vrsqrt.f32 %v4237_v23 }
 0x970   : > { %v4238_v57 = vadd.f32 1e-05, %v4218_v44 }
 0x971   : > { %v12886_v15 = vpop.eup %12885 }
 0x972   : > { %12891 = vrsqrt.f32 %v4238_v57  ;;  %v4244_v26 = vmul.f32 %v12886_v15, %v4220_v37  ;;  %v4243_v16 = vmul.f32 %v12886_v15, %v4219_v46  ;;  %v4246_v28 = vmul.f32 %v12886_v15, %v4222_v47 }
 0x973   : > { %v4245_v9 = vmul.f32 %v12886_v15, %v4221_v41 }
 0x974   : > { %v12888_v18 = vpop.eup %12887  ;;  %v4281_v49 = vmul.f32 %v15471_v25, %v4244_v26  ;;  %v4280_v23 = vmul.f32 %v15479_v50, %v4243_v16  ;;  %v4283_v37 = vmul.f32 %v15482_v59, %v4246_v28 }
 0x975   : > { %v4248_v44 = vmul.f32 %v12888_v18, %v4224_v56  ;;  %v4247_v36 = vmul.f32 %v12888_v18, %v4223_v35  ;;  %v4249_v1 = vmul.f32 %v12888_v18, %v4225_v24  ;;  %v15526_v39 = vmul.f32 %v15491_v4, %v4245_v9 }
 0x976   : > { %v4318_v32 = vadd.f32 %v15476_v17, %v4281_v49  ;;  %v4317_v46 = vadd.f32 %v15485_v13, %v4280_v23  ;;  %v4250_v15 = vmul.f32 %v12888_v18, %v4226_v11  ;;  %v4231_v35 = vsub.f32 %v15414_v20, %v15456_v10 }
 0x977   : > { %v4285_v47 = vmul.f32 %v15471_v25, %v4248_v44  ;;  %v4284_v57 = vmul.f32 %v15479_v50, %v4247_v36  ;;  %v15531_v41 = vmul.f32 %v15491_v4, %v4249_v1  ;;  %v4232_v56 = vsub.f32 %v15422_v54, %v15456_v10 }
 0x978   : > { %v4350_v26 = vmul.f32 0.044715, %v4318_v32  ;;  %v4349_v16 = vmul.f32 0.044715, %v4317_v46  ;;  %v4233_v24 = vsub.f32 %v15428_v21, %v15456_v10  ;;  %v4234_v9 = vsub.f32 %v15435_v7, %v15456_v10 }
 0x979   : > { %v15537_v28 = vpop.eup %12889  ;;  %v4322_v11 = vadd.f32 %v15476_v17, %v4285_v47  ;;  %v4321_v18 = vadd.f32 %v15485_v13, %v4284_v57  ;;  %v4287_v1 = vmul.f32 %v15482_v59, %v4250_v15  ;;  %v15549_v40 = vadd.f32 %v15488_v19, %v4283_v37 }
 0x97a   : > { %v4366_v49 = vmul.f32 %v4350_v26, %v4318_v32  ;;  %v4365_v23 = vmul.f32 %v4349_v16, %v4317_v46  ;;  %v4252_v20 = vmul.f32 %v15537_v28, %v4228_v27  ;;  %v4251_v54 = vmul.f32 %v15537_v28, %v4227_v62 }
 0x97b   : > { %v4354_v44 = vmul.f32 0.044715, %v4322_v11  ;;  %v4353_v36 = vmul.f32 0.044715, %v4321_v18 }
 0x97c   : > { %v15551_v0 = vpop.eup %12891  ;;  %v4382_v51 = vmul.f32 %v4366_v49, %v4318_v32  ;;  %v4381_v22 = vmul.f32 %v4365_v23, %v4317_v46  ;;  %v4289_v47 = vmul.f32 %v15471_v25, %v4252_v20  ;;  %v4288_v57 = vmul.f32 %v15479_v50, %v4251_v54 }
 0x97d   : > { %v4370_v26 = vmul.f32 %v4354_v44, %v4322_v11  ;;  %v4369_v16 = vmul.f32 %v4353_v36, %v4321_v18  ;;  %v4256_v27 = vmul.f32 %v15551_v0, %v4232_v56  ;;  %v4255_v62 = vmul.f32 %v15551_v0, %v4231_v35 }
 0x97e   : > { %v4398_v45 = vadd.f32 %v4382_v51, %v4318_v32  ;;  %v4397_v14 = vadd.f32 %v4381_v22, %v4317_v46  ;;  %v4326_v15 = vadd.f32 %v15476_v17, %v4289_v47  ;;  %v15559_v37 = vadd.f32 %v15485_v13, %v4288_v57 }
 0x97f   : > { %v4386_v48 = vmul.f32 %v4370_v26, %v4322_v11  ;;  %v4385_v49 = vmul.f32 %v4369_v16, %v4321_v18  ;;  %v4293_v23 = vmul.f32 %v15471_v25, %v4256_v27  ;;  %v4292_v20 = vmul.f32 %v15479_v50, %v4255_v62 }
 0x980   : > { %v15563_v54 = vmul.f32 0.5, %v4318_v32  ;;  %v4414_v44 = vmul.f32 0.7978846, %v4398_v45  ;;  %v4413_v36 = vmul.f32 0.7978846, %v4397_v14  ;;  %v15566_v56 = vadd.f32 %v15488_v19, %v4287_v1 }
 0x981   : > { %v4402_v51 = vadd.f32 %v4386_v48, %v4322_v11  ;;  %v4401_v22 = vadd.f32 %v4385_v49, %v4321_v18  ;;  %v15569_v35 = vadd.f32 %v15476_v17, %v4293_v23  ;;  %v4358_v47 = vmul.f32 0.044715, %v4326_v15 }
 0x982   : > { %12893 = vtanh.f32 %v4414_v44  ;;  %v4333_v57 = vmul.f32 0.5, %v4317_v46  ;;  %v15572_v26 = vadd.f32 %v15485_v13, %v4292_v20  ;;  %v4357_v25 = vmul.f32 0.044715, %v15559_v37 }
 0x983   : > { %v4418_v50 = vmul.f32 0.7978846, %v4402_v51  ;;  %v4417_v32 = vmul.f32 0.7978846, %v4401_v22  ;;  %12895 = vtanh.f32 %v4413_v36  ;;  %v15576_v14 = vmul.f32 0.5, %v15549_v40 }
 0x984   : > { %v4338_v45 = vmul.f32 0.5, %v4322_v11  ;;  %v4362_v48 = vmul.f32 0.044715, %v15569_v35  ;;  %v4374_v1 = vmul.f32 %v4358_v47, %v4326_v15  ;;  %v4361_v17 = vmul.f32 0.044715, %v15572_v26 }
 0x985   : > { %12897 = vtanh.f32 %v4418_v50  ;;  %v4373_v46 = vmul.f32 %v4357_v25, %v15559_v37  ;;  %v4352_v13 = vmul.f32 0.044715, %v15549_v40  ;;  %v4356_v16 = vmul.f32 0.044715, %v15566_v56 }
 0x986   : > { %12899 = vtanh.f32 %v4417_v32  ;;  %v4378_v27 = vmul.f32 %v4362_v48, %v15569_v35  ;;  %v4390_v62 = vmul.f32 %v4374_v1, %v4326_v15  ;;  %v4377_v49 = vmul.f32 %v4361_v17, %v15572_v26 }
 0x987   : > { %v4389_v11 = vmul.f32 %v4373_v46, %v15559_v37  ;;  %v4368_v23 = vmul.f32 %v4352_v13, %v15549_v40  ;;  %v4372_v20 = vmul.f32 %v4356_v16, %v15566_v56  ;;  %v15590_v44 = vadd.f32 %v15506_v8, %v15526_v39 }
 0x988   : > { %v4394_v36 = vmul.f32 %v4378_v27, %v15569_v35  ;;  %v4406_v51 = vadd.f32 %v4390_v62, %v4326_v15  ;;  %v4393_v22 = vmul.f32 %v4377_v49, %v15572_v26  ;;  %v15596_v47 = vadd.f32 %v15506_v8, %v15531_v41 }
 0x989   : > { %v4337_v25 = vmul.f32 0.5, %v4321_v18  ;;  %v4405_v50 = vadd.f32 %v4389_v11, %v15559_v37  ;;  %v4384_v32 = vmul.f32 %v4368_v23, %v15549_v40  ;;  %v4388_v48 = vmul.f32 %v4372_v20, %v15566_v56 }
 0x98a   : > { %v15601_v1 = vmul.f32 0.5, %v4326_v15  ;;  %v4410_v39 = vadd.f32 %v4394_v36, %v15569_v35  ;;  %v4422_v17 = vmul.f32 0.7978846, %v4406_v51  ;;  %v4409_v46 = vadd.f32 %v4393_v22, %v15572_v26 }
 0x98b   : > { %v4421_v13 = vmul.f32 0.7978846, %v4405_v50  ;;  %v4400_v16 = vadd.f32 %v4384_v32, %v15549_v40  ;;  %v4404_v41 = vadd.f32 %v4388_v48, %v15566_v56  ;;  %v4351_v18 = vmul.f32 0.044715, %v15590_v44 }
 0x98c   : > { %v12894_v27 = vpop.eup %12893  ;;  %v4426_v62 = vmul.f32 0.7978846, %v4410_v39  ;;  %12901 = vtanh.f32 %v4422_v17  ;;  %v4425_v49 = vmul.f32 0.7978846, %v4409_v46  ;;  %v4355_v11 = vmul.f32 0.044715, %v15596_v47 }
 0x98d   : > { %v12896_v15 = vpop.eup %12895  ;;  %v4446_v23 = vadd.f32 1.0, %v12894_v27  ;;  %12903 = vtanh.f32 %v4421_v13  ;;  %v4416_v20 = vmul.f32 0.7978846, %v4400_v16  ;;  %v4420_v36 = vmul.f32 0.7978846, %v4404_v41 }
 0x98e   : > { %v4445_v51 = vadd.f32 1.0, %v12896_v15  ;;  %12905 = vtanh.f32 %v4426_v62  ;;  %v4367_v22 = vmul.f32 %v4351_v18, %v15590_v44  ;;  %v4371_v40 = vmul.f32 %v4355_v11, %v15596_v47  ;;  %v12125_v11 = vld [vmem:[#allocation22 + $0x600] ss:$16 sps:$4 sm:$0xff]  }
 0x98f   : > { %v12898_v50 = vpop.eup %12897  ;;  %v4462_v32 = vmul.f32 %v4446_v23, %v15563_v54  ;;  %12907 = vtanh.f32 %v4425_v49  ;;  %v4254_v48 = vmul.f32 %v15537_v28, %v4230_v63  ;;  %v4258_v39 = vmul.f32 %v15551_v0, %v4234_v9 }
 0x990   : > { %v12900_v17 = vpop.eup %12899  ;;  %v4450_v46 = vadd.f32 1.0, %v12898_v50  ;;  %v4461_v13 = vmul.f32 %v4445_v51, %v4333_v57  ;;  %12909 = vtanh.f32 %v4416_v20  ;;  %v4383_v16 = vmul.f32 %v4367_v22, %v15590_v44 }
 0x991   : > { %v4494_v54 = vadd.f32 %v4478_v55, %v4462_v32  ;;  %v4449_v41 = vadd.f32 1.0, %v12900_v17  ;;  %12911 = vtanh.f32 %v4420_v36  ;;  %v4387_v12 = vmul.f32 %v4371_v40, %v15596_v47 }
 0x992   : > { %v4466_v18 = vmul.f32 %v4450_v46, %v4338_v45  ;;  %v4493_v63 = vadd.f32 %v4477_v58, %v4461_v13  ;;  %v4399_v7 = vadd.f32 %v4383_v16, %v15590_v44  ;;  %v4291_v9 = vmul.f32 %v15482_v59, %v4254_v48  ;;  %v12131_v46 = vld [vmem:[#allocation22 + $0x620] ss:$16 sps:$4 sm:$0xff]   ;;  %v12134_v13 = vld [vmem:[#allocation22 + $0x628] ss:$16 sps:$4 sm:$0xff]  }
 0x993   : > { %v4465_v27 = vmul.f32 %v4449_v41, %v4337_v25  ;;  %v4403_v57 = vadd.f32 %v4387_v12, %v15596_v47  ;;  %v4295_v62 = vmul.f32 %v15482_v59, %v4258_v39  ;;  %v4253_v55 = vmul.f32 %v15537_v28, %v4229_v61  ;;  %v12128_v61 = vld [vmem:[#allocation22 + $0x608] ss:$16 sps:$4 sm:$0xff]  }
 0x994   : > { %v4498_v45 = vadd.f32 %v4482_v31, %v4466_v18  ;;  %v4415_v49 = vmul.f32 0.7978846, %v4399_v7  ;;  %v15637_v58 = vadd.f32 %v15488_v19, %v4291_v9  ;;  %v4257_v25 = vmul.f32 %v15551_v0, %v4233_v24  ;;  %v12136_v24 = vld [vmem:[#allocation22 + $0x62c] ss:$16 sps:$4 sm:$0xff]   ;;  %v12139_v18 = vld [vmem:[#allocation22 + $0x644] ss:$16 sps:$4 sm:$0xff]  }
 0x995   : > { %v17199_v59 = vunpack.c.h.bf16 %v15275_v5  ;;  %v4419_v23 = vmul.f32 0.7978846, %v4403_v57  ;;  %v15646_v43 = vadd.f32 %v15488_v19, %v4295_v62  ;;  %v4290_v6 = vmul.f32 %v15491_v4, %v4253_v55  ;;  %v12133_v5 = vld [vmem:[#allocation22 + $0x624] ss:$16 sps:$4 sm:$0xff]  }
 0x996   : > { %v12902_v3 = vpop.eup %12901  ;;  %v15649_v31 = vpack.c.bf16 %v4498_v45, %v4494_v54  ;;  %v4341_v28 = vmul.f32 0.5, %v15559_v37  ;;  %12913 = vtanh.f32 %v4415_v49  ;;  %v4360_v21 = vmul.f32 0.044715, %v15637_v58 }
 0x997   : > { %v4497_v15 = vadd.f32 %v17199_v59, %v4465_v27  ;;  %v12904_v10 = vpop.eup %12903  ;;  %v4346_v20 = vmul.f32 0.5, %v15569_v35  ;;  %v4454_v19 = vadd.f32 1.0, %v12902_v3  ;;  %12915 = vtanh.f32 %v4419_v23 }
 0x998   : > { %v12906_v36 = vpop.eup %12905  ;;  %5341 = vmatprep.mubr.bf16.mxu0 %v15649_v31  ;;  %5447 = vmatprep.mubr.bf16.mxu1 %v15649_v31  ;;  %v4453_v51 = vadd.f32 1.0, %v12904_v10  ;;  %v4364_v37 = vmul.f32 0.044715, %v15646_v43  ;;  %v4376_v22 = vmul.f32 %v4360_v21, %v15637_v58  ;;  %v4294_v40 = vmul.f32 %v15491_v4, %v4257_v25  ;;  %v12140_v21 = vld [vmem:[#allocation22 + $0x648] ss:$16 sps:$4 sm:$0xff]  }
 0x999   : > { %v15653_v0 = vpack.c.bf16 %v4497_v15, %v4493_v63  ;;  %v12908_v50 = vpop.eup %12907  ;;  %v4458_v35 = vadd.f32 1.0, %v12906_v36  ;;  %v4470_v32 = vmul.f32 %v4454_v19, %v15601_v1  ;;  %v4345_v48 = vmul.f32 0.5, %v15572_v26  ;;  %v12142_v26 = vld [vmem:[#allocation22 + $0x64c] ss:$16 sps:$4 sm:$0xff]  }
 0x99a   : > { %v15666_v39 = vadd.f32 %v15506_v8, %v4290_v6  ;;  %v12910_v17 = vpop.eup %12909  ;;  %v4457_v16 = vadd.f32 1.0, %v12908_v50  ;;  %v4469_v4 = vmul.f32 %v4453_v51, %v4341_v28  ;;  %v4380_v54 = vmul.f32 %v4364_v37, %v15646_v43 }
 0x99b   : > { %5342 = vmatmul.mubr.bf16.vlgmr.msra.gmra.mrb[32].mxu0 %v15653_v0  ;;  %5448 = vmatmul.mubr.bf16.vlgmr.msra.gmra.mrb[32].mxu1 %v15653_v0  ;;  %v4392_v41 = vmul.f32 %v4376_v22, %v15637_v58  ;;  %v12912_v12 = vpop.eup %12911  ;;  %v4474_v1 = vmul.f32 %v4458_v35, %v4346_v20  ;;  %v4340_v63 = vmul.f32 0.5, %v15566_v56  ;;  %v4448_v7 = vadd.f32 1.0, %v12910_v17  ;;  %v12145_v22 = vld [vmem:[#allocation22 + $0x664] ss:$16 sps:$4 sm:$0xff]  }
 0x99c   : > { %5363 = vmatpush1.bf16.msra.mxu0 %v12125_v11  ;;  %5469 = vmatpush1.bf16.msra.mxu1 %v12128_v61  ;;  %v15672_v9 = vadd.f32 %v15506_v8, %v4294_v40  ;;  %v17200_v27 = vunpack.c.l.bf16 %v15310_v34  ;;  %v4473_v62 = vmul.f32 %v4457_v16, %v4345_v48  ;;  %v4452_v55 = vadd.f32 1.0, %v12912_v12  ;;  %v12137_v8 = vld [vmem:[#allocation22 + $0x640] ss:$16 sps:$4 sm:$0xff]   ;;  %v12148_v40 = vld [vmem:[#allocation22 + $0x66c] ss:$16 sps:$4 sm:$0xff]  }
 0x99d   : > { %5364 = vmatprep.subr.bf16.mxu0 %v12133_v5  ;;  %5470 = vmatprep.subr.bf16.mxu1 %v12136_v24  ;;  %v4396_v45 = vmul.f32 %v4380_v54, %v15646_v43  ;;  %v17201_v49 = vunpack.c.h.bf16 %v15310_v34  ;;  %v17202_v11 = vunpack.c.l.bf16 %v15323_v38  ;;  %v4464_v15 = vmul.f32 %v4448_v7, %v15576_v14  ;;  %v12151_v54 = vld [vmem:[#allocation22 + $0x684] ss:$16 sps:$4 sm:$0xff]  }
 0x99e   : > { %v4502_v57 = vadd.f32 %v17200_v27, %v4470_v32  ;;  %v4408_v56 = vadd.f32 %v4392_v41, %v15637_v58  ;;  %v17203_v23 = vunpack.c.h.bf16 %v15323_v38  ;;  %v4468_v3 = vmul.f32 %v4452_v55, %v4340_v63  ;;  %v12154_v41 = vld [vmem:[#allocation22 + $0x68c] ss:$16 sps:$4 sm:$0xff]  }
 0x99f   : > { %v4506_v25 = vadd.f32 %v17201_v49, %v4474_v1  ;;  %v4501_v59 = vadd.f32 %v17202_v11, %v4469_v4  ;;  %v4335_v61 = vmul.f32 0.5, %v15590_v44  ;;  %v4412_v28 = vadd.f32 %v4396_v45, %v15646_v43  ;;  %v12157_v45 = vld [vmem:[#allocation22 + $0x6a4] ss:$16 sps:$4 sm:$0xff]   ;;  %v12160_v49 = vld [vmem:[#allocation22 + $0x6ac] ss:$16 sps:$4 sm:$0xff]  }
 0x9a0   : > { %5365 = vmatpush1.bf16.msra.mxu0 %v12131_v46  ;;  %5471 = vmatpush1.bf16.msra.mxu1 %v12134_v13  ;;  %v4505_v6 = vadd.f32 %v17203_v23, %v4473_v62  ;;  %v17204_v14 = vunpack.c.l.bf16 %v15325_v30  ;;  %v4424_v5 = vmul.f32 0.7978846, %v4408_v56  ;;  %v4359_v24 = vmul.f32 0.044715, %v15666_v39  ;;  %v12914_v20 = vpop.eup %12913  ;;  %v12143_v46 = vld [vmem:[#allocation22 + $0x660] ss:$16 sps:$4 sm:$0xff]  }
 0x9a1   : > { %v15687_v34 = vpack.c.bf16 %v4506_v25, %v4502_v57  ;;  %5366 = vmatprep.subr.bf16.mxu0 %v12139_v18  ;;  %5472 = vmatprep.subr.bf16.mxu1 %v12142_v26  ;;  %v17205_v38 = vunpack.c.h.bf16 %v15325_v30  ;;  %v4428_v44 = vmul.f32 0.7978846, %v4412_v28  ;;  %v4363_v51 = vmul.f32 0.044715, %v15672_v9  ;;  %v12916_v37 = vpop.eup %12915  ;;  %v12146_v13 = vld [vmem:[#allocation22 + $0x668] ss:$16 sps:$4 sm:$0xff]  }
 0x9a2   : > { %v4496_v10 = vadd.f32 %v17204_v14, %v4464_v15  ;;  %v15692_v19 = vpack.c.bf16 %v4505_v6, %v4501_v59  ;;  %v4339_v50 = vmul.f32 0.5, %v15596_v47  ;;  %v4447_v35 = vadd.f32 1.0, %v12914_v20  ;;  %v12149_v57 = vld [vmem:[#allocation22 + $0x680] ss:$16 sps:$4 sm:$0xff]   ;;  %v12152_v62 = vld [vmem:[#allocation22 + $0x688] ss:$16 sps:$4 sm:$0xff]  }
 0x9a3   : > { %v4500_v36 = vadd.f32 %v17205_v38, %v4468_v3  ;;  %5351 = vmatprep.mubr.bf16.mxu0 %v15687_v34  ;;  %5457 = vmatprep.mubr.bf16.mxu1 %v15687_v34  ;;  %12917 = vtanh.f32 %v4424_v5  ;;  %v4375_v32 = vmul.f32 %v4359_v24, %v15666_v39  ;;  %v4451_v48 = vadd.f32 1.0, %v12916_v37  ;;  %v12155_v59 = vld [vmem:[#allocation22 + $0x6a0] ss:$16 sps:$4 sm:$0xff]   ;;  %v12158_v15 = vld [vmem:[#allocation22 + $0x6a8] ss:$16 sps:$4 sm:$0xff]  }
 0x9a4   : > { %5352 = vmatmul.mubr.bf16.gmra.mrb[36].mxu0 %v15692_v19  ;;  %5458 = vmatmul.mubr.bf16.gmra.mrb[36].mxu1 %v15692_v19  ;;  %12919 = vtanh.f32 %v4428_v44  ;;  %v4379_v17 = vmul.f32 %v4363_v51, %v15672_v9  ;;  %v4463_v16 = vmul.f32 %v4447_v35, %v4335_v61  ;;  %v4479_v47 = vunpack.c.l.bf16 %v15337_v2  ;;  %v12166_v23 = vld [vmem:[#allocation22 + $0x6cc] ss:$16 sps:$4 sm:$0xff]   ;;  %v12164_v5 = vld [vmem:[#allocation22 + $0x6c8] ss:$16 sps:$4 sm:$0xff]   ;;  %v12169_v38 = vld [vmem:[#allocation22 + $0x6e4] ss:$16 sps:$4 sm:$0xff]  }
 0x9a5   : > { %v15703_v30 = vpack.c.bf16 %v4500_v36, %v4496_v10  ;;  %5367 = vmatpush1.bf16.msra.mxu0 %v12137_v8  ;;  %5473 = vmatpush1.bf16.msra.mxu1 %v12140_v21  ;;  %v4391_v4 = vmul.f32 %v4375_v32, %v15666_v39  ;;  %v4467_v12 = vmul.f32 %v4451_v48, %v4339_v50  ;;  %v4483_v1 = vunpack.c.h.bf16 %v15337_v2  ;;  %v12163_v8 = vld [vmem:[#allocation22 + $0x6c4] ss:$16 sps:$4 sm:$0xff]   ;;  %v12161_v10 = vld [vmem:[#allocation22 + $0x6c0] ss:$16 sps:$4 sm:$0xff]   ;;  %v12172_v36 = vld [vmem:[#allocation22 + $0x6ec] ss:$16 sps:$4 sm:$0xff]  }
 0x9a6   : > { %v4395_v18 = vmul.f32 %v4379_v17, %v15672_v9  ;;  %5368 = vmatprep.subr.bf16.mxu0 %v12145_v22  ;;  %5474 = vmatprep.subr.bf16.mxu1 %v12148_v40  ;;  %v4495_v26 = vadd.f32 %v4479_v47, %v4463_v16  ;;  %v4344_v6 = vmul.f32 0.5, %v15637_v58  ;;  %v4348_v61 = vmul.f32 0.5, %v15646_v43  ;;  %v12167_v43 = vld [vmem:[#allocation22 + $0x6e0] ss:$16 sps:$4 sm:$0xff]   ;;  %v12170_v37 = vld [vmem:[#allocation22 + $0x6e8] ss:$16 sps:$4 sm:$0xff]  }
 0x9a7   : > { %5394 = vmatprep.mubr.bf16.mxu0 %v15703_v30  ;;  %5500 = vmatprep.mubr.bf16.mxu1 %v15703_v30  ;;  %v4407_v63 = vadd.f32 %v4391_v4, %v15666_v39  ;;  %v4499_v7 = vadd.f32 %v4483_v1, %v4467_v12  ;;  %v4488_v14 = vunpack.c.l.bf16 %v15347_v53  ;;  %v4492_v20 = vunpack.c.h.bf16 %v15347_v53  ;;  %v12175_v50 = vld [vmem:[#allocation22 + $0x704] ss:$16 sps:$4 sm:$0xff]   ;;  %v12178_v35 = vld [vmem:[#allocation22 + $0x70c] ss:$16 sps:$4 sm:$0xff]   ;;  %v12173_v16 = vld [vmem:[#allocation22 + $0x700] ss:$16 sps:$4 sm:$0xff]  }
 0x9a8   : > { %v4411_v27 = vadd.f32 %v4395_v18, %v15672_v9  ;;  %v4343_v53 = vmul.f32 0.5, %v15666_v39  ;;  %v4347_v48 = vmul.f32 0.5, %v15672_v9  ;;  %v12176_v47 = vld [vmem:[#allocation22 + $0x708] ss:$16 sps:$4 sm:$0xff]   ;;  %v12184_v12 = vld [vmem:[#allocation22 + $0x72c] ss:$16 sps:$4 sm:$0xff]  }
 0x9a9   : > { %5369 = vmatpush1.bf16.msra.mxu0 %v12143_v46  ;;  %5475 = vmatpush1.bf16.msra.mxu1 %v12146_v13  ;;  %v4423_v55 = vmul.f32 0.7978846, %v4407_v63  ;;  %v15714_v2 = vpack.c.bf16 %v4499_v7, %v4495_v26  ;;  %v4487_v13 = vunpack.c.l.bf16 %v15354_v29  ;;  %v12179_v9 = vld [vmem:[#allocation22 + $0x720] ss:$16 sps:$4 sm:$0xff]   ;;  %v12182_v18 = vld [vmem:[#allocation22 + $0x728] ss:$16 sps:$4 sm:$0xff]  }
 0x9aa   : > { %5370 = vmatprep.subr.bf16.mxu0 %v12151_v54  ;;  %5476 = vmatprep.subr.bf16.mxu1 %v12154_v41  ;;  %v4427_v25 = vmul.f32 0.7978846, %v4411_v27  ;;  %v4491_v54 = vunpack.c.h.bf16 %v15354_v29  ;;  %v12181_v41 = vld [vmem:[#allocation22 + $0x724] ss:$16 sps:$4 sm:$0xff]   ;;  %v12190_v7 = vld [vmem:[#allocation22 + $0x74c] ss:$16 sps:$4 sm:$0xff]  }
 0x9ab   : > { %12921 = vtanh.f32 %v4423_v55  ;;  %v12187_v63 = vld [vmem:[#allocation22 + $0x744] ss:$16 sps:$4 sm:$0xff]   ;;  %v12185_v27 = vld [vmem:[#allocation22 + $0x740] ss:$16 sps:$4 sm:$0xff]   ;;  %v12188_v29 = vld [vmem:[#allocation22 + $0x748] ss:$16 sps:$4 sm:$0xff]  }
 0x9ac   : > { %12923 = vtanh.f32 %v4427_v25  ;;  %v12191_v55 = vld [vmem:[#allocation22 + $0x760] ss:$16 sps:$4 sm:$0xff]   ;;  %v12202_v25 = vld [vmem:[#allocation22 + $0x78c] ss:$16 sps:$4 sm:$0xff]  }
 0x9ad   : > { %v12918_v11 = vpop.eup %12917  ;;  %5371 = vmatpush1.bf16.msra.mxu0 %v12149_v57  ;;  %5477 = vmatpush1.bf16.msra.mxu1 %v12152_v62  ;;  %v12193_v57 = vld [vmem:[#allocation22 + $0x764] ss:$16 sps:$4 sm:$0xff]   ;;  %v12196_v62 = vld [vmem:[#allocation22 + $0x76c] ss:$16 sps:$4 sm:$0xff]  }
 0x9ae   : > { %v12920_v56 = vpop.eup %12919  ;;  %5372 = vmatprep.subr.bf16.mxu0 %v12157_v45  ;;  %5478 = vmatprep.subr.bf16.mxu1 %v12160_v49  ;;  %v4456_v3 = vadd.f32 1.0, %v12918_v11  ;;  %v12194_v45 = vld [vmem:[#allocation22 + $0x768] ss:$16 sps:$4 sm:$0xff]   ;;  %v12199_v49 = vld [vmem:[#allocation22 + $0x784] ss:$16 sps:$4 sm:$0xff]  }
 0x9af   : > { %v4460_v28 = vadd.f32 1.0, %v12920_v56  ;;  %v12197_v11 = vld [vmem:[#allocation22 + $0x780] ss:$16 sps:$4 sm:$0xff]   ;;  %v12208_v56 = vld [vmem:[#allocation22 + $0x7ac] ss:$16 sps:$4 sm:$0xff]  }
 0x9b0   : > { %v4472_v21 = vmul.f32 %v4456_v3, %v4344_v6  ;;  %v12211_v6 = vld [vmem:[#allocation22 + $0x7c4] ss:$16 sps:$4 sm:$0xff]   ;;  %v12214_v3 = vld [vmem:[#allocation22 + $0x7cc] ss:$16 sps:$4 sm:$0xff]  }
 0x9b1   : > { %5373 = vmatpush1.bf16.msra.mxu0 %v12155_v59  ;;  %5479 = vmatpush1.bf16.msra.mxu1 %v12158_v15  ;;  %v4476_v24 = vmul.f32 %v4460_v28, %v4348_v61  ;;  %v12200_v59 = vld [vmem:[#allocation22 + $0x788] ss:$16 sps:$4 sm:$0xff]   ;;  %v12205_v15 = vld [vmem:[#allocation22 + $0x7a4] ss:$16 sps:$4 sm:$0xff]   ;;  %v12209_v61 = vld [vmem:[#allocation22 + $0x7c0] ss:$16 sps:$4 sm:$0xff]  }
 0x9b2   : > { %5374 = vmatprep.subr.bf16.mxu0 %v12163_v8  ;;  %5480 = vmatprep.subr.bf16.mxu1 %v12166_v23  ;;  %v4504_v44 = vadd.f32 %v4488_v14, %v4472_v21  ;;  %v12203_v8 = vld [vmem:[#allocation22 + $0x7a0] ss:$16 sps:$4 sm:$0xff]   ;;  %v12206_v23 = vld [vmem:[#allocation22 + $0x7a8] ss:$16 sps:$4 sm:$0xff]   ;;  %v12217_v21 = vld [vmem:[#allocation22 + $0x7e4] ss:$16 sps:$4 sm:$0xff]  }
 0x9b3   : > { %v4508_v58 = vadd.f32 %v4492_v20, %v4476_v24  ;;  %v12212_v28 = vld [vmem:[#allocation22 + $0x7c8] ss:$16 sps:$4 sm:$0xff]   ;;  %v12220_v14 = vld [vmem:[#allocation22 + $0x7ec] ss:$16 sps:$4 sm:$0xff]   ;;  %v12221_v24 = vld [vmem:[#allocation22 + $0x800] ss:$16 sps:$4 sm:$0xff]  }
 0x9b4   : > { %v12223_v20 = vld [vmem:[#allocation22 + $0x804] ss:$16 sps:$4 sm:$0xff]  }
 0x9b5   : > { %v12922_v51 = vpop.eup %12921  ;;  %5375 = vmatpush1.bf16.msra.mxu0 %v12161_v10  ;;  %5481 = vmatpush1.bf16.msra.mxu1 %v12164_v5  ;;  %v15720_v22 = vpack.c.bf16 %v4508_v58, %v4504_v44  ;;  %v12215_v10 = vld [vmem:[#allocation22 + $0x7e0] ss:$16 sps:$4 sm:$0xff]   ;;  %v12218_v5 = vld [vmem:[#allocation22 + $0x7e8] ss:$16 sps:$4 sm:$0xff]   ;;  %v12229_v44 = vld [vmem:[#allocation22 + $0x824] ss:$16 sps:$4 sm:$0xff]  }
 0x9b6   : > { %v12924_v40 = vpop.eup %12923  ;;  %5376 = vmatprep.subr.bf16.mxu0 %v12169_v38  ;;  %5482 = vmatprep.subr.bf16.mxu1 %v12172_v36  ;;  %v4455_v32 = vadd.f32 1.0, %v12922_v51  ;;  %v12224_v38 = vld [vmem:[#allocation22 + $0x808] ss:$16 sps:$4 sm:$0xff]   ;;  %v12226_v36 = vld [vmem:[#allocation22 + $0x80c] ss:$16 sps:$4 sm:$0xff]  }
 0x9b7   : > { %v4459_v17 = vadd.f32 1.0, %v12924_v40  ;;  %v12232_v58 = vld [vmem:[#allocation22 + $0x82c] ss:$16 sps:$4 sm:$0xff]   ;;  %v12227_v51 = vld [vmem:[#allocation22 + $0x820] ss:$16 sps:$4 sm:$0xff]  }
 0x9b8   : > { %v4471_v46 = vmul.f32 %v4455_v32, %v4343_v53 }
 0x9b9   : > { %5377 = vmatpush1.bf16.msra.mxu0 %v12167_v43  ;;  %5483 = vmatpush1.bf16.msra.mxu1 %v12170_v37  ;;  %v4475_v4 = vmul.f32 %v4459_v17, %v4347_v48  ;;  %v12230_v43 = vld [vmem:[#allocation22 + $0x828] ss:$16 sps:$4 sm:$0xff]   ;;  %v4647_v37 = vld [vmem:[#allocation23 + $0x4] sm:$0xf] }
 0x9ba   : > { %5378 = vmatprep.subr.bf16.mxu0 %v12175_v50  ;;  %5484 = vmatprep.subr.bf16.mxu1 %v12178_v35  ;;  %v4503_v1 = vadd.f32 %v4487_v13, %v4471_v46  ;;  %v4652_v40 = vrot.slane %v4647_v37, %v17195_v52  ;;  %v4660_v50 = vrot.slane %v4647_v37, %v17196_v60 }
 0x9bb   : > { %v4507_v39 = vadd.f32 %v4491_v54, %v4475_v4  ;;  %v4656_v35 = vrot.slane %v4647_v37, %v17197_v42  ;;  %v4664_v13 = vrot.slane %v4647_v37, %v17198_v33 }
 0x9bd   : > { %5379 = vmatpush1.bf16.msra.mxu0 %v12173_v16  ;;  %5485 = vmatpush1.bf16.msra.mxu1 %v12176_v47  ;;  %v15726_v26 = vpack.c.bf16 %v4507_v39, %v4503_v1 }
 0x9be   : > { %5380 = vmatprep.subr.bf16.mxu0 %v12181_v41  ;;  %5486 = vmatprep.subr.bf16.mxu1 %v12184_v12 }
 0x9c1   : > { %5381 = vmatpush1.bf16.msra.mxu0 %v12179_v9  ;;  %5487 = vmatpush1.bf16.msra.mxu1 %v12182_v18 }
 0x9c2   : > { %5382 = vmatprep.subr.bf16.mxu0 %v12187_v63  ;;  %5488 = vmatprep.subr.bf16.mxu1 %v12190_v7 }
 0x9c5   : > { %5383 = vmatpush1.bf16.msra.mxu0 %v12185_v27  ;;  %5489 = vmatpush1.bf16.msra.mxu1 %v12188_v29 }
 0x9c6   : > { %5384 = vmatprep.subr.bf16.mxu0 %v12193_v57  ;;  %5490 = vmatprep.subr.bf16.mxu1 %v12196_v62 }
 0x9c9   : > { %5385 = vmatpush1.bf16.msra.mxu0 %v12191_v55  ;;  %5491 = vmatpush1.bf16.msra.mxu1 %v12194_v45 }
 0x9ca   : > { %5386 = vmatprep.subr.bf16.mxu0 %v12199_v49  ;;  %5492 = vmatprep.subr.bf16.mxu1 %v12202_v25 }
 0x9cd   : > { %5387 = vmatpush1.bf16.msra.mxu0 %v12197_v11  ;;  %5493 = vmatpush1.bf16.msra.mxu1 %v12200_v59 }
 0x9ce   : > { %5388 = vmatprep.subr.bf16.mxu0 %v12205_v15  ;;  %5494 = vmatprep.subr.bf16.mxu1 %v12208_v56 }
 0x9d1   : > { %5389 = vmatpush1.bf16.msra.mxu0 %v12203_v8  ;;  %5495 = vmatpush1.bf16.msra.mxu1 %v12206_v23 }
 0x9d2   : > { %5390 = vmatprep.subr.bf16.mxu0 %v12211_v6  ;;  %5496 = vmatprep.subr.bf16.mxu1 %v12214_v3 }
 0x9d5   : > { %5391 = vmatpush1.bf16.msra.mxu0 %v12209_v61  ;;  %5497 = vmatpush1.bf16.msra.mxu1 %v12212_v28 }
 0x9d6   : > { %5392 = vmatprep.subr.bf16.mxu0 %v12217_v21  ;;  %5498 = vmatprep.subr.bf16.mxu1 %v12220_v14 }
 0x9d9   : > { %5393 = vmatpush1.bf16.msra.mxu0 %v12215_v10  ;;  %5499 = vmatpush1.bf16.msra.mxu1 %v12218_v5 }
 0x9da   : > { %6687 = vmatprep.subr.bf16.mxu0 %v12223_v20  ;;  %6793 = vmatprep.subr.bf16.mxu1 %v12226_v36 }
 0x9dc   : > { %5395 = vmatmul.mubr.bf16.vlgmr.msra.gmra.mrb[32].mxu0 %v15714_v2  ;;  %5501 = vmatmul.mubr.bf16.vlgmr.msra.gmra.mrb[32].mxu1 %v15714_v2 }
 0x9dd   : > { %5404 = vmatprep.mubr.bf16.mxu0 %v15720_v22  ;;  %5510 = vmatprep.mubr.bf16.mxu1 %v15720_v22 }
 0x9de   : > { %6688 = vmatpush1.bf16.msra.mxu0 %v12221_v24  ;;  %6794 = vmatpush1.bf16.msra.mxu1 %v12224_v38 }
 0x9df   : > { %6689 = vmatprep.subr.bf16.mxu0 %v12229_v44  ;;  %6795 = vmatprep.subr.bf16.mxu1 %v12232_v58 }
 0x9e2   : > { %6690 = vmatpush1.bf16.msra.mxu0 %v12227_v51  ;;  %6796 = vmatpush1.bf16.msra.mxu1 %v12230_v43 }
 0x9e4   : > { %5405 = vmatmul.mubr.bf16.gmra.mrb[36].mxu0 %v15726_v26  ;;  %5511 = vmatmul.mubr.bf16.gmra.mrb[36].mxu1 %v15726_v26 }
 0xaaf   : > { %v5396_v53 = vpop.f32.mrb[32].mxu0  ;;  %v5502_v32 = vpop.f32.mrb[32].mxu1 }
 0xab0   : > { %v15737_v48 = vadd.f32 %v5396_v53, %v4652_v40  ;;  %v15739_v17 = vadd.f32 %v5502_v32, %v4660_v50  ;;  %v5398_v46 = vpop.f32.mrb[33].mxu0  ;;  %v5504_v16 = vpop.f32.mrb[33].mxu1 }
 0xab1   : > { %v15742_v47 = vadd.f32 %v5398_v46, %v4656_v35  ;;  %v5400_v4 = vpop.f32.mrb[34].mxu0  ;;  %v5506_v54 = vpop.f32.mrb[34].mxu1  ;;  %v15756_v27 = vadd.f32 %v5504_v16, %v4664_v13 }
 0xab2   : > { %v5549_v41 = vmul.f32 %v15737_v48, %v15737_v48  ;;  %v15746_v12 = vadd.f32 %v5400_v4, %v4652_v40  ;;  %v5402_v1 = vpop.f32.mrb[35].mxu0  ;;  %v5508_v39 = vpop.f32.mrb[35].mxu1  ;;  %v5551_v7 = vmul.f32 %v15739_v17, %v15739_v17  ;;  %v15760_v57 = vadd.f32 %v5506_v54, %v4660_v50 }
 0xab3   : > { %v5525_v9 = vadd.f32 %v15742_v47, %v15737_v48  ;;  %v5550_v18 = vmul.f32 %v15742_v47, %v15742_v47  ;;  %v15752_v63 = vadd.f32 %v5402_v1, %v4656_v35  ;;  %v15767_v25 = vadd.f32 %v5508_v39, %v4664_v13 }
 0xab4   : > { %v5553_v29 = vmul.f32 %v15746_v12, %v15746_v12  ;;  %v5555_v21 = vmul.f32 %v15760_v57, %v15760_v57  ;;  %v5552_v20 = vmul.f32 %v15756_v27, %v15756_v27 }
 0xab5   : > { %v5530_v62 = vadd.f32 %v15752_v63, %v15746_v12  ;;  %v5554_v55 = vmul.f32 %v15752_v63, %v15752_v63  ;;  %v5526_v45 = vadd.f32 %v15739_v17, %v5525_v9  ;;  %v5565_v49 = vadd.f32 %v5550_v18, %v5549_v41 }
 0xab6   : > { %v5556_v43 = vmul.f32 %v15767_v25, %v15767_v25 }
 0xab7   : > { %v5406_v11 = vpop.f32.mrb[36].mxu0  ;;  %v5512_v59 = vpop.f32.mrb[36].mxu1  ;;  %v5527_v15 = vadd.f32 %v15756_v27, %v5526_v45  ;;  %v5531_v56 = vadd.f32 %v15760_v57, %v5530_v62  ;;  %v5566_v8 = vadd.f32 %v5565_v49, %v5551_v7  ;;  %v5570_v28 = vadd.f32 %v5554_v55, %v5553_v29 }
 0xab8   : > { %v15771_v23 = vadd.f32 %v5406_v11, %v4652_v40  ;;  %v15773_v6 = vadd.f32 %v5512_v59, %v4660_v50  ;;  %v5408_v3 = vpop.f32.mrb[37].mxu0  ;;  %v5514_v61 = vpop.f32.mrb[37].mxu1 }
 0xab9   : > { %v15777_v14 = vadd.f32 %v5408_v3, %v4656_v35  ;;  %v5410_v10 = vpop.f32.mrb[38].mxu0  ;;  %v5516_v5 = vpop.f32.mrb[38].mxu1  ;;  %5528 = vadd.xlane.f32.xlu0 %v5527_v15  ;;  %v5532_v24 = vadd.f32 %v15767_v25, %v5531_v56  ;;  %v15784_v36 = vadd.f32 %v5514_v61, %v4664_v13  ;;  %v5567_v46 = vadd.f32 %v5566_v8, %v5552_v20  ;;  %v12233_v56 = vld [vmem:[#allocation22 + $0x840] ss:$16 sps:$4 sm:$0xff]   ;;  %v12235_v8 = vld [vmem:[#allocation22 + $0x844] ss:$16 sps:$4 sm:$0xff]  }
 0xaba   : > { %v5557_v38 = vmul.f32 %v15771_v23, %v15771_v23  ;;  %v15786_v44 = vadd.f32 %v5410_v10, %v4652_v40  ;;  %v5412_v58 = vpop.f32.mrb[39].mxu0  ;;  %v5518_v51 = vpop.f32.mrb[39].mxu1  ;;  %v5559_v16 = vmul.f32 %v15773_v6, %v15773_v6  ;;  %v15800_v4 = vadd.f32 %v5516_v5, %v4660_v50  ;;  %v12236_v3 = vld [vmem:[#allocation22 + $0x848] ss:$16 sps:$4 sm:$0xff]   ;;  %v12238_v61 = vld [vmem:[#allocation22 + $0x84c] ss:$16 sps:$4 sm:$0xff]   ;;  %6691 = vmatprep.subr.bf16.mxu0 %v12235_v8 }
 0xabb   : > { %v5535_v37 = vadd.f32 %v15777_v14, %v15771_v23  ;;  %v5558_v53 = vmul.f32 %v15777_v14, %v15777_v14  ;;  %v15794_v32 = vadd.f32 %v5412_v58, %v4656_v35  ;;  %5533 = vadd.xlane.f32.xlu1 %v5532_v24  ;;  %v5571_v54 = vadd.f32 %v5570_v28, %v5555_v21  ;;  %v12239_v28 = vld [vmem:[#allocation22 + $0x860] ss:$16 sps:$4 sm:$0xff]   ;;  %v12241_v21 = vld [vmem:[#allocation22 + $0x864] ss:$16 sps:$4 sm:$0xff]   ;;  %v12242_v10 = vld [vmem:[#allocation22 + $0x868] ss:$16 sps:$4 sm:$0xff]  }
 0xabc   : > { %v5561_v40 = vmul.f32 %v15786_v44, %v15786_v44  ;;  %v15807_v9 = vadd.f32 %v5518_v51, %v4664_v13  ;;  %v5563_v55 = vmul.f32 %v15800_v4, %v15800_v4  ;;  %v5560_v49 = vmul.f32 %v15784_v36, %v15784_v36  ;;  %6797 = vmatprep.subr.bf16.mxu1 %v12238_v61  ;;  %v12244_v5 = vld [vmem:[#allocation22 + $0x86c] ss:$16 sps:$4 sm:$0xff]   ;;  %v12247_v24 = vld [vmem:[#allocation22 + $0x884] ss:$16 sps:$4 sm:$0xff]   ;;  %v12248_v58 = vld [vmem:[#allocation22 + $0x888] ss:$16 sps:$4 sm:$0xff]  }
 0xabd   : > { %v5540_v41 = vadd.f32 %v15794_v32, %v15786_v44  ;;  %v5562_v1 = vmul.f32 %v15794_v32, %v15794_v32  ;;  %5568 = vadd.xlane.f32.xlu0 %v5567_v46  ;;  %v5536_v35 = vadd.f32 %v15773_v6, %v5535_v37  ;;  %v5575_v39 = vadd.f32 %v5558_v53, %v5557_v38  ;;  %v12250_v20 = vld [vmem:[#allocation22 + $0x88c] ss:$16 sps:$4 sm:$0xff]   ;;  %v12245_v38 = vld [vmem:[#allocation22 + $0x880] ss:$16 sps:$4 sm:$0xff]   ;;  %v12254_v37 = vld [vmem:[#allocation22 + $0x8a8] ss:$16 sps:$4 sm:$0xff]  }
 0xabe   : > { %v5572_v18 = vadd.f32 %v5571_v54, %v5556_v43  ;;  %v5564_v59 = vmul.f32 %v15807_v9, %v15807_v9  ;;  %6692 = vmatpush1.bf16.msra.mxu0 %v12233_v56  ;;  %6798 = vmatpush1.bf16.msra.mxu1 %v12236_v3  ;;  %v12251_v51 = vld [vmem:[#allocation22 + $0x8a0] ss:$16 sps:$4 sm:$0xff]   ;;  %v12253_v43 = vld [vmem:[#allocation22 + $0x8a4] ss:$16 sps:$4 sm:$0xff]   ;;  %v12256_v53 = vld [vmem:[#allocation22 + $0x8ac] ss:$16 sps:$4 sm:$0xff]  }
 0xabf   : > { %v5537_v7 = vadd.f32 %v15784_v36, %v5536_v35  ;;  %v5541_v29 = vadd.f32 %v15800_v4, %v5540_v41  ;;  %v5576_v50 = vadd.f32 %v5575_v39, %v5559_v16  ;;  %v5580_v62 = vadd.f32 %v5562_v1, %v5561_v40  ;;  %6693 = vmatprep.subr.bf16.mxu0 %v12241_v21  ;;  %v12259_v46 = vld [vmem:[#allocation22 + $0x8c4] ss:$16 sps:$4 sm:$0xff]   ;;  %v12262_v16 = vld [vmem:[#allocation22 + $0x8cc] ss:$16 sps:$4 sm:$0xff]   ;;  %v12257_v40 = vld [vmem:[#allocation22 + $0x8c0] ss:$16 sps:$4 sm:$0xff]  }
 0xac0   : > { %5573 = vadd.xlane.f32.xlu1 %v5572_v18  ;;  %6799 = vmatprep.subr.bf16.mxu1 %v12244_v5  ;;  %v12260_v54 = vld [vmem:[#allocation22 + $0x8c8] ss:$16 sps:$4 sm:$0xff]   ;;  %v12265_v41 = vld [vmem:[#allocation22 + $0x8e4] ss:$16 sps:$4 sm:$0xff]   ;;  %v12268_v1 = vld [vmem:[#allocation22 + $0x8ec] ss:$16 sps:$4 sm:$0xff]  }
 0xac1   : > { %5538 = vadd.xlane.f32.xlu0 %v5537_v7  ;;  %v5542_v45 = vadd.f32 %v15807_v9, %v5541_v29  ;;  %v5581_v11 = vadd.f32 %v5580_v62, %v5563_v55  ;;  %v5577_v13 = vadd.f32 %v5576_v50, %v5560_v49  ;;  %v12263_v35 = vld [vmem:[#allocation22 + $0x8e0] ss:$16 sps:$4 sm:$0xff]   ;;  %v12266_v39 = vld [vmem:[#allocation22 + $0x8e8] ss:$16 sps:$4 sm:$0xff]   ;;  %v12271_v18 = vld [vmem:[#allocation22 + $0x904] ss:$16 sps:$4 sm:$0xff]  }
 0xac2   : > { %6694 = vmatpush1.bf16.msra.mxu0 %v12239_v28  ;;  %6800 = vmatpush1.bf16.msra.mxu1 %v12242_v10  ;;  %v12274_v7 = vld [vmem:[#allocation22 + $0x90c] ss:$16 sps:$4 sm:$0xff]   ;;  %v12269_v29 = vld [vmem:[#allocation22 + $0x900] ss:$16 sps:$4 sm:$0xff]   ;;  %v12272_v50 = vld [vmem:[#allocation22 + $0x908] ss:$16 sps:$4 sm:$0xff]  }
 0xac3   : > { %v5582_v15 = vadd.f32 %v5581_v11, %v5564_v59  ;;  %6695 = vmatprep.subr.bf16.mxu0 %v12247_v24  ;;  %6801 = vmatprep.subr.bf16.mxu1 %v12250_v20  ;;  %v12277_v62 = vld [vmem:[#allocation22 + $0x924] ss:$16 sps:$4 sm:$0xff]   ;;  %v12280_v55 = vld [vmem:[#allocation22 + $0x92c] ss:$16 sps:$4 sm:$0xff]   ;;  %v12278_v49 = vld [vmem:[#allocation22 + $0x928] ss:$16 sps:$4 sm:$0xff]  }
 0xac4   : > { %5543 = vadd.xlane.f32.xlu1 %v5542_v45  ;;  %v12275_v45 = vld [vmem:[#allocation22 + $0x920] ss:$16 sps:$4 sm:$0xff]   ;;  %v12283_v11 = vld [vmem:[#allocation22 + $0x944] ss:$16 sps:$4 sm:$0xff]   ;;  %v12292_v8 = vld [vmem:[#allocation22 + $0x96c] ss:$16 sps:$4 sm:$0xff]  }
 0xac5   : > { %5578 = vadd.xlane.f32.xlu0 %v5577_v13  ;;  %v12286_v13 = vld [vmem:[#allocation22 + $0x94c] ss:$16 sps:$4 sm:$0xff]   ;;  %v12281_v59 = vld [vmem:[#allocation22 + $0x940] ss:$16 sps:$4 sm:$0xff]   ;;  %v12289_v56 = vld [vmem:[#allocation22 + $0x964] ss:$16 sps:$4 sm:$0xff]  }
 0xac6   : > { %6696 = vmatpush1.bf16.msra.mxu0 %v12245_v38  ;;  %6802 = vmatpush1.bf16.msra.mxu1 %v12248_v58  ;;  %v12287_v3 = vld [vmem:[#allocation22 + $0x960] ss:$16 sps:$4 sm:$0xff]   ;;  %v12290_v61 = vld [vmem:[#allocation22 + $0x968] ss:$16 sps:$4 sm:$0xff]   ;;  %v12295_v28 = vld [vmem:[#allocation22 + $0x984] ss:$16 sps:$4 sm:$0xff]  }
 0xac7   : > { %6697 = vmatprep.subr.bf16.mxu0 %v12253_v43  ;;  %6803 = vmatprep.subr.bf16.mxu1 %v12256_v53  ;;  %v12298_v21 = vld [vmem:[#allocation22 + $0x98c] ss:$16 sps:$4 sm:$0xff]   ;;  %v12293_v10 = vld [vmem:[#allocation22 + $0x980] ss:$16 sps:$4 sm:$0xff]   ;;  %v12296_v5 = vld [vmem:[#allocation22 + $0x988] ss:$16 sps:$4 sm:$0xff]  }
 0xac8   : > { %5583 = vadd.xlane.f32.xlu1 %v5582_v15  ;;  %v12284_v15 = vld [vmem:[#allocation22 + $0x948] ss:$16 sps:$4 sm:$0xff]   ;;  %v12301_v24 = vld [vmem:[#allocation22 + $0x9a4] ss:$16 sps:$4 sm:$0xff]   ;;  %v12304_v20 = vld [vmem:[#allocation22 + $0x9ac] ss:$16 sps:$4 sm:$0xff]  }
 0xac9   : > { %v12299_v38 = vld [vmem:[#allocation22 + $0x9a0] ss:$16 sps:$4 sm:$0xff]   ;;  %v12302_v58 = vld [vmem:[#allocation22 + $0x9a8] ss:$16 sps:$4 sm:$0xff]   ;;  %v12310_v43 = vld [vmem:[#allocation22 + $0x9cc] ss:$16 sps:$4 sm:$0xff]  }
 0xaca   : > { %6698 = vmatpush1.bf16.msra.mxu0 %v12251_v51  ;;  %6804 = vmatpush1.bf16.msra.mxu1 %v12254_v37  ;;  %v12307_v51 = vld [vmem:[#allocation22 + $0x9c4] ss:$16 sps:$4 sm:$0xff]   ;;  %v12305_v37 = vld [vmem:[#allocation22 + $0x9c0] ss:$16 sps:$4 sm:$0xff]   ;;  %v12308_v53 = vld [vmem:[#allocation22 + $0x9c8] ss:$16 sps:$4 sm:$0xff]  }
 0xacb   : > { %6699 = vmatprep.subr.bf16.mxu0 %v12259_v46  ;;  %6805 = vmatprep.subr.bf16.mxu1 %v12262_v16  ;;  %v12313_v46 = vld [vmem:[#allocation22 + $0x9e4] ss:$16 sps:$4 sm:$0xff]   ;;  %v12316_v16 = vld [vmem:[#allocation22 + $0x9ec] ss:$16 sps:$4 sm:$0xff]  }
 0xace   : > { %6700 = vmatpush1.bf16.msra.mxu0 %v12257_v40  ;;  %6806 = vmatpush1.bf16.msra.mxu1 %v12260_v54  ;;  %v12311_v40 = vld [vmem:[#allocation22 + $0x9e0] ss:$16 sps:$4 sm:$0xff]   ;;  %v12314_v54 = vld [vmem:[#allocation22 + $0x9e8] ss:$16 sps:$4 sm:$0xff]  }
 0xacf   : > { %6701 = vmatprep.subr.bf16.mxu0 %v12265_v41  ;;  %6807 = vmatprep.subr.bf16.mxu1 %v12268_v1  ;;  %v12319_v41 = vld [vmem:[#allocation22 + $0xa04] ss:$16 sps:$4 sm:$0xff]   ;;  %v12322_v1 = vld [vmem:[#allocation22 + $0xa0c] ss:$16 sps:$4 sm:$0xff]  }
 0xad2   : > { %6702 = vmatpush1.bf16.msra.mxu0 %v12263_v35  ;;  %6808 = vmatpush1.bf16.msra.mxu1 %v12266_v39 }
 0xad3   : > { %6703 = vmatprep.subr.bf16.mxu0 %v12271_v18  ;;  %6809 = vmatprep.subr.bf16.mxu1 %v12274_v7 }
 0xad6   : > { %6704 = vmatpush1.bf16.msra.mxu0 %v12269_v29  ;;  %6810 = vmatpush1.bf16.msra.mxu1 %v12272_v50 }
 0xad7   : > { %6705 = vmatprep.subr.bf16.mxu0 %v12277_v62  ;;  %6811 = vmatprep.subr.bf16.mxu1 %v12280_v55 }
 0xada   : > { %6706 = vmatpush1.bf16.msra.mxu0 %v12275_v45  ;;  %6812 = vmatpush1.bf16.msra.mxu1 %v12278_v49 }
 0xadb   : > { %6707 = vmatprep.subr.bf16.mxu0 %v12283_v11  ;;  %6813 = vmatprep.subr.bf16.mxu1 %v12286_v13 }
 0xade   : > { %6708 = vmatpush1.bf16.msra.mxu0 %v12281_v59  ;;  %6814 = vmatpush1.bf16.msra.mxu1 %v12284_v15 }
 0xadf   : > { %6709 = vmatprep.subr.bf16.mxu0 %v12289_v56  ;;  %6815 = vmatprep.subr.bf16.mxu1 %v12292_v8 }
 0xae2   : > { %6710 = vmatpush1.bf16.msra.mxu0 %v12287_v3  ;;  %6816 = vmatpush1.bf16.msra.mxu1 %v12290_v61 }
 0xae3   : > { %6711 = vmatprep.subr.bf16.mxu0 %v12295_v28  ;;  %6817 = vmatprep.subr.bf16.mxu1 %v12298_v21 }
 0xae6   : > { %6712 = vmatpush1.bf16.msra.mxu0 %v12293_v10  ;;  %6818 = vmatpush1.bf16.msra.mxu1 %v12296_v5  ;;  %v5522_v5 = vld [vmem:[#allocation25 + $0x4] sm:$0xf] }
 0xae7   : > { %6713 = vmatprep.subr.bf16.mxu0 %v12301_v24  ;;  %6819 = vmatprep.subr.bf16.mxu1 %v12304_v20  ;;  %v5856_v24 = vunpack.c.l.bf16 %v15649_v31  ;;  %v5860_v20 = vunpack.c.h.bf16 %v15649_v31 }
 0xaea   : > { %6714 = vmatpush1.bf16.msra.mxu0 %v12299_v38  ;;  %6820 = vmatpush1.bf16.msra.mxu1 %v12302_v58  ;;  %v5855_v38 = vunpack.c.l.bf16 %v15653_v0 }
 0xaeb   : > { %6715 = vmatprep.subr.bf16.mxu0 %v12307_v51  ;;  %6821 = vmatprep.subr.bf16.mxu1 %v12310_v43  ;;  %v5524_v43 = vld [vmem:[#allocation26 + $0x4] sm:$0xf] }
 0xaee   : > { %6716 = vmatpush1.bf16.msra.mxu0 %v12305_v37  ;;  %6822 = vmatpush1.bf16.msra.mxu1 %v12308_v53 }
 0xaef   : > { %6717 = vmatprep.subr.bf16.mxu0 %v12313_v46  ;;  %6823 = vmatprep.subr.bf16.mxu1 %v12316_v16 }
 0xaf2   : > { %6718 = vmatpush1.bf16.msra.mxu0 %v12311_v40  ;;  %6824 = vmatpush1.bf16.msra.mxu1 %v12314_v54 }
 0xaf3   : > { %6740 = vmatprep.subr.bf16.mxu0 %v12319_v41  ;;  %6846 = vmatprep.subr.bf16.mxu1 %v12322_v1 }
 0xb46   : > { %v5529_v35 = vpop.xlane.xlu0 %5528 }
 0xb47   : > { %v15818_v39 = vmul.f32 0.001953125, %v5529_v35  ;;  %v15843_v35 = vrot.slane %v5522_v5, %v17197_v42 }
 0xb48   : > { %v5534_v18 = vpop.xlane.xlu1 %5533 }
 0xb49   : > { %v15820_v7 = vmul.f32 0.001953125, %v5534_v18  ;;  %v5589_v50 = vmul.f32 %v15818_v39, %v15818_v39 }
 0xb4a   : > { %v5569_v29 = vpop.xlane.xlu0 %5568 }
 0xb4b   : > { %v5585_v62 = vmul.f32 0.001953125, %v5569_v29  ;;  %v5590_v49 = vmul.f32 %v15820_v7, %v15820_v7 }
 0xb4d   : > { %v5593_v55 = vsub.f32 %v5585_v62, %v5589_v50  ;;  %v5574_v45 = vpop.xlane.xlu1 %5573  ;;  %v15848_v62 = vrot.slane %v5524_v43, %v17197_v42 }
 0xb4e   : > { %v5586_v11 = vmul.f32 0.001953125, %v5574_v45  ;;  %v5539_v13 = vpop.xlane.xlu0 %5538  ;;  %v15854_v45 = vrot.slane %v5522_v5, %v17198_v33 }
 0xb4f   : > { %v5613_v59 = vadd.f32 1e-05, %v5593_v55  ;;  %v15826_v15 = vmul.f32 0.001953125, %v5539_v13  ;;  %v15851_v55 = vrot.slane %v5522_v5, %v17195_v52  ;;  %v15863_v13 = vrot.slane %v5522_v5, %v17196_v60 }
 0xb50   : > { %v5594_v56 = vsub.f32 %v5586_v11, %v5590_v49  ;;  %v15857_v49 = vrot.slane %v5524_v43, %v17195_v52  ;;  %v15860_v11 = vrot.slane %v5524_v43, %v17198_v33  ;;  %v5602_v5 = vsub.f32 %v15752_v63, %v15820_v7 }
 0xb51   : > { %12925 = vrsqrt.f32 %v5613_v59  ;;  %v5544_v8 = vpop.xlane.xlu1 %5543  ;;  %v5591_v21 = vmul.f32 %v15826_v15, %v15826_v15  ;;  %v5597_v59 = vsub.f32 %v15737_v48, %v15818_v39  ;;  %v5606_v63 = vsub.f32 %v15777_v14, %v15826_v15 }
 0xb52   : > { %v5614_v3 = vadd.f32 1e-05, %v5594_v56  ;;  %v15828_v61 = vmul.f32 0.001953125, %v5544_v8  ;;  %v5579_v28 = vpop.xlane.xlu0 %5578  ;;  %v5598_v56 = vsub.f32 %v15742_v47, %v15818_v39  ;;  %v5600_v8 = vsub.f32 %v15756_v27, %v15818_v39 }
 0xb53   : > { %v5587_v10 = vmul.f32 0.001953125, %v5579_v28  ;;  %v5603_v27 = vsub.f32 %v15760_v57, %v15820_v7  ;;  %v5608_v57 = vsub.f32 %v15784_v36, %v15826_v15 }
 0xb54   : > { %12927 = vrsqrt.f32 %v5614_v3  ;;  %v5592_v16 = vmul.f32 %v15828_v61, %v15828_v61 }
 0xb55   : > { %v5595_v58 = vsub.f32 %v5587_v10, %v5591_v21  ;;  %v5584_v51 = vpop.xlane.xlu1 %5583  ;;  %v5599_v21 = vsub.f32 %v15739_v17, %v15818_v39  ;;  %v5601_v10 = vsub.f32 %v15746_v12, %v15820_v7  ;;  %v5605_v17 = vsub.f32 %v15771_v23, %v15826_v15 }
 0xb56   : > { %v5588_v40 = vmul.f32 0.001953125, %v5584_v51 }
 0xb57   : > { %v5615_v1 = vadd.f32 1e-05, %v5595_v58  ;;  %v15878_v58 = vrot.slane %v5524_v43, %v17196_v60  ;;  %v5607_v43 = vsub.f32 %v15773_v6, %v15826_v15 }
 0xb58   : > { %v5596_v50 = vsub.f32 %v5588_v40, %v5592_v16  ;;  %v5604_v16 = vsub.f32 %v15767_v25, %v15820_v7 }
 0xb59   : > { %12929 = vrsqrt.f32 %v5615_v1 }
 0xb5a   : > { %v5616_v3 = vadd.f32 1e-05, %v5596_v50 }
 0xb5b   : > { %v12926_v28 = vpop.eup %12925 }
 0xb5c   : > { %12931 = vrsqrt.f32 %v5616_v3  ;;  %v5622_v48 = vmul.f32 %v12926_v28, %v5598_v56  ;;  %v5621_v47 = vmul.f32 %v12926_v28, %v5597_v59  ;;  %v5624_v51 = vmul.f32 %v12926_v28, %v5600_v8 }
 0xb5d   : > { %v5623_v12 = vmul.f32 %v12926_v28, %v5599_v21 }
 0xb5e   : > { %v12928_v39 = vpop.eup %12927  ;;  %v5659_v40 = vmul.f32 %v15843_v35, %v5622_v48  ;;  %v5658_v1 = vmul.f32 %v15851_v55, %v5621_v47  ;;  %v5661_v56 = vmul.f32 %v15854_v45, %v5624_v51 }
 0xb5f   : > { %v5626_v50 = vmul.f32 %v12928_v39, %v5602_v5  ;;  %v5625_v25 = vmul.f32 %v12928_v39, %v5601_v10  ;;  %v5627_v7 = vmul.f32 %v12928_v39, %v5603_v27  ;;  %v15898_v14 = vmul.f32 %v15863_v13, %v5623_v12 }
 0xb60   : > { %v5696_v23 = vadd.f32 %v15848_v62, %v5659_v40  ;;  %v5695_v59 = vadd.f32 %v15857_v49, %v5658_v1  ;;  %v5628_v28 = vmul.f32 %v12928_v39, %v5604_v16  ;;  %v5609_v10 = vsub.f32 %v15786_v44, %v15828_v61 }
 0xb61   : > { %v5663_v8 = vmul.f32 %v15843_v35, %v5626_v50  ;;  %v5662_v3 = vmul.f32 %v15851_v55, %v5625_v25  ;;  %v15903_v21 = vmul.f32 %v15863_v13, %v5627_v7  ;;  %v5610_v5 = vsub.f32 %v15794_v32, %v15828_v61 }
 0xb62   : > { %v5728_v48 = vmul.f32 0.044715, %v5696_v23  ;;  %v5727_v47 = vmul.f32 0.044715, %v5695_v59  ;;  %v5611_v27 = vsub.f32 %v15800_v4, %v15828_v61  ;;  %v5612_v12 = vsub.f32 %v15807_v9, %v15828_v61 }
 0xb63   : > { %v15909_v51 = vpop.eup %12929  ;;  %v5700_v16 = vadd.f32 %v15848_v62, %v5663_v8  ;;  %v5699_v39 = vadd.f32 %v15857_v49, %v5662_v3  ;;  %v5665_v7 = vmul.f32 %v15854_v45, %v5628_v28  ;;  %v15921_v29 = vadd.f32 %v15860_v11, %v5661_v56 }
 0xb64   : > { %v5744_v40 = vmul.f32 %v5728_v48, %v5696_v23  ;;  %v5743_v1 = vmul.f32 %v5727_v47, %v5695_v59  ;;  %v5630_v44 = vmul.f32 %v15909_v51, %v5606_v63  ;;  %v5629_v32 = vmul.f32 %v15909_v51, %v5605_v17 }
 0xb65   : > { %v5732_v50 = vmul.f32 0.044715, %v5700_v16  ;;  %v5731_v25 = vmul.f32 0.044715, %v5699_v39 }
 0xb66   : > { %v15923_v18 = vpop.eup %12931  ;;  %v5760_v41 = vmul.f32 %v5744_v40, %v5696_v23  ;;  %v5759_v54 = vmul.f32 %v5743_v1, %v5695_v59  ;;  %v5667_v8 = vmul.f32 %v15843_v35, %v5630_v44  ;;  %v5666_v3 = vmul.f32 %v15851_v55, %v5629_v32 }
 0xb67   : > { %v5748_v48 = vmul.f32 %v5732_v50, %v5700_v16  ;;  %v5747_v47 = vmul.f32 %v5731_v25, %v5699_v39  ;;  %v5634_v63 = vmul.f32 %v15923_v18, %v5610_v5  ;;  %v5633_v17 = vmul.f32 %v15923_v18, %v5609_v10 }
 0xb68   : > { %v5776_v46 = vadd.f32 %v5760_v41, %v5696_v23  ;;  %v5775_v53 = vadd.f32 %v5759_v54, %v5695_v59  ;;  %v5704_v28 = vadd.f32 %v15848_v62, %v5667_v8  ;;  %v15931_v56 = vadd.f32 %v15857_v49, %v5666_v3 }
 0xb69   : > { %v5764_v37 = vmul.f32 %v5748_v48, %v5700_v16  ;;  %v5763_v40 = vmul.f32 %v5747_v47, %v5699_v39  ;;  %v5671_v1 = vmul.f32 %v15843_v35, %v5634_v63  ;;  %v5670_v44 = vmul.f32 %v15851_v55, %v5633_v17 }
 0xb6a   : > { %v15935_v32 = vmul.f32 0.5, %v5696_v23  ;;  %v5792_v50 = vmul.f32 0.7978846, %v5776_v46  ;;  %v5791_v25 = vmul.f32 0.7978846, %v5775_v53  ;;  %v15938_v5 = vadd.f32 %v15860_v11, %v5665_v7 }
 0xb6b   : > { %v5780_v41 = vadd.f32 %v5764_v37, %v5700_v16  ;;  %v5779_v54 = vadd.f32 %v5763_v40, %v5699_v39  ;;  %v15941_v10 = vadd.f32 %v15848_v62, %v5671_v1  ;;  %v5736_v8 = vmul.f32 0.044715, %v5704_v28 }
 0xb6c   : > { %12933 = vtanh.f32 %v5792_v50  ;;  %v5711_v3 = vmul.f32 0.5, %v5695_v59  ;;  %v15944_v48 = vadd.f32 %v15857_v49, %v5670_v44  ;;  %v5735_v35 = vmul.f32 0.044715, %v15931_v56 }
 0xb6d   : > { %v5796_v55 = vmul.f32 0.7978846, %v5780_v41  ;;  %v5795_v23 = vmul.f32 0.7978846, %v5779_v54  ;;  %12935 = vtanh.f32 %v5791_v25  ;;  %v15948_v53 = vmul.f32 0.5, %v15921_v29 }
 0xb6e   : > { %v5716_v46 = vmul.f32 0.5, %v5700_v16  ;;  %v5740_v37 = vmul.f32 0.044715, %v15941_v10  ;;  %v5752_v7 = vmul.f32 %v5736_v8, %v5704_v28  ;;  %v5739_v62 = vmul.f32 0.044715, %v15944_v48 }
 0xb6f   : > { %12937 = vtanh.f32 %v5796_v55  ;;  %v5751_v59 = vmul.f32 %v5735_v35, %v15931_v56  ;;  %v5730_v49 = vmul.f32 0.044715, %v15921_v29  ;;  %v5734_v47 = vmul.f32 0.044715, %v15938_v5 }
 0xb70   : > { %12939 = vtanh.f32 %v5795_v23  ;;  %v5756_v63 = vmul.f32 %v5740_v37, %v15941_v10  ;;  %v5768_v17 = vmul.f32 %v5752_v7, %v5704_v28  ;;  %v5755_v40 = vmul.f32 %v5739_v62, %v15944_v48 }
 0xb71   : > { %v5767_v16 = vmul.f32 %v5751_v59, %v15931_v56  ;;  %v5746_v1 = vmul.f32 %v5730_v49, %v15921_v29  ;;  %v5750_v44 = vmul.f32 %v5734_v47, %v15938_v5  ;;  %v15962_v50 = vadd.f32 %v15878_v58, %v15898_v14 }
 0xb72   : > { %v5772_v25 = vmul.f32 %v5756_v63, %v15941_v10  ;;  %v5784_v41 = vadd.f32 %v5768_v17, %v5704_v28  ;;  %v5771_v54 = vmul.f32 %v5755_v40, %v15944_v48  ;;  %v15968_v8 = vadd.f32 %v15878_v58, %v15903_v21 }
 0xb73   : > { %v5715_v35 = vmul.f32 0.5, %v5699_v39  ;;  %v5783_v55 = vadd.f32 %v5767_v16, %v15931_v56  ;;  %v5762_v23 = vmul.f32 %v5746_v1, %v15921_v29  ;;  %v5766_v37 = vmul.f32 %v5750_v44, %v15938_v5 }
 0xb74   : > { %v15973_v7 = vmul.f32 0.5, %v5704_v28  ;;  %v5788_v14 = vadd.f32 %v5772_v25, %v15941_v10  ;;  %v5800_v62 = vmul.f32 0.7978846, %v5784_v41  ;;  %v5787_v59 = vadd.f32 %v5771_v54, %v15944_v48 }
 0xb75   : > { %v5799_v49 = vmul.f32 0.7978846, %v5783_v55  ;;  %v5778_v47 = vadd.f32 %v5762_v23, %v15921_v29  ;;  %v5782_v21 = vadd.f32 %v5766_v37, %v15938_v5  ;;  %v5729_v39 = vmul.f32 0.044715, %v15962_v50 }
 0xb76   : > { %v12934_v63 = vpop.eup %12933  ;;  %v5804_v17 = vmul.f32 0.7978846, %v5788_v14  ;;  %12941 = vtanh.f32 %v5800_v62  ;;  %v5803_v40 = vmul.f32 0.7978846, %v5787_v59  ;;  %v5733_v16 = vmul.f32 0.044715, %v15968_v8 }
 0xb77   : > { %v12936_v28 = vpop.eup %12935  ;;  %v5824_v1 = vadd.f32 1.0, %v12934_v63  ;;  %12943 = vtanh.f32 %v5799_v49  ;;  %v5794_v44 = vmul.f32 0.7978846, %v5778_v47  ;;  %v5798_v25 = vmul.f32 0.7978846, %v5782_v21 }
 0xb78   : > { %v5823_v41 = vadd.f32 1.0, %v12936_v28  ;;  %12945 = vtanh.f32 %v5804_v17  ;;  %v5745_v54 = vmul.f32 %v5729_v39, %v15962_v50  ;;  %v5749_v29 = vmul.f32 %v5733_v16, %v15968_v8  ;;  %v12317_v16 = vld [vmem:[#allocation22 + $0xa00] ss:$16 sps:$4 sm:$0xff]  }
 0xb79   : > { %v12938_v55 = vpop.eup %12937  ;;  %v5840_v23 = vmul.f32 %v5824_v1, %v15935_v32  ;;  %12947 = vtanh.f32 %v5803_v40  ;;  %v5632_v37 = vmul.f32 %v15909_v51, %v5608_v57  ;;  %v5636_v14 = vmul.f32 %v15923_v18, %v5612_v12 }
 0xb7a   : > { %v12940_v62 = vpop.eup %12939  ;;  %v5828_v59 = vadd.f32 1.0, %v12938_v55  ;;  %v5839_v49 = vmul.f32 %v5823_v41, %v5711_v3  ;;  %12949 = vtanh.f32 %v5794_v44  ;;  %v5761_v47 = vmul.f32 %v5745_v54, %v15962_v50 }
 0xb7b   : > { %v5872_v32 = vadd.f32 %v5856_v24, %v5840_v23  ;;  %v5827_v21 = vadd.f32 1.0, %v12940_v62  ;;  %12951 = vtanh.f32 %v5798_v25  ;;  %v5765_v36 = vmul.f32 %v5749_v29, %v15968_v8 }
 0xb7c   : > { %v5844_v39 = vmul.f32 %v5828_v59, %v5716_v46  ;;  %v5871_v57 = vadd.f32 %v5855_v38, %v5839_v49  ;;  %v5777_v9 = vadd.f32 %v5761_v47, %v15962_v50  ;;  %v5669_v12 = vmul.f32 %v15854_v45, %v5632_v37  ;;  %v12323_v59 = vld [vmem:[#allocation22 + $0xa20] ss:$16 sps:$4 sm:$0xff]   ;;  %v12326_v49 = vld [vmem:[#allocation22 + $0xa28] ss:$16 sps:$4 sm:$0xff]  }
 0xb7d   : > { %v5843_v63 = vmul.f32 %v5827_v21, %v5715_v35  ;;  %v5781_v3 = vadd.f32 %v5765_v36, %v15968_v8  ;;  %v5673_v17 = vmul.f32 %v15854_v45, %v5636_v14  ;;  %v5631_v24 = vmul.f32 %v15909_v51, %v5607_v43  ;;  %v12320_v43 = vld [vmem:[#allocation22 + $0xa08] ss:$16 sps:$4 sm:$0xff]  }
 0xb7e   : > { %v5876_v46 = vadd.f32 %v5860_v20, %v5844_v39  ;;  %v5793_v40 = vmul.f32 0.7978846, %v5777_v9  ;;  %v16009_v38 = vadd.f32 %v15860_v11, %v5669_v12  ;;  %v5635_v35 = vmul.f32 %v15923_v18, %v5611_v27  ;;  %v12328_v27 = vld [vmem:[#allocation22 + $0xa2c] ss:$16 sps:$4 sm:$0xff]   ;;  %v12331_v39 = vld [vmem:[#allocation22 + $0xa44] ss:$16 sps:$4 sm:$0xff]  }
 0xb7f   : > { %v17206_v45 = vunpack.c.h.bf16 %v15653_v0  ;;  %v5797_v1 = vmul.f32 0.7978846, %v5781_v3  ;;  %v16018_v6 = vadd.f32 %v15860_v11, %v5673_v17  ;;  %v5668_v31 = vmul.f32 %v15863_v13, %v5631_v24  ;;  %v12325_v0 = vld [vmem:[#allocation22 + $0xa24] ss:$16 sps:$4 sm:$0xff]  }
 0xb80   : > { %v12942_v15 = vpop.eup %12941  ;;  %v16021_v20 = vpack.c.bf16 %v5876_v46, %v5872_v32  ;;  %v5719_v51 = vmul.f32 0.5, %v15931_v56  ;;  %12953 = vtanh.f32 %v5793_v40  ;;  %v5738_v4 = vmul.f32 0.044715, %v16009_v38 }
 0xb81   : > { %v5875_v28 = vadd.f32 %v17206_v45, %v5843_v63  ;;  %v12944_v61 = vpop.eup %12943  ;;  %v5724_v44 = vmul.f32 0.5, %v15941_v10  ;;  %v5832_v11 = vadd.f32 1.0, %v12942_v15  ;;  %12955 = vtanh.f32 %v5797_v1 }
 0xb82   : > { %v12946_v25 = vpop.eup %12945  ;;  %6719 = vmatprep.mubr.bf16.mxu0 %v16021_v20  ;;  %6825 = vmatprep.mubr.bf16.mxu1 %v16021_v20  ;;  %v5831_v41 = vadd.f32 1.0, %v12944_v61  ;;  %v5742_v56 = vmul.f32 0.044715, %v16018_v6  ;;  %v5754_v54 = vmul.f32 %v5738_v4, %v16009_v38  ;;  %v5672_v29 = vmul.f32 %v15863_v13, %v5635_v35  ;;  %v12332_v4 = vld [vmem:[#allocation22 + $0xa48] ss:$16 sps:$4 sm:$0xff]  }
 0xb83   : > { %v16025_v18 = vpack.c.bf16 %v5875_v28, %v5871_v57  ;;  %v12948_v55 = vpop.eup %12947  ;;  %v5836_v10 = vadd.f32 1.0, %v12946_v25  ;;  %v5848_v23 = vmul.f32 %v5832_v11, %v15973_v7  ;;  %v5723_v37 = vmul.f32 0.5, %v15944_v48  ;;  %v12334_v48 = vld [vmem:[#allocation22 + $0xa4c] ss:$16 sps:$4 sm:$0xff]  }
 0xb84   : > { %v16038_v14 = vadd.f32 %v15878_v58, %v5668_v31  ;;  %v12950_v62 = vpop.eup %12949  ;;  %v5835_v47 = vadd.f32 1.0, %v12948_v55  ;;  %v5847_v13 = vmul.f32 %v5831_v41, %v5719_v51  ;;  %v5758_v32 = vmul.f32 %v5742_v56, %v16018_v6 }
 0xb85   : > { %6720 = vmatmul.mubr.bf16.vlgmr.msra.gmra.mrb[40].mxu0 %v16025_v18  ;;  %6826 = vmatmul.mubr.bf16.vlgmr.msra.gmra.mrb[40].mxu1 %v16025_v18  ;;  %v5770_v21 = vmul.f32 %v5754_v54, %v16009_v38  ;;  %v12952_v36 = vpop.eup %12951  ;;  %v5852_v7 = vmul.f32 %v5836_v10, %v5724_v44  ;;  %v5718_v57 = vmul.f32 0.5, %v15938_v5  ;;  %v5826_v9 = vadd.f32 1.0, %v12950_v62  ;;  %v12337_v54 = vld [vmem:[#allocation22 + $0xa64] ss:$16 sps:$4 sm:$0xff]  }
 0xb86   : > { %6741 = vmatpush1.bf16.msra.mxu0 %v12317_v16  ;;  %6847 = vmatpush1.bf16.msra.mxu1 %v12320_v43  ;;  %v16044_v12 = vadd.f32 %v15878_v58, %v5672_v29  ;;  %v17207_v63 = vunpack.c.l.bf16 %v15687_v34  ;;  %v5851_v17 = vmul.f32 %v5835_v47, %v5723_v37  ;;  %v5830_v24 = vadd.f32 1.0, %v12952_v36  ;;  %v12329_v58 = vld [vmem:[#allocation22 + $0xa40] ss:$16 sps:$4 sm:$0xff]   ;;  %v12340_v29 = vld [vmem:[#allocation22 + $0xa6c] ss:$16 sps:$4 sm:$0xff]  }
 0xb87   : > { %6742 = vmatprep.subr.bf16.mxu0 %v12325_v0  ;;  %6848 = vmatprep.subr.bf16.mxu1 %v12328_v27  ;;  %v5774_v46 = vmul.f32 %v5758_v32, %v16018_v6  ;;  %v17208_v40 = vunpack.c.h.bf16 %v15687_v34  ;;  %v17209_v16 = vunpack.c.l.bf16 %v15692_v19  ;;  %v5842_v28 = vmul.f32 %v5826_v9, %v15948_v53  ;;  %v12343_v32 = vld [vmem:[#allocation22 + $0xa84] ss:$16 sps:$4 sm:$0xff]  }
 0xb88   : > { %v5880_v3 = vadd.f32 %v17207_v63, %v5848_v23  ;;  %v5786_v5 = vadd.f32 %v5770_v21, %v16009_v38  ;;  %v17210_v1 = vunpack.c.h.bf16 %v15692_v19  ;;  %v5846_v15 = vmul.f32 %v5830_v24, %v5718_v57  ;;  %v12346_v21 = vld [vmem:[#allocation22 + $0xa8c] ss:$16 sps:$4 sm:$0xff]  }
 0xb89   : > { %v5884_v35 = vadd.f32 %v17208_v40, %v5852_v7  ;;  %v5879_v45 = vadd.f32 %v17209_v16, %v5847_v13  ;;  %v5713_v43 = vmul.f32 0.5, %v15962_v50  ;;  %v5790_v51 = vadd.f32 %v5774_v46, %v16018_v6  ;;  %v12349_v46 = vld [vmem:[#allocation22 + $0xaa4] ss:$16 sps:$4 sm:$0xff]   ;;  %v12352_v40 = vld [vmem:[#allocation22 + $0xaac] ss:$16 sps:$4 sm:$0xff]  }
 0xb8a   : > { %6743 = vmatpush1.bf16.msra.mxu0 %v12323_v59  ;;  %6849 = vmatpush1.bf16.msra.mxu1 %v12326_v49  ;;  %v5883_v31 = vadd.f32 %v17210_v1, %v5851_v17  ;;  %v17211_v53 = vunpack.c.l.bf16 %v15703_v30  ;;  %v5802_v0 = vmul.f32 0.7978846, %v5786_v5  ;;  %v5737_v27 = vmul.f32 0.044715, %v16038_v14  ;;  %v12954_v44 = vpop.eup %12953  ;;  %v12335_v59 = vld [vmem:[#allocation22 + $0xa60] ss:$16 sps:$4 sm:$0xff]  }
 0xb8b   : > { %v16059_v34 = vpack.c.bf16 %v5884_v35, %v5880_v3  ;;  %6744 = vmatprep.subr.bf16.mxu0 %v12331_v39  ;;  %6850 = vmatprep.subr.bf16.mxu1 %v12334_v48  ;;  %v17212_v19 = vunpack.c.h.bf16 %v15703_v30  ;;  %v5806_v50 = vmul.f32 0.7978846, %v5790_v51  ;;  %v5741_v41 = vmul.f32 0.044715, %v16044_v12  ;;  %v12956_v56 = vpop.eup %12955  ;;  %v12338_v49 = vld [vmem:[#allocation22 + $0xa68] ss:$16 sps:$4 sm:$0xff]  }
 0xb8c   : > { %v5874_v61 = vadd.f32 %v17211_v53, %v5842_v28  ;;  %v16064_v11 = vpack.c.bf16 %v5883_v31, %v5879_v45  ;;  %v5717_v55 = vmul.f32 0.5, %v15968_v8  ;;  %v5825_v10 = vadd.f32 1.0, %v12954_v44  ;;  %v12341_v3 = vld [vmem:[#allocation22 + $0xa80] ss:$16 sps:$4 sm:$0xff]   ;;  %v12344_v17 = vld [vmem:[#allocation22 + $0xa88] ss:$16 sps:$4 sm:$0xff]  }
 0xb8d   : > { %v5878_v25 = vadd.f32 %v17212_v19, %v5846_v15  ;;  %6729 = vmatprep.mubr.bf16.mxu0 %v16059_v34  ;;  %6835 = vmatprep.mubr.bf16.mxu1 %v16059_v34  ;;  %12957 = vtanh.f32 %v5802_v0  ;;  %v5753_v23 = vmul.f32 %v5737_v27, %v16038_v14  ;;  %v5829_v37 = vadd.f32 1.0, %v12956_v56  ;;  %v12347_v45 = vld [vmem:[#allocation22 + $0xaa0] ss:$16 sps:$4 sm:$0xff]   ;;  %v12350_v28 = vld [vmem:[#allocation22 + $0xaa8] ss:$16 sps:$4 sm:$0xff]  }
 0xb8e   : > { %6730 = vmatmul.mubr.bf16.gmra.mrb[44].mxu0 %v16064_v11  ;;  %6836 = vmatmul.mubr.bf16.gmra.mrb[44].mxu1 %v16064_v11  ;;  %12959 = vtanh.f32 %v5806_v50  ;;  %v5757_v62 = vmul.f32 %v5741_v41, %v16044_v12  ;;  %v5841_v47 = vmul.f32 %v5825_v10, %v5713_v43  ;;  %v5857_v8 = vunpack.c.l.bf16 %v15714_v2  ;;  %v12358_v1 = vld [vmem:[#allocation22 + $0xacc] ss:$16 sps:$4 sm:$0xff]   ;;  %v12356_v0 = vld [vmem:[#allocation22 + $0xac8] ss:$16 sps:$4 sm:$0xff]   ;;  %v12361_v19 = vld [vmem:[#allocation22 + $0xae4] ss:$16 sps:$4 sm:$0xff]  }
 0xb8f   : > { %v16075_v30 = vpack.c.bf16 %v5878_v25, %v5874_v61  ;;  %6745 = vmatpush1.bf16.msra.mxu0 %v12329_v58  ;;  %6851 = vmatpush1.bf16.msra.mxu1 %v12332_v4  ;;  %v5769_v13 = vmul.f32 %v5753_v23, %v16038_v14  ;;  %v5845_v36 = vmul.f32 %v5829_v37, %v5717_v55  ;;  %v5861_v7 = vunpack.c.h.bf16 %v15714_v2  ;;  %v12355_v58 = vld [vmem:[#allocation22 + $0xac4] ss:$16 sps:$4 sm:$0xff]   ;;  %v12353_v61 = vld [vmem:[#allocation22 + $0xac0] ss:$16 sps:$4 sm:$0xff]   ;;  %v12364_v25 = vld [vmem:[#allocation22 + $0xaec] ss:$16 sps:$4 sm:$0xff]  }
 0xb90   : > { %v5773_v39 = vmul.f32 %v5757_v62, %v16044_v12  ;;  %6746 = vmatprep.subr.bf16.mxu0 %v12337_v54  ;;  %6852 = vmatprep.subr.bf16.mxu1 %v12340_v29  ;;  %v5873_v48 = vadd.f32 %v5857_v8, %v5841_v47  ;;  %v5722_v31 = vmul.f32 0.5, %v16009_v38  ;;  %v5726_v43 = vmul.f32 0.5, %v16018_v6  ;;  %v12359_v6 = vld [vmem:[#allocation22 + $0xae0] ss:$16 sps:$4 sm:$0xff]   ;;  %v12362_v56 = vld [vmem:[#allocation22 + $0xae8] ss:$16 sps:$4 sm:$0xff]  }
 0xb91   : > { %6772 = vmatprep.mubr.bf16.mxu0 %v16075_v30  ;;  %6878 = vmatprep.mubr.bf16.mxu1 %v16075_v30  ;;  %v5785_v57 = vadd.f32 %v5769_v13, %v16038_v14  ;;  %v5877_v9 = vadd.f32 %v5861_v7, %v5845_v36  ;;  %v5866_v53 = vunpack.c.l.bf16 %v15720_v22  ;;  %v5870_v44 = vunpack.c.h.bf16 %v15720_v22  ;;  %v12367_v55 = vld [vmem:[#allocation22 + $0xb04] ss:$16 sps:$4 sm:$0xff]   ;;  %v12370_v10 = vld [vmem:[#allocation22 + $0xb0c] ss:$16 sps:$4 sm:$0xff]   ;;  %v12365_v47 = vld [vmem:[#allocation22 + $0xb00] ss:$16 sps:$4 sm:$0xff]  }
 0xb92   : > { %v5789_v63 = vadd.f32 %v5773_v39, %v16044_v12  ;;  %v5721_v22 = vmul.f32 0.5, %v16038_v14  ;;  %v5725_v37 = vmul.f32 0.5, %v16044_v12  ;;  %v12368_v8 = vld [vmem:[#allocation22 + $0xb08] ss:$16 sps:$4 sm:$0xff]   ;;  %v12376_v36 = vld [vmem:[#allocation22 + $0xb2c] ss:$16 sps:$4 sm:$0xff]  }
 0xb93   : > { %6747 = vmatpush1.bf16.msra.mxu0 %v12335_v59  ;;  %6853 = vmatpush1.bf16.msra.mxu1 %v12338_v49  ;;  %v5801_v24 = vmul.f32 0.7978846, %v5785_v57  ;;  %v16086_v2 = vpack.c.bf16 %v5877_v9, %v5873_v48  ;;  %v5865_v49 = vunpack.c.l.bf16 %v15726_v26  ;;  %v12371_v12 = vld [vmem:[#allocation22 + $0xb20] ss:$16 sps:$4 sm:$0xff]   ;;  %v12374_v39 = vld [vmem:[#allocation22 + $0xb28] ss:$16 sps:$4 sm:$0xff]  }
 0xb94   : > { %6748 = vmatprep.subr.bf16.mxu0 %v12343_v32  ;;  %6854 = vmatprep.subr.bf16.mxu1 %v12346_v21  ;;  %v5805_v35 = vmul.f32 0.7978846, %v5789_v63  ;;  %v5869_v32 = vunpack.c.h.bf16 %v15726_v26  ;;  %v12373_v21 = vld [vmem:[#allocation22 + $0xb24] ss:$16 sps:$4 sm:$0xff]   ;;  %v12382_v9 = vld [vmem:[#allocation22 + $0xb4c] ss:$16 sps:$4 sm:$0xff]  }
 0xb95   : > { %12961 = vtanh.f32 %v5801_v24  ;;  %v12379_v57 = vld [vmem:[#allocation22 + $0xb44] ss:$16 sps:$4 sm:$0xff]   ;;  %v12377_v63 = vld [vmem:[#allocation22 + $0xb40] ss:$16 sps:$4 sm:$0xff]   ;;  %v12380_v26 = vld [vmem:[#allocation22 + $0xb48] ss:$16 sps:$4 sm:$0xff]  }
 0xb96   : > { %12963 = vtanh.f32 %v5805_v35  ;;  %v12383_v24 = vld [vmem:[#allocation22 + $0xb60] ss:$16 sps:$4 sm:$0xff]   ;;  %v12394_v35 = vld [vmem:[#allocation22 + $0xb8c] ss:$16 sps:$4 sm:$0xff]  }
 0xb97   : > { %v12958_v16 = vpop.eup %12957  ;;  %6749 = vmatpush1.bf16.msra.mxu0 %v12341_v3  ;;  %6855 = vmatpush1.bf16.msra.mxu1 %v12344_v17  ;;  %v12385_v3 = vld [vmem:[#allocation22 + $0xb64] ss:$16 sps:$4 sm:$0xff]   ;;  %v12388_v17 = vld [vmem:[#allocation22 + $0xb6c] ss:$16 sps:$4 sm:$0xff]  }
 0xb98   : > { %v12960_v5 = vpop.eup %12959  ;;  %6750 = vmatprep.subr.bf16.mxu0 %v12349_v46  ;;  %6856 = vmatprep.subr.bf16.mxu1 %v12352_v40  ;;  %v5834_v15 = vadd.f32 1.0, %v12958_v16  ;;  %v12386_v46 = vld [vmem:[#allocation22 + $0xb68] ss:$16 sps:$4 sm:$0xff]   ;;  %v12391_v40 = vld [vmem:[#allocation22 + $0xb84] ss:$16 sps:$4 sm:$0xff]  }
 0xb99   : > { %v5838_v51 = vadd.f32 1.0, %v12960_v5  ;;  %v12389_v16 = vld [vmem:[#allocation22 + $0xb80] ss:$16 sps:$4 sm:$0xff]   ;;  %v12400_v5 = vld [vmem:[#allocation22 + $0xbac] ss:$16 sps:$4 sm:$0xff]  }
 0xb9a   : > { %v5850_v4 = vmul.f32 %v5834_v15, %v5722_v31  ;;  %v12403_v31 = vld [vmem:[#allocation22 + $0xbc4] ss:$16 sps:$4 sm:$0xff]   ;;  %v12406_v15 = vld [vmem:[#allocation22 + $0xbcc] ss:$16 sps:$4 sm:$0xff]  }
 0xb9b   : > { %6751 = vmatpush1.bf16.msra.mxu0 %v12347_v45  ;;  %6857 = vmatpush1.bf16.msra.mxu1 %v12350_v28  ;;  %v5854_v27 = vmul.f32 %v5838_v51, %v5726_v43  ;;  %v12392_v45 = vld [vmem:[#allocation22 + $0xb88] ss:$16 sps:$4 sm:$0xff]   ;;  %v12397_v28 = vld [vmem:[#allocation22 + $0xba4] ss:$16 sps:$4 sm:$0xff]   ;;  %v12401_v43 = vld [vmem:[#allocation22 + $0xbc0] ss:$16 sps:$4 sm:$0xff]  }
 0xb9c   : > { %6752 = vmatprep.subr.bf16.mxu0 %v12355_v58  ;;  %6858 = vmatprep.subr.bf16.mxu1 %v12358_v1  ;;  %v5882_v50 = vadd.f32 %v5866_v53, %v5850_v4  ;;  %v12395_v58 = vld [vmem:[#allocation22 + $0xba0] ss:$16 sps:$4 sm:$0xff]   ;;  %v12398_v1 = vld [vmem:[#allocation22 + $0xba8] ss:$16 sps:$4 sm:$0xff]   ;;  %v12409_v4 = vld [vmem:[#allocation22 + $0xbe4] ss:$16 sps:$4 sm:$0xff]  }
 0xb9d   : > { %v5886_v38 = vadd.f32 %v5870_v44, %v5854_v27  ;;  %v12404_v51 = vld [vmem:[#allocation22 + $0xbc8] ss:$16 sps:$4 sm:$0xff]   ;;  %v12412_v53 = vld [vmem:[#allocation22 + $0xbec] ss:$16 sps:$4 sm:$0xff]   ;;  %v12413_v27 = vld [vmem:[#allocation22 + $0xc00] ss:$16 sps:$4 sm:$0xff]  }
 0xb9e   : > { %v12415_v44 = vld [vmem:[#allocation22 + $0xc04] ss:$16 sps:$4 sm:$0xff]  }
 0xb9f   : > { %v12962_v41 = vpop.eup %12961  ;;  %6753 = vmatpush1.bf16.msra.mxu0 %v12353_v61  ;;  %6859 = vmatpush1.bf16.msra.mxu1 %v12356_v0  ;;  %v16092_v54 = vpack.c.bf16 %v5886_v38, %v5882_v50  ;;  %v12407_v61 = vld [vmem:[#allocation22 + $0xbe0] ss:$16 sps:$4 sm:$0xff]   ;;  %v12410_v0 = vld [vmem:[#allocation22 + $0xbe8] ss:$16 sps:$4 sm:$0xff]   ;;  %v12421_v50 = vld [vmem:[#allocation22 + $0xc24] ss:$16 sps:$4 sm:$0xff]  }
 0xba0   : > { %v12964_v29 = vpop.eup %12963  ;;  %6754 = vmatprep.subr.bf16.mxu0 %v12361_v19  ;;  %6860 = vmatprep.subr.bf16.mxu1 %v12364_v25  ;;  %v5833_v23 = vadd.f32 1.0, %v12962_v41  ;;  %v12416_v19 = vld [vmem:[#allocation22 + $0xc08] ss:$16 sps:$4 sm:$0xff]   ;;  %v12418_v25 = vld [vmem:[#allocation22 + $0xc0c] ss:$16 sps:$4 sm:$0xff]  }
 0xba1   : > { %v5837_v62 = vadd.f32 1.0, %v12964_v29  ;;  %v12424_v38 = vld [vmem:[#allocation22 + $0xc2c] ss:$16 sps:$4 sm:$0xff]   ;;  %v12419_v41 = vld [vmem:[#allocation22 + $0xc20] ss:$16 sps:$4 sm:$0xff]  }
 0xba2   : > { %v5849_v59 = vmul.f32 %v5833_v23, %v5721_v22 }
 0xba3   : > { %6755 = vmatpush1.bf16.msra.mxu0 %v12359_v6  ;;  %6861 = vmatpush1.bf16.msra.mxu1 %v12362_v56  ;;  %v5853_v13 = vmul.f32 %v5837_v62, %v5725_v37  ;;  %v12422_v6 = vld [vmem:[#allocation22 + $0xc28] ss:$16 sps:$4 sm:$0xff]  }
 0xba4   : > { %6756 = vmatprep.subr.bf16.mxu0 %v12367_v55  ;;  %6862 = vmatprep.subr.bf16.mxu1 %v12370_v10  ;;  %v5881_v7 = vadd.f32 %v5865_v49, %v5849_v59  ;;  %v6025_v56 = vld [vmem:[#allocation23 + $0x8] sm:$0xf] }
 0xba5   : > { %v5885_v14 = vadd.f32 %v5869_v32, %v5853_v13  ;;  %v6030_v29 = vrot.slane %v6025_v56, %v17195_v52  ;;  %v6038_v55 = vrot.slane %v6025_v56, %v17196_v60  ;;  %v6034_v10 = vrot.slane %v6025_v56, %v17197_v42 }
 0xba6   : > { %v6042_v49 = vrot.slane %v6025_v56, %v17198_v33 }
 0xba7   : > { %6757 = vmatpush1.bf16.msra.mxu0 %v12365_v47  ;;  %6863 = vmatpush1.bf16.msra.mxu1 %v12368_v8  ;;  %v16098_v48 = vpack.c.bf16 %v5885_v14, %v5881_v7 }
 0xba8   : > { %6758 = vmatprep.subr.bf16.mxu0 %v12373_v21  ;;  %6864 = vmatprep.subr.bf16.mxu1 %v12376_v36 }
 0xbab   : > { %6759 = vmatpush1.bf16.msra.mxu0 %v12371_v12  ;;  %6865 = vmatpush1.bf16.msra.mxu1 %v12374_v39 }
 0xbac   : > { %6760 = vmatprep.subr.bf16.mxu0 %v12379_v57  ;;  %6866 = vmatprep.subr.bf16.mxu1 %v12382_v9 }
 0xbaf   : > { %6761 = vmatpush1.bf16.msra.mxu0 %v12377_v63  ;;  %6867 = vmatpush1.bf16.msra.mxu1 %v12380_v26 }
 0xbb0   : > { %6762 = vmatprep.subr.bf16.mxu0 %v12385_v3  ;;  %6868 = vmatprep.subr.bf16.mxu1 %v12388_v17 }
 0xbb3   : > { %6763 = vmatpush1.bf16.msra.mxu0 %v12383_v24  ;;  %6869 = vmatpush1.bf16.msra.mxu1 %v12386_v46 }
 0xbb4   : > { %6764 = vmatprep.subr.bf16.mxu0 %v12391_v40  ;;  %6870 = vmatprep.subr.bf16.mxu1 %v12394_v35 }
 0xbb7   : > { %6765 = vmatpush1.bf16.msra.mxu0 %v12389_v16  ;;  %6871 = vmatpush1.bf16.msra.mxu1 %v12392_v45 }
 0xbb8   : > { %6766 = vmatprep.subr.bf16.mxu0 %v12397_v28  ;;  %6872 = vmatprep.subr.bf16.mxu1 %v12400_v5 }
 0xbbb   : > { %6767 = vmatpush1.bf16.msra.mxu0 %v12395_v58  ;;  %6873 = vmatpush1.bf16.msra.mxu1 %v12398_v1 }
 0xbbc   : > { %6768 = vmatprep.subr.bf16.mxu0 %v12403_v31  ;;  %6874 = vmatprep.subr.bf16.mxu1 %v12406_v15 }
 0xbbf   : > { %6769 = vmatpush1.bf16.msra.mxu0 %v12401_v43  ;;  %6875 = vmatpush1.bf16.msra.mxu1 %v12404_v51 }
 0xbc0   : > { %6770 = vmatprep.subr.bf16.mxu0 %v12409_v4  ;;  %6876 = vmatprep.subr.bf16.mxu1 %v12412_v53 }
 0xbc3   : > { %6771 = vmatpush1.bf16.msra.mxu0 %v12407_v61  ;;  %6877 = vmatpush1.bf16.msra.mxu1 %v12410_v0 }
 0xbc4   : > { %8065 = vmatprep.subr.bf16.mxu0 %v12415_v44  ;;  %8171 = vmatprep.subr.bf16.mxu1 %v12418_v25 }
 0xbc6   : > { %6773 = vmatmul.mubr.bf16.vlgmr.msra.gmra.mrb[40].mxu0 %v16086_v2  ;;  %6879 = vmatmul.mubr.bf16.vlgmr.msra.gmra.mrb[40].mxu1 %v16086_v2 }
 0xbc7   : > { %6782 = vmatprep.mubr.bf16.mxu0 %v16092_v54  ;;  %6888 = vmatprep.mubr.bf16.mxu1 %v16092_v54 }
 0xbc8   : > { %8066 = vmatpush1.bf16.msra.mxu0 %v12413_v27  ;;  %8172 = vmatpush1.bf16.msra.mxu1 %v12416_v19 }
 0xbc9   : > { %8067 = vmatprep.subr.bf16.mxu0 %v12421_v50  ;;  %8173 = vmatprep.subr.bf16.mxu1 %v12424_v38 }
 0xbcc   : > { %8068 = vmatpush1.bf16.msra.mxu0 %v12419_v41  ;;  %8174 = vmatpush1.bf16.msra.mxu1 %v12422_v6 }
 0xbce   : > { %6783 = vmatmul.mubr.bf16.gmra.mrb[44].mxu0 %v16098_v48  ;;  %6889 = vmatmul.mubr.bf16.gmra.mrb[44].mxu1 %v16098_v48 }
 0xc99   : > { %v6774_v22 = vpop.f32.mrb[40].mxu0  ;;  %v6880_v23 = vpop.f32.mrb[40].mxu1 }
 0xc9a   : > { %v16109_v37 = vadd.f32 %v6774_v22, %v6030_v29  ;;  %v16111_v62 = vadd.f32 %v6880_v23, %v6038_v55  ;;  %v6776_v59 = vpop.f32.mrb[41].mxu0  ;;  %v6882_v47 = vpop.f32.mrb[41].mxu1 }
 0xc9b   : > { %v16114_v8 = vadd.f32 %v6776_v59, %v6034_v10  ;;  %v6778_v13 = vpop.f32.mrb[42].mxu0  ;;  %v6884_v32 = vpop.f32.mrb[42].mxu1  ;;  %v16128_v63 = vadd.f32 %v6882_v47, %v6042_v49 }
 0xc9c   : > { %v6927_v21 = vmul.f32 %v16109_v37, %v16109_v37  ;;  %v16118_v36 = vadd.f32 %v6778_v13, %v6030_v29  ;;  %v6780_v7 = vpop.f32.mrb[43].mxu0  ;;  %v6886_v14 = vpop.f32.mrb[43].mxu1  ;;  %v6929_v9 = vmul.f32 %v16111_v62, %v16111_v62  ;;  %v16132_v3 = vadd.f32 %v6884_v32, %v6038_v55 }
 0xc9d   : > { %v6903_v12 = vadd.f32 %v16114_v8, %v16109_v37  ;;  %v6928_v39 = vmul.f32 %v16114_v8, %v16114_v8  ;;  %v16124_v57 = vadd.f32 %v6780_v7, %v6034_v10  ;;  %v16139_v35 = vadd.f32 %v6886_v14, %v6042_v49 }
 0xc9e   : > { %v6931_v26 = vmul.f32 %v16118_v36, %v16118_v36  ;;  %v6933_v4 = vmul.f32 %v16132_v3, %v16132_v3  ;;  %v6930_v44 = vmul.f32 %v16128_v63, %v16128_v63 }
 0xc9f   : > { %v6908_v17 = vadd.f32 %v16124_v57, %v16118_v36  ;;  %v6932_v24 = vmul.f32 %v16124_v57, %v16124_v57  ;;  %v6904_v46 = vadd.f32 %v16111_v62, %v6903_v12  ;;  %v6943_v40 = vadd.f32 %v6928_v39, %v6927_v21 }
 0xca0   : > { %v6934_v6 = vmul.f32 %v16139_v35, %v16139_v35 }
 0xca1   : > { %v6784_v16 = vpop.f32.mrb[44].mxu0  ;;  %v6890_v45 = vpop.f32.mrb[44].mxu1  ;;  %v6905_v28 = vadd.f32 %v16128_v63, %v6904_v46  ;;  %v6909_v5 = vadd.f32 %v16132_v3, %v6908_v17  ;;  %v6944_v58 = vadd.f32 %v6943_v40, %v6929_v9  ;;  %v6948_v51 = vadd.f32 %v6932_v24, %v6931_v26 }
 0xca2   : > { %v16143_v1 = vadd.f32 %v6784_v16, %v6030_v29  ;;  %v16145_v31 = vadd.f32 %v6890_v45, %v6038_v55  ;;  %v6786_v15 = vpop.f32.mrb[45].mxu0  ;;  %v6892_v43 = vpop.f32.mrb[45].mxu1 }
 0xca3   : > { %v16149_v53 = vadd.f32 %v6786_v15, %v6034_v10  ;;  %v6788_v61 = vpop.f32.mrb[46].mxu0  ;;  %v6894_v0 = vpop.f32.mrb[46].mxu1  ;;  %6906 = vadd.xlane.f32.xlu0 %v6905_v28  ;;  %v6910_v27 = vadd.f32 %v16139_v35, %v6909_v5  ;;  %v16156_v25 = vadd.f32 %v6892_v43, %v6042_v49  ;;  %v6945_v59 = vadd.f32 %v6944_v58, %v6930_v44  ;;  %v12425_v5 = vld [vmem:[#allocation22 + $0xc40] ss:$16 sps:$4 sm:$0xff]   ;;  %v12427_v58 = vld [vmem:[#allocation22 + $0xc44] ss:$16 sps:$4 sm:$0xff]  }
 0xca4   : > { %v6935_v19 = vmul.f32 %v16143_v1, %v16143_v1  ;;  %v16158_v50 = vadd.f32 %v6788_v61, %v6030_v29  ;;  %v6790_v38 = vpop.f32.mrb[47].mxu0  ;;  %v6896_v41 = vpop.f32.mrb[47].mxu1  ;;  %v6937_v47 = vmul.f32 %v16145_v31, %v16145_v31  ;;  %v16172_v13 = vadd.f32 %v6894_v0, %v6038_v55  ;;  %v12428_v15 = vld [vmem:[#allocation22 + $0xc48] ss:$16 sps:$4 sm:$0xff]   ;;  %v12430_v43 = vld [vmem:[#allocation22 + $0xc4c] ss:$16 sps:$4 sm:$0xff]   ;;  %8069 = vmatprep.subr.bf16.mxu0 %v12427_v58 }
 0xca5   : > { %v6913_v56 = vadd.f32 %v16149_v53, %v16143_v1  ;;  %v6936_v22 = vmul.f32 %v16149_v53, %v16149_v53  ;;  %v16166_v23 = vadd.f32 %v6790_v38, %v6034_v10  ;;  %6911 = vadd.xlane.f32.xlu1 %v6910_v27  ;;  %v6949_v32 = vadd.f32 %v6948_v51, %v6933_v4  ;;  %v12431_v51 = vld [vmem:[#allocation22 + $0xc60] ss:$16 sps:$4 sm:$0xff]   ;;  %v12433_v4 = vld [vmem:[#allocation22 + $0xc64] ss:$16 sps:$4 sm:$0xff]   ;;  %v12434_v61 = vld [vmem:[#allocation22 + $0xc68] ss:$16 sps:$4 sm:$0xff]  }
 0xca6   : > { %v6939_v29 = vmul.f32 %v16158_v50, %v16158_v50  ;;  %v16179_v12 = vadd.f32 %v6896_v41, %v6042_v49  ;;  %v6941_v24 = vmul.f32 %v16172_v13, %v16172_v13  ;;  %v6938_v40 = vmul.f32 %v16156_v25, %v16156_v25  ;;  %8175 = vmatprep.subr.bf16.mxu1 %v12430_v43  ;;  %v12436_v0 = vld [vmem:[#allocation22 + $0xc6c] ss:$16 sps:$4 sm:$0xff]   ;;  %v12439_v27 = vld [vmem:[#allocation22 + $0xc84] ss:$16 sps:$4 sm:$0xff]   ;;  %v12440_v38 = vld [vmem:[#allocation22 + $0xc88] ss:$16 sps:$4 sm:$0xff]  }
 0xca7   : > { %v6918_v21 = vadd.f32 %v16166_v23, %v16158_v50  ;;  %v6940_v7 = vmul.f32 %v16166_v23, %v16166_v23  ;;  %6946 = vadd.xlane.f32.xlu0 %v6945_v59  ;;  %v6914_v10 = vadd.f32 %v16145_v31, %v6913_v56  ;;  %v6953_v14 = vadd.f32 %v6936_v22, %v6935_v19  ;;  %v12442_v44 = vld [vmem:[#allocation22 + $0xc8c] ss:$16 sps:$4 sm:$0xff]   ;;  %v12437_v19 = vld [vmem:[#allocation22 + $0xc80] ss:$16 sps:$4 sm:$0xff]   ;;  %v12446_v56 = vld [vmem:[#allocation22 + $0xca8] ss:$16 sps:$4 sm:$0xff]  }
 0xca8   : > { %v6950_v39 = vadd.f32 %v6949_v32, %v6934_v6  ;;  %v6942_v45 = vmul.f32 %v16179_v12, %v16179_v12  ;;  %8070 = vmatpush1.bf16.msra.mxu0 %v12425_v5  ;;  %8176 = vmatpush1.bf16.msra.mxu1 %v12428_v15  ;;  %v12443_v41 = vld [vmem:[#allocation22 + $0xca0] ss:$16 sps:$4 sm:$0xff]   ;;  %v12445_v6 = vld [vmem:[#allocation22 + $0xca4] ss:$16 sps:$4 sm:$0xff]   ;;  %v12448_v22 = vld [vmem:[#allocation22 + $0xcac] ss:$16 sps:$4 sm:$0xff]  }
 0xca9   : > { %v6915_v9 = vadd.f32 %v16156_v25, %v6914_v10  ;;  %v6919_v26 = vadd.f32 %v16172_v13, %v6918_v21  ;;  %v6954_v55 = vadd.f32 %v6953_v14, %v6937_v47  ;;  %v6958_v17 = vadd.f32 %v6940_v7, %v6939_v29  ;;  %8071 = vmatprep.subr.bf16.mxu0 %v12433_v4  ;;  %v12451_v59 = vld [vmem:[#allocation22 + $0xcc4] ss:$16 sps:$4 sm:$0xff]   ;;  %v12454_v47 = vld [vmem:[#allocation22 + $0xccc] ss:$16 sps:$4 sm:$0xff]   ;;  %v12449_v29 = vld [vmem:[#allocation22 + $0xcc0] ss:$16 sps:$4 sm:$0xff]  }
 0xcaa   : > { %6951 = vadd.xlane.f32.xlu1 %v6950_v39  ;;  %8177 = vmatprep.subr.bf16.mxu1 %v12436_v0  ;;  %v12452_v32 = vld [vmem:[#allocation22 + $0xcc8] ss:$16 sps:$4 sm:$0xff]   ;;  %v12457_v21 = vld [vmem:[#allocation22 + $0xce4] ss:$16 sps:$4 sm:$0xff]   ;;  %v12460_v7 = vld [vmem:[#allocation22 + $0xcec] ss:$16 sps:$4 sm:$0xff]  }
 0xcab   : > { %6916 = vadd.xlane.f32.xlu0 %v6915_v9  ;;  %v6920_v46 = vadd.f32 %v16179_v12, %v6919_v26  ;;  %v6959_v16 = vadd.f32 %v6958_v17, %v6941_v24  ;;  %v6955_v49 = vadd.f32 %v6954_v55, %v6938_v40  ;;  %v12455_v10 = vld [vmem:[#allocation22 + $0xce0] ss:$16 sps:$4 sm:$0xff]   ;;  %v12458_v14 = vld [vmem:[#allocation22 + $0xce8] ss:$16 sps:$4 sm:$0xff]   ;;  %v12463_v39 = vld [vmem:[#allocation22 + $0xd04] ss:$16 sps:$4 sm:$0xff]  }
 0xcac   : > { %8072 = vmatpush1.bf16.msra.mxu0 %v12431_v51  ;;  %8178 = vmatpush1.bf16.msra.mxu1 %v12434_v61  ;;  %v12466_v9 = vld [vmem:[#allocation22 + $0xd0c] ss:$16 sps:$4 sm:$0xff]   ;;  %v12461_v26 = vld [vmem:[#allocation22 + $0xd00] ss:$16 sps:$4 sm:$0xff]   ;;  %v12464_v55 = vld [vmem:[#allocation22 + $0xd08] ss:$16 sps:$4 sm:$0xff]  }
 0xcad   : > { %v6960_v28 = vadd.f32 %v6959_v16, %v6942_v45  ;;  %8073 = vmatprep.subr.bf16.mxu0 %v12439_v27  ;;  %8179 = vmatprep.subr.bf16.mxu1 %v12442_v44  ;;  %v12469_v17 = vld [vmem:[#allocation22 + $0xd24] ss:$16 sps:$4 sm:$0xff]   ;;  %v12472_v24 = vld [vmem:[#allocation22 + $0xd2c] ss:$16 sps:$4 sm:$0xff]   ;;  %v12470_v40 = vld [vmem:[#allocation22 + $0xd28] ss:$16 sps:$4 sm:$0xff]  }
 0xcae   : > { %6921 = vadd.xlane.f32.xlu1 %v6920_v46  ;;  %v12467_v46 = vld [vmem:[#allocation22 + $0xd20] ss:$16 sps:$4 sm:$0xff]   ;;  %v12475_v16 = vld [vmem:[#allocation22 + $0xd44] ss:$16 sps:$4 sm:$0xff]   ;;  %v12484_v58 = vld [vmem:[#allocation22 + $0xd6c] ss:$16 sps:$4 sm:$0xff]  }
 0xcaf   : > { %6956 = vadd.xlane.f32.xlu0 %v6955_v49  ;;  %v12478_v49 = vld [vmem:[#allocation22 + $0xd4c] ss:$16 sps:$4 sm:$0xff]   ;;  %v12473_v45 = vld [vmem:[#allocation22 + $0xd40] ss:$16 sps:$4 sm:$0xff]   ;;  %v12481_v5 = vld [vmem:[#allocation22 + $0xd64] ss:$16 sps:$4 sm:$0xff]  }
 0xcb0   : > { %8074 = vmatpush1.bf16.msra.mxu0 %v12437_v19  ;;  %8180 = vmatpush1.bf16.msra.mxu1 %v12440_v38  ;;  %v12479_v15 = vld [vmem:[#allocation22 + $0xd60] ss:$16 sps:$4 sm:$0xff]   ;;  %v12482_v43 = vld [vmem:[#allocation22 + $0xd68] ss:$16 sps:$4 sm:$0xff]   ;;  %v12487_v51 = vld [vmem:[#allocation22 + $0xd84] ss:$16 sps:$4 sm:$0xff]  }
 0xcb1   : > { %8075 = vmatprep.subr.bf16.mxu0 %v12445_v6  ;;  %8181 = vmatprep.subr.bf16.mxu1 %v12448_v22  ;;  %v12490_v4 = vld [vmem:[#allocation22 + $0xd8c] ss:$16 sps:$4 sm:$0xff]   ;;  %v12485_v61 = vld [vmem:[#allocation22 + $0xd80] ss:$16 sps:$4 sm:$0xff]   ;;  %v12488_v0 = vld [vmem:[#allocation22 + $0xd88] ss:$16 sps:$4 sm:$0xff]  }
 0xcb2   : > { %6961 = vadd.xlane.f32.xlu1 %v6960_v28  ;;  %v12476_v28 = vld [vmem:[#allocation22 + $0xd48] ss:$16 sps:$4 sm:$0xff]   ;;  %v12493_v27 = vld [vmem:[#allocation22 + $0xda4] ss:$16 sps:$4 sm:$0xff]   ;;  %v12496_v44 = vld [vmem:[#allocation22 + $0xdac] ss:$16 sps:$4 sm:$0xff]  }
 0xcb3   : > { %v12491_v19 = vld [vmem:[#allocation22 + $0xda0] ss:$16 sps:$4 sm:$0xff]   ;;  %v12494_v38 = vld [vmem:[#allocation22 + $0xda8] ss:$16 sps:$4 sm:$0xff]   ;;  %v12502_v6 = vld [vmem:[#allocation22 + $0xdcc] ss:$16 sps:$4 sm:$0xff]  }
 0xcb4   : > { %8076 = vmatpush1.bf16.msra.mxu0 %v12443_v41  ;;  %8182 = vmatpush1.bf16.msra.mxu1 %v12446_v56  ;;  %v12499_v41 = vld [vmem:[#allocation22 + $0xdc4] ss:$16 sps:$4 sm:$0xff]   ;;  %v12497_v56 = vld [vmem:[#allocation22 + $0xdc0] ss:$16 sps:$4 sm:$0xff]   ;;  %v12500_v22 = vld [vmem:[#allocation22 + $0xdc8] ss:$16 sps:$4 sm:$0xff]  }
 0xcb5   : > { %8077 = vmatprep.subr.bf16.mxu0 %v12451_v59  ;;  %8183 = vmatprep.subr.bf16.mxu1 %v12454_v47  ;;  %v12505_v59 = vld [vmem:[#allocation22 + $0xde4] ss:$16 sps:$4 sm:$0xff]   ;;  %v12508_v47 = vld [vmem:[#allocation22 + $0xdec] ss:$16 sps:$4 sm:$0xff]  }
 0xcb8   : > { %8078 = vmatpush1.bf16.msra.mxu0 %v12449_v29  ;;  %8184 = vmatpush1.bf16.msra.mxu1 %v12452_v32  ;;  %v12503_v29 = vld [vmem:[#allocation22 + $0xde0] ss:$16 sps:$4 sm:$0xff]   ;;  %v12506_v32 = vld [vmem:[#allocation22 + $0xde8] ss:$16 sps:$4 sm:$0xff]  }
 0xcb9   : > { %8079 = vmatprep.subr.bf16.mxu0 %v12457_v21  ;;  %8185 = vmatprep.subr.bf16.mxu1 %v12460_v7  ;;  %v12511_v21 = vld [vmem:[#allocation22 + $0xe04] ss:$16 sps:$4 sm:$0xff]   ;;  %v12514_v7 = vld [vmem:[#allocation22 + $0xe0c] ss:$16 sps:$4 sm:$0xff]  }
 0xcbc   : > { %8080 = vmatpush1.bf16.msra.mxu0 %v12455_v10  ;;  %8186 = vmatpush1.bf16.msra.mxu1 %v12458_v14 }
 0xcbd   : > { %8081 = vmatprep.subr.bf16.mxu0 %v12463_v39  ;;  %8187 = vmatprep.subr.bf16.mxu1 %v12466_v9 }
 0xcc0   : > { %8082 = vmatpush1.bf16.msra.mxu0 %v12461_v26  ;;  %8188 = vmatpush1.bf16.msra.mxu1 %v12464_v55 }
 0xcc1   : > { %8083 = vmatprep.subr.bf16.mxu0 %v12469_v17  ;;  %8189 = vmatprep.subr.bf16.mxu1 %v12472_v24 }
 0xcc4   : > { %8084 = vmatpush1.bf16.msra.mxu0 %v12467_v46  ;;  %8190 = vmatpush1.bf16.msra.mxu1 %v12470_v40 }
 0xcc5   : > { %8085 = vmatprep.subr.bf16.mxu0 %v12475_v16  ;;  %8191 = vmatprep.subr.bf16.mxu1 %v12478_v49 }
 0xcc8   : > { %8086 = vmatpush1.bf16.msra.mxu0 %v12473_v45  ;;  %8192 = vmatpush1.bf16.msra.mxu1 %v12476_v28 }
 0xcc9   : > { %8087 = vmatprep.subr.bf16.mxu0 %v12481_v5  ;;  %8193 = vmatprep.subr.bf16.mxu1 %v12484_v58 }
 0xccc   : > { %8088 = vmatpush1.bf16.msra.mxu0 %v12479_v15  ;;  %8194 = vmatpush1.bf16.msra.mxu1 %v12482_v43 }
 0xccd   : > { %8089 = vmatprep.subr.bf16.mxu0 %v12487_v51  ;;  %8195 = vmatprep.subr.bf16.mxu1 %v12490_v4 }
 0xcd0   : > { %8090 = vmatpush1.bf16.msra.mxu0 %v12485_v61  ;;  %8196 = vmatpush1.bf16.msra.mxu1 %v12488_v0  ;;  %v6900_v0 = vld [vmem:[#allocation25 + $0x8] sm:$0xf] }
 0xcd1   : > { %8091 = vmatprep.subr.bf16.mxu0 %v12493_v27  ;;  %8197 = vmatprep.subr.bf16.mxu1 %v12496_v44  ;;  %v7234_v27 = vunpack.c.l.bf16 %v16021_v20  ;;  %v7238_v44 = vunpack.c.h.bf16 %v16021_v20 }
 0xcd4   : > { %8092 = vmatpush1.bf16.msra.mxu0 %v12491_v19  ;;  %8198 = vmatpush1.bf16.msra.mxu1 %v12494_v38  ;;  %v7233_v19 = vunpack.c.l.bf16 %v16025_v18 }
 0xcd5   : > { %8093 = vmatprep.subr.bf16.mxu0 %v12499_v41  ;;  %8199 = vmatprep.subr.bf16.mxu1 %v12502_v6  ;;  %v6902_v6 = vld [vmem:[#allocation26 + $0x8] sm:$0xf] }
 0xcd8   : > { %8094 = vmatpush1.bf16.msra.mxu0 %v12497_v56  ;;  %8200 = vmatpush1.bf16.msra.mxu1 %v12500_v22 }
 0xcd9   : > { %8095 = vmatprep.subr.bf16.mxu0 %v12505_v59  ;;  %8201 = vmatprep.subr.bf16.mxu1 %v12508_v47 }
 0xcdc   : > { %8096 = vmatpush1.bf16.msra.mxu0 %v12503_v29  ;;  %8202 = vmatpush1.bf16.msra.mxu1 %v12506_v32 }
 0xcdd   : > { %8118 = vmatprep.subr.bf16.mxu0 %v12511_v21  ;;  %8224 = vmatprep.subr.bf16.mxu1 %v12514_v7 }
 0xd30   : > { %v6907_v10 = vpop.xlane.xlu0 %6906 }
 0xd31   : > { %v16190_v14 = vmul.f32 0.001953125, %v6907_v10  ;;  %v16215_v10 = vrot.slane %v6900_v0, %v17197_v42 }
 0xd32   : > { %v6912_v39 = vpop.xlane.xlu1 %6911 }
 0xd33   : > { %v16192_v9 = vmul.f32 0.001953125, %v6912_v39  ;;  %v6967_v55 = vmul.f32 %v16190_v14, %v16190_v14 }
 0xd34   : > { %v6947_v26 = vpop.xlane.xlu0 %6946 }
 0xd35   : > { %v6963_v17 = vmul.f32 0.001953125, %v6947_v26  ;;  %v6968_v40 = vmul.f32 %v16192_v9, %v16192_v9 }
 0xd37   : > { %v6971_v24 = vsub.f32 %v6963_v17, %v6967_v55  ;;  %v6952_v46 = vpop.xlane.xlu1 %6951  ;;  %v16220_v17 = vrot.slane %v6902_v6, %v17197_v42 }
 0xd38   : > { %v6964_v16 = vmul.f32 0.001953125, %v6952_v46  ;;  %v6917_v49 = vpop.xlane.xlu0 %6916  ;;  %v16226_v46 = vrot.slane %v6900_v0, %v17198_v33 }
 0xd39   : > { %v6991_v45 = vadd.f32 1e-05, %v6971_v24  ;;  %v16198_v28 = vmul.f32 0.001953125, %v6917_v49  ;;  %v16223_v24 = vrot.slane %v6900_v0, %v17195_v52  ;;  %v16235_v49 = vrot.slane %v6900_v0, %v17196_v60 }
 0xd3a   : > { %v6972_v5 = vsub.f32 %v6964_v16, %v6968_v40  ;;  %v16229_v40 = vrot.slane %v6902_v6, %v17195_v52  ;;  %v16232_v16 = vrot.slane %v6902_v6, %v17198_v33  ;;  %v6980_v0 = vsub.f32 %v16124_v57, %v16192_v9 }
 0xd3b   : > { %12965 = vrsqrt.f32 %v6991_v45  ;;  %v6922_v58 = vpop.xlane.xlu1 %6921  ;;  %v6969_v4 = vmul.f32 %v16198_v28, %v16198_v28  ;;  %v6975_v45 = vsub.f32 %v16109_v37, %v16190_v14  ;;  %v6984_v57 = vsub.f32 %v16149_v53, %v16198_v28 }
 0xd3c   : > { %v6992_v15 = vadd.f32 1e-05, %v6972_v5  ;;  %v16200_v43 = vmul.f32 0.001953125, %v6922_v58  ;;  %v6957_v51 = vpop.xlane.xlu0 %6956  ;;  %v6976_v5 = vsub.f32 %v16114_v8, %v16190_v14  ;;  %v6978_v58 = vsub.f32 %v16128_v63, %v16190_v14 }
 0xd3d   : > { %v6965_v61 = vmul.f32 0.001953125, %v6957_v51  ;;  %v6981_v63 = vsub.f32 %v16132_v3, %v16192_v9  ;;  %v6986_v3 = vsub.f32 %v16156_v25, %v16198_v28 }
 0xd3e   : > { %12967 = vrsqrt.f32 %v6992_v15  ;;  %v6970_v47 = vmul.f32 %v16200_v43, %v16200_v43 }
 0xd3f   : > { %v6973_v38 = vsub.f32 %v6965_v61, %v6969_v4  ;;  %v6962_v41 = vpop.xlane.xlu1 %6961  ;;  %v6977_v4 = vsub.f32 %v16111_v62, %v16190_v14  ;;  %v6979_v61 = vsub.f32 %v16118_v36, %v16192_v9  ;;  %v6983_v62 = vsub.f32 %v16143_v1, %v16198_v28 }
 0xd40   : > { %v6966_v29 = vmul.f32 0.001953125, %v6962_v41 }
 0xd41   : > { %v6993_v7 = vadd.f32 1e-05, %v6973_v38  ;;  %v16250_v38 = vrot.slane %v6902_v6, %v17196_v60  ;;  %v6985_v6 = vsub.f32 %v16145_v31, %v16198_v28 }
 0xd42   : > { %v6974_v55 = vsub.f32 %v6966_v29, %v6970_v47  ;;  %v6982_v47 = vsub.f32 %v16139_v35, %v16192_v9 }
 0xd43   : > { %12969 = vrsqrt.f32 %v6993_v7 }
 0xd44   : > { %v6994_v15 = vadd.f32 1e-05, %v6974_v55 }
 0xd45   : > { %v12966_v51 = vpop.eup %12965 }
 0xd46   : > { %12971 = vrsqrt.f32 %v6994_v15  ;;  %v7000_v37 = vmul.f32 %v12966_v51, %v6976_v5  ;;  %v6999_v8 = vmul.f32 %v12966_v51, %v6975_v45  ;;  %v7002_v41 = vmul.f32 %v12966_v51, %v6978_v58 }
 0xd47   : > { %v7001_v36 = vmul.f32 %v12966_v51, %v6977_v4 }
 0xd48   : > { %v12968_v14 = vpop.eup %12967  ;;  %v7037_v29 = vmul.f32 %v16215_v10, %v7000_v37  ;;  %v7036_v7 = vmul.f32 %v16223_v24, %v6999_v8  ;;  %v7039_v5 = vmul.f32 %v16226_v46, %v7002_v41 }
 0xd49   : > { %v7004_v55 = vmul.f32 %v12968_v14, %v6980_v0  ;;  %v7003_v35 = vmul.f32 %v12968_v14, %v6979_v61  ;;  %v7005_v9 = vmul.f32 %v12968_v14, %v6981_v63  ;;  %v16270_v53 = vmul.f32 %v16235_v49, %v7001_v36 }
 0xd4a   : > { %v7074_v1 = vadd.f32 %v16220_v17, %v7037_v29  ;;  %v7073_v45 = vadd.f32 %v16229_v40, %v7036_v7  ;;  %v7006_v51 = vmul.f32 %v12968_v14, %v6982_v47  ;;  %v6987_v61 = vsub.f32 %v16158_v50, %v16200_v43 }
 0xd4b   : > { %v7041_v58 = vmul.f32 %v16215_v10, %v7004_v55  ;;  %v7040_v15 = vmul.f32 %v16223_v24, %v7003_v35  ;;  %v16275_v4 = vmul.f32 %v16235_v49, %v7005_v9  ;;  %v6988_v0 = vsub.f32 %v16166_v23, %v16200_v43 }
 0xd4c   : > { %v7106_v37 = vmul.f32 0.044715, %v7074_v1  ;;  %v7105_v8 = vmul.f32 0.044715, %v7073_v45  ;;  %v6989_v63 = vsub.f32 %v16172_v13, %v16200_v43  ;;  %v6990_v36 = vsub.f32 %v16179_v12, %v16200_v43 }
 0xd4d   : > { %v16281_v41 = vpop.eup %12969  ;;  %v7078_v47 = vadd.f32 %v16220_v17, %v7041_v58  ;;  %v7077_v14 = vadd.f32 %v16229_v40, %v7040_v15  ;;  %v7043_v9 = vmul.f32 %v16226_v46, %v7006_v51  ;;  %v16293_v26 = vadd.f32 %v16232_v16, %v7039_v5 }
 0xd4e   : > { %v7122_v29 = vmul.f32 %v7106_v37, %v7074_v1  ;;  %v7121_v7 = vmul.f32 %v7105_v8, %v7073_v45  ;;  %v7008_v50 = vmul.f32 %v16281_v41, %v6984_v57  ;;  %v7007_v23 = vmul.f32 %v16281_v41, %v6983_v62 }
 0xd4f   : > { %v7110_v55 = vmul.f32 0.044715, %v7078_v47  ;;  %v7109_v35 = vmul.f32 0.044715, %v7077_v14 }
 0xd50   : > { %v16295_v39 = vpop.eup %12971  ;;  %v7138_v21 = vmul.f32 %v7122_v29, %v7074_v1  ;;  %v7137_v32 = vmul.f32 %v7121_v7, %v7073_v45  ;;  %v7045_v58 = vmul.f32 %v16215_v10, %v7008_v50  ;;  %v7044_v15 = vmul.f32 %v16223_v24, %v7007_v23 }
 0xd51   : > { %v7126_v37 = vmul.f32 %v7110_v55, %v7078_v47  ;;  %v7125_v8 = vmul.f32 %v7109_v35, %v7077_v14  ;;  %v7012_v57 = vmul.f32 %v16295_v39, %v6988_v0  ;;  %v7011_v62 = vmul.f32 %v16295_v39, %v6987_v61 }
 0xd52   : > { %v7154_v59 = vadd.f32 %v7138_v21, %v7074_v1  ;;  %v7153_v22 = vadd.f32 %v7137_v32, %v7073_v45  ;;  %v7082_v51 = vadd.f32 %v16220_v17, %v7045_v58  ;;  %v16303_v5 = vadd.f32 %v16229_v40, %v7044_v15 }
 0xd53   : > { %v7142_v56 = vmul.f32 %v7126_v37, %v7078_v47  ;;  %v7141_v29 = vmul.f32 %v7125_v8, %v7077_v14  ;;  %v7049_v7 = vmul.f32 %v16215_v10, %v7012_v57  ;;  %v7048_v50 = vmul.f32 %v16223_v24, %v7011_v62 }
 0xd54   : > { %v16307_v23 = vmul.f32 0.5, %v7074_v1  ;;  %v7170_v55 = vmul.f32 0.7978846, %v7154_v59  ;;  %v7169_v35 = vmul.f32 0.7978846, %v7153_v22  ;;  %v16310_v0 = vadd.f32 %v16232_v16, %v7043_v9 }
 0xd55   : > { %v7158_v21 = vadd.f32 %v7142_v56, %v7078_v47  ;;  %v7157_v32 = vadd.f32 %v7141_v29, %v7077_v14  ;;  %v16313_v61 = vadd.f32 %v16220_v17, %v7049_v7  ;;  %v7114_v58 = vmul.f32 0.044715, %v7082_v51 }
 0xd56   : > { %12973 = vtanh.f32 %v7170_v55  ;;  %v7089_v15 = vmul.f32 0.5, %v7073_v45  ;;  %v16316_v37 = vadd.f32 %v16229_v40, %v7048_v50  ;;  %v7113_v10 = vmul.f32 0.044715, %v16303_v5 }
 0xd57   : > { %v7174_v24 = vmul.f32 0.7978846, %v7158_v21  ;;  %v7173_v1 = vmul.f32 0.7978846, %v7157_v32  ;;  %12975 = vtanh.f32 %v7169_v35  ;;  %v16320_v22 = vmul.f32 0.5, %v16293_v26 }
 0xd58   : > { %v7094_v59 = vmul.f32 0.5, %v7078_v47  ;;  %v7118_v56 = vmul.f32 0.044715, %v16313_v61  ;;  %v7130_v9 = vmul.f32 %v7114_v58, %v7082_v51  ;;  %v7117_v17 = vmul.f32 0.044715, %v16316_v37 }
 0xd59   : > { %12977 = vtanh.f32 %v7174_v24  ;;  %v7129_v45 = vmul.f32 %v7113_v10, %v16303_v5  ;;  %v7108_v40 = vmul.f32 0.044715, %v16293_v26  ;;  %v7112_v8 = vmul.f32 0.044715, %v16310_v0 }
 0xd5a   : > { %12979 = vtanh.f32 %v7173_v1  ;;  %v7134_v57 = vmul.f32 %v7118_v56, %v16313_v61  ;;  %v7146_v62 = vmul.f32 %v7130_v9, %v7082_v51  ;;  %v7133_v29 = vmul.f32 %v7117_v17, %v16316_v37 }
 0xd5b   : > { %v7145_v47 = vmul.f32 %v7129_v45, %v16303_v5  ;;  %v7124_v7 = vmul.f32 %v7108_v40, %v16293_v26  ;;  %v7128_v50 = vmul.f32 %v7112_v8, %v16310_v0  ;;  %v16334_v55 = vadd.f32 %v16250_v38, %v16270_v53 }
 0xd5c   : > { %v7150_v35 = vmul.f32 %v7134_v57, %v16313_v61  ;;  %v7162_v21 = vadd.f32 %v7146_v62, %v7082_v51  ;;  %v7149_v32 = vmul.f32 %v7133_v29, %v16316_v37  ;;  %v16340_v58 = vadd.f32 %v16250_v38, %v16275_v4 }
 0xd5d   : > { %v7093_v10 = vmul.f32 0.5, %v7077_v14  ;;  %v7161_v24 = vadd.f32 %v7145_v47, %v16303_v5  ;;  %v7140_v1 = vmul.f32 %v7124_v7, %v16293_v26  ;;  %v7144_v56 = vmul.f32 %v7128_v50, %v16310_v0 }
 0xd5e   : > { %v16345_v9 = vmul.f32 0.5, %v7082_v51  ;;  %v7166_v53 = vadd.f32 %v7150_v35, %v16313_v61  ;;  %v7178_v17 = vmul.f32 0.7978846, %v7162_v21  ;;  %v7165_v45 = vadd.f32 %v7149_v32, %v16316_v37 }
 0xd5f   : > { %v7177_v40 = vmul.f32 0.7978846, %v7161_v24  ;;  %v7156_v8 = vadd.f32 %v7140_v1, %v16293_v26  ;;  %v7160_v4 = vadd.f32 %v7144_v56, %v16310_v0  ;;  %v7107_v14 = vmul.f32 0.044715, %v16334_v55 }
 0xd60   : > { %v12974_v57 = vpop.eup %12973  ;;  %v7182_v62 = vmul.f32 0.7978846, %v7166_v53  ;;  %12981 = vtanh.f32 %v7178_v17  ;;  %v7181_v29 = vmul.f32 0.7978846, %v7165_v45  ;;  %v7111_v47 = vmul.f32 0.044715, %v16340_v58 }
 0xd61   : > { %v12976_v51 = vpop.eup %12975  ;;  %v7202_v7 = vadd.f32 1.0, %v12974_v57  ;;  %12983 = vtanh.f32 %v7177_v40  ;;  %v7172_v50 = vmul.f32 0.7978846, %v7156_v8  ;;  %v7176_v35 = vmul.f32 0.7978846, %v7160_v4 }
 0xd62   : > { %v7201_v21 = vadd.f32 1.0, %v12976_v51  ;;  %12985 = vtanh.f32 %v7182_v62  ;;  %v7123_v32 = vmul.f32 %v7107_v14, %v16334_v55  ;;  %v7127_v26 = vmul.f32 %v7111_v47, %v16340_v58  ;;  %v12509_v47 = vld [vmem:[#allocation22 + $0xe00] ss:$16 sps:$4 sm:$0xff]  }
 0xd63   : > { %v12978_v24 = vpop.eup %12977  ;;  %v7218_v1 = vmul.f32 %v7202_v7, %v16307_v23  ;;  %12987 = vtanh.f32 %v7181_v29  ;;  %v7010_v56 = vmul.f32 %v16281_v41, %v6986_v3  ;;  %v7014_v53 = vmul.f32 %v16295_v39, %v6990_v36 }
 0xd64   : > { %v12980_v17 = vpop.eup %12979  ;;  %v7206_v45 = vadd.f32 1.0, %v12978_v24  ;;  %v7217_v40 = vmul.f32 %v7201_v21, %v7089_v15  ;;  %12989 = vtanh.f32 %v7172_v50  ;;  %v7139_v8 = vmul.f32 %v7123_v32, %v16334_v55 }
 0xd65   : > { %v7250_v23 = vadd.f32 %v7234_v27, %v7218_v1  ;;  %v7205_v4 = vadd.f32 1.0, %v12980_v17  ;;  %12991 = vtanh.f32 %v7176_v35  ;;  %v7143_v25 = vmul.f32 %v7127_v26, %v16340_v58 }
 0xd66   : > { %v7222_v14 = vmul.f32 %v7206_v45, %v7094_v59  ;;  %v7249_v3 = vadd.f32 %v7233_v19, %v7217_v40  ;;  %v7155_v12 = vadd.f32 %v7139_v8, %v16334_v55  ;;  %v7047_v36 = vmul.f32 %v16226_v46, %v7010_v56  ;;  %v12515_v45 = vld [vmem:[#allocation22 + $0xe20] ss:$16 sps:$4 sm:$0xff]   ;;  %v12518_v40 = vld [vmem:[#allocation22 + $0xe28] ss:$16 sps:$4 sm:$0xff]  }
 0xd67   : > { %v7221_v57 = vmul.f32 %v7205_v4, %v7093_v10  ;;  %v7159_v15 = vadd.f32 %v7143_v25, %v16340_v58  ;;  %v7051_v62 = vmul.f32 %v16226_v46, %v7014_v53  ;;  %v7009_v27 = vmul.f32 %v16281_v41, %v6985_v6  ;;  %v12512_v6 = vld [vmem:[#allocation22 + $0xe08] ss:$16 sps:$4 sm:$0xff]  }
 0xd68   : > { %v7254_v59 = vadd.f32 %v7238_v44, %v7222_v14  ;;  %v7171_v29 = vmul.f32 0.7978846, %v7155_v12  ;;  %v16381_v19 = vadd.f32 %v16232_v16, %v7047_v36  ;;  %v7013_v10 = vmul.f32 %v16295_v39, %v6989_v63  ;;  %v12520_v63 = vld [vmem:[#allocation22 + $0xe2c] ss:$16 sps:$4 sm:$0xff]   ;;  %v12523_v14 = vld [vmem:[#allocation22 + $0xe44] ss:$16 sps:$4 sm:$0xff]  }
 0xd69   : > { %v17213_v46 = vunpack.c.h.bf16 %v16025_v18  ;;  %v7175_v7 = vmul.f32 0.7978846, %v7159_v15  ;;  %v16390_v31 = vadd.f32 %v16232_v16, %v7051_v62  ;;  %v7046_v20 = vmul.f32 %v16235_v49, %v7009_v27  ;;  %v12517_v18 = vld [vmem:[#allocation22 + $0xe24] ss:$16 sps:$4 sm:$0xff]  }
 0xd6a   : > { %v12982_v28 = vpop.eup %12981  ;;  %v16393_v44 = vpack.c.bf16 %v7254_v59, %v7250_v23  ;;  %v7097_v41 = vmul.f32 0.5, %v16303_v5  ;;  %12993 = vtanh.f32 %v7171_v29  ;;  %v7116_v13 = vmul.f32 0.044715, %v16381_v19 }
 0xd6b   : > { %v7253_v51 = vadd.f32 %v17213_v46, %v7221_v57  ;;  %v12984_v43 = vpop.eup %12983  ;;  %v7102_v50 = vmul.f32 0.5, %v16313_v61  ;;  %v7210_v16 = vadd.f32 1.0, %v12982_v28  ;;  %12995 = vtanh.f32 %v7175_v7 }
 0xd6c   : > { %v12986_v35 = vpop.eup %12985  ;;  %8097 = vmatprep.mubr.bf16.mxu0 %v16393_v44  ;;  %8203 = vmatprep.mubr.bf16.mxu1 %v16393_v44  ;;  %v7209_v21 = vadd.f32 1.0, %v12984_v43  ;;  %v7120_v5 = vmul.f32 0.044715, %v16390_v31  ;;  %v7132_v32 = vmul.f32 %v7116_v13, %v16381_v19  ;;  %v7050_v26 = vmul.f32 %v16235_v49, %v7013_v10  ;;  %v12524_v13 = vld [vmem:[#allocation22 + $0xe48] ss:$16 sps:$4 sm:$0xff]  }
 0xd6d   : > { %v16397_v39 = vpack.c.bf16 %v7253_v51, %v7249_v3  ;;  %v12988_v24 = vpop.eup %12987  ;;  %v7214_v61 = vadd.f32 1.0, %v12986_v35  ;;  %v7226_v1 = vmul.f32 %v7210_v16, %v16345_v9  ;;  %v7101_v56 = vmul.f32 0.5, %v16316_v37  ;;  %v12526_v37 = vld [vmem:[#allocation22 + $0xe4c] ss:$16 sps:$4 sm:$0xff]  }
 0xd6e   : > { %v16410_v53 = vadd.f32 %v16250_v38, %v7046_v20  ;;  %v12990_v17 = vpop.eup %12989  ;;  %v7213_v8 = vadd.f32 1.0, %v12988_v24  ;;  %v7225_v49 = vmul.f32 %v7209_v21, %v7097_v41  ;;  %v7136_v23 = vmul.f32 %v7120_v5, %v16390_v31 }
 0xd6f   : > { %8098 = vmatmul.mubr.bf16.vlgmr.msra.gmra.mrb[48].mxu0 %v16397_v39  ;;  %8204 = vmatmul.mubr.bf16.vlgmr.msra.gmra.mrb[48].mxu1 %v16397_v39  ;;  %v7148_v4 = vmul.f32 %v7132_v32, %v16381_v19  ;;  %v12992_v25 = vpop.eup %12991  ;;  %v7230_v9 = vmul.f32 %v7214_v61, %v7102_v50  ;;  %v7096_v3 = vmul.f32 0.5, %v16310_v0  ;;  %v7204_v12 = vadd.f32 1.0, %v12990_v17  ;;  %v12529_v32 = vld [vmem:[#allocation22 + $0xe64] ss:$16 sps:$4 sm:$0xff]  }
 0xd70   : > { %8119 = vmatpush1.bf16.msra.mxu0 %v12509_v47  ;;  %8225 = vmatpush1.bf16.msra.mxu1 %v12512_v6  ;;  %v16416_v36 = vadd.f32 %v16250_v38, %v7050_v26  ;;  %v17214_v57 = vunpack.c.l.bf16 %v16059_v34  ;;  %v7229_v62 = vmul.f32 %v7213_v8, %v7101_v56  ;;  %v7208_v27 = vadd.f32 1.0, %v12992_v25  ;;  %v12521_v38 = vld [vmem:[#allocation22 + $0xe40] ss:$16 sps:$4 sm:$0xff]   ;;  %v12532_v26 = vld [vmem:[#allocation22 + $0xe6c] ss:$16 sps:$4 sm:$0xff]  }
 0xd71   : > { %8120 = vmatprep.subr.bf16.mxu0 %v12517_v18  ;;  %8226 = vmatprep.subr.bf16.mxu1 %v12520_v63  ;;  %v7152_v59 = vmul.f32 %v7136_v23, %v16390_v31  ;;  %v17215_v29 = vunpack.c.h.bf16 %v16059_v34  ;;  %v17216_v47 = vunpack.c.l.bf16 %v16064_v11  ;;  %v7220_v51 = vmul.f32 %v7204_v12, %v16320_v22  ;;  %v12535_v23 = vld [vmem:[#allocation22 + $0xe84] ss:$16 sps:$4 sm:$0xff]  }
 0xd72   : > { %v7258_v15 = vadd.f32 %v17214_v57, %v7226_v1  ;;  %v7164_v0 = vadd.f32 %v7148_v4, %v16381_v19  ;;  %v17217_v7 = vunpack.c.h.bf16 %v16064_v11  ;;  %v7224_v28 = vmul.f32 %v7208_v27, %v7096_v3  ;;  %v12538_v4 = vld [vmem:[#allocation22 + $0xe8c] ss:$16 sps:$4 sm:$0xff]  }
 0xd73   : > { %v7262_v10 = vadd.f32 %v17215_v29, %v7230_v9  ;;  %v7257_v46 = vadd.f32 %v17216_v47, %v7225_v49  ;;  %v7091_v6 = vmul.f32 0.5, %v16334_v55  ;;  %v7168_v41 = vadd.f32 %v7152_v59, %v16390_v31  ;;  %v12541_v59 = vld [vmem:[#allocation22 + $0xea4] ss:$16 sps:$4 sm:$0xff]   ;;  %v12544_v29 = vld [vmem:[#allocation22 + $0xeac] ss:$16 sps:$4 sm:$0xff]  }
 0xd74   : > { %8121 = vmatpush1.bf16.msra.mxu0 %v12515_v45  ;;  %8227 = vmatpush1.bf16.msra.mxu1 %v12518_v40  ;;  %v7261_v20 = vadd.f32 %v17217_v7, %v7229_v62  ;;  %v17218_v22 = vunpack.c.l.bf16 %v16075_v30  ;;  %v7180_v18 = vmul.f32 0.7978846, %v7164_v0  ;;  %v7115_v63 = vmul.f32 0.044715, %v16410_v53  ;;  %v12994_v50 = vpop.eup %12993  ;;  %v12527_v45 = vld [vmem:[#allocation22 + $0xe60] ss:$16 sps:$4 sm:$0xff]  }
 0xd75   : > { %v16431_v34 = vpack.c.bf16 %v7262_v10, %v7258_v15  ;;  %8122 = vmatprep.subr.bf16.mxu0 %v12523_v14  ;;  %8228 = vmatprep.subr.bf16.mxu1 %v12526_v37  ;;  %v17219_v11 = vunpack.c.h.bf16 %v16075_v30  ;;  %v7184_v55 = vmul.f32 0.7978846, %v7168_v41  ;;  %v7119_v21 = vmul.f32 0.044715, %v16416_v36  ;;  %v12996_v5 = vpop.eup %12995  ;;  %v12530_v40 = vld [vmem:[#allocation22 + $0xe68] ss:$16 sps:$4 sm:$0xff]  }
 0xd76   : > { %v7252_v43 = vadd.f32 %v17218_v22, %v7220_v51  ;;  %v16436_v16 = vpack.c.bf16 %v7261_v20, %v7257_v46  ;;  %v7095_v24 = vmul.f32 0.5, %v16340_v58  ;;  %v7203_v61 = vadd.f32 1.0, %v12994_v50  ;;  %v12533_v15 = vld [vmem:[#allocation22 + $0xe80] ss:$16 sps:$4 sm:$0xff]   ;;  %v12536_v62 = vld [vmem:[#allocation22 + $0xe88] ss:$16 sps:$4 sm:$0xff]  }
 0xd77   : > { %v7256_v35 = vadd.f32 %v17219_v11, %v7224_v28  ;;  %8107 = vmatprep.mubr.bf16.mxu0 %v16431_v34  ;;  %8213 = vmatprep.mubr.bf16.mxu1 %v16431_v34  ;;  %12997 = vtanh.f32 %v7180_v18  ;;  %v7131_v1 = vmul.f32 %v7115_v63, %v16410_v53  ;;  %v7207_v56 = vadd.f32 1.0, %v12996_v5  ;;  %v12539_v46 = vld [vmem:[#allocation22 + $0xea0] ss:$16 sps:$4 sm:$0xff]   ;;  %v12542_v51 = vld [vmem:[#allocation22 + $0xea8] ss:$16 sps:$4 sm:$0xff]  }
 0xd78   : > { %8108 = vmatmul.mubr.bf16.gmra.mrb[52].mxu0 %v16436_v16  ;;  %8214 = vmatmul.mubr.bf16.gmra.mrb[52].mxu1 %v16436_v16  ;;  %12999 = vtanh.f32 %v7184_v55  ;;  %v7135_v17 = vmul.f32 %v7119_v21, %v16416_v36  ;;  %v7219_v8 = vmul.f32 %v7203_v61, %v7091_v6  ;;  %v7235_v58 = vunpack.c.l.bf16 %v16086_v2  ;;  %v12550_v7 = vld [vmem:[#allocation22 + $0xecc] ss:$16 sps:$4 sm:$0xff]   ;;  %v12548_v18 = vld [vmem:[#allocation22 + $0xec8] ss:$16 sps:$4 sm:$0xff]   ;;  %v12553_v11 = vld [vmem:[#allocation22 + $0xee4] ss:$16 sps:$4 sm:$0xff]  }
 0xd79   : > { %v16447_v30 = vpack.c.bf16 %v7256_v35, %v7252_v43  ;;  %8123 = vmatpush1.bf16.msra.mxu0 %v12521_v38  ;;  %8229 = vmatpush1.bf16.msra.mxu1 %v12524_v13  ;;  %v7147_v49 = vmul.f32 %v7131_v1, %v16410_v53  ;;  %v7223_v25 = vmul.f32 %v7207_v56, %v7095_v24  ;;  %v7239_v9 = vunpack.c.h.bf16 %v16086_v2  ;;  %v12547_v38 = vld [vmem:[#allocation22 + $0xec4] ss:$16 sps:$4 sm:$0xff]   ;;  %v12545_v43 = vld [vmem:[#allocation22 + $0xec0] ss:$16 sps:$4 sm:$0xff]   ;;  %v12556_v35 = vld [vmem:[#allocation22 + $0xeec] ss:$16 sps:$4 sm:$0xff]  }
 0xd7a   : > { %v7151_v14 = vmul.f32 %v7135_v17, %v16416_v36  ;;  %8124 = vmatprep.subr.bf16.mxu0 %v12529_v32  ;;  %8230 = vmatprep.subr.bf16.mxu1 %v12532_v26  ;;  %v7251_v37 = vadd.f32 %v7235_v58, %v7219_v8  ;;  %v7100_v20 = vmul.f32 0.5, %v16381_v19  ;;  %v7104_v6 = vmul.f32 0.5, %v16390_v31  ;;  %v12551_v31 = vld [vmem:[#allocation22 + $0xee0] ss:$16 sps:$4 sm:$0xff]   ;;  %v12554_v5 = vld [vmem:[#allocation22 + $0xee8] ss:$16 sps:$4 sm:$0xff]  }
 0xd7b   : > { %8150 = vmatprep.mubr.bf16.mxu0 %v16447_v30  ;;  %8256 = vmatprep.mubr.bf16.mxu1 %v16447_v30  ;;  %v7163_v3 = vadd.f32 %v7147_v49, %v16410_v53  ;;  %v7255_v12 = vadd.f32 %v7239_v9, %v7223_v25  ;;  %v7244_v22 = vunpack.c.l.bf16 %v16092_v54  ;;  %v7248_v50 = vunpack.c.h.bf16 %v16092_v54  ;;  %v12559_v24 = vld [vmem:[#allocation22 + $0xf04] ss:$16 sps:$4 sm:$0xff]   ;;  %v12562_v61 = vld [vmem:[#allocation22 + $0xf0c] ss:$16 sps:$4 sm:$0xff]   ;;  %v12557_v8 = vld [vmem:[#allocation22 + $0xf00] ss:$16 sps:$4 sm:$0xff]  }
 0xd7c   : > { %v7167_v57 = vadd.f32 %v7151_v14, %v16416_v36  ;;  %v7099_v54 = vmul.f32 0.5, %v16410_v53  ;;  %v7103_v56 = vmul.f32 0.5, %v16416_v36  ;;  %v12560_v58 = vld [vmem:[#allocation22 + $0xf08] ss:$16 sps:$4 sm:$0xff]   ;;  %v12568_v25 = vld [vmem:[#allocation22 + $0xf2c] ss:$16 sps:$4 sm:$0xff]  }
 0xd7d   : > { %8125 = vmatpush1.bf16.msra.mxu0 %v12527_v45  ;;  %8231 = vmatpush1.bf16.msra.mxu1 %v12530_v40  ;;  %v7179_v27 = vmul.f32 0.7978846, %v7163_v3  ;;  %v16458_v2 = vpack.c.bf16 %v7255_v12, %v7251_v37  ;;  %v7243_v40 = vunpack.c.l.bf16 %v16098_v48  ;;  %v12563_v36 = vld [vmem:[#allocation22 + $0xf20] ss:$16 sps:$4 sm:$0xff]   ;;  %v12566_v14 = vld [vmem:[#allocation22 + $0xf28] ss:$16 sps:$4 sm:$0xff]  }
 0xd7e   : > { %8126 = vmatprep.subr.bf16.mxu0 %v12535_v23  ;;  %8232 = vmatprep.subr.bf16.mxu1 %v12538_v4  ;;  %v7183_v10 = vmul.f32 0.7978846, %v7167_v57  ;;  %v7247_v23 = vunpack.c.h.bf16 %v16098_v48  ;;  %v12565_v4 = vld [vmem:[#allocation22 + $0xf24] ss:$16 sps:$4 sm:$0xff]   ;;  %v12574_v12 = vld [vmem:[#allocation22 + $0xf4c] ss:$16 sps:$4 sm:$0xff]  }
 0xd7f   : > { %13001 = vtanh.f32 %v7179_v27  ;;  %v12571_v3 = vld [vmem:[#allocation22 + $0xf44] ss:$16 sps:$4 sm:$0xff]   ;;  %v12569_v57 = vld [vmem:[#allocation22 + $0xf40] ss:$16 sps:$4 sm:$0xff]   ;;  %v12572_v48 = vld [vmem:[#allocation22 + $0xf48] ss:$16 sps:$4 sm:$0xff]  }
 0xd80   : > { %13003 = vtanh.f32 %v7183_v10  ;;  %v12575_v27 = vld [vmem:[#allocation22 + $0xf60] ss:$16 sps:$4 sm:$0xff]   ;;  %v12586_v10 = vld [vmem:[#allocation22 + $0xf8c] ss:$16 sps:$4 sm:$0xff]  }
 0xd81   : > { %v12998_v47 = vpop.eup %12997  ;;  %8127 = vmatpush1.bf16.msra.mxu0 %v12533_v15  ;;  %8233 = vmatpush1.bf16.msra.mxu1 %v12536_v62  ;;  %v12577_v15 = vld [vmem:[#allocation22 + $0xf64] ss:$16 sps:$4 sm:$0xff]   ;;  %v12580_v62 = vld [vmem:[#allocation22 + $0xf6c] ss:$16 sps:$4 sm:$0xff]  }
 0xd82   : > { %v13000_v0 = vpop.eup %12999  ;;  %8128 = vmatprep.subr.bf16.mxu0 %v12541_v59  ;;  %8234 = vmatprep.subr.bf16.mxu1 %v12544_v29  ;;  %v7212_v28 = vadd.f32 1.0, %v12998_v47  ;;  %v12578_v59 = vld [vmem:[#allocation22 + $0xf68] ss:$16 sps:$4 sm:$0xff]   ;;  %v12583_v29 = vld [vmem:[#allocation22 + $0xf84] ss:$16 sps:$4 sm:$0xff]  }
 0xd83   : > { %v7216_v41 = vadd.f32 1.0, %v13000_v0  ;;  %v12581_v47 = vld [vmem:[#allocation22 + $0xf80] ss:$16 sps:$4 sm:$0xff]   ;;  %v12592_v0 = vld [vmem:[#allocation22 + $0xfac] ss:$16 sps:$4 sm:$0xff]  }
 0xd84   : > { %v7228_v13 = vmul.f32 %v7212_v28, %v7100_v20  ;;  %v12595_v20 = vld [vmem:[#allocation22 + $0xfc4] ss:$16 sps:$4 sm:$0xff]   ;;  %v12598_v28 = vld [vmem:[#allocation22 + $0xfcc] ss:$16 sps:$4 sm:$0xff]  }
 0xd85   : > { %8129 = vmatpush1.bf16.msra.mxu0 %v12539_v46  ;;  %8235 = vmatpush1.bf16.msra.mxu1 %v12542_v51  ;;  %v7232_v63 = vmul.f32 %v7216_v41, %v7104_v6  ;;  %v12584_v46 = vld [vmem:[#allocation22 + $0xf88] ss:$16 sps:$4 sm:$0xff]   ;;  %v12589_v51 = vld [vmem:[#allocation22 + $0xfa4] ss:$16 sps:$4 sm:$0xff]   ;;  %v12593_v6 = vld [vmem:[#allocation22 + $0xfc0] ss:$16 sps:$4 sm:$0xff]  }
 0xd86   : > { %8130 = vmatprep.subr.bf16.mxu0 %v12547_v38  ;;  %8236 = vmatprep.subr.bf16.mxu1 %v12550_v7  ;;  %v7260_v55 = vadd.f32 %v7244_v22, %v7228_v13  ;;  %v12587_v38 = vld [vmem:[#allocation22 + $0xfa0] ss:$16 sps:$4 sm:$0xff]   ;;  %v12590_v7 = vld [vmem:[#allocation22 + $0xfa8] ss:$16 sps:$4 sm:$0xff]   ;;  %v12601_v13 = vld [vmem:[#allocation22 + $0xfe4] ss:$16 sps:$4 sm:$0xff]  }
 0xd87   : > { %v7264_v19 = vadd.f32 %v7248_v50, %v7232_v63  ;;  %v12596_v41 = vld [vmem:[#allocation22 + $0xfc8] ss:$16 sps:$4 sm:$0xff]   ;;  %v12604_v22 = vld [vmem:[#allocation22 + $0xfec] ss:$16 sps:$4 sm:$0xff]   ;;  %v12605_v63 = vld [vmem:[#allocation28] ss:$16 sps:$4 sm:$0xff]  }
 0xd88   : > { %v12607_v50 = vld [vmem:[#allocation28 + $0x4] ss:$16 sps:$4 sm:$0xff]  }
 0xd89   : > { %v13002_v21 = vpop.eup %13001  ;;  %8131 = vmatpush1.bf16.msra.mxu0 %v12545_v43  ;;  %8237 = vmatpush1.bf16.msra.mxu1 %v12548_v18  ;;  %v16464_v32 = vpack.c.bf16 %v7264_v19, %v7260_v55  ;;  %v12599_v43 = vld [vmem:[#allocation22 + $0xfe0] ss:$16 sps:$4 sm:$0xff]   ;;  %v12602_v18 = vld [vmem:[#allocation22 + $0xfe8] ss:$16 sps:$4 sm:$0xff]   ;;  %v12613_v55 = vld [vmem:[#allocation28 + $0x24] ss:$16 sps:$4 sm:$0xff]  }
 0xd8a   : > { %v13004_v26 = vpop.eup %13003  ;;  %8132 = vmatprep.subr.bf16.mxu0 %v12553_v11  ;;  %8238 = vmatprep.subr.bf16.mxu1 %v12556_v35  ;;  %v7211_v1 = vadd.f32 1.0, %v13002_v21  ;;  %v12608_v11 = vld [vmem:[#allocation28 + $0x8] ss:$16 sps:$4 sm:$0xff]   ;;  %v12610_v35 = vld [vmem:[#allocation28 + $0xc] ss:$16 sps:$4 sm:$0xff]  }
 0xd8b   : > { %v7215_v17 = vadd.f32 1.0, %v13004_v26  ;;  %v12616_v19 = vld [vmem:[#allocation28 + $0x2c] ss:$16 sps:$4 sm:$0xff]   ;;  %v12611_v21 = vld [vmem:[#allocation28 + $0x20] ss:$16 sps:$4 sm:$0xff]  }
 0xd8c   : > { %v7227_v45 = vmul.f32 %v7211_v1, %v7099_v54 }
 0xd8d   : > { %8133 = vmatpush1.bf16.msra.mxu0 %v12551_v31  ;;  %8239 = vmatpush1.bf16.msra.mxu1 %v12554_v5  ;;  %v7231_v49 = vmul.f32 %v7215_v17, %v7103_v56  ;;  %v12614_v31 = vld [vmem:[#allocation28 + $0x28] ss:$16 sps:$4 sm:$0xff]   ;;  %v7403_v5 = vld [vmem:[#allocation23 + $0xc] sm:$0xf] }
 0xd8e   : > { %8134 = vmatprep.subr.bf16.mxu0 %v12559_v24  ;;  %8240 = vmatprep.subr.bf16.mxu1 %v12562_v61  ;;  %v7259_v9 = vadd.f32 %v7243_v40, %v7227_v45  ;;  %v7408_v26 = vrot.slane %v7403_v5, %v17195_v52  ;;  %v7416_v24 = vrot.slane %v7403_v5, %v17196_v60 }
 0xd8f   : > { %v7263_v53 = vadd.f32 %v7247_v23, %v7231_v49  ;;  %v7412_v61 = vrot.slane %v7403_v5, %v17197_v42  ;;  %v7420_v40 = vrot.slane %v7403_v5, %v17198_v33 }
 0xd91   : > { %8135 = vmatpush1.bf16.msra.mxu0 %v12557_v8  ;;  %8241 = vmatpush1.bf16.msra.mxu1 %v12560_v58  ;;  %v16470_v37 = vpack.c.bf16 %v7263_v53, %v7259_v9 }
 0xd92   : > { %8136 = vmatprep.subr.bf16.mxu0 %v12565_v4  ;;  %8242 = vmatprep.subr.bf16.mxu1 %v12568_v25 }
 0xd95   : > { %8137 = vmatpush1.bf16.msra.mxu0 %v12563_v36  ;;  %8243 = vmatpush1.bf16.msra.mxu1 %v12566_v14 }
 0xd96   : > { %8138 = vmatprep.subr.bf16.mxu0 %v12571_v3  ;;  %8244 = vmatprep.subr.bf16.mxu1 %v12574_v12 }
 0xd99   : > { %8139 = vmatpush1.bf16.msra.mxu0 %v12569_v57  ;;  %8245 = vmatpush1.bf16.msra.mxu1 %v12572_v48 }
 0xd9a   : > { %8140 = vmatprep.subr.bf16.mxu0 %v12577_v15  ;;  %8246 = vmatprep.subr.bf16.mxu1 %v12580_v62 }
 0xd9d   : > { %8141 = vmatpush1.bf16.msra.mxu0 %v12575_v27  ;;  %8247 = vmatpush1.bf16.msra.mxu1 %v12578_v59 }
 0xd9e   : > { %8142 = vmatprep.subr.bf16.mxu0 %v12583_v29  ;;  %8248 = vmatprep.subr.bf16.mxu1 %v12586_v10 }
 0xda1   : > { %8143 = vmatpush1.bf16.msra.mxu0 %v12581_v47  ;;  %8249 = vmatpush1.bf16.msra.mxu1 %v12584_v46 }
 0xda2   : > { %8144 = vmatprep.subr.bf16.mxu0 %v12589_v51  ;;  %8250 = vmatprep.subr.bf16.mxu1 %v12592_v0 }
 0xda5   : > { %8145 = vmatpush1.bf16.msra.mxu0 %v12587_v38  ;;  %8251 = vmatpush1.bf16.msra.mxu1 %v12590_v7 }
 0xda6   : > { %8146 = vmatprep.subr.bf16.mxu0 %v12595_v20  ;;  %8252 = vmatprep.subr.bf16.mxu1 %v12598_v28 }
 0xda9   : > { %8147 = vmatpush1.bf16.msra.mxu0 %v12593_v6  ;;  %8253 = vmatpush1.bf16.msra.mxu1 %v12596_v41 }
 0xdaa   : > { %8148 = vmatprep.subr.bf16.mxu0 %v12601_v13  ;;  %8254 = vmatprep.subr.bf16.mxu1 %v12604_v22 }
 0xdad   : > { %8149 = vmatpush1.bf16.msra.mxu0 %v12599_v43  ;;  %8255 = vmatpush1.bf16.msra.mxu1 %v12602_v18 }
 0xdae   : > { %9441 = vmatprep.subr.bf16.mxu0 %v12607_v50  ;;  %9547 = vmatprep.subr.bf16.mxu1 %v12610_v35 }
 0xdb0   : > { %8151 = vmatmul.mubr.bf16.vlgmr.msra.gmra.mrb[48].mxu0 %v16458_v2  ;;  %8257 = vmatmul.mubr.bf16.vlgmr.msra.gmra.mrb[48].mxu1 %v16458_v2 }
 0xdb1   : > { %8160 = vmatprep.mubr.bf16.mxu0 %v16464_v32  ;;  %8266 = vmatprep.mubr.bf16.mxu1 %v16464_v32 }
 0xdb2   : > { %9442 = vmatpush1.bf16.msra.mxu0 %v12605_v63  ;;  %9548 = vmatpush1.bf16.msra.mxu1 %v12608_v11 }
 0xdb3   : > { %9443 = vmatprep.subr.bf16.mxu0 %v12613_v55  ;;  %9549 = vmatprep.subr.bf16.mxu1 %v12616_v19 }
 0xdb6   : > { %9444 = vmatpush1.bf16.msra.mxu0 %v12611_v21  ;;  %9550 = vmatpush1.bf16.msra.mxu1 %v12614_v31 }
 0xdb8   : > { %8161 = vmatmul.mubr.bf16.gmra.mrb[52].mxu0 %v16470_v37  ;;  %8267 = vmatmul.mubr.bf16.gmra.mrb[52].mxu1 %v16470_v37 }
 0xe83   : > { %v8152_v54 = vpop.f32.mrb[48].mxu0  ;;  %v8258_v1 = vpop.f32.mrb[48].mxu1 }
 0xe84   : > { %v16481_v56 = vadd.f32 %v8152_v54, %v7408_v26  ;;  %v16483_v17 = vadd.f32 %v8258_v1, %v7416_v24  ;;  %v8154_v45 = vpop.f32.mrb[49].mxu0  ;;  %v8260_v8 = vpop.f32.mrb[49].mxu1 }
 0xe85   : > { %v16486_v58 = vadd.f32 %v8154_v45, %v7412_v61  ;;  %v8156_v49 = vpop.f32.mrb[50].mxu0  ;;  %v8262_v23 = vpop.f32.mrb[50].mxu1  ;;  %v16500_v57 = vadd.f32 %v8260_v8, %v7420_v40 }
 0xe86   : > { %v8305_v4 = vmul.f32 %v16481_v56, %v16481_v56  ;;  %v16490_v25 = vadd.f32 %v8156_v49, %v7408_v26  ;;  %v8158_v9 = vpop.f32.mrb[51].mxu0  ;;  %v8264_v53 = vpop.f32.mrb[51].mxu1  ;;  %v8307_v12 = vmul.f32 %v16483_v17, %v16483_v17  ;;  %v16504_v15 = vadd.f32 %v8262_v23, %v7416_v24 }
 0xe87   : > { %v8281_v36 = vadd.f32 %v16486_v58, %v16481_v56  ;;  %v8306_v14 = vmul.f32 %v16486_v58, %v16486_v58  ;;  %v16496_v3 = vadd.f32 %v8158_v9, %v7412_v61  ;;  %v16511_v10 = vadd.f32 %v8264_v53, %v7420_v40 }
 0xe88   : > { %v8309_v48 = vmul.f32 %v16490_v25, %v16490_v25  ;;  %v8311_v13 = vmul.f32 %v16504_v15, %v16504_v15  ;;  %v8308_v50 = vmul.f32 %v16500_v57, %v16500_v57 }
 0xe89   : > { %v8286_v62 = vadd.f32 %v16496_v3, %v16490_v25  ;;  %v8310_v27 = vmul.f32 %v16496_v3, %v16496_v3  ;;  %v8282_v59 = vadd.f32 %v16483_v17, %v8281_v36  ;;  %v8321_v29 = vadd.f32 %v8306_v14, %v8305_v4 }
 0xe8a   : > { %v8312_v31 = vmul.f32 %v16511_v10, %v16511_v10 }
 0xe8b   : > { %v8162_v47 = vpop.f32.mrb[52].mxu0  ;;  %v8268_v46 = vpop.f32.mrb[52].mxu1  ;;  %v8283_v51 = vadd.f32 %v16500_v57, %v8282_v59  ;;  %v8287_v0 = vadd.f32 %v16504_v15, %v8286_v62  ;;  %v8322_v38 = vadd.f32 %v8321_v29, %v8307_v12  ;;  %v8326_v41 = vadd.f32 %v8310_v27, %v8309_v48 }
 0xe8c   : > { %v16515_v7 = vadd.f32 %v8162_v47, %v7408_v26  ;;  %v16517_v20 = vadd.f32 %v8268_v46, %v7416_v24  ;;  %v8164_v28 = vpop.f32.mrb[53].mxu0  ;;  %v8270_v6 = vpop.f32.mrb[53].mxu1 }
 0xe8d   : > { %v16521_v22 = vadd.f32 %v8164_v28, %v7412_v61  ;;  %v8166_v43 = vpop.f32.mrb[54].mxu0  ;;  %v8272_v18 = vpop.f32.mrb[54].mxu1  ;;  %8284 = vadd.xlane.f32.xlu0 %v8283_v51  ;;  %v8288_v63 = vadd.f32 %v16511_v10, %v8287_v0  ;;  %v16528_v35 = vadd.f32 %v8270_v6, %v7420_v40  ;;  %v8323_v45 = vadd.f32 %v8322_v38, %v8308_v50  ;;  %v12617_v0 = vld [vmem:[#allocation28 + $0x40] ss:$16 sps:$4 sm:$0xff]   ;;  %v12619_v38 = vld [vmem:[#allocation28 + $0x44] ss:$16 sps:$4 sm:$0xff]  }
 0xe8e   : > { %v8313_v11 = vmul.f32 %v16515_v7, %v16515_v7  ;;  %v16530_v55 = vadd.f32 %v8166_v43, %v7408_v26  ;;  %v8168_v19 = vpop.f32.mrb[55].mxu0  ;;  %v8274_v21 = vpop.f32.mrb[55].mxu1  ;;  %v8315_v8 = vmul.f32 %v16517_v20, %v16517_v20  ;;  %v16544_v49 = vadd.f32 %v8272_v18, %v7416_v24  ;;  %v12620_v28 = vld [vmem:[#allocation28 + $0x48] ss:$16 sps:$4 sm:$0xff]   ;;  %v12622_v6 = vld [vmem:[#allocation28 + $0x4c] ss:$16 sps:$4 sm:$0xff]   ;;  %9445 = vmatprep.subr.bf16.mxu0 %v12619_v38 }
 0xe8f   : > { %v8291_v5 = vadd.f32 %v16521_v22, %v16515_v7  ;;  %v8314_v54 = vmul.f32 %v16521_v22, %v16521_v22  ;;  %v16538_v1 = vadd.f32 %v8168_v19, %v7412_v61  ;;  %8289 = vadd.xlane.f32.xlu1 %v8288_v63  ;;  %v8327_v23 = vadd.f32 %v8326_v41, %v8311_v13  ;;  %v12623_v41 = vld [vmem:[#allocation28 + $0x60] ss:$16 sps:$4 sm:$0xff]   ;;  %v12625_v13 = vld [vmem:[#allocation28 + $0x64] ss:$16 sps:$4 sm:$0xff]   ;;  %v12626_v43 = vld [vmem:[#allocation28 + $0x68] ss:$16 sps:$4 sm:$0xff]  }
 0xe90   : > { %v8317_v26 = vmul.f32 %v16530_v55, %v16530_v55  ;;  %v16551_v36 = vadd.f32 %v8274_v21, %v7420_v40  ;;  %v8319_v27 = vmul.f32 %v16544_v49, %v16544_v49  ;;  %v8316_v29 = vmul.f32 %v16528_v35, %v16528_v35  ;;  %9551 = vmatprep.subr.bf16.mxu1 %v12622_v6  ;;  %v12628_v18 = vld [vmem:[#allocation28 + $0x6c] ss:$16 sps:$4 sm:$0xff]   ;;  %v12631_v63 = vld [vmem:[#allocation28 + $0x84] ss:$16 sps:$4 sm:$0xff]   ;;  %v12632_v19 = vld [vmem:[#allocation28 + $0x88] ss:$16 sps:$4 sm:$0xff]  }
 0xe91   : > { %v8296_v4 = vadd.f32 %v16538_v1, %v16530_v55  ;;  %v8318_v9 = vmul.f32 %v16538_v1, %v16538_v1  ;;  %8324 = vadd.xlane.f32.xlu0 %v8323_v45  ;;  %v8292_v61 = vadd.f32 %v16517_v20, %v8291_v5  ;;  %v8331_v53 = vadd.f32 %v8314_v54, %v8313_v11  ;;  %v12634_v50 = vld [vmem:[#allocation28 + $0x8c] ss:$16 sps:$4 sm:$0xff]   ;;  %v12629_v11 = vld [vmem:[#allocation28 + $0x80] ss:$16 sps:$4 sm:$0xff]   ;;  %v12638_v5 = vld [vmem:[#allocation28 + $0xa8] ss:$16 sps:$4 sm:$0xff]  }
 0xe92   : > { %v8328_v14 = vadd.f32 %v8327_v23, %v8312_v31  ;;  %v8320_v46 = vmul.f32 %v16551_v36, %v16551_v36  ;;  %9446 = vmatpush1.bf16.msra.mxu0 %v12617_v0  ;;  %9552 = vmatpush1.bf16.msra.mxu1 %v12620_v28  ;;  %v12635_v21 = vld [vmem:[#allocation28 + $0xa0] ss:$16 sps:$4 sm:$0xff]   ;;  %v12637_v31 = vld [vmem:[#allocation28 + $0xa4] ss:$16 sps:$4 sm:$0xff]   ;;  %v12640_v54 = vld [vmem:[#allocation28 + $0xac] ss:$16 sps:$4 sm:$0xff]  }
 0xe93   : > { %v8293_v12 = vadd.f32 %v16528_v35, %v8292_v61  ;;  %v8297_v48 = vadd.f32 %v16544_v49, %v8296_v4  ;;  %v8332_v24 = vadd.f32 %v8331_v53, %v8315_v8  ;;  %v8336_v62 = vadd.f32 %v8318_v9, %v8317_v26  ;;  %9447 = vmatprep.subr.bf16.mxu0 %v12625_v13  ;;  %v12643_v45 = vld [vmem:[#allocation28 + $0xc4] ss:$16 sps:$4 sm:$0xff]   ;;  %v12646_v8 = vld [vmem:[#allocation28 + $0xcc] ss:$16 sps:$4 sm:$0xff]   ;;  %v12641_v26 = vld [vmem:[#allocation28 + $0xc0] ss:$16 sps:$4 sm:$0xff]  }
 0xe94   : > { %8329 = vadd.xlane.f32.xlu1 %v8328_v14  ;;  %9553 = vmatprep.subr.bf16.mxu1 %v12628_v18  ;;  %v12644_v23 = vld [vmem:[#allocation28 + $0xc8] ss:$16 sps:$4 sm:$0xff]   ;;  %v12649_v4 = vld [vmem:[#allocation28 + $0xe4] ss:$16 sps:$4 sm:$0xff]   ;;  %v12652_v9 = vld [vmem:[#allocation28 + $0xec] ss:$16 sps:$4 sm:$0xff]  }
 0xe95   : > { %8294 = vadd.xlane.f32.xlu0 %v8293_v12  ;;  %v8298_v59 = vadd.f32 %v16551_v36, %v8297_v48  ;;  %v8337_v47 = vadd.f32 %v8336_v62, %v8319_v27  ;;  %v8333_v40 = vadd.f32 %v8332_v24, %v8316_v29  ;;  %v12647_v61 = vld [vmem:[#allocation28 + $0xe0] ss:$16 sps:$4 sm:$0xff]   ;;  %v12650_v53 = vld [vmem:[#allocation28 + $0xe8] ss:$16 sps:$4 sm:$0xff]   ;;  %v12655_v14 = vld [vmem:[#allocation28 + $0x104] ss:$16 sps:$4 sm:$0xff]  }
 0xe96   : > { %9448 = vmatpush1.bf16.msra.mxu0 %v12623_v41  ;;  %9554 = vmatpush1.bf16.msra.mxu1 %v12626_v43  ;;  %v12658_v12 = vld [vmem:[#allocation28 + $0x10c] ss:$16 sps:$4 sm:$0xff]   ;;  %v12653_v48 = vld [vmem:[#allocation28 + $0x100] ss:$16 sps:$4 sm:$0xff]   ;;  %v12656_v24 = vld [vmem:[#allocation28 + $0x108] ss:$16 sps:$4 sm:$0xff]  }
 0xe97   : > { %v8338_v51 = vadd.f32 %v8337_v47, %v8320_v46  ;;  %9449 = vmatprep.subr.bf16.mxu0 %v12631_v63  ;;  %9555 = vmatprep.subr.bf16.mxu1 %v12634_v50  ;;  %v12661_v62 = vld [vmem:[#allocation28 + $0x124] ss:$16 sps:$4 sm:$0xff]   ;;  %v12664_v27 = vld [vmem:[#allocation28 + $0x12c] ss:$16 sps:$4 sm:$0xff]   ;;  %v12662_v29 = vld [vmem:[#allocation28 + $0x128] ss:$16 sps:$4 sm:$0xff]  }
 0xe98   : > { %8299 = vadd.xlane.f32.xlu1 %v8298_v59  ;;  %v12659_v59 = vld [vmem:[#allocation28 + $0x120] ss:$16 sps:$4 sm:$0xff]   ;;  %v12667_v47 = vld [vmem:[#allocation28 + $0x144] ss:$16 sps:$4 sm:$0xff]   ;;  %v12676_v38 = vld [vmem:[#allocation28 + $0x16c] ss:$16 sps:$4 sm:$0xff]  }
 0xe99   : > { %8334 = vadd.xlane.f32.xlu0 %v8333_v40  ;;  %v12670_v40 = vld [vmem:[#allocation28 + $0x14c] ss:$16 sps:$4 sm:$0xff]   ;;  %v12665_v46 = vld [vmem:[#allocation28 + $0x140] ss:$16 sps:$4 sm:$0xff]   ;;  %v12673_v0 = vld [vmem:[#allocation28 + $0x164] ss:$16 sps:$4 sm:$0xff]  }
 0xe9a   : > { %9450 = vmatpush1.bf16.msra.mxu0 %v12629_v11  ;;  %9556 = vmatpush1.bf16.msra.mxu1 %v12632_v19  ;;  %v12671_v28 = vld [vmem:[#allocation28 + $0x160] ss:$16 sps:$4 sm:$0xff]   ;;  %v12674_v6 = vld [vmem:[#allocation28 + $0x168] ss:$16 sps:$4 sm:$0xff]   ;;  %v12679_v41 = vld [vmem:[#allocation28 + $0x184] ss:$16 sps:$4 sm:$0xff]  }
 0xe9b   : > { %9451 = vmatprep.subr.bf16.mxu0 %v12637_v31  ;;  %9557 = vmatprep.subr.bf16.mxu1 %v12640_v54  ;;  %v12682_v13 = vld [vmem:[#allocation28 + $0x18c] ss:$16 sps:$4 sm:$0xff]   ;;  %v12677_v43 = vld [vmem:[#allocation28 + $0x180] ss:$16 sps:$4 sm:$0xff]   ;;  %v12680_v18 = vld [vmem:[#allocation28 + $0x188] ss:$16 sps:$4 sm:$0xff]  }
 0xe9c   : > { %8339 = vadd.xlane.f32.xlu1 %v8338_v51  ;;  %v12668_v51 = vld [vmem:[#allocation28 + $0x148] ss:$16 sps:$4 sm:$0xff]   ;;  %v12685_v63 = vld [vmem:[#allocation28 + $0x1a4] ss:$16 sps:$4 sm:$0xff]   ;;  %v12688_v50 = vld [vmem:[#allocation28 + $0x1ac] ss:$16 sps:$4 sm:$0xff]  }
 0xe9d   : > { %v12683_v11 = vld [vmem:[#allocation28 + $0x1a0] ss:$16 sps:$4 sm:$0xff]   ;;  %v12686_v19 = vld [vmem:[#allocation28 + $0x1a8] ss:$16 sps:$4 sm:$0xff]   ;;  %v12694_v31 = vld [vmem:[#allocation28 + $0x1cc] ss:$16 sps:$4 sm:$0xff]  }
 0xe9e   : > { %9452 = vmatpush1.bf16.msra.mxu0 %v12635_v21  ;;  %9558 = vmatpush1.bf16.msra.mxu1 %v12638_v5  ;;  %v12691_v21 = vld [vmem:[#allocation28 + $0x1c4] ss:$16 sps:$4 sm:$0xff]   ;;  %v12689_v5 = vld [vmem:[#allocation28 + $0x1c0] ss:$16 sps:$4 sm:$0xff]   ;;  %v12692_v54 = vld [vmem:[#allocation28 + $0x1c8] ss:$16 sps:$4 sm:$0xff]  }
 0xe9f   : > { %9453 = vmatprep.subr.bf16.mxu0 %v12643_v45  ;;  %9559 = vmatprep.subr.bf16.mxu1 %v12646_v8  ;;  %v12697_v45 = vld [vmem:[#allocation28 + $0x1e4] ss:$16 sps:$4 sm:$0xff]   ;;  %v12700_v8 = vld [vmem:[#allocation28 + $0x1ec] ss:$16 sps:$4 sm:$0xff]  }
 0xea2   : > { %9454 = vmatpush1.bf16.msra.mxu0 %v12641_v26  ;;  %9560 = vmatpush1.bf16.msra.mxu1 %v12644_v23  ;;  %v12695_v26 = vld [vmem:[#allocation28 + $0x1e0] ss:$16 sps:$4 sm:$0xff]   ;;  %v12698_v23 = vld [vmem:[#allocation28 + $0x1e8] ss:$16 sps:$4 sm:$0xff]  }
 0xea3   : > { %9455 = vmatprep.subr.bf16.mxu0 %v12649_v4  ;;  %9561 = vmatprep.subr.bf16.mxu1 %v12652_v9  ;;  %v12703_v4 = vld [vmem:[#allocation28 + $0x204] ss:$16 sps:$4 sm:$0xff]   ;;  %v12706_v9 = vld [vmem:[#allocation28 + $0x20c] ss:$16 sps:$4 sm:$0xff]  }
 0xea6   : > { %9456 = vmatpush1.bf16.msra.mxu0 %v12647_v61  ;;  %9562 = vmatpush1.bf16.msra.mxu1 %v12650_v53 }
 0xea7   : > { %9457 = vmatprep.subr.bf16.mxu0 %v12655_v14  ;;  %9563 = vmatprep.subr.bf16.mxu1 %v12658_v12 }
 0xeaa   : > { %9458 = vmatpush1.bf16.msra.mxu0 %v12653_v48  ;;  %9564 = vmatpush1.bf16.msra.mxu1 %v12656_v24 }
 0xeab   : > { %9459 = vmatprep.subr.bf16.mxu0 %v12661_v62  ;;  %9565 = vmatprep.subr.bf16.mxu1 %v12664_v27 }
 0xeae   : > { %9460 = vmatpush1.bf16.msra.mxu0 %v12659_v59  ;;  %9566 = vmatpush1.bf16.msra.mxu1 %v12662_v29 }
 0xeaf   : > { %9461 = vmatprep.subr.bf16.mxu0 %v12667_v47  ;;  %9567 = vmatprep.subr.bf16.mxu1 %v12670_v40 }
 0xeb2   : > { %9462 = vmatpush1.bf16.msra.mxu0 %v12665_v46  ;;  %9568 = vmatpush1.bf16.msra.mxu1 %v12668_v51 }
 0xeb3   : > { %9463 = vmatprep.subr.bf16.mxu0 %v12673_v0  ;;  %9569 = vmatprep.subr.bf16.mxu1 %v12676_v38 }
 0xeb6   : > { %9464 = vmatpush1.bf16.msra.mxu0 %v12671_v28  ;;  %9570 = vmatpush1.bf16.msra.mxu1 %v12674_v6 }
 0xeb7   : > { %9465 = vmatprep.subr.bf16.mxu0 %v12679_v41  ;;  %9571 = vmatprep.subr.bf16.mxu1 %v12682_v13 }
 0xeba   : > { %9466 = vmatpush1.bf16.msra.mxu0 %v12677_v43  ;;  %9572 = vmatpush1.bf16.msra.mxu1 %v12680_v18  ;;  %v8278_v18 = vld [vmem:[#allocation25 + $0xc] sm:$0xf] }
 0xebb   : > { %9467 = vmatprep.subr.bf16.mxu0 %v12685_v63  ;;  %9573 = vmatprep.subr.bf16.mxu1 %v12688_v50  ;;  %v8612_v63 = vunpack.c.l.bf16 %v16393_v44  ;;  %v8616_v50 = vunpack.c.h.bf16 %v16393_v44 }
 0xebe   : > { %9468 = vmatpush1.bf16.msra.mxu0 %v12683_v11  ;;  %9574 = vmatpush1.bf16.msra.mxu1 %v12686_v19  ;;  %v8611_v11 = vunpack.c.l.bf16 %v16397_v39 }
 0xebf   : > { %9469 = vmatprep.subr.bf16.mxu0 %v12691_v21  ;;  %9575 = vmatprep.subr.bf16.mxu1 %v12694_v31  ;;  %v8280_v31 = vld [vmem:[#allocation26 + $0xc] sm:$0xf] }
 0xec2   : > { %9470 = vmatpush1.bf16.msra.mxu0 %v12689_v5  ;;  %9576 = vmatpush1.bf16.msra.mxu1 %v12692_v54 }
 0xec3   : > { %9471 = vmatprep.subr.bf16.mxu0 %v12697_v45  ;;  %9577 = vmatprep.subr.bf16.mxu1 %v12700_v8 }
 0xec6   : > { %9472 = vmatpush1.bf16.msra.mxu0 %v12695_v26  ;;  %9578 = vmatpush1.bf16.msra.mxu1 %v12698_v23 }
 0xec7   : > { %9494 = vmatprep.subr.bf16.mxu0 %v12703_v4  ;;  %9600 = vmatprep.subr.bf16.mxu1 %v12706_v9 }
 0xf1a   : > { %v8285_v61 = vpop.xlane.xlu0 %8284 }
 0xf1b   : > { %v16562_v53 = vmul.f32 0.001953125, %v8285_v61  ;;  %v16587_v61 = vrot.slane %v8278_v18, %v17197_v42 }
 0xf1c   : > { %v8290_v14 = vpop.xlane.xlu1 %8289 }
 0xf1d   : > { %v16564_v12 = vmul.f32 0.001953125, %v8290_v14  ;;  %v8345_v24 = vmul.f32 %v16562_v53, %v16562_v53 }
 0xf1e   : > { %v8325_v48 = vpop.xlane.xlu0 %8324 }
 0xf1f   : > { %v8341_v62 = vmul.f32 0.001953125, %v8325_v48  ;;  %v8346_v29 = vmul.f32 %v16564_v12, %v16564_v12 }
 0xf21   : > { %v8349_v27 = vsub.f32 %v8341_v62, %v8345_v24  ;;  %v8330_v59 = vpop.xlane.xlu1 %8329  ;;  %v16592_v62 = vrot.slane %v8280_v31, %v17197_v42 }
 0xf22   : > { %v8342_v47 = vmul.f32 0.001953125, %v8330_v59  ;;  %v8295_v40 = vpop.xlane.xlu0 %8294  ;;  %v16598_v59 = vrot.slane %v8278_v18, %v17198_v33 }
 0xf23   : > { %v8369_v46 = vadd.f32 1e-05, %v8349_v27  ;;  %v16570_v51 = vmul.f32 0.001953125, %v8295_v40  ;;  %v16595_v27 = vrot.slane %v8278_v18, %v17195_v52  ;;  %v16607_v40 = vrot.slane %v8278_v18, %v17196_v60 }
 0xf24   : > { %v8350_v0 = vsub.f32 %v8342_v47, %v8346_v29  ;;  %v16601_v29 = vrot.slane %v8280_v31, %v17195_v52  ;;  %v16604_v47 = vrot.slane %v8280_v31, %v17198_v33  ;;  %v8358_v18 = vsub.f32 %v16496_v3, %v16564_v12 }
 0xf25   : > { %13005 = vrsqrt.f32 %v8369_v46  ;;  %v8300_v38 = vpop.xlane.xlu1 %8299  ;;  %v8347_v13 = vmul.f32 %v16570_v51, %v16570_v51  ;;  %v8353_v46 = vsub.f32 %v16481_v56, %v16562_v53  ;;  %v8362_v3 = vsub.f32 %v16521_v22, %v16570_v51 }
 0xf26   : > { %v8370_v28 = vadd.f32 1e-05, %v8350_v0  ;;  %v16572_v6 = vmul.f32 0.001953125, %v8300_v38  ;;  %v8335_v41 = vpop.xlane.xlu0 %8334  ;;  %v8354_v0 = vsub.f32 %v16486_v58, %v16562_v53  ;;  %v8356_v38 = vsub.f32 %v16500_v57, %v16562_v53 }
 0xf27   : > { %v8343_v43 = vmul.f32 0.001953125, %v8335_v41  ;;  %v8359_v57 = vsub.f32 %v16504_v15, %v16564_v12  ;;  %v8364_v15 = vsub.f32 %v16528_v35, %v16570_v51 }
 0xf28   : > { %13007 = vrsqrt.f32 %v8370_v28  ;;  %v8348_v8 = vmul.f32 %v16572_v6, %v16572_v6 }
 0xf29   : > { %v8351_v19 = vsub.f32 %v8343_v43, %v8347_v13  ;;  %v8340_v21 = vpop.xlane.xlu1 %8339  ;;  %v8355_v13 = vsub.f32 %v16483_v17, %v16562_v53  ;;  %v8357_v43 = vsub.f32 %v16490_v25, %v16564_v12  ;;  %v8361_v17 = vsub.f32 %v16515_v7, %v16570_v51 }
 0xf2a   : > { %v8344_v26 = vmul.f32 0.001953125, %v8340_v21 }
 0xf2b   : > { %v8371_v9 = vadd.f32 1e-05, %v8351_v19  ;;  %v16622_v19 = vrot.slane %v8280_v31, %v17196_v60  ;;  %v8363_v31 = vsub.f32 %v16517_v20, %v16570_v51 }
 0xf2c   : > { %v8352_v24 = vsub.f32 %v8344_v26, %v8348_v8  ;;  %v8360_v8 = vsub.f32 %v16511_v10, %v16564_v12 }
 0xf2d   : > { %13009 = vrsqrt.f32 %v8371_v9 }
 0xf2e   : > { %v8372_v28 = vadd.f32 1e-05, %v8352_v24 }
 0xf2f   : > { %v13006_v41 = vpop.eup %13005 }
 0xf30   : > { %13011 = vrsqrt.f32 %v8372_v28  ;;  %v8378_v56 = vmul.f32 %v13006_v41, %v8354_v0  ;;  %v8377_v58 = vmul.f32 %v13006_v41, %v8353_v46  ;;  %v8380_v21 = vmul.f32 %v13006_v41, %v8356_v38 }
 0xf31   : > { %v8379_v25 = vmul.f32 %v13006_v41, %v8355_v13 }
 0xf32   : > { %v13008_v53 = vpop.eup %13007  ;;  %v8415_v26 = vmul.f32 %v16587_v61, %v8378_v56  ;;  %v8414_v9 = vmul.f32 %v16595_v27, %v8377_v58  ;;  %v8417_v0 = vmul.f32 %v16598_v59, %v8380_v21 }
 0xf33   : > { %v8382_v24 = vmul.f32 %v13008_v53, %v8358_v18  ;;  %v8381_v10 = vmul.f32 %v13008_v53, %v8357_v43  ;;  %v8383_v12 = vmul.f32 %v13008_v53, %v8359_v57  ;;  %v16642_v22 = vmul.f32 %v16607_v40, %v8379_v25 }
 0xf34   : > { %v8452_v7 = vadd.f32 %v16592_v62, %v8415_v26  ;;  %v8451_v46 = vadd.f32 %v16601_v29, %v8414_v9  ;;  %v8384_v41 = vmul.f32 %v13008_v53, %v8360_v8  ;;  %v8365_v43 = vsub.f32 %v16530_v55, %v16572_v6 }
 0xf35   : > { %v8419_v38 = vmul.f32 %v16587_v61, %v8382_v24  ;;  %v8418_v28 = vmul.f32 %v16595_v27, %v8381_v10  ;;  %v16647_v13 = vmul.f32 %v16607_v40, %v8383_v12  ;;  %v8366_v18 = vsub.f32 %v16538_v1, %v16572_v6 }
 0xf36   : > { %v8484_v56 = vmul.f32 0.044715, %v8452_v7  ;;  %v8483_v58 = vmul.f32 0.044715, %v8451_v46  ;;  %v8367_v57 = vsub.f32 %v16544_v49, %v16572_v6  ;;  %v8368_v25 = vsub.f32 %v16551_v36, %v16572_v6 }
 0xf37   : > { %v16653_v21 = vpop.eup %13009  ;;  %v8456_v8 = vadd.f32 %v16592_v62, %v8419_v38  ;;  %v8455_v53 = vadd.f32 %v16601_v29, %v8418_v28  ;;  %v8421_v12 = vmul.f32 %v16598_v59, %v8384_v41  ;;  %v16665_v48 = vadd.f32 %v16604_v47, %v8417_v0 }
 0xf38   : > { %v8500_v26 = vmul.f32 %v8484_v56, %v8452_v7  ;;  %v8499_v9 = vmul.f32 %v8483_v58, %v8451_v46  ;;  %v8386_v55 = vmul.f32 %v16653_v21, %v8362_v3  ;;  %v8385_v1 = vmul.f32 %v16653_v21, %v8361_v17 }
 0xf39   : > { %v8488_v24 = vmul.f32 0.044715, %v8456_v8  ;;  %v8487_v10 = vmul.f32 0.044715, %v8455_v53 }
 0xf3a   : > { %v16667_v14 = vpop.eup %13011  ;;  %v8516_v4 = vmul.f32 %v8500_v26, %v8452_v7  ;;  %v8515_v23 = vmul.f32 %v8499_v9, %v8451_v46  ;;  %v8423_v38 = vmul.f32 %v16587_v61, %v8386_v55  ;;  %v8422_v28 = vmul.f32 %v16595_v27, %v8385_v1 }
 0xf3b   : > { %v8504_v56 = vmul.f32 %v8488_v24, %v8456_v8  ;;  %v8503_v58 = vmul.f32 %v8487_v10, %v8455_v53  ;;  %v8390_v3 = vmul.f32 %v16667_v14, %v8366_v18  ;;  %v8389_v17 = vmul.f32 %v16667_v14, %v8365_v43 }
 0xf3c   : > { %v8532_v45 = vadd.f32 %v8516_v4, %v8452_v7  ;;  %v8531_v54 = vadd.f32 %v8515_v23, %v8451_v46  ;;  %v8460_v41 = vadd.f32 %v16592_v62, %v8423_v38  ;;  %v16675_v0 = vadd.f32 %v16601_v29, %v8422_v28 }
 0xf3d   : > { %v8520_v5 = vmul.f32 %v8504_v56, %v8456_v8  ;;  %v8519_v26 = vmul.f32 %v8503_v58, %v8455_v53  ;;  %v8427_v9 = vmul.f32 %v16587_v61, %v8390_v3  ;;  %v8426_v55 = vmul.f32 %v16595_v27, %v8389_v17 }
 0xf3e   : > { %v16679_v1 = vmul.f32 0.5, %v8452_v7  ;;  %v8548_v24 = vmul.f32 0.7978846, %v8532_v45  ;;  %v8547_v10 = vmul.f32 0.7978846, %v8531_v54  ;;  %v16682_v18 = vadd.f32 %v16604_v47, %v8421_v12 }
 0xf3f   : > { %v8536_v4 = vadd.f32 %v8520_v5, %v8456_v8  ;;  %v8535_v23 = vadd.f32 %v8519_v26, %v8455_v53  ;;  %v16685_v43 = vadd.f32 %v16592_v62, %v8427_v9  ;;  %v8492_v38 = vmul.f32 0.044715, %v8460_v41 }
 0xf40   : > { %13013 = vtanh.f32 %v8548_v24  ;;  %v8467_v28 = vmul.f32 0.5, %v8451_v46  ;;  %v16688_v56 = vadd.f32 %v16601_v29, %v8426_v55  ;;  %v8491_v61 = vmul.f32 0.044715, %v16675_v0 }
 0xf41   : > { %v8552_v27 = vmul.f32 0.7978846, %v8536_v4  ;;  %v8551_v7 = vmul.f32 0.7978846, %v8535_v23  ;;  %13015 = vtanh.f32 %v8547_v10  ;;  %v16692_v54 = vmul.f32 0.5, %v16665_v48 }
 0xf42   : > { %v8472_v45 = vmul.f32 0.5, %v8456_v8  ;;  %v8496_v5 = vmul.f32 0.044715, %v16685_v43  ;;  %v8508_v12 = vmul.f32 %v8492_v38, %v8460_v41  ;;  %v8495_v62 = vmul.f32 0.044715, %v16688_v56 }
 0xf43   : > { %13017 = vtanh.f32 %v8552_v27  ;;  %v8507_v46 = vmul.f32 %v8491_v61, %v16675_v0  ;;  %v8486_v29 = vmul.f32 0.044715, %v16665_v48  ;;  %v8490_v58 = vmul.f32 0.044715, %v16682_v18 }
 0xf44   : > { %13019 = vtanh.f32 %v8551_v7  ;;  %v8512_v3 = vmul.f32 %v8496_v5, %v16685_v43  ;;  %v8524_v17 = vmul.f32 %v8508_v12, %v8460_v41  ;;  %v8511_v26 = vmul.f32 %v8495_v62, %v16688_v56 }
 0xf45   : > { %v8523_v8 = vmul.f32 %v8507_v46, %v16675_v0  ;;  %v8502_v9 = vmul.f32 %v8486_v29, %v16665_v48  ;;  %v8506_v55 = vmul.f32 %v8490_v58, %v16682_v18  ;;  %v16706_v24 = vadd.f32 %v16622_v19, %v16642_v22 }
 0xf46   : > { %v8528_v10 = vmul.f32 %v8512_v3, %v16685_v43  ;;  %v8540_v4 = vadd.f32 %v8524_v17, %v8460_v41  ;;  %v8527_v23 = vmul.f32 %v8511_v26, %v16688_v56  ;;  %v16712_v38 = vadd.f32 %v16622_v19, %v16647_v13 }
 0xf47   : > { %v8471_v61 = vmul.f32 0.5, %v8455_v53  ;;  %v8539_v27 = vadd.f32 %v8523_v8, %v16675_v0  ;;  %v8518_v7 = vmul.f32 %v8502_v9, %v16665_v48  ;;  %v8522_v5 = vmul.f32 %v8506_v55, %v16682_v18 }
 0xf48   : > { %v16717_v12 = vmul.f32 0.5, %v8460_v41  ;;  %v8544_v22 = vadd.f32 %v8528_v10, %v16685_v43  ;;  %v8556_v62 = vmul.f32 0.7978846, %v8540_v4  ;;  %v8543_v46 = vadd.f32 %v8527_v23, %v16688_v56 }
 0xf49   : > { %v8555_v29 = vmul.f32 0.7978846, %v8539_v27  ;;  %v8534_v58 = vadd.f32 %v8518_v7, %v16665_v48  ;;  %v8538_v13 = vadd.f32 %v8522_v5, %v16682_v18  ;;  %v8485_v53 = vmul.f32 0.044715, %v16706_v24 }
 0xf4a   : > { %v13014_v3 = vpop.eup %13013  ;;  %v8560_v17 = vmul.f32 0.7978846, %v8544_v22  ;;  %13021 = vtanh.f32 %v8556_v62  ;;  %v8559_v26 = vmul.f32 0.7978846, %v8543_v46  ;;  %v8489_v8 = vmul.f32 0.044715, %v16712_v38 }
 0xf4b   : > { %v13016_v41 = vpop.eup %13015  ;;  %v8580_v9 = vadd.f32 1.0, %v13014_v3  ;;  %13023 = vtanh.f32 %v8555_v29  ;;  %v8550_v55 = vmul.f32 0.7978846, %v8534_v58  ;;  %v8554_v10 = vmul.f32 0.7978846, %v8538_v13 }
 0xf4c   : > { %v8579_v4 = vadd.f32 1.0, %v13016_v41  ;;  %13025 = vtanh.f32 %v8560_v17  ;;  %v8501_v23 = vmul.f32 %v8485_v53, %v16706_v24  ;;  %v8505_v48 = vmul.f32 %v8489_v8, %v16712_v38  ;;  %v12701_v8 = vld [vmem:[#allocation28 + $0x200] ss:$16 sps:$4 sm:$0xff]  }
 0xf4d   : > { %v13018_v27 = vpop.eup %13017  ;;  %v8596_v7 = vmul.f32 %v8580_v9, %v16679_v1  ;;  %13027 = vtanh.f32 %v8559_v26  ;;  %v8388_v5 = vmul.f32 %v16653_v21, %v8364_v15  ;;  %v8392_v22 = vmul.f32 %v16667_v14, %v8368_v25 }
 0xf4e   : > { %v13020_v62 = vpop.eup %13019  ;;  %v8584_v46 = vadd.f32 1.0, %v13018_v27  ;;  %v8595_v29 = vmul.f32 %v8579_v4, %v8467_v28  ;;  %13029 = vtanh.f32 %v8550_v55  ;;  %v8517_v58 = vmul.f32 %v8501_v23, %v16706_v24  ;;  %v12712_v55 = vld [vmem:[#allocation28 + $0x22c] ss:$16 sps:$4 sm:$0xff]  }
 0xf4f   : > { %v8628_v1 = vadd.f32 %v8612_v63, %v8596_v7  ;;  %v8583_v13 = vadd.f32 1.0, %v13020_v62  ;;  %13031 = vtanh.f32 %v8554_v10  ;;  %v8521_v35 = vmul.f32 %v8505_v48, %v16712_v38 }
 0xf50   : > { %v8600_v53 = vmul.f32 %v8584_v46, %v8472_v45  ;;  %v8627_v15 = vadd.f32 %v8611_v11, %v8595_v29  ;;  %v8533_v36 = vadd.f32 %v8517_v58, %v16706_v24  ;;  %v8425_v25 = vmul.f32 %v16598_v59, %v8388_v5  ;;  %v12707_v46 = vld [vmem:[#allocation28 + $0x220] ss:$16 sps:$4 sm:$0xff]   ;;  %v12710_v29 = vld [vmem:[#allocation28 + $0x228] ss:$16 sps:$4 sm:$0xff]  }
 0xf51   : > { %v8599_v3 = vmul.f32 %v8583_v13, %v8471_v61  ;;  %v8537_v28 = vadd.f32 %v8521_v35, %v16712_v38  ;;  %v8429_v17 = vmul.f32 %v16598_v59, %v8392_v22  ;;  %v8387_v63 = vmul.f32 %v16653_v21, %v8363_v31  ;;  %v12704_v31 = vld [vmem:[#allocation28 + $0x208] ss:$16 sps:$4 sm:$0xff]  }
 0xf52   : > { %v8632_v45 = vadd.f32 %v8616_v50, %v8600_v53  ;;  %v8549_v26 = vmul.f32 0.7978846, %v8533_v36  ;;  %v16753_v11 = vadd.f32 %v16604_v47, %v8425_v25  ;;  %v8391_v61 = vmul.f32 %v16667_v14, %v8367_v57  ;;  %v12709_v57 = vld [vmem:[#allocation28 + $0x224] ss:$16 sps:$4 sm:$0xff]  }
 0xf53   : > { %v17220_v59 = vunpack.c.h.bf16 %v16397_v39  ;;  %v8553_v9 = vmul.f32 0.7978846, %v8537_v28  ;;  %v16762_v20 = vadd.f32 %v16604_v47, %v8429_v17  ;;  %v8424_v44 = vmul.f32 %v16607_v40, %v8387_v63  ;;  %v12715_v53 = vld [vmem:[#allocation28 + $0x244] ss:$16 sps:$4 sm:$0xff]  }
 0xf54   : > { %v13022_v51 = vpop.eup %13021  ;;  %v8644_v50 = vpack.c.bf16 %v8632_v45, %v8628_v1  ;;  %v8475_v21 = vmul.f32 0.5, %v16675_v0  ;;  %13033 = vtanh.f32 %v8549_v26  ;;  %v8494_v49 = vmul.f32 0.044715, %v16753_v11 }
 0xf55   : > { %v8631_v41 = vadd.f32 %v17220_v59, %v8599_v3  ;;  %v13024_v6 = vpop.eup %13023  ;;  %v8480_v39 = vmul.f32 0.5, %v16685_v43  ;;  %v8588_v10 = vadd.f32 1.0, %v13022_v51  ;;  %13035 = vtanh.f32 %v8553_v9 }
 0xf56   : > { %v13026_v47 = vpop.eup %13025  ;;  %9473 = vmatprep.mubr.bf16.mxu0 %v8644_v50  ;;  %9579 = vmatprep.mubr.bf16.mxu1 %v8644_v50  ;;  %v8587_v4 = vadd.f32 1.0, %v13024_v6  ;;  %v8498_v23 = vmul.f32 0.044715, %v16762_v20  ;;  %v8510_v48 = vmul.f32 %v8494_v49, %v16753_v11  ;;  %v8428_v0 = vmul.f32 %v16607_v40, %v8391_v61 }
 0xf57   : > { %v8643_v14 = vpack.c.bf16 %v8631_v41, %v8627_v15  ;;  %v13028_v27 = vpop.eup %13027  ;;  %v8592_v7 = vadd.f32 1.0, %v13026_v47  ;;  %v8604_v5 = vmul.f32 %v8588_v10, %v16717_v12  ;;  %v8479_v43 = vmul.f32 0.5, %v16688_v56  ;;  %v12718_v56 = vld [vmem:[#allocation28 + $0x24c] ss:$16 sps:$4 sm:$0xff]  }
 0xf58   : > { %v16774_v22 = vadd.f32 %v16622_v19, %v8424_v44  ;;  %v13030_v62 = vpop.eup %13029  ;;  %v8591_v58 = vadd.f32 1.0, %v13028_v27  ;;  %v8603_v1 = vmul.f32 %v8587_v4, %v8475_v21  ;;  %v8514_v40 = vmul.f32 %v8498_v23, %v16762_v20  ;;  %v12716_v21 = vld [vmem:[#allocation28 + $0x248] ss:$16 sps:$4 sm:$0xff]   ;;  %v12721_v4 = vld [vmem:[#allocation28 + $0x264] ss:$16 sps:$4 sm:$0xff]  }
 0xf59   : > { %9474 = vmatmul.mubr.bf16.vlgmr.msra.gmra.mrb[56].mxu0 %v8643_v14  ;;  %9580 = vmatmul.mubr.bf16.vlgmr.msra.gmra.mrb[56].mxu1 %v8643_v14  ;;  %v8526_v13 = vmul.f32 %v8510_v48, %v16753_v11  ;;  %v13032_v35 = vpop.eup %13031  ;;  %v8608_v12 = vmul.f32 %v8592_v7, %v8480_v39  ;;  %v8474_v15 = vmul.f32 0.5, %v16682_v18  ;;  %v8582_v36 = vadd.f32 1.0, %v13030_v62  ;;  %v12724_v23 = vld [vmem:[#allocation28 + $0x26c] ss:$16 sps:$4 sm:$0xff]   ;;  %v12722_v62 = vld [vmem:[#allocation28 + $0x268] ss:$16 sps:$4 sm:$0xff]  }
 0xf5a   : > { %9495 = vmatpush1.bf16.msra.mxu0 %v12701_v8  ;;  %9601 = vmatpush1.bf16.msra.mxu1 %v12704_v31  ;;  %v16780_v25 = vadd.f32 %v16622_v19, %v8428_v0  ;;  %v17221_v3 = vunpack.c.l.bf16 %v16431_v34  ;;  %v8607_v17 = vmul.f32 %v8591_v58, %v8479_v43  ;;  %v8586_v63 = vadd.f32 1.0, %v13032_v35  ;;  %v12713_v19 = vld [vmem:[#allocation28 + $0x240] ss:$16 sps:$4 sm:$0xff]   ;;  %v12727_v58 = vld [vmem:[#allocation28 + $0x284] ss:$16 sps:$4 sm:$0xff]  }
 0xf5b   : > { %9496 = vmatprep.subr.bf16.mxu0 %v12709_v57  ;;  %9602 = vmatprep.subr.bf16.mxu1 %v12712_v55  ;;  %v8530_v45 = vmul.f32 %v8514_v40, %v16762_v20  ;;  %v17222_v26 = vunpack.c.h.bf16 %v16431_v34  ;;  %v17223_v8 = vunpack.c.l.bf16 %v16436_v16  ;;  %v8598_v41 = vmul.f32 %v8582_v36, %v16692_v54  ;;  %v12719_v43 = vld [vmem:[#allocation28 + $0x260] ss:$16 sps:$4 sm:$0xff]  }
 0xf5c   : > { %v8636_v28 = vadd.f32 %v17221_v3, %v8604_v5  ;;  %v8542_v18 = vadd.f32 %v8526_v13, %v16753_v11  ;;  %v17224_v9 = vunpack.c.h.bf16 %v16436_v16  ;;  %v8602_v51 = vmul.f32 %v8586_v63, %v8474_v15  ;;  %v12725_v36 = vld [vmem:[#allocation28 + $0x280] ss:$16 sps:$4 sm:$0xff]   ;;  %v12728_v3 = vld [vmem:[#allocation28 + $0x288] ss:$16 sps:$4 sm:$0xff]   ;;  %v12736_v63 = vld [vmem:[#allocation28 + $0x2ac] ss:$16 sps:$4 sm:$0xff]  }
 0xf5d   : > { %v8640_v61 = vadd.f32 %v17222_v26, %v8608_v12  ;;  %v8635_v59 = vadd.f32 %v17223_v8, %v8603_v1  ;;  %v8469_v50 = vmul.f32 0.5, %v16706_v24  ;;  %v8546_v31 = vadd.f32 %v8530_v45, %v16762_v20  ;;  %v12730_v1 = vld [vmem:[#allocation28 + $0x28c] ss:$16 sps:$4 sm:$0xff]   ;;  %v12734_v8 = vld [vmem:[#allocation28 + $0x2a8] ss:$16 sps:$4 sm:$0xff]  }
 0xf5e   : > { %9497 = vmatpush1.bf16.msra.mxu0 %v12707_v46  ;;  %9603 = vmatpush1.bf16.msra.mxu1 %v12710_v29  ;;  %v8639_v44 = vadd.f32 %v17224_v9, %v8607_v17  ;;  %v17225_v49 = vunpack.c.l.bf16 %v16447_v30  ;;  %v8558_v6 = vmul.f32 0.7978846, %v8542_v18  ;;  %v8493_v14 = vmul.f32 0.044715, %v16774_v22  ;;  %v13034_v57 = vpop.eup %13033  ;;  %v12733_v17 = vld [vmem:[#allocation28 + $0x2a4] ss:$16 sps:$4 sm:$0xff]  }
 0xf5f   : > { %v8648_v34 = vpack.c.bf16 %v8640_v61, %v8636_v28  ;;  %9498 = vmatprep.subr.bf16.mxu0 %v12715_v53  ;;  %9604 = vmatprep.subr.bf16.mxu1 %v12718_v56  ;;  %v17226_v16 = vunpack.c.h.bf16 %v16447_v30  ;;  %v8562_v10 = vmul.f32 0.7978846, %v8546_v31  ;;  %v8497_v24 = vmul.f32 0.044715, %v16780_v25  ;;  %v13036_v47 = vpop.eup %13035  ;;  %v12731_v61 = vld [vmem:[#allocation28 + $0x2a0] ss:$16 sps:$4 sm:$0xff]  }
 0xf60   : > { %v8630_v54 = vadd.f32 %v17225_v49, %v8598_v41  ;;  %v8647_v55 = vpack.c.bf16 %v8639_v44, %v8635_v59  ;;  %v8473_v48 = vmul.f32 0.5, %v16712_v38  ;;  %v8581_v0 = vadd.f32 1.0, %v13034_v57  ;;  %v12739_v41 = vld [vmem:[#allocation28 + $0x2c4] ss:$16 sps:$4 sm:$0xff]   ;;  %v12742_v18 = vld [vmem:[#allocation28 + $0x2cc] ss:$16 sps:$4 sm:$0xff]  }
 0xf61   : > { %v8634_v39 = vadd.f32 %v17226_v16, %v8602_v51  ;;  %9483 = vmatprep.mubr.bf16.mxu0 %v8648_v34  ;;  %9589 = vmatprep.mubr.bf16.mxu1 %v8648_v34  ;;  %13037 = vtanh.f32 %v8558_v6  ;;  %v8509_v27 = vmul.f32 %v8493_v14, %v16774_v22  ;;  %v8585_v5 = vadd.f32 1.0, %v13036_v47  ;;  %v12737_v34 = vld [vmem:[#allocation28 + $0x2c0] ss:$16 sps:$4 sm:$0xff]   ;;  %v12745_v6 = vld [vmem:[#allocation28 + $0x2e4] ss:$16 sps:$4 sm:$0xff]  }
 0xf62   : > { %9484 = vmatmul.mubr.bf16.gmra.mrb[60].mxu0 %v8647_v55  ;;  %9590 = vmatmul.mubr.bf16.gmra.mrb[60].mxu1 %v8647_v55  ;;  %13039 = vtanh.f32 %v8562_v10  ;;  %v8513_v30 = vmul.f32 %v8497_v24, %v16780_v25  ;;  %v8597_v46 = vmul.f32 %v8581_v0, %v8469_v50  ;;  %v8613_v29 = vunpack.c.l.bf16 %v16458_v2  ;;  %v12748_v14 = vld [vmem:[#allocation28 + $0x2ec] ss:$16 sps:$4 sm:$0xff]   ;;  %v12746_v16 = vld [vmem:[#allocation28 + $0x2e8] ss:$16 sps:$4 sm:$0xff]   ;;  %v12751_v24 = vld [vmem:[#allocation28 + $0x304] ss:$16 sps:$4 sm:$0xff]  }
 0xf63   : > { %v8646_v7 = vpack.c.bf16 %v8634_v39, %v8630_v54  ;;  %9499 = vmatpush1.bf16.msra.mxu0 %v12713_v19  ;;  %9605 = vmatpush1.bf16.msra.mxu1 %v12716_v21  ;;  %v8525_v38 = vmul.f32 %v8509_v27, %v16774_v22  ;;  %v8601_v40 = vmul.f32 %v8585_v5, %v8473_v48  ;;  %v8617_v13 = vunpack.c.h.bf16 %v16458_v2  ;;  %v12740_v21 = vld [vmem:[#allocation28 + $0x2c8] ss:$16 sps:$4 sm:$0xff]   ;;  %v12754_v47 = vld [vmem:[#allocation28 + $0x30c] ss:$16 sps:$4 sm:$0xff]  }
 0xf64   : > { %v8529_v35 = vmul.f32 %v8513_v30, %v16780_v25  ;;  %9500 = vmatprep.subr.bf16.mxu0 %v12721_v4  ;;  %9606 = vmatprep.subr.bf16.mxu1 %v12724_v23  ;;  %v8629_v12 = vadd.f32 %v8613_v29, %v8597_v46  ;;  %v8478_v19 = vmul.f32 0.5, %v16753_v11  ;;  %v8482_v44 = vmul.f32 0.5, %v16762_v20  ;;  %v12743_v20 = vld [vmem:[#allocation28 + $0x2e0] ss:$16 sps:$4 sm:$0xff]   ;;  %v12752_v5 = vld [vmem:[#allocation28 + $0x308] ss:$16 sps:$4 sm:$0xff]  }
 0xf65   : > { %9526 = vmatprep.mubr.bf16.mxu0 %v8646_v7  ;;  %9632 = vmatprep.mubr.bf16.mxu1 %v8646_v7  ;;  %v8541_v53 = vadd.f32 %v8525_v38, %v16774_v22  ;;  %v8633_v56 = vadd.f32 %v8617_v13, %v8601_v40  ;;  %v8622_v31 = vunpack.c.l.bf16 %v16464_v32  ;;  %v8626_v54 = vunpack.c.h.bf16 %v16464_v32  ;;  %v12749_v7 = vld [vmem:[#allocation28 + $0x300] ss:$16 sps:$4 sm:$0xff]   ;;  %v12760_v46 = vld [vmem:[#allocation28 + $0x32c] ss:$16 sps:$4 sm:$0xff]   ;;  %v12758_v38 = vld [vmem:[#allocation28 + $0x328] ss:$16 sps:$4 sm:$0xff]  }
 0xf66   : > { %v8545_v15 = vadd.f32 %v8529_v35, %v16780_v25  ;;  %v8477_v32 = vmul.f32 0.5, %v16774_v22  ;;  %v8481_v23 = vmul.f32 0.5, %v16780_v25  ;;  %v8621_v27 = vunpack.c.l.bf16 %v16470_v37  ;;  %v12755_v25 = vld [vmem:[#allocation28 + $0x320] ss:$16 sps:$4 sm:$0xff]   ;;  %v12766_v40 = vld [vmem:[#allocation28 + $0x34c] ss:$16 sps:$4 sm:$0xff]  }
 0xf67   : > { %9501 = vmatpush1.bf16.msra.mxu0 %v12719_v43  ;;  %9607 = vmatpush1.bf16.msra.mxu1 %v12722_v62  ;;  %v8557_v28 = vmul.f32 0.7978846, %v8541_v53  ;;  %v16810_v2 = vpack.c.bf16 %v8633_v56, %v8629_v12  ;;  %v8625_v43 = vunpack.c.h.bf16 %v16470_v37  ;;  %v12757_v62 = vld [vmem:[#allocation28 + $0x324] ss:$16 sps:$4 sm:$0xff]   ;;  %v12761_v13 = vld [vmem:[#allocation28 + $0x340] ss:$16 sps:$4 sm:$0xff]  }
 0xf68   : > { %9502 = vmatprep.subr.bf16.mxu0 %v12727_v58  ;;  %9608 = vmatprep.subr.bf16.mxu1 %v12730_v1  ;;  %v8561_v45 = vmul.f32 0.7978846, %v8545_v15  ;;  %v12763_v1 = vld [vmem:[#allocation28 + $0x344] ss:$16 sps:$4 sm:$0xff]   ;;  %v12764_v35 = vld [vmem:[#allocation28 + $0x348] ss:$16 sps:$4 sm:$0xff]  }
 0xf69   : > { %13041 = vtanh.f32 %v8557_v28  ;;  %v12769_v37 = vld [vmem:[#allocation28 + $0x364] ss:$16 sps:$4 sm:$0xff]   ;;  %v12772_v12 = vld [vmem:[#allocation28 + $0x36c] ss:$16 sps:$4 sm:$0xff]   ;;  %v12767_v53 = vld [vmem:[#allocation28 + $0x360] ss:$16 sps:$4 sm:$0xff]  }
 0xf6a   : > { %13043 = vtanh.f32 %v8561_v45  ;;  %v12770_v56 = vld [vmem:[#allocation28 + $0x368] ss:$16 sps:$4 sm:$0xff]   ;;  %v12775_v15 = vld [vmem:[#allocation28 + $0x384] ss:$16 sps:$4 sm:$0xff]   ;;  %v12779_v45 = vld [vmem:[#allocation28 + $0x3a0] ss:$16 sps:$4 sm:$0xff]  }
 0xf6b   : > { %v13038_v26 = vpop.eup %13037  ;;  %9503 = vmatpush1.bf16.msra.mxu0 %v12725_v36  ;;  %9609 = vmatpush1.bf16.msra.mxu1 %v12728_v3  ;;  %v12778_v36 = vld [vmem:[#allocation28 + $0x38c] ss:$16 sps:$4 sm:$0xff]   ;;  %v12773_v3 = vld [vmem:[#allocation28 + $0x380] ss:$16 sps:$4 sm:$0xff]   ;;  %v12776_v28 = vld [vmem:[#allocation28 + $0x388] ss:$16 sps:$4 sm:$0xff]  }
 0xf6c   : > { %v13040_v59 = vpop.eup %13039  ;;  %9504 = vmatprep.subr.bf16.mxu0 %v12733_v17  ;;  %9610 = vmatprep.subr.bf16.mxu1 %v12736_v63  ;;  %v8590_v9 = vadd.f32 1.0, %v13038_v26  ;;  %v12781_v17 = vld [vmem:[#allocation28 + $0x3a4] ss:$16 sps:$4 sm:$0xff]   ;;  %v12784_v63 = vld [vmem:[#allocation28 + $0x3ac] ss:$16 sps:$4 sm:$0xff]  }
 0xf6d   : > { %v8594_v51 = vadd.f32 1.0, %v13040_v59  ;;  %v12782_v26 = vld [vmem:[#allocation28 + $0x3a8] ss:$16 sps:$4 sm:$0xff]   ;;  %v12785_v59 = vld [vmem:[#allocation28 + $0x3c0] ss:$16 sps:$4 sm:$0xff]  }
 0xf6e   : > { %v8606_v50 = vmul.f32 %v8590_v9, %v8478_v19  ;;  %v12796_v19 = vld [vmem:[#allocation28 + $0x3ec] ss:$16 sps:$4 sm:$0xff]   ;;  %v12791_v9 = vld [vmem:[#allocation28 + $0x3e0] ss:$16 sps:$4 sm:$0xff]  }
 0xf6f   : > { %9505 = vmatpush1.bf16.msra.mxu0 %v12731_v61  ;;  %9611 = vmatpush1.bf16.msra.mxu1 %v12734_v8  ;;  %v8610_v49 = vmul.f32 %v8594_v51, %v8482_v44  ;;  %v12787_v61 = vld [vmem:[#allocation28 + $0x3c4] ss:$16 sps:$4 sm:$0xff]   ;;  %v12790_v8 = vld [vmem:[#allocation28 + $0x3cc] ss:$16 sps:$4 sm:$0xff]   ;;  %v12794_v44 = vld [vmem:[#allocation28 + $0x3e8] ss:$16 sps:$4 sm:$0xff]  }
 0xf70   : > { %9506 = vmatprep.subr.bf16.mxu0 %v12739_v41  ;;  %9612 = vmatprep.subr.bf16.mxu1 %v12742_v18  ;;  %v8638_v57 = vadd.f32 %v8622_v31, %v8606_v50  ;;  %v12788_v41 = vld [vmem:[#allocation28 + $0x3c8] ss:$16 sps:$4 sm:$0xff]   ;;  %v12793_v18 = vld [vmem:[#allocation28 + $0x3e4] ss:$16 sps:$4 sm:$0xff]   ;;  %v16826_v51 = vld [vmem:[#allocation29] sm:$0xf] }
 0xf71   : > { %v8642_v11 = vadd.f32 %v8626_v54, %v8610_v49  ;;  %v8784_v50 = vrot.slane %v16826_v51, %v17195_v52  ;;  %v8788_v31 = vrot.slane %v16826_v51, %v17197_v42 }
 0xf73   : > { %v13042_v55 = vpop.eup %13041  ;;  %9507 = vmatpush1.bf16.msra.mxu0 %v12737_v34  ;;  %9613 = vmatpush1.bf16.msra.mxu1 %v12740_v21  ;;  %v16816_v39 = vpack.c.bf16 %v8642_v11, %v8638_v57 }
 0xf74   : > { %v13044_v10 = vpop.eup %13043  ;;  %9508 = vmatprep.subr.bf16.mxu0 %v12745_v6  ;;  %9614 = vmatprep.subr.bf16.mxu1 %v12748_v14  ;;  %v8589_v4 = vadd.f32 1.0, %v13042_v55 }
 0xf75   : > { %v8593_v48 = vadd.f32 1.0, %v13044_v10 }
 0xf76   : > { %v8605_v0 = vmul.f32 %v8589_v4, %v8477_v32 }
 0xf77   : > { %9509 = vmatpush1.bf16.msra.mxu0 %v12743_v20  ;;  %9615 = vmatpush1.bf16.msra.mxu1 %v12746_v16  ;;  %v8609_v30 = vmul.f32 %v8593_v48, %v8481_v23 }
 0xf78   : > { %9510 = vmatprep.subr.bf16.mxu0 %v12751_v24  ;;  %9616 = vmatprep.subr.bf16.mxu1 %v12754_v47  ;;  %v8637_v29 = vadd.f32 %v8621_v27, %v8605_v0 }
 0xf79   : > { %v8641_v22 = vadd.f32 %v8625_v43, %v8609_v30 }
 0xf7b   : > { %9511 = vmatpush1.bf16.msra.mxu0 %v12749_v7  ;;  %9617 = vmatpush1.bf16.msra.mxu1 %v12752_v5  ;;  %v8649_v58 = vpack.c.bf16 %v8641_v22, %v8637_v29 }
 0xf7c   : > { %9512 = vmatprep.subr.bf16.mxu0 %v12757_v62  ;;  %9618 = vmatprep.subr.bf16.mxu1 %v12760_v46 }
 0xf7f   : > { %9513 = vmatpush1.bf16.msra.mxu0 %v12755_v25  ;;  %9619 = vmatpush1.bf16.msra.mxu1 %v12758_v38 }
 0xf80   : > { %9514 = vmatprep.subr.bf16.mxu0 %v12763_v1  ;;  %9620 = vmatprep.subr.bf16.mxu1 %v12766_v40 }
 0xf83   : > { %9515 = vmatpush1.bf16.msra.mxu0 %v12761_v13  ;;  %9621 = vmatpush1.bf16.msra.mxu1 %v12764_v35 }
 0xf84   : > { %9516 = vmatprep.subr.bf16.mxu0 %v12769_v37  ;;  %9622 = vmatprep.subr.bf16.mxu1 %v12772_v12 }
 0xf87   : > { %9517 = vmatpush1.bf16.msra.mxu0 %v12767_v53  ;;  %9623 = vmatpush1.bf16.msra.mxu1 %v12770_v56  ;;  %v12797_v56 = vld [vmem:[#allocation34 + $0x40] sm:$0xff]  }
 0xf88   : > { %9518 = vmatprep.subr.bf16.mxu0 %v12775_v15  ;;  %9624 = vmatprep.subr.bf16.mxu1 %v12778_v36  ;;  %v12798_v15 = vld [vmem:[#allocation34] sm:$0xff]   ;;  %v12799_v36 = vld [vmem:[#allocation34 + $0x48] sm:$0xff]  }
 0xf8b   : > { %9519 = vmatpush1.bf16.msra.mxu0 %v12773_v3  ;;  %9625 = vmatpush1.bf16.msra.mxu1 %v12776_v28  ;;  %v12800_v3 = vld [vmem:[#allocation34 + $0x8] sm:$0xff]   ;;  %v12801_v28 = vld [vmem:[#allocation34 + $0x50] sm:$0xff]  }
 0xf8c   : > { %9520 = vmatprep.subr.bf16.mxu0 %v12781_v17  ;;  %9626 = vmatprep.subr.bf16.mxu1 %v12784_v63  ;;  %v12802_v17 = vld [vmem:[#allocation34 + $0x10] sm:$0xff]   ;;  %v12803_v63 = vld [vmem:[#allocation34 + $0x58] sm:$0xff]  }
 0xf8f   : > { %9521 = vmatpush1.bf16.msra.mxu0 %v12779_v45  ;;  %9627 = vmatpush1.bf16.msra.mxu1 %v12782_v26  ;;  %v12804_v45 = vld [vmem:[#allocation34 + $0x18] sm:$0xff]   ;;  %v12805_v26 = vld [vmem:[#allocation34 + $0x60] sm:$0xff]  }
 0xf90   : > { %9522 = vmatprep.subr.bf16.mxu0 %v12787_v61  ;;  %9628 = vmatprep.subr.bf16.mxu1 %v12790_v8  ;;  %v12806_v61 = vld [vmem:[#allocation34 + $0x20] sm:$0xff]   ;;  %v12807_v8 = vld [vmem:[#allocation34 + $0x68] sm:$0xff]  }
 0xf93   : > { %9523 = vmatpush1.bf16.msra.mxu0 %v12785_v59  ;;  %9629 = vmatpush1.bf16.msra.mxu1 %v12788_v41  ;;  %v12808_v59 = vld [vmem:[#allocation34 + $0x28] sm:$0xff]   ;;  %v12809_v41 = vld [vmem:[#allocation34 + $0x70] sm:$0xff]  }
 0xf94   : > { %9524 = vmatprep.subr.bf16.mxu0 %v12793_v18  ;;  %9630 = vmatprep.subr.bf16.mxu1 %v12796_v19  ;;  %v12810_v18 = vld [vmem:[#allocation34 + $0x30] sm:$0xff]   ;;  %v12811_v19 = vld [vmem:[#allocation34 + $0x78] sm:$0xff]  }
 0xf97   : > { %9525 = vmatpush1.bf16.msra.mxu0 %v12791_v9  ;;  %9631 = vmatpush1.bf16.msra.mxu1 %v12794_v44  ;;  %v12812_v9 = vld [vmem:[#allocation34 + $0x38] sm:$0xff]  }
 0xf98   : > { %11304 = vmatprep.subr.bf16.mxu0 %v12797_v56 }
 0xf9a   : > { %9527 = vmatmul.mubr.bf16.vlgmr.msra.gmra.mrb[56].mxu0 %v16810_v2  ;;  %9633 = vmatmul.mubr.bf16.vlgmr.msra.gmra.mrb[56].mxu1 %v16810_v2 }
 0xf9b   : > { %9536 = vmatprep.mubr.bf16.mxu0 %v16816_v39  ;;  %9642 = vmatprep.mubr.bf16.mxu1 %v16816_v39 }
 0xf9c   : > { %11305 = vmatpush3.bf16.msra.mxu0 %v12798_v15  ;;  %v9654_v15 = vld [vmem:[#allocation32] sm:$0x3] }
 0xf9d   : > { %11306 = vmatprep.subr.bf16.mxu0 %v12799_v36 }
 0xfa0   : > { %11307 = vmatpush3.bf16.msra.mxu0 %v12800_v3 }
 0xfa1   : > { %11308 = vmatprep.subr.bf16.mxu0 %v12801_v28 }
 0xfa2   : > { %9537 = vmatmul.mubr.bf16.gmra.mrb[60].mxu0 %v8649_v58  ;;  %9643 = vmatmul.mubr.bf16.gmra.mrb[60].mxu1 %v8649_v58 }
 0xfa4   : > { %11309 = vmatpush3.bf16.msra.mxu0 %v12802_v17 }
 0xfa5   : > { %11310 = vmatprep.subr.bf16.mxu0 %v12803_v63 }
 0xfa8   : > { %11311 = vmatpush3.bf16.msra.mxu0 %v12804_v45 }
 0xfa9   : > { %11312 = vmatprep.subr.bf16.mxu0 %v12805_v26  ;;  %v9750_v26 = vrot.slane %v9654_v15, %v17195_v52 }
 0xfac   : > { %11313 = vmatpush3.bf16.msra.mxu0 %v12806_v61  ;;  %v9754_v61 = vrot.slane %v9654_v15, %v17197_v42 }
 0xfad   : > { %11314 = vmatprep.subr.bf16.mxu0 %v12807_v8 }
 0xfb0   : > { %11315 = vmatpush3.bf16.msra.mxu0 %v12808_v59 }
 0xfb1   : > { %11316 = vmatprep.subr.bf16.mxu0 %v12809_v41 }
 0xfb4   : > { %11317 = vmatpush3.bf16.msra.mxu0 %v12810_v18 }
 0xfb5   : > { %11318 = vmatprep.subr.bf16.mxu0 %v12811_v19 }
 0xfb8   : > { %11319 = vmatpush3.bf16.msra.mxu0 %v12812_v9 }
0x106d   : > { %v9528_v34 = vpop.f32.mrb[56].mxu0  ;;  %v16832_v21 = vpop.f32.mrb[56].mxu1 }
0x106e   : > { %v16834_v49 = vadd.f32 %v9528_v34, %v8784_v50  ;;  %v9530_v2 = vpop.f32.mrb[57].mxu0  ;;  %v16836_v54 = vpop.f32.mrb[57].mxu1 }
0x106f   : > { %v16838_v6 = vadd.f32 %v9530_v2, %v8788_v31  ;;  %v9532_v14 = vpop.f32.mrb[58].mxu0  ;;  %v16840_v57 = vpop.f32.mrb[58].mxu1 }
0x1070   : > { %v16842_v11 = vadd.f32 %v9532_v14, %v8784_v50  ;;  %v9534_v55 = vpop.f32.mrb[59].mxu0  ;;  %v16844_v20 = vpop.f32.mrb[59].mxu1  ;;  %v9671_v10 = vmul.f32 %v16834_v49, %v16834_v49 }
0x1071   : > { %v16846_v16 = vadd.f32 %v9534_v55, %v8788_v31  ;;  %v9655_v39 = vadd.f32 %v16838_v6, %v16834_v49  ;;  %v9672_v24 = vmul.f32 %v16838_v6, %v16838_v6 }
0x1072   : > { %v9673_v32 = vmul.f32 %v16842_v11, %v16842_v11 }
0x1073   : > { %9656 = vadd.xlane.f32.xlu0 %v9655_v39  ;;  %v9658_v47 = vadd.f32 %v16846_v16, %v16842_v11  ;;  %v9674_v4 = vmul.f32 %v16846_v16, %v16846_v16  ;;  %v9679_v0 = vadd.f32 %v9672_v24, %v9671_v10 }
0x1075   : > { %v9538_v23 = vpop.f32.mrb[60].mxu0  ;;  %v16860_v48 = vpop.f32.mrb[60].mxu1  ;;  %9659 = vadd.xlane.f32.xlu1 %v9658_v47  ;;  %v9682_v46 = vadd.f32 %v9674_v4, %v9673_v32 }
0x1076   : > { %v16862_v27 = vadd.f32 %v9538_v23, %v8784_v50  ;;  %v9540_v7 = vpop.f32.mrb[61].mxu0  ;;  %v16864_v5 = vpop.f32.mrb[61].mxu1 }
0x1077   : > { %v16866_v30 = vadd.f32 %v9540_v7, %v8788_v31  ;;  %v9542_v43 = vpop.f32.mrb[62].mxu0  ;;  %v16868_v62 = vpop.f32.mrb[62].mxu1  ;;  %9680 = vadd.xlane.f32.xlu0 %v9679_v0 }
0x1078   : > { %v16870_v29 = vadd.f32 %v9542_v43, %v8784_v50  ;;  %v9544_v22 = vpop.f32.mrb[63].mxu0  ;;  %v16872_v25 = vpop.f32.mrb[63].mxu1  ;;  %v9675_v1 = vmul.f32 %v16862_v27, %v16862_v27 }
0x1079   : > { %v16874_v38 = vadd.f32 %v9544_v22, %v8788_v31  ;;  %9683 = vadd.xlane.f32.xlu1 %v9682_v46  ;;  %v9661_v58 = vadd.f32 %v16866_v30, %v16862_v27  ;;  %v9676_v40 = vmul.f32 %v16866_v30, %v16866_v30 }
0x107a   : > { %v9677_v35 = vmul.f32 %v16870_v29, %v16870_v29 }
0x107b   : > { %9662 = vadd.xlane.f32.xlu0 %v9661_v58  ;;  %v9664_v13 = vadd.f32 %v16874_v38, %v16870_v29  ;;  %v9678_v37 = vmul.f32 %v16874_v38, %v16874_v38  ;;  %v9685_v12 = vadd.f32 %v9676_v40, %v9675_v1 }
0x107d   : > { %9665 = vadd.xlane.f32.xlu1 %v9664_v13  ;;  %v9688_v53 = vadd.f32 %v9678_v37, %v9677_v35 }
0x107f   : > { %9686 = vadd.xlane.f32.xlu0 %v9685_v12  ;;  %v9653_v12 = vld [vmem:[#allocation31] sm:$0x3] }
0x1080   : > { %v9731_v17 = vrot.slane %v9653_v12, %v17195_v52  ;;  %v9735_v63 = vrot.slane %v9653_v12, %v17197_v42 }
0x1081   : > { %9689 = vadd.xlane.f32.xlu1 %v9688_v53 }
0x1100   : > { %v9657_v44 = vpop.xlane.xlu0 %9656 }
0x1101   : > { %v9667_v50 = vmul.f32 0.00390625, %v9657_v44 }
0x1102   : > { %v9660_v31 = vpop.xlane.xlu1 %9659 }
0x1103   : > { %v9668_v34 = vmul.f32 0.00390625, %v9660_v31  ;;  %v9695_v14 = vmul.f32 %v9667_v50, %v9667_v50  ;;  %v9703_v3 = vsub.f32 %v16834_v49, %v9667_v50  ;;  %v9704_v28 = vsub.f32 %v16838_v6, %v9667_v50 }
0x1104   : > { %v9681_v2 = vpop.xlane.xlu0 %9680 }
0x1105   : > { %v9691_v55 = vmul.f32 0.00390625, %v9681_v2  ;;  %v9696_v24 = vmul.f32 %v9668_v34, %v9668_v34  ;;  %v9705_v8 = vsub.f32 %v16842_v11, %v9668_v34  ;;  %v9706_v59 = vsub.f32 %v16846_v16, %v9668_v34 }
0x1106   : > { %v9684_v39 = vpop.xlane.xlu1 %9683 }
0x1107   : > { %v9699_v10 = vsub.f32 %v9691_v55, %v9695_v14  ;;  %v9692_v47 = vmul.f32 0.00390625, %v9684_v39 }
0x1108   : > { %v9663_v32 = vpop.xlane.xlu0 %9662 }
0x1109   : > { %v9711_v4 = vadd.f32 1e-05, %v9699_v10  ;;  %v9700_v23 = vsub.f32 %v9692_v47, %v9696_v24  ;;  %v9669_v0 = vmul.f32 0.00390625, %v9663_v32 }
0x110a   : > { %v9666_v7 = vpop.xlane.xlu1 %9665 }
0x110b   : > { %13045 = vrsqrt.f32 %v9711_v4  ;;  %v9712_v43 = vadd.f32 1e-05, %v9700_v23  ;;  %v9670_v46 = vmul.f32 0.00390625, %v9666_v7  ;;  %v9697_v58 = vmul.f32 %v9669_v0, %v9669_v0 }
0x110c   : > { %v9687_v22 = vpop.xlane.xlu0 %9686  ;;  %v9707_v42 = vsub.f32 %v16862_v27, %v9669_v0  ;;  %v9708_v16 = vsub.f32 %v16866_v30, %v9669_v0 }
0x110d   : > { %13047 = vrsqrt.f32 %v9712_v43  ;;  %v9693_v1 = vmul.f32 0.00390625, %v9687_v22  ;;  %v9698_v35 = vmul.f32 %v9670_v46, %v9670_v46  ;;  %v9709_v39 = vsub.f32 %v16870_v29, %v9670_v46 }
0x110e   : > { %v9690_v40 = vpop.xlane.xlu1 %9689  ;;  %v9710_v24 = vsub.f32 %v16874_v38, %v9670_v46 }
0x110f   : > { %v9701_v13 = vsub.f32 %v9693_v1, %v9697_v58  ;;  %v9694_v37 = vmul.f32 0.00390625, %v9690_v40 }
0x1111   : > { %v9713_v53 = vadd.f32 1e-05, %v9701_v13  ;;  %v9702_v56 = vsub.f32 %v9694_v37, %v9698_v35 }
0x1113   : > { %13049 = vrsqrt.f32 %v9713_v53  ;;  %v9714_v36 = vadd.f32 1e-05, %v9702_v56 }
0x1115   : > { %v13046_v45 = vpop.eup %13045  ;;  %13051 = vrsqrt.f32 %v9714_v36 }
0x1116   : > { %v9719_v41 = vmul.f32 %v13046_v45, %v9703_v3  ;;  %v9720_v18 = vmul.f32 %v13046_v45, %v9704_v28 }
0x1117   : > { %v13048_v19 = vpop.eup %13047 }
0x1118   : > { %v9738_v49 = vmul.f32 %v9731_v17, %v9719_v41  ;;  %v9739_v9 = vmul.f32 %v9735_v63, %v9720_v18  ;;  %v9721_v6 = vmul.f32 %v13048_v19, %v9705_v8  ;;  %v9722_v44 = vmul.f32 %v13048_v19, %v9706_v59 }
0x111a   : > { %v16896_v50 = vadd.f32 %v9750_v26, %v9738_v49  ;;  %v16898_v31 = vadd.f32 %v9754_v61, %v9739_v9  ;;  %v9740_v2 = vmul.f32 %v9731_v17, %v9721_v6  ;;  %v9741_v52 = vmul.f32 %v9735_v63, %v9722_v44 }
0x111c   : > { %v16901_v14 = vadd.f32 %v9750_v26, %v9740_v2  ;;  %v16903_v11 = vadd.f32 %v9754_v61, %v9741_v52  ;;  %v9774_v34 = vmul.f32 0.044715, %v16898_v31  ;;  %v9773_v10 = vmul.f32 0.044715, %v16896_v50 }
0x111d   : > { %v13050_v55 = vpop.eup %13049 }
0x111e   : > { %v9723_v47 = vmul.f32 %v13050_v55, %v9707_v42  ;;  %v9724_v32 = vmul.f32 %v13050_v55, %v9708_v16  ;;  %v9776_v4 = vmul.f32 0.044715, %v16903_v11  ;;  %v9782_v23 = vmul.f32 %v9774_v34, %v16898_v31 }
0x111f   : > { %v13052_v27 = vpop.eup %13051  ;;  %v9775_v7 = vmul.f32 0.044715, %v16901_v14  ;;  %v9781_v30 = vmul.f32 %v9773_v10, %v16896_v50 }
0x1120   : > { %v9742_v0 = vmul.f32 %v9731_v17, %v9723_v47  ;;  %v9743_v43 = vmul.f32 %v9735_v63, %v9724_v32  ;;  %v9725_v22 = vmul.f32 %v13052_v27, %v9709_v39  ;;  %v9726_v58 = vmul.f32 %v13052_v27, %v9710_v24 }
0x1121   : > { %v9784_v29 = vmul.f32 %v9776_v4, %v16903_v11  ;;  %v9790_v1 = vmul.f32 %v9782_v23, %v16898_v31  ;;  %v9783_v38 = vmul.f32 %v9775_v7, %v16901_v14  ;;  %v9789_v46 = vmul.f32 %v9781_v30, %v16896_v50 }
0x1122   : > { %v16918_v40 = vadd.f32 %v9754_v61, %v9743_v43  ;;  %v9744_v13 = vmul.f32 %v9731_v17, %v9725_v22  ;;  %v9745_v35 = vmul.f32 %v9735_v63, %v9726_v58  ;;  %v16924_v15 = vadd.f32 %v9750_v26, %v9742_v0 }
0x1123   : > { %v9792_v37 = vmul.f32 %v9784_v29, %v16903_v11  ;;  %v9798_v12 = vadd.f32 %v9790_v1, %v16898_v31  ;;  %v9791_v53 = vmul.f32 %v9783_v38, %v16901_v14  ;;  %v9797_v56 = vadd.f32 %v9789_v46, %v16896_v50 }
0x1124   : > { %v16926_v36 = vadd.f32 %v9750_v26, %v9744_v13  ;;  %v16928_v3 = vadd.f32 %v9754_v61, %v9745_v35  ;;  %v9778_v28 = vmul.f32 0.044715, %v16918_v40  ;;  %v9777_v49 = vmul.f32 0.044715, %v16924_v15 }
0x1125   : > { %v9800_v45 = vadd.f32 %v9792_v37, %v16903_v11  ;;  %v9806_v17 = vmul.f32 0.7978846, %v9798_v12  ;;  %v9799_v63 = vadd.f32 %v9791_v53, %v16901_v14  ;;  %v9805_v8 = vmul.f32 0.7978846, %v9797_v56 }
0x1126   : > { %v9780_v59 = vmul.f32 0.044715, %v16928_v3  ;;  %v9786_v41 = vmul.f32 %v9778_v28, %v16918_v40  ;;  %v9779_v9 = vmul.f32 0.044715, %v16926_v36  ;;  %v9785_v2 = vmul.f32 %v9777_v49, %v16924_v15 }
0x1127   : > { %v9808_v18 = vmul.f32 0.7978846, %v9800_v45  ;;  %13053 = vtanh.f32 %v9806_v17  ;;  %v9807_v19 = vmul.f32 0.7978846, %v9799_v63  ;;  %v8796_v23 = vrot.slane %v16826_v51, %v17198_v33 }
0x1128   : > { %13055 = vtanh.f32 %v9805_v8  ;;  %v9788_v26 = vmul.f32 %v9780_v59, %v16928_v3  ;;  %v9794_v61 = vmul.f32 %v9786_v41, %v16918_v40  ;;  %v9787_v52 = vmul.f32 %v9779_v9, %v16926_v36 }
0x1129   : > { %13057 = vtanh.f32 %v9808_v18  ;;  %v9793_v34 = vmul.f32 %v9785_v2, %v16924_v15  ;;  %v9766_v7 = vmul.f32 0.5, %v16898_v31  ;;  %v8792_v43 = vrot.slane %v16826_v51, %v17196_v60 }
0x112a   : > { %13059 = vtanh.f32 %v9807_v19  ;;  %v9796_v6 = vmul.f32 %v9788_v26, %v16928_v3  ;;  %v9802_v44 = vadd.f32 %v9794_v61, %v16918_v40  ;;  %v9795_v55 = vmul.f32 %v9787_v52, %v16926_v36 }
0x112b   : > { %v9801_v10 = vadd.f32 %v9793_v34, %v16924_v15  ;;  %v9765_v22 = vmul.f32 0.5, %v16896_v50  ;;  %v9768_v1 = vmul.f32 0.5, %v16903_v11  ;;  %v9767_v13 = vmul.f32 0.5, %v16901_v14 }
0x112c   : > { %v9804_v42 = vadd.f32 %v9796_v6, %v16928_v3  ;;  %v9810_v16 = vmul.f32 0.7978846, %v9802_v44  ;;  %v9803_v24 = vadd.f32 %v9795_v55, %v16926_v36  ;;  %v11405_v31 = vadd.f32 %v16836_v54, %v8796_v23 }
0x112d   : > { %v9809_v47 = vmul.f32 0.7978846, %v9801_v10  ;;  %v11407_v37 = vadd.f32 %v16844_v20, %v8796_v23  ;;  %v11404_v60 = vadd.f32 %v16832_v21, %v8792_v43  ;;  %v11406_v51 = vadd.f32 %v16840_v57, %v8792_v43 }
0x112e   : > { %v9812_v39 = vmul.f32 0.7978846, %v9804_v42  ;;  %13061 = vtanh.f32 %v9810_v16  ;;  %v9811_v4 = vmul.f32 0.7978846, %v9803_v24  ;;  %v9770_v17 = vmul.f32 0.5, %v16918_v40 }
0x112f   : > { %v9772_v54 = vmul.f32 0.5, %v16928_v3  ;;  %v11409_v21 = vadd.f32 %v16864_v5, %v8796_v23  ;;  %v11411_v19 = vadd.f32 %v16872_v25, %v8796_v23  ;;  %v9769_v61 = vmul.f32 0.5, %v16924_v15  ;;  %v11279_v15 = vld [vmem:[#allocation35] ss:$0 sm:$0xff] }
0x1130   : > { %13063 = vtanh.f32 %v9812_v39  ;;  %v9771_v49 = vmul.f32 0.5, %v16926_v36  ;;  %v11408_v2 = vadd.f32 %v16860_v48, %v8792_v43  ;;  %v11410_v52 = vadd.f32 %v16868_v62, %v8792_v43 }
0x1131   : > { %v13054_v32 = vpop.eup %13053  ;;  %13065 = vtanh.f32 %v9809_v47 }
0x1132   : > { %v13056_v27 = vpop.eup %13055  ;;  %v9822_v30 = vadd.f32 1.0, %v13054_v32  ;;  %13067 = vtanh.f32 %v9811_v4 }
0x1133   : > { %v13058_v0 = vpop.eup %13057  ;;  %v9821_v58 = vadd.f32 1.0, %v13056_v27 }
0x1134   : > { %v13060_v29 = vpop.eup %13059  ;;  %v9824_v38 = vadd.f32 1.0, %v13058_v0  ;;  %v9830_v46 = vmul.f32 %v9822_v30, %v9766_v7 }
0x1135   : > { %v9823_v33 = vadd.f32 1.0, %v13060_v29  ;;  %v9829_v35 = vmul.f32 %v9821_v58, %v9765_v22 }
0x1136   : > { %v9832_v12 = vmul.f32 %v9824_v38, %v9768_v1  ;;  %v9838_v56 = vadd.f32 %v11405_v31, %v9830_v46 }
0x1137   : > { %v9831_v50 = vmul.f32 %v9823_v33, %v9767_v13  ;;  %v9837_v11 = vadd.f32 %v11404_v60, %v9829_v35 }
0x1138   : > { %v13062_v53 = vpop.eup %13061  ;;  %v9840_v28 = vadd.f32 %v11407_v37, %v9832_v12 }
0x1139   : > { %v9839_v45 = vadd.f32 %v11406_v51, %v9831_v50  ;;  %v9826_v14 = vadd.f32 1.0, %v13062_v53 }
0x113a   : > { %v13064_v63 = vpop.eup %13063  ;;  %v9846_v8 = vpack.c.bf16 %v9840_v28, %v9838_v56 }
0x113b   : > { %v9845_v59 = vpack.c.bf16 %v9839_v45, %v9837_v11  ;;  %v9828_v20 = vadd.f32 1.0, %v13064_v63  ;;  %v9834_v41 = vmul.f32 %v9826_v14, %v9770_v17  ;;  %v13066_v18 = vpop.eup %13065 }
0x113c   : > { %10016 = vmatprep.mubr.bf16.mxu0 %v9846_v8  ;;  %v13068_v57 = vpop.eup %13067  ;;  %v9825_v40 = vadd.f32 1.0, %v13066_v18 }
0x113d   : > { %10017 = vmatmul.mubr.bf16.vlgmr.msra.gmra.mrb[64].mxu0 %v9845_v59  ;;  %v9836_v26 = vmul.f32 %v9828_v20, %v9772_v54  ;;  %v9827_v9 = vadd.f32 1.0, %v13068_v57  ;;  %v9842_v6 = vadd.f32 %v11409_v21, %v9834_v41 }
0x113e   : > { %v9833_v3 = vmul.f32 %v9825_v40, %v9769_v61  ;;  %v11296_v40 = vld [vmem:[#allocation37] ss:$0 sm:$0xff] }
0x113f   : > { %v9844_v44 = vadd.f32 %v11411_v19, %v9836_v26  ;;  %v9835_v5 = vmul.f32 %v9827_v9, %v9771_v49 }
0x1140   : > { %v9841_v16 = vadd.f32 %v11408_v2, %v9833_v3 }
0x1141   : > { %v9848_v42 = vpack.c.bf16 %v9844_v44, %v9842_v6  ;;  %v9843_v34 = vadd.f32 %v11410_v52, %v9835_v5  ;;  %v11297_v44 = vld [vmem:[#allocation38] ss:$0 sm:$0xff] }
0x1143   : > { %10024 = vmatprep.mubr.bf16.mxu0 %v9848_v42  ;;  %v9847_v25 = vpack.c.bf16 %v9843_v34, %v9841_v16 }
0x1145   : > { %10025 = vmatmul.mubr.bf16.gmra.mrb[68].mxu0 %v9847_v25 }
0x1210   : > { %v11320_v55 = vpop.f32.mrb[64].mxu0 }
0x1211   : > { %v11321_v39 = vpop.f32.mrb[65].mxu0 }
0x1212   : > { %v11322_v10 = vadd.f32 %v11321_v39, %v11320_v55  ;;  %v11323_v36 = vpop.f32.mrb[66].mxu0 }
0x1213   : > { %v11324_v24 = vpop.f32.mrb[67].mxu0 }
0x1214   : > { %v10019_v47 = vadd.f32 %v11322_v10, %v11279_v15  ;;  %v11325_v32 = vadd.f32 %v11324_v24, %v11323_v36 }
0x1216   : > { %v16968_v4 = vadd.f32 %v11325_v32, %v11279_v15  ;;  %10035 = vadd.xlane.f32.xlu0 %v10019_v47  ;;  %v10047_v48 = vmul.f32 %v10019_v47, %v10019_v47 }
0x1218   : > { %10037 = vadd.xlane.f32.xlu1 %v16968_v4  ;;  %v11326_v62 = vpop.f32.mrb[68].mxu0  ;;  %v10048_v23 = vmul.f32 %v16968_v4, %v16968_v4 }
0x1219   : > { %v11327_v27 = vpop.f32.mrb[69].mxu0 }
0x121a   : > { %10051 = vadd.xlane.f32.xlu0 %v10047_v48  ;;  %v11328_v7 = vadd.f32 %v11327_v27, %v11326_v62  ;;  %v11329_v30 = vpop.f32.mrb[70].mxu0 }
0x121b   : > { %v11330_v0 = vpop.f32.mrb[71].mxu0 }
0x121c   : > { %10053 = vadd.xlane.f32.xlu1 %v10048_v23  ;;  %v10027_v43 = vadd.f32 %v11328_v7, %v11279_v15  ;;  %v11331_v22 = vadd.f32 %v11330_v0, %v11329_v30 }
0x121e   : > { %v16973_v58 = vadd.f32 %v11331_v22, %v11279_v15  ;;  %10039 = vadd.xlane.f32.xlu0 %v10027_v43  ;;  %v10049_v29 = vmul.f32 %v10027_v43, %v10027_v43 }
0x1220   : > { %10041 = vadd.xlane.f32.xlu1 %v16973_v58  ;;  %v10050_v1 = vmul.f32 %v16973_v58, %v16973_v58 }
0x1222   : > { %10055 = vadd.xlane.f32.xlu0 %v10049_v29 }
0x1224   : > { %10057 = vadd.xlane.f32.xlu1 %v10050_v1 }
0x12a3   : > { %v10036_v38 = vpop.xlane.xlu0 %10035 }
0x12a4   : > { %v10043_v46 = vmul.f32 0.015625, %v10036_v38 }
0x12a5   : > { %v10038_v13 = vpop.xlane.xlu1 %10037 }
0x12a6   : > { %v10044_v33 = vmul.f32 0.015625, %v10038_v13  ;;  %v10063_v31 = vmul.f32 %v10043_v46, %v10043_v46  ;;  %v10071_v19 = vsub.f32 %v10019_v47, %v10043_v46 }
0x12a7   : > { %v10052_v35 = vpop.xlane.xlu0 %10051 }
0x12a8   : > { %v10059_v37 = vmul.f32 0.015625, %v10052_v35  ;;  %v10064_v60 = vmul.f32 %v10044_v33, %v10044_v33  ;;  %v10072_v49 = vsub.f32 %v16968_v4, %v10044_v33 }
0x12a9   : > { %v10054_v12 = vpop.xlane.xlu1 %10053 }
0x12aa   : > { %v10067_v51 = vsub.f32 %v10059_v37, %v10063_v31  ;;  %v10060_v50 = vmul.f32 0.015625, %v10054_v12 }
0x12ab   : > { %v10040_v28 = vpop.xlane.xlu0 %10039 }
0x12ac   : > { %v10075_v53 = vadd.f32 1e-05, %v10067_v51  ;;  %v10068_v56 = vsub.f32 %v10060_v50, %v10064_v60  ;;  %v10045_v11 = vmul.f32 0.015625, %v10040_v28 }
0x12ad   : > { %v10042_v17 = vpop.xlane.xlu1 %10041 }
0x12ae   : > { %13069 = vrsqrt.f32 %v10075_v53  ;;  %v10076_v45 = vadd.f32 1e-05, %v10068_v56  ;;  %v10046_v14 = vmul.f32 0.015625, %v10042_v17  ;;  %v10065_v8 = vmul.f32 %v10045_v11, %v10045_v11 }
0x12af   : > { %v10056_v63 = vpop.xlane.xlu0 %10055  ;;  %v10073_v16 = vsub.f32 %v10027_v43, %v10045_v11 }
0x12b0   : > { %13071 = vrsqrt.f32 %v10076_v45  ;;  %v10061_v59 = vmul.f32 0.015625, %v10056_v63  ;;  %v10066_v20 = vmul.f32 %v10046_v14, %v10046_v14  ;;  %v10074_v25 = vsub.f32 %v16973_v58, %v10046_v14 }
0x12b1   : > { %v10058_v54 = vpop.xlane.xlu1 %10057 }
0x12b2   : > { %v10069_v41 = vsub.f32 %v10061_v59, %v10065_v8  ;;  %v10062_v18 = vmul.f32 0.015625, %v10058_v54 }
0x12b4   : > { %v10077_v21 = vadd.f32 1e-05, %v10069_v41  ;;  %v10070_v57 = vsub.f32 %v10062_v18, %v10066_v20 }
0x12b6   : > { %13073 = vrsqrt.f32 %v10077_v21  ;;  %v10078_v26 = vadd.f32 1e-05, %v10070_v57 }
0x12b8   : > { %v13070_v61 = vpop.eup %13069  ;;  %13075 = vrsqrt.f32 %v10078_v26 }
0x12b9   : > { %v10083_v9 = vmul.f32 %v13070_v61, %v10071_v19 }
0x12ba   : > { %v13072_v6 = vpop.eup %13071 }
0x12bb   : > { %v10093_v3 = vmul.f32 %v11296_v40, %v10083_v9  ;;  %v10084_v2 = vmul.f32 %v13072_v6, %v10072_v49 }
0x12bd   : > { %v10103_v52 = vadd.f32 %v11297_v44, %v10093_v3  ;;  %v10094_v5 = vmul.f32 %v11296_v40, %v10084_v2 }
0x12bf   : > { %10107 = vst [vmem:[%s1077_s25] sm:$0xff] %v10103_v52  ;;  %v10104_v42 = vadd.f32 %v11297_v44, %v10094_v5 }
0x12c0   : > { %v13074_v34 = vpop.eup %13073 }
0x12c1   : > { %10108 = vst [vmem:[%s1077_s25 + $0x8] sm:$0xff] %v10104_v42  ;;  %v10085_v55 = vmul.f32 %v13074_v34, %v10073_v16 }
0x12c2   : > { %v13076_v15 = vpop.eup %13075 }
0x12c3   : > { %v10095_v39 = vmul.f32 %v11296_v40, %v10085_v55  ;;  %v10086_v10 = vmul.f32 %v13076_v15, %v10074_v25 }
0x12c5   : > { %v10105_v36 = vadd.f32 %v11297_v44, %v10095_v39  ;;  %v10096_v24 = vmul.f32 %v11296_v40, %v10086_v10 }
0x12c7   : > { %10109 = vst [vmem:[%s1077_s25 + $0x10] sm:$0xff] %v10105_v36  ;;  %v10106_v47 = vadd.f32 %v11297_v44, %v10096_v24 }
0x12c9   : > { %10110 = vst [vmem:[%s1077_s25 + $0x18] sm:$0xff] %v10106_v47 }
0x12ca   : > { %13762 = shalt.err (!%p13759_p10)
}
0x12cb   : > { %s13763_s1 = scalar_lea.hbm %s16987_s8, 512  ;;  %s13767_s30 = scalar_lea.hbm %s17229_s5, 1024 }
0x12cc   : > { %p13764_p2 = scmp.ne.s32.totalorder %s16987_s8, %s13763_s1  ;;  %p13768_p7 = scmp.lt.u32.totalorder %s16987_s8, %s17229_s5 }
0x12cd   : > { %p13769_p8 = scmp.lt.u32.totalorder %s13767_s30, %s13763_s1  ;;  %p13771_p13 = scmp.lt.u32.totalorder %s13763_s1, %s16987_s8 }
0x12ce   : > { %p13765_p3 = pnand %p13764_p2, %p17230_p0 }
0x12cf   : > { %p13770_p11 = por %p13769_p8, %p13768_p7 }
0x12d0   : > { %p13766_p4 = pneg %p13765_p3 }
0x12d1   : > { %p13772_p1 = por %p13771_p13, %p13770_p11 }
0x12d3   : > { %p13773_p6 = pnand %p13772_p1, %p13766_p4 }
0x12d5   : > { %13776 = shalt.err (!%p13773_p6)
}
0x12d6   : > { %s13899_s27 = smov 128   ;;  %s13900_s10 = smov 8  }
0x12d7   : > { %11588 = dma.vmem_to_hbm [thread:$0]  (%p17230_p0), %s16989_s29, 512, %s16987_s8, %s16993_s14, %s13899_s27, %s13899_s27, %s13900_s10  }
0x12d8 PF: > { %s17231_s3 = sld [smem:[#allocation58_spill]]  ;;  %s17232_s24 = sld [smem:[#allocation55_spill]] }
0x12d9   : > { %s17233_s9 = sld [smem:[#allocation63_spill]] }
0x12de   : > { %p11715_p5 = scmp.ge.s32.totalorder %s17231_s3, 2  ;;  %s10140_s4 = sand.u32 1, %s17232_s24  }
0x12df   : > { %p17234_p9 = scmp.ne.s32.totalorder %s17233_s9, 0  ;;  %s10141_s1 = scalar_lea.sflag [#allocation4], %s10140_s4 }
0x12e1   : > { %p11664_p12 = pnand %p11715_p5, %p17234_p9 }
0x12e3   : > { %13846 = dma.done.wait (!%p11664_p12), %s10141_s1, 512  }
0x12e4   : > { %13848 = vsyncadd (!%p11664_p12), %s10141_s1, 4294966784  ;;  %s17235_s30 = sld [smem:[#allocation60_spill]]  ;;  %s17236_s29 = sld [smem:[#allocation56_spill]] }
0x12e5   : > { %s17237_s2 = sld [smem:[#allocation57_spill]]  ;;  %s17238_s6 = sld [smem:[#allocation61_spill]] }
0x12ea   : > { %p48_p10 = scmp.ge.s32.totalorder %s17235_s30, 4  }
0x12ec   :  { %50 = sbr.rel (!%p48_p10) target bundleno = 33 (0x21), region = 264 }
0x12f3   :  { %10146 = vsyncpa [#allocation3], 1 }
0x12f4   :  { %10148 = vsyncpa [#allocation3 + $0x1], 1 }
0x12f5   :  { %10149 = vsyncpa [#allocation6], 1 }
0x12f6   :  { %10150 = vsyncpa [#allocation9], 1 }
0x12f7   :  { %10151 = vsyncpa [#allocation12], 1 }
0x12f8   :  { %10152 = vsyncpa [#allocation15], 1 }
0x12f9   :  { %10153 = vsyncpa [#allocation18], 1 }
0x12fa   :  { %10154 = vsyncpa [#allocation21], 1 }
0x12fb   :  { %10155 = vsyncpa [#allocation24], 1 }
0x12fc   :  { %10156 = vsyncpa [#allocation27], 1 }
0x12fd   :  { %10157 = vsyncpa [#allocation30], 1 }
0x12fe   :  { %10158 = vsyncpa [#allocation33], 1 }
0x12ff   :  { %10159 = vsyncpa [#allocation36], 1 }
0x1300   :  { %10160 = vsyncpa [#allocation39], 1 }
0x1301   :  { %10161 = vsyncpa [#allocation4], 1 }
0x1302   :  { %10163 = vsyncpa [#allocation4 + $0x1], 1 }

</bundles_post_ra>
